<compile_context>
chip_gen: v5e
topology: v5e:2x2
jax: 0.10.0
libtpu: 0.0.40
codegen_flags: <defaults>
</compile_context>

<pallas_src>
import functools

import jax
import jax.numpy as jnp
from jax.experimental import pallas as pl
from jax.experimental.pallas import tpu as pltpu

_BN_EPS = 1e-5
_LRELU_SLOPE = 0.2
_LANE = 128                            # TPU lane width
_MAX_TILE_M = 1024                     # big tiles amortize ~0.35us/step pipeline overhead
_VMEM_LIMIT = 32 * 1024 * 1024         # safe on v5e/v6e (128 MiB phys) and v7x (64 MiB phys)
_MAX_RESIDENT_Y_BYTES = 16 * 1024 * 1024   # f32 Y scratch budget (conservative for v7x)


def _round_up(x, m):
    return (x + m - 1) // m * m


# ---------------------------------------------------------------------------
# Fused Pallas kernel: matmul + BN batch-stats + fold + affine + LeakyReLU
# ---------------------------------------------------------------------------
def _fused_conv_bn_lrelu_kernel(p_ref, w_ref, gb_ref, o_ref,
                                y_scr, s0_scr, s1_scr, ss_scr,
                                *, tile_m, m_true):
    phase = pl.program_id(0)   # 0: matmul + stats,  1: fold BN + apply + write
    i = pl.program_id(1)       # M tile index

    @pl.when((phase == 0) & (i == 0))
    def _init_stats():
        s0_scr[...] = jnp.zeros_like(s0_scr)
        s1_scr[...] = jnp.zeros_like(s1_scr)

    @pl.when(phase == 0)
    def _matmul_stats():
        # bf16 operands, f32 MXU accumulation; Y stays resident in VMEM scratch.
        y = jnp.dot(p_ref[...], w_ref[...], preferred_element_type=jnp.float32)
        off = pl.multiple_of(i * tile_m, tile_m)
        y_scr[pl.ds(off, tile_m), :] = y
        s0_scr[...] += jnp.sum(y, axis=0, keepdims=True)        # [1, Cp] channel sums
        s1_scr[...] += jnp.sum(y * y, axis=0, keepdims=True)    # [1, Cp] channel sumsq

    @pl.when((phase == 1) & (i == 0))
    def _fold_bn():
        # Train-mode BatchNorm: biased variance over the full (unpadded) batch axis.
        inv_m = jnp.float32(1.0 / m_true)
        mean = s0_scr[...] * inv_m
        var = jnp.maximum(s1_scr[...] * inv_m - mean * mean, 0.0)
        scale = gb_ref[0:1, :] * jax.lax.rsqrt(var + jnp.float32(_BN_EPS))
        ss_scr[0:1, :] = scale
        ss_scr[1:2, :] = gb_ref[1:2, :] - mean * scale

    @pl.when(phase == 1)
    def _apply():
        off = pl.multiple_of(i * tile_m, tile_m)
        y = y_scr[pl.ds(off, tile_m), :]
        z = y * ss_scr[0:1, :] + ss_scr[1:2, :]
        o_ref[...] = jnp.where(z >= 0, z, jnp.float32(_LRELU_SLOPE) * z).astype(o_ref.dtype)


# ---------------------------------------------------------------------------
# Host-side glue
# ---------------------------------------------------------------------------
def _im2col_nhwc(x, k, stride, pad):
    """x: [N, H, W, C] -> patches [N*Ho*Wo, k*k*C] bf16, feature order (kh, kw, c)."""
    x = x.astype(jnp.bfloat16)
    N, H, W, C = x.shape
    xp = jnp.pad(x, ((0, 0), (pad, pad), (pad, pad), (0, 0)))
    Ho = (H + 2 * pad - k) // stride + 1
    Wo = (W + 2 * pad - k) // stride + 1
    cols = []
    for i in range(k):
        for j in range(k):
            cols.append(xp[:, i:i + stride * Ho:stride, j:j + stride * Wo:stride, :])
    p = jnp.stack(cols, axis=3)                      # [N, Ho, Wo, k*k, C]
    p = p.reshape(N * Ho * Wo, k * k * C)            # [M, K] bf16
    return p, Ho, Wo


def conv_bn_lrelu_nhwc(x, w, gamma, beta, *, kernel_size, stride, padding, out_dtype):
    """One ConvLayers block on an NHWC activation. Returns NHWC (out_dtype)."""
    N = x.shape[0]
    c_out, c_in, kh, kw = w.shape

    # Pad input channels to a multiple of 8 so K = kh*kw*c_in_p is lane aligned
    # (128 for the default k=4). Only the first layer (c_in=3) actually pads.
    c_in_p = _round_up(c_in, 8)
    if c_in_p != c_in:
        x = jnp.pad(x, ((0, 0), (0, 0), (0, 0), (0, c_in_p - c_in)))

    p, Ho, Wo = _im2col_nhwc(x, kernel_size, stride, padding)    # [M, K] bf16
    M, K = p.shape

    Cp = _round_up(c_out, _LANE)
    tile_m = min(_MAX_TILE_M, _round_up(M, 8))
    Mp = _round_up(M, tile_m)
    if Mp != M:
        # Zero rows contribute nothing to BN sums (mean/var divide by the true M).
        p = jnp.pad(p, ((0, Mp - M), (0, 0)))
    num_tiles = Mp // tile_m

    # Resident-Y fused path: f32 Y scratch must fit VMEM on every generation.
    assert Mp * Cp * 4 <= _MAX_RESIDENT_Y_BYTES, "resident-Y scratch too large for fused path"

    # Weight: OIHW -> (kh, kw, c_in_p, c_out) so rows match the patch feature order.
    wt = jnp.transpose(w, (2, 3, 1, 0))
    if c_in_p != c_in:
        wt = jnp.pad(wt, ((0, 0), (0, 0), (0, c_in_p - c_in), (0, 0)))
    wmat = wt.reshape(K, c_out).astype(jnp.bfloat16)
    if Cp != c_out:
        wmat = jnp.pad(wmat, ((0, 0), (0, Cp - c_out)))

    gb = jnp.stack([jnp.pad(gamma.astype(jnp.float32), (0, Cp - c_out)),
                    jnp.pad(beta.astype(jnp.float32), (0, Cp - c_out))], axis=0)  # [2, Cp]

    kernel = functools.partial(_fused_conv_bn_lrelu_kernel, tile_m=tile_m, m_true=M)

    out = pl.pallas_call(
        kernel,
        out_shape=jax.ShapeDtypeStruct((Mp, Cp), out_dtype),
        grid=(2, num_tiles),
        in_specs=[
            # Phase 0 streams tile i; phase 1 pins block 0 (no redundant re-fetch).
            pl.BlockSpec((tile_m, K), lambda ph, i: (i * (1 - ph), 0)),
            pl.BlockSpec((K, Cp), lambda ph, i: (0, 0)),
            pl.BlockSpec((2, Cp), lambda ph, i: (0, 0)),
        ],
        # Phase 0 parks on block 0 (never written there); phase 1 writes tile i.
        out_specs=pl.BlockSpec((tile_m, Cp), lambda ph, i: (i * ph, 0)),
        scratch_shapes=[
            pltpu.VMEM((Mp, Cp), jnp.float32),   # resident Y
            pltpu.VMEM((1, Cp), jnp.float32),    # channel sum
            pltpu.VMEM((1, Cp), jnp.float32),    # channel sum of squares
            pltpu.VMEM((2, Cp), jnp.float32),    # folded scale / shift
        ],
        compiler_params=pltpu.CompilerParams(
            dimension_semantics=("arbitrary", "arbitrary"),
            vmem_limit_bytes=_VMEM_LIMIT,
        ),
        cost_estimate=pl.CostEstimate(
            flops=2 * M * K * c_out,
            transcendentals=0,
            bytes_accessed=(Mp * K * 2 + K * Cp * 2 + 2 * Cp * 4
                            + Mp * Cp * jnp.dtype(out_dtype).itemsize),
        ),
    )(p, wmat, gb)

    return out[:M, :c_out].reshape(N, Ho, Wo, c_out)


def conv_layers_forward(x_nchw, params, *, kernel_size=4, stride=2, padding=1):
    """ConvLayers.forward: NCHW in, NCHW out. Internally NHWC; bf16 between layers."""
    x = jnp.transpose(x_nchw, (0, 2, 3, 1))
    n_layers = len(params)
    for li, (w, g, b) in enumerate(params):
        out_dtype = jnp.float32 if li == n_layers - 1 else jnp.bfloat16
        x = conv_bn_lrelu_nhwc(x, w, g, b, kernel_size=kernel_size, stride=stride,
                               padding=padding, out_dtype=out_dtype)
    return jnp.transpose(x, (0, 3, 1, 2))


def make_params(num_layers=4, num_base_chans=16, kernel_size=4, key=None):
    """Deterministic params mimicking nn.Conv2d default init + BN defaults (gamma=1, beta=0)."""
    if key is None:
        key = jax.random.PRNGKey(0)
    params = []
    c_in = 3
    c_out = num_base_chans
    for i in range(num_layers):
        key, wk = jax.random.split(key)
        fan_in = c_in * kernel_size * kernel_size
        bound = 1.0 / (fan_in ** 0.5)
        w = jax.random.uniform(wk, (c_out, c_in, kernel_size, kernel_size),
                               jnp.float32, -bound, bound)
        gamma = jnp.ones((c_out,), jnp.float32)
        beta = jnp.zeros((c_out,), jnp.float32)
        params.append((w, gamma, beta))
        c_in = c_out
        c_out = num_base_chans * 2 ** (i + 1)
    return params


def _reference(x, params, *, kernel_size=4, stride=2, padding=1, matmul_dtype=jnp.float32):
    """Pure-JAX reference. matmul_dtype=bf16 matches the kernel's MXU operand precision."""
    for (w, g, b) in params:
        y = jax.lax.conv_general_dilated(
            x.astype(matmul_dtype), w.astype(matmul_dtype), (stride, stride),
            [(padding, padding), (padding, padding)],
            dimension_numbers=('NCHW', 'OIHW', 'NCHW'),
            preferred_element_type=jnp.float32)
        mean = jnp.mean(y, axis=(0, 2, 3), keepdims=True)
        var = jnp.mean((y - mean) ** 2, axis=(0, 2, 3), keepdims=True)
        yn = (y - mean) * jax.lax.rsqrt(var + _BN_EPS)
        yn = yn * g.reshape(1, -1, 1, 1) + b.reshape(1, -1, 1, 1)
        x = jnp.where(yn >= 0, yn, _LRELU_SLOPE * yn)
    return x


if __name__ == "__main__":
    # ConvLayers defaults: num_layers=4, num_base_chans=16, kernel_size=4, stride=2, padding=1.
    # c_in is fixed to 3 by _make_layers. Spatial 64 -> 32/16/8/4, so layer 1 has
    # M = 2*32*32 = 2048 rows -> a real multi-tile grid (exercises cross-tile BN stats
    # and the resident-Y / two-phase fused path).
    key = jax.random.PRNGKey(0)
    kx, kp = jax.random.split(key)
    x = jax.random.normal(kx, (2, 3, 64, 64), jnp.float32)
    params = make_params(num_layers=4, num_base_chans=16, kernel_size=4, key=kp)

    fwd = jax.jit(functools.partial(conv_layers_forward, kernel_size=4, stride=2, padding=1))
    out = jax.block_until_ready(fwd(x, params))
    assert out.shape == (2, 128, 4, 4), out.shape

    # Tight check vs a reference using the same bf16 MXU operand precision (f32 accumulate).
    ref_bf16 = jax.block_until_ready(_reference(x, params, matmul_dtype=jnp.bfloat16))
    assert jnp.allclose(out, ref_bf16, atol=2e-2, rtol=2e-2), \
        float(jnp.max(jnp.abs(out - ref_bf16)))

    # Loose check vs a full-f32 reference: bf16 MXU operands + bf16 inter-layer activations
    # shift numerics slightly, and per-channel BatchNorm over a small batch amplifies drift.
    ref_f32 = jax.block_until_ready(_reference(x, params, matmul_dtype=jnp.float32))
    assert jnp.allclose(out, ref_f32, atol=1.5e-1, rtol=1.5e-1), \
        float(jnp.max(jnp.abs(out - ref_f32)))

    print("KERNEL_OK")
</pallas_src>

<mosaic_0001>
module attributes {stable_mosaic.version = 11 : i64} {
  func.func @_fused_conv_bn_lrelu_kernel(%arg0: i32, %arg1: i32, %arg2: memref<1024x128xbf16, #tpu.memory_space<vmem>>, %arg3: memref<128x128xbf16, #tpu.memory_space<vmem>>, %arg4: memref<2x128xf32, #tpu.memory_space<vmem>>, %arg5: memref<1024x128xbf16, #tpu.memory_space<vmem>>, %arg6: memref<2048x128xf32, #tpu.memory_space<vmem>>, %arg7: memref<1x128xf32, #tpu.memory_space<vmem>>, %arg8: memref<1x128xf32, #tpu.memory_space<vmem>>, %arg9: memref<2x128xf32, #tpu.memory_space<vmem>>) attributes {dimension_semantics = [#tpu.dimension_semantics<arbitrary>, #tpu.dimension_semantics<arbitrary>], iteration_bounds = array<i64: 2, 2>, scalar_prefetch = 0 : i64, scratch_operands = 4 : i64, tpu.core_type = #tpu.core_type<tc>, window_params = [{transform_indices = @transform_0, window_bounds = array<i64: 1024, 128>}, {pipeline_mode = #tpu.pipeline_mode<synchronous>, transform_indices = @transform_1, window_bounds = array<i64: 128, 128>}, {pipeline_mode = #tpu.pipeline_mode<synchronous>, transform_indices = @transform_2, window_bounds = array<i64: 2, 128>}, {transform_indices = @transform_3, window_bounds = array<i64: 1024, 128>}]} {
    %c0_i32 = arith.constant 0 : i32
    %0 = arith.cmpi eq, %arg0, %c0_i32 : i32
    %c0_i32_0 = arith.constant 0 : i32
    %1 = arith.cmpi eq, %arg1, %c0_i32_0 : i32
    %2 = arith.andi %0, %1 : i1
    %3 = arith.extui %2 : i1 to i32
    %c0_i32_1 = arith.constant 0 : i32
    %4 = arith.cmpi ne, %3, %c0_i32_1 : i32
    scf.if %4 {
      %cst = arith.constant 0.000000e+00 : f32
      %16 = vector.broadcast %cst : f32 to vector<1x128xf32>
      %c0 = arith.constant 0 : index
      %c0_8 = arith.constant 0 : index
      %17 = vector.load %arg7[%c0, %c0_8] : memref<1x128xf32, #tpu.memory_space<vmem>>, vector<1x128xf32>
      tpu.vector_store %arg7[%c0, %c0_8], %16 {strides = array<i32>} : memref<1x128xf32, #tpu.memory_space<vmem>>, vector<1x128xf32>,
      %cst_9 = arith.constant 0.000000e+00 : f32
      %18 = vector.broadcast %cst_9 : f32 to vector<1x128xf32>
      %c0_10 = arith.constant 0 : index
      %c0_11 = arith.constant 0 : index
      %19 = vector.load %arg8[%c0_10, %c0_11] : memref<1x128xf32, #tpu.memory_space<vmem>>, vector<1x128xf32>
      tpu.vector_store %arg8[%c0_10, %c0_11], %18 {strides = array<i32>} : memref<1x128xf32, #tpu.memory_space<vmem>>, vector<1x128xf32>,
    } else {
    }
    %c0_i32_2 = arith.constant 0 : i32
    %5 = arith.cmpi eq, %arg0, %c0_i32_2 : i32
    %6 = arith.extui %5 : i1 to i32
    %c0_i32_3 = arith.constant 0 : i32
    %7 = arith.cmpi ne, %6, %c0_i32_3 : i32
    scf.if %7 {
      %c0 = arith.constant 0 : index
      %c0_8 = arith.constant 0 : index
      %16 = vector.load %arg2[%c0, %c0_8] : memref<1024x128xbf16, #tpu.memory_space<vmem>>, vector<1024x128xbf16>
      %c0_9 = arith.constant 0 : index
      %c0_10 = arith.constant 0 : index
      %17 = vector.load %arg3[%c0_9, %c0_10] : memref<128x128xbf16, #tpu.memory_space<vmem>>, vector<128x128xbf16>
      %cst = arith.constant dense<0.000000e+00> : vector<1024x128xf32>
      %18 = tpu.matmul %16, %17, %cst {dimension_numbers = #tpu.dot_dimension_numbers<[1], [0], [0], [1], [0, 0, 1, 1], [], []>} : vector<1024x128xbf16>, vector<128x128xbf16>, vector<1024x128xf32> -> vector<1024x128xf32>
      %c1024_i32 = arith.constant 1024 : i32
      %19 = arith.muli %arg1, %c1024_i32 : i32
      %20 = tpu.assume_multiple %19, 1024 : i32
      %21 = arith.index_cast %20 : i32 to index
      %c0_11 = arith.constant 0 : index
      %22 = vector.load %arg6[%21, %c0_11] : memref<2048x128xf32, #tpu.memory_space<vmem>>, vector<1024x128xf32>
      tpu.vector_store %arg6[%21, %c0_11], %18 {strides = array<i32>} : memref<2048x128xf32, #tpu.memory_space<vmem>>, vector<1024x128xf32>,
      %c0_12 = arith.constant 0 : index
      %c0_13 = arith.constant 0 : index
      %23 = vector.load %arg7[%c0_12, %c0_13] : memref<1x128xf32, #tpu.memory_space<vmem>>, vector<1x128xf32>
      %cst_14 = arith.constant dense<0.000000e+00> : vector<128xf32>
      %24 = vector.multi_reduction <add>, %18, %cst_14 [0] : vector<1024x128xf32> to vector<128xf32>
      %25 = vector.shape_cast %24 : vector<128xf32> to vector<1x128xf32>
      %26 = arith.addf %23, %25 : vector<1x128xf32>
      %c0_15 = arith.constant 0 : index
      %c0_16 = arith.constant 0 : index
      %27 = vector.load %arg7[%c0_15, %c0_16] : memref<1x128xf32, #tpu.memory_space<vmem>>, vector<1x128xf32>
      tpu.vector_store %arg7[%c0_15, %c0_16], %26 {strides = array<i32>} : memref<1x128xf32, #tpu.memory_space<vmem>>, vector<1x128xf32>,
      %c0_17 = arith.constant 0 : index
      %c0_18 = arith.constant 0 : index
      %28 = vector.load %arg8[%c0_17, %c0_18] : memref<1x128xf32, #tpu.memory_space<vmem>>, vector<1x128xf32>
      %29 = arith.mulf %18, %18 : vector<1024x128xf32>
      %cst_19 = arith.constant dense<0.000000e+00> : vector<128xf32>
      %30 = vector.multi_reduction <add>, %29, %cst_19 [0] : vector<1024x128xf32> to vector<128xf32>
      %31 = vector.shape_cast %30 : vector<128xf32> to vector<1x128xf32>
      %32 = arith.addf %28, %31 : vector<1x128xf32>
      %c0_20 = arith.constant 0 : index
      %c0_21 = arith.constant 0 : index
      %33 = vector.load %arg8[%c0_20, %c0_21] : memref<1x128xf32, #tpu.memory_space<vmem>>, vector<1x128xf32>
      tpu.vector_store %arg8[%c0_20, %c0_21], %32 {strides = array<i32>} : memref<1x128xf32, #tpu.memory_space<vmem>>, vector<1x128xf32>,
    } else {
    }
    %c1_i32 = arith.constant 1 : i32
    %8 = arith.cmpi eq, %arg0, %c1_i32 : i32
    %c0_i32_4 = arith.constant 0 : i32
    %9 = arith.cmpi eq, %arg1, %c0_i32_4 : i32
    %10 = arith.andi %8, %9 : i1
    %11 = arith.extui %10 : i1 to i32
    %c0_i32_5 = arith.constant 0 : i32
    %12 = arith.cmpi ne, %11, %c0_i32_5 : i32
    scf.if %12 {
      %c0 = arith.constant 0 : index
      %c0_8 = arith.constant 0 : index
      %16 = vector.load %arg7[%c0, %c0_8] : memref<1x128xf32, #tpu.memory_space<vmem>>, vector<1x128xf32>
      %cst = arith.constant 4.8828125E-4 : f32
      %17 = vector.broadcast %cst : f32 to vector<1x128xf32>
      %18 = arith.mulf %16, %17 : vector<1x128xf32>
      %c0_9 = arith.constant 0 : index
      %c0_10 = arith.constant 0 : index
      %19 = vector.load %arg8[%c0_9, %c0_10] : memref<1x128xf32, #tpu.memory_space<vmem>>, vector<1x128xf32>
      %cst_11 = arith.constant 4.8828125E-4 : f32
      %20 = vector.broadcast %cst_11 : f32 to vector<1x128xf32>
      %21 = arith.mulf %19, %20 : vector<1x128xf32>
      %22 = arith.mulf %18, %18 : vector<1x128xf32>
      %23 = arith.subf %21, %22 : vector<1x128xf32>
      %cst_12 = arith.constant 0.000000e+00 : f32
      %24 = vector.broadcast %cst_12 : f32 to vector<1x128xf32>
      %25 = arith.maximumf %23, %24 : vector<1x128xf32>
      %c0_13 = arith.constant 0 : index
      %c0_14 = arith.constant 0 : index
      %26 = vector.load %arg4[%c0_13, %c0_14] : memref<2x128xf32, #tpu.memory_space<vmem>>, vector<1x128xf32>
      %cst_15 = arith.constant 9.99999974E-6 : f32
      %27 = vector.broadcast %cst_15 : f32 to vector<1x128xf32>
      %28 = arith.addf %25, %27 : vector<1x128xf32>
      %29 = math.rsqrt %28 : vector<1x128xf32>
      %30 = arith.mulf %26, %29 : vector<1x128xf32>
      %c0_16 = arith.constant 0 : index
      %c0_17 = arith.constant 0 : index
      %31 = vector.load %arg9[%c0_16, %c0_17] : memref<2x128xf32, #tpu.memory_space<vmem>>, vector<1x128xf32>
      tpu.vector_store %arg9[%c0_16, %c0_17], %30 {strides = array<i32>} : memref<2x128xf32, #tpu.memory_space<vmem>>, vector<1x128xf32>,
      %c1 = arith.constant 1 : index
      %c0_18 = arith.constant 0 : index
      %32 = vector.load %arg4[%c1, %c0_18] : memref<2x128xf32, #tpu.memory_space<vmem>>, vector<1x128xf32>
      %33 = arith.mulf %18, %30 : vector<1x128xf32>
      %34 = arith.subf %32, %33 : vector<1x128xf32>
      %c1_19 = arith.constant 1 : index
      %c0_20 = arith.constant 0 : index
      %35 = vector.load %arg9[%c1_19, %c0_20] : memref<2x128xf32, #tpu.memory_space<vmem>>, vector<1x128xf32>
      tpu.vector_store %arg9[%c1_19, %c0_20], %34 {strides = array<i32>} : memref<2x128xf32, #tpu.memory_space<vmem>>, vector<1x128xf32>,
    } else {
    }
    %c1_i32_6 = arith.constant 1 : i32
    %13 = arith.cmpi eq, %arg0, %c1_i32_6 : i32
    %14 = arith.extui %13 : i1 to i32
    %c0_i32_7 = arith.constant 0 : i32
    %15 = arith.cmpi ne, %14, %c0_i32_7 : i32
    scf.if %15 {
      %c1024_i32 = arith.constant 1024 : i32
      %16 = arith.muli %arg1, %c1024_i32 : i32
      %17 = tpu.assume_multiple %16, 1024 : i32
      %18 = arith.index_cast %17 : i32 to index
      %c0 = arith.constant 0 : index
      %19 = vector.load %arg6[%18, %c0] : memref<2048x128xf32, #tpu.memory_space<vmem>>, vector<1024x128xf32>
      %c0_8 = arith.constant 0 : index
      %c0_9 = arith.constant 0 : index
      %20 = vector.load %arg9[%c0_8, %c0_9] : memref<2x128xf32, #tpu.memory_space<vmem>>, vector<1x128xf32>
      %21 = vector.broadcast %20 : vector<1x128xf32> to vector<1024x128xf32>
      %22 = arith.mulf %19, %21 : vector<1024x128xf32>
      %c1 = arith.constant 1 : index
      %c0_10 = arith.constant 0 : index
      %23 = vector.load %arg9[%c1, %c0_10] : memref<2x128xf32, #tpu.memory_space<vmem>>, vector<1x128xf32>
      %24 = vector.broadcast %23 : vector<1x128xf32> to vector<1024x128xf32>
      %25 = arith.addf %22, %24 : vector<1024x128xf32>
      %cst = arith.constant 0.000000e+00 : f32
      %26 = vector.broadcast %cst : f32 to vector<1024x128xf32>
      %27 = arith.cmpf oge, %25, %26 : vector<1024x128xf32>
      %cst_11 = arith.constant 2.000000e-01 : f32
      %28 = vector.broadcast %cst_11 : f32 to vector<1024x128xf32>
      %29 = arith.mulf %28, %25 : vector<1024x128xf32>
      %30 = arith.select %27, %25, %29 : vector<1024x128xi1>, vector<1024x128xf32>
      %31 = arith.truncf %30 : vector<1024x128xf32> to vector<1024x128xbf16>
      %c0_12 = arith.constant 0 : index
      %c0_13 = arith.constant 0 : index
      %32 = vector.load %arg5[%c0_12, %c0_13] : memref<1024x128xbf16, #tpu.memory_space<vmem>>, vector<1024x128xbf16>
      tpu.vector_store %arg5[%c0_12, %c0_13], %31 {strides = array<i32>} : memref<1024x128xbf16, #tpu.memory_space<vmem>>, vector<1024x128xbf16>,
    } else {
    }
    return
  }
  func.func @transform_0(%arg0: i32, %arg1: i32) -> (i32, i32) {
    %c1_i32 = arith.constant 1 : i32
    %0 = arith.subi %c1_i32, %arg0 : i32
    %1 = arith.muli %arg1, %0 : i32
    %c0_i32 = arith.constant 0 : i32
    %c0_i32_0 = arith.constant 0 : i32
    return %1, %c0_i32 : i32, i32
  }
  func.func @transform_1(%arg0: i32, %arg1: i32) -> (i32, i32) {
    %c0_i32 = arith.constant 0 : i32
    %c0_i32_0 = arith.constant 0 : i32
    %c0_i32_1 = arith.constant 0 : i32
    return %c0_i32, %c0_i32_0 : i32, i32
  }
  func.func @transform_2(%arg0: i32, %arg1: i32) -> (i32, i32) {
    %c0_i32 = arith.constant 0 : i32
    %c0_i32_0 = arith.constant 0 : i32
    %c0_i32_1 = arith.constant 0 : i32
    return %c0_i32, %c0_i32_0 : i32, i32
  }
  func.func @transform_3(%arg0: i32, %arg1: i32) -> (i32, i32) {
    %0 = arith.muli %arg1, %arg0 : i32
    %c0_i32 = arith.constant 0 : i32
    %c0_i32_0 = arith.constant 0 : i32
    return %0, %c0_i32 : i32, i32
  }
}

module attributes {stable_mosaic.version = 11 : i64} {
  func.func @_fused_conv_bn_lrelu_kernel(%arg0: i32, %arg1: i32, %arg2: memref<512x256xbf16, #tpu.memory_space<vmem>>, %arg3: memref<256x128xbf16, #tpu.memory_space<vmem>>, %arg4: memref<2x128xf32, #tpu.memory_space<vmem>>, %arg5: memref<512x128xbf16, #tpu.memory_space<vmem>>, %arg6: memref<512x128xf32, #tpu.memory_space<vmem>>, %arg7: memref<1x128xf32, #tpu.memory_space<vmem>>, %arg8: memref<1x128xf32, #tpu.memory_space<vmem>>, %arg9: memref<2x128xf32, #tpu.memory_space<vmem>>) attributes {dimension_semantics = [#tpu.dimension_semantics<arbitrary>, #tpu.dimension_semantics<arbitrary>], iteration_bounds = array<i64: 2, 1>, scalar_prefetch = 0 : i64, scratch_operands = 4 : i64, tpu.core_type = #tpu.core_type<tc>, window_params = [{transform_indices = @transform_0, window_bounds = array<i64: 512, 256>}, {pipeline_mode = #tpu.pipeline_mode<synchronous>, transform_indices = @transform_1, window_bounds = array<i64: 256, 128>}, {pipeline_mode = #tpu.pipeline_mode<synchronous>, transform_indices = @transform_2, window_bounds = array<i64: 2, 128>}, {transform_indices = @transform_3, window_bounds = array<i64: 512, 128>}]} {
    %c0_i32 = arith.constant 0 : i32
    %0 = arith.cmpi eq, %arg0, %c0_i32 : i32
    %c0_i32_0 = arith.constant 0 : i32
    %1 = arith.cmpi eq, %arg1, %c0_i32_0 : i32
    %2 = arith.andi %0, %1 : i1
    %3 = arith.extui %2 : i1 to i32
    %c0_i32_1 = arith.constant 0 : i32
    %4 = arith.cmpi ne, %3, %c0_i32_1 : i32
    scf.if %4 {
      %cst = arith.constant 0.000000e+00 : f32
      %16 = vector.broadcast %cst : f32 to vector<1x128xf32>
      %c0 = arith.constant 0 : index
      %c0_8 = arith.constant 0 : index
      %17 = vector.load %arg7[%c0, %c0_8] : memref<1x128xf32, #tpu.memory_space<vmem>>, vector<1x128xf32>
      tpu.vector_store %arg7[%c0, %c0_8], %16 {strides = array<i32>} : memref<1x128xf32, #tpu.memory_space<vmem>>, vector<1x128xf32>,
      %cst_9 = arith.constant 0.000000e+00 : f32
      %18 = vector.broadcast %cst_9 : f32 to vector<1x128xf32>
      %c0_10 = arith.constant 0 : index
      %c0_11 = arith.constant 0 : index
      %19 = vector.load %arg8[%c0_10, %c0_11] : memref<1x128xf32, #tpu.memory_space<vmem>>, vector<1x128xf32>
      tpu.vector_store %arg8[%c0_10, %c0_11], %18 {strides = array<i32>} : memref<1x128xf32, #tpu.memory_space<vmem>>, vector<1x128xf32>,
    } else {
    }
    %c0_i32_2 = arith.constant 0 : i32
    %5 = arith.cmpi eq, %arg0, %c0_i32_2 : i32
    %6 = arith.extui %5 : i1 to i32
    %c0_i32_3 = arith.constant 0 : i32
    %7 = arith.cmpi ne, %6, %c0_i32_3 : i32
    scf.if %7 {
      %c0 = arith.constant 0 : index
      %c0_8 = arith.constant 0 : index
      %16 = vector.load %arg2[%c0, %c0_8] : memref<512x256xbf16, #tpu.memory_space<vmem>>, vector<512x256xbf16>
      %c0_9 = arith.constant 0 : index
      %c0_10 = arith.constant 0 : index
      %17 = vector.load %arg3[%c0_9, %c0_10] : memref<256x128xbf16, #tpu.memory_space<vmem>>, vector<256x128xbf16>
      %cst = arith.constant dense<0.000000e+00> : vector<512x128xf32>
      %18 = tpu.matmul %16, %17, %cst {dimension_numbers = #tpu.dot_dimension_numbers<[1], [0], [0], [1], [0, 0, 1, 1], [], []>} : vector<512x256xbf16>, vector<256x128xbf16>, vector<512x128xf32> -> vector<512x128xf32>
      %c512_i32 = arith.constant 512 : i32
      %19 = arith.muli %arg1, %c512_i32 : i32
      %20 = tpu.assume_multiple %19, 512 : i32
      %21 = arith.index_cast %20 : i32 to index
      %c0_11 = arith.constant 0 : index
      %22 = vector.load %arg6[%21, %c0_11] : memref<512x128xf32, #tpu.memory_space<vmem>>, vector<512x128xf32>
      tpu.vector_store %arg6[%21, %c0_11], %18 {strides = array<i32>} : memref<512x128xf32, #tpu.memory_space<vmem>>, vector<512x128xf32>,
      %c0_12 = arith.constant 0 : index
      %c0_13 = arith.constant 0 : index
      %23 = vector.load %arg7[%c0_12, %c0_13] : memref<1x128xf32, #tpu.memory_space<vmem>>, vector<1x128xf32>
      %cst_14 = arith.constant dense<0.000000e+00> : vector<128xf32>
      %24 = vector.multi_reduction <add>, %18, %cst_14 [0] : vector<512x128xf32> to vector<128xf32>
      %25 = vector.shape_cast %24 : vector<128xf32> to vector<1x128xf32>
      %26 = arith.addf %23, %25 : vector<1x128xf32>
      %c0_15 = arith.constant 0 : index
      %c0_16 = arith.constant 0 : index
      %27 = vector.load %arg7[%c0_15, %c0_16] : memref<1x128xf32, #tpu.memory_space<vmem>>, vector<1x128xf32>
      tpu.vector_store %arg7[%c0_15, %c0_16], %26 {strides = array<i32>} : memref<1x128xf32, #tpu.memory_space<vmem>>, vector<1x128xf32>,
      %c0_17 = arith.constant 0 : index
      %c0_18 = arith.constant 0 : index
      %28 = vector.load %arg8[%c0_17, %c0_18] : memref<1x128xf32, #tpu.memory_space<vmem>>, vector<1x128xf32>
      %29 = arith.mulf %18, %18 : vector<512x128xf32>
      %cst_19 = arith.constant dense<0.000000e+00> : vector<128xf32>
      %30 = vector.multi_reduction <add>, %29, %cst_19 [0] : vector<512x128xf32> to vector<128xf32>
      %31 = vector.shape_cast %30 : vector<128xf32> to vector<1x128xf32>
      %32 = arith.addf %28, %31 : vector<1x128xf32>
      %c0_20 = arith.constant 0 : index
      %c0_21 = arith.constant 0 : index
      %33 = vector.load %arg8[%c0_20, %c0_21] : memref<1x128xf32, #tpu.memory_space<vmem>>, vector<1x128xf32>
      tpu.vector_store %arg8[%c0_20, %c0_21], %32 {strides = array<i32>} : memref<1x128xf32, #tpu.memory_space<vmem>>, vector<1x128xf32>,
    } else {
    }
    %c1_i32 = arith.constant 1 : i32
    %8 = arith.cmpi eq, %arg0, %c1_i32 : i32
    %c0_i32_4 = arith.constant 0 : i32
    %9 = arith.cmpi eq, %arg1, %c0_i32_4 : i32
    %10 = arith.andi %8, %9 : i1
    %11 = arith.extui %10 : i1 to i32
    %c0_i32_5 = arith.constant 0 : i32
    %12 = arith.cmpi ne, %11, %c0_i32_5 : i32
    scf.if %12 {
      %c0 = arith.constant 0 : index
      %c0_8 = arith.constant 0 : index
      %16 = vector.load %arg7[%c0, %c0_8] : memref<1x128xf32, #tpu.memory_space<vmem>>, vector<1x128xf32>
      %cst = arith.constant 0.001953125 : f32
      %17 = vector.broadcast %cst : f32 to vector<1x128xf32>
      %18 = arith.mulf %16, %17 : vector<1x128xf32>
      %c0_9 = arith.constant 0 : index
      %c0_10 = arith.constant 0 : index
      %19 = vector.load %arg8[%c0_9, %c0_10] : memref<1x128xf32, #tpu.memory_space<vmem>>, vector<1x128xf32>
      %cst_11 = arith.constant 0.001953125 : f32
      %20 = vector.broadcast %cst_11 : f32 to vector<1x128xf32>
      %21 = arith.mulf %19, %20 : vector<1x128xf32>
      %22 = arith.mulf %18, %18 : vector<1x128xf32>
      %23 = arith.subf %21, %22 : vector<1x128xf32>
      %cst_12 = arith.constant 0.000000e+00 : f32
      %24 = vector.broadcast %cst_12 : f32 to vector<1x128xf32>
      %25 = arith.maximumf %23, %24 : vector<1x128xf32>
      %c0_13 = arith.constant 0 : index
      %c0_14 = arith.constant 0 : index
      %26 = vector.load %arg4[%c0_13, %c0_14] : memref<2x128xf32, #tpu.memory_space<vmem>>, vector<1x128xf32>
      %cst_15 = arith.constant 9.99999974E-6 : f32
      %27 = vector.broadcast %cst_15 : f32 to vector<1x128xf32>
      %28 = arith.addf %25, %27 : vector<1x128xf32>
      %29 = math.rsqrt %28 : vector<1x128xf32>
      %30 = arith.mulf %26, %29 : vector<1x128xf32>
      %c0_16 = arith.constant 0 : index
      %c0_17 = arith.constant 0 : index
      %31 = vector.load %arg9[%c0_16, %c0_17] : memref<2x128xf32, #tpu.memory_space<vmem>>, vector<1x128xf32>
      tpu.vector_store %arg9[%c0_16, %c0_17], %30 {strides = array<i32>} : memref<2x128xf32, #tpu.memory_space<vmem>>, vector<1x128xf32>,
      %c1 = arith.constant 1 : index
      %c0_18 = arith.constant 0 : index
      %32 = vector.load %arg4[%c1, %c0_18] : memref<2x128xf32, #tpu.memory_space<vmem>>, vector<1x128xf32>
      %33 = arith.mulf %18, %30 : vector<1x128xf32>
      %34 = arith.subf %32, %33 : vector<1x128xf32>
      %c1_19 = arith.constant 1 : index
      %c0_20 = arith.constant 0 : index
      %35 = vector.load %arg9[%c1_19, %c0_20] : memref<2x128xf32, #tpu.memory_space<vmem>>, vector<1x128xf32>
      tpu.vector_store %arg9[%c1_19, %c0_20], %34 {strides = array<i32>} : memref<2x128xf32, #tpu.memory_space<vmem>>, vector<1x128xf32>,
    } else {
    }
    %c1_i32_6 = arith.constant 1 : i32
    %13 = arith.cmpi eq, %arg0, %c1_i32_6 : i32
    %14 = arith.extui %13 : i1 to i32
    %c0_i32_7 = arith.constant 0 : i32
    %15 = arith.cmpi ne, %14, %c0_i32_7 : i32
    scf.if %15 {
      %c512_i32 = arith.constant 512 : i32
      %16 = arith.muli %arg1, %c512_i32 : i32
      %17 = tpu.assume_multiple %16, 512 : i32
      %18 = arith.index_cast %17 : i32 to index
      %c0 = arith.constant 0 : index
      %19 = vector.load %arg6[%18, %c0] : memref<512x128xf32, #tpu.memory_space<vmem>>, vector<512x128xf32>
      %c0_8 = arith.constant 0 : index
      %c0_9 = arith.constant 0 : index
      %20 = vector.load %arg9[%c0_8, %c0_9] : memref<2x128xf32, #tpu.memory_space<vmem>>, vector<1x128xf32>
      %21 = vector.broadcast %20 : vector<1x128xf32> to vector<512x128xf32>
      %22 = arith.mulf %19, %21 : vector<512x128xf32>
      %c1 = arith.constant 1 : index
      %c0_10 = arith.constant 0 : index
      %23 = vector.load %arg9[%c1, %c0_10] : memref<2x128xf32, #tpu.memory_space<vmem>>, vector<1x128xf32>
      %24 = vector.broadcast %23 : vector<1x128xf32> to vector<512x128xf32>
      %25 = arith.addf %22, %24 : vector<512x128xf32>
      %cst = arith.constant 0.000000e+00 : f32
      %26 = vector.broadcast %cst : f32 to vector<512x128xf32>
      %27 = arith.cmpf oge, %25, %26 : vector<512x128xf32>
      %cst_11 = arith.constant 2.000000e-01 : f32
      %28 = vector.broadcast %cst_11 : f32 to vector<512x128xf32>
      %29 = arith.mulf %28, %25 : vector<512x128xf32>
      %30 = arith.select %27, %25, %29 : vector<512x128xi1>, vector<512x128xf32>
      %31 = arith.truncf %30 : vector<512x128xf32> to vector<512x128xbf16>
      %c0_12 = arith.constant 0 : index
      %c0_13 = arith.constant 0 : index
      %32 = vector.load %arg5[%c0_12, %c0_13] : memref<512x128xbf16, #tpu.memory_space<vmem>>, vector<512x128xbf16>
      tpu.vector_store %arg5[%c0_12, %c0_13], %31 {strides = array<i32>} : memref<512x128xbf16, #tpu.memory_space<vmem>>, vector<512x128xbf16>,
    } else {
    }
    return
  }
  func.func @transform_0(%arg0: i32, %arg1: i32) -> (i32, i32) {
    %c1_i32 = arith.constant 1 : i32
    %0 = arith.subi %c1_i32, %arg0 : i32
    %1 = arith.muli %arg1, %0 : i32
    %c0_i32 = arith.constant 0 : i32
    %c0_i32_0 = arith.constant 0 : i32
    return %1, %c0_i32 : i32, i32
  }
  func.func @transform_1(%arg0: i32, %arg1: i32) -> (i32, i32) {
    %c0_i32 = arith.constant 0 : i32
    %c0_i32_0 = arith.constant 0 : i32
    %c0_i32_1 = arith.constant 0 : i32
    return %c0_i32, %c0_i32_0 : i32, i32
  }
  func.func @transform_2(%arg0: i32, %arg1: i32) -> (i32, i32) {
    %c0_i32 = arith.constant 0 : i32
    %c0_i32_0 = arith.constant 0 : i32
    %c0_i32_1 = arith.constant 0 : i32
    return %c0_i32, %c0_i32_0 : i32, i32
  }
  func.func @transform_3(%arg0: i32, %arg1: i32) -> (i32, i32) {
    %0 = arith.muli %arg1, %arg0 : i32
    %c0_i32 = arith.constant 0 : i32
    %c0_i32_0 = arith.constant 0 : i32
    return %0, %c0_i32 : i32, i32
  }
}

module attributes {stable_mosaic.version = 11 : i64} {
  func.func @_fused_conv_bn_lrelu_kernel(%arg0: i32, %arg1: i32, %arg2: memref<128x512xbf16, #tpu.memory_space<vmem>>, %arg3: memref<512x128xbf16, #tpu.memory_space<vmem>>, %arg4: memref<2x128xf32, #tpu.memory_space<vmem>>, %arg5: memref<128x128xbf16, #tpu.memory_space<vmem>>, %arg6: memref<128x128xf32, #tpu.memory_space<vmem>>, %arg7: memref<1x128xf32, #tpu.memory_space<vmem>>, %arg8: memref<1x128xf32, #tpu.memory_space<vmem>>, %arg9: memref<2x128xf32, #tpu.memory_space<vmem>>) attributes {dimension_semantics = [#tpu.dimension_semantics<arbitrary>, #tpu.dimension_semantics<arbitrary>], iteration_bounds = array<i64: 2, 1>, scalar_prefetch = 0 : i64, scratch_operands = 4 : i64, tpu.core_type = #tpu.core_type<tc>, window_params = [{transform_indices = @transform_0, window_bounds = array<i64: 128, 512>}, {pipeline_mode = #tpu.pipeline_mode<synchronous>, transform_indices = @transform_1, window_bounds = array<i64: 512, 128>}, {pipeline_mode = #tpu.pipeline_mode<synchronous>, transform_indices = @transform_2, window_bounds = array<i64: 2, 128>}, {transform_indices = @transform_3, window_bounds = array<i64: 128, 128>}]} {
    %c0_i32 = arith.constant 0 : i32
    %0 = arith.cmpi eq, %arg0, %c0_i32 : i32
    %c0_i32_0 = arith.constant 0 : i32
    %1 = arith.cmpi eq, %arg1, %c0_i32_0 : i32
    %2 = arith.andi %0, %1 : i1
    %3 = arith.extui %2 : i1 to i32
    %c0_i32_1 = arith.constant 0 : i32
    %4 = arith.cmpi ne, %3, %c0_i32_1 : i32
    scf.if %4 {
      %cst = arith.constant 0.000000e+00 : f32
      %16 = vector.broadcast %cst : f32 to vector<1x128xf32>
      %c0 = arith.constant 0 : index
      %c0_8 = arith.constant 0 : index
      %17 = vector.load %arg7[%c0, %c0_8] : memref<1x128xf32, #tpu.memory_space<vmem>>, vector<1x128xf32>
      tpu.vector_store %arg7[%c0, %c0_8], %16 {strides = array<i32>} : memref<1x128xf32, #tpu.memory_space<vmem>>, vector<1x128xf32>,
      %cst_9 = arith.constant 0.000000e+00 : f32
      %18 = vector.broadcast %cst_9 : f32 to vector<1x128xf32>
      %c0_10 = arith.constant 0 : index
      %c0_11 = arith.constant 0 : index
      %19 = vector.load %arg8[%c0_10, %c0_11] : memref<1x128xf32, #tpu.memory_space<vmem>>, vector<1x128xf32>
      tpu.vector_store %arg8[%c0_10, %c0_11], %18 {strides = array<i32>} : memref<1x128xf32, #tpu.memory_space<vmem>>, vector<1x128xf32>,
    } else {
    }
    %c0_i32_2 = arith.constant 0 : i32
    %5 = arith.cmpi eq, %arg0, %c0_i32_2 : i32
    %6 = arith.extui %5 : i1 to i32
    %c0_i32_3 = arith.constant 0 : i32
    %7 = arith.cmpi ne, %6, %c0_i32_3 : i32
    scf.if %7 {
      %c0 = arith.constant 0 : index
      %c0_8 = arith.constant 0 : index
      %16 = vector.load %arg2[%c0, %c0_8] : memref<128x512xbf16, #tpu.memory_space<vmem>>, vector<128x512xbf16>
      %c0_9 = arith.constant 0 : index
      %c0_10 = arith.constant 0 : index
      %17 = vector.load %arg3[%c0_9, %c0_10] : memref<512x128xbf16, #tpu.memory_space<vmem>>, vector<512x128xbf16>
      %cst = arith.constant dense<0.000000e+00> : vector<128x128xf32>
      %18 = tpu.matmul %16, %17, %cst {dimension_numbers = #tpu.dot_dimension_numbers<[1], [0], [0], [1], [0, 0, 1, 1], [], []>} : vector<128x512xbf16>, vector<512x128xbf16>, vector<128x128xf32> -> vector<128x128xf32>
      %c128_i32 = arith.constant 128 : i32
      %19 = arith.muli %arg1, %c128_i32 : i32
      %20 = tpu.assume_multiple %19, 128 : i32
      %21 = arith.index_cast %20 : i32 to index
      %c0_11 = arith.constant 0 : index
      %22 = vector.load %arg6[%21, %c0_11] : memref<128x128xf32, #tpu.memory_space<vmem>>, vector<128x128xf32>
      tpu.vector_store %arg6[%21, %c0_11], %18 {strides = array<i32>} : memref<128x128xf32, #tpu.memory_space<vmem>>, vector<128x128xf32>,
      %c0_12 = arith.constant 0 : index
      %c0_13 = arith.constant 0 : index
      %23 = vector.load %arg7[%c0_12, %c0_13] : memref<1x128xf32, #tpu.memory_space<vmem>>, vector<1x128xf32>
      %cst_14 = arith.constant dense<0.000000e+00> : vector<128xf32>
      %24 = vector.multi_reduction <add>, %18, %cst_14 [0] : vector<128x128xf32> to vector<128xf32>
      %25 = vector.shape_cast %24 : vector<128xf32> to vector<1x128xf32>
      %26 = arith.addf %23, %25 : vector<1x128xf32>
      %c0_15 = arith.constant 0 : index
      %c0_16 = arith.constant 0 : index
      %27 = vector.load %arg7[%c0_15, %c0_16] : memref<1x128xf32, #tpu.memory_space<vmem>>, vector<1x128xf32>
      tpu.vector_store %arg7[%c0_15, %c0_16], %26 {strides = array<i32>} : memref<1x128xf32, #tpu.memory_space<vmem>>, vector<1x128xf32>,
      %c0_17 = arith.constant 0 : index
      %c0_18 = arith.constant 0 : index
      %28 = vector.load %arg8[%c0_17, %c0_18] : memref<1x128xf32, #tpu.memory_space<vmem>>, vector<1x128xf32>
      %29 = arith.mulf %18, %18 : vector<128x128xf32>
      %cst_19 = arith.constant dense<0.000000e+00> : vector<128xf32>
      %30 = vector.multi_reduction <add>, %29, %cst_19 [0] : vector<128x128xf32> to vector<128xf32>
      %31 = vector.shape_cast %30 : vector<128xf32> to vector<1x128xf32>
      %32 = arith.addf %28, %31 : vector<1x128xf32>
      %c0_20 = arith.constant 0 : index
      %c0_21 = arith.constant 0 : index
      %33 = vector.load %arg8[%c0_20, %c0_21] : memref<1x128xf32, #tpu.memory_space<vmem>>, vector<1x128xf32>
      tpu.vector_store %arg8[%c0_20, %c0_21], %32 {strides = array<i32>} : memref<1x128xf32, #tpu.memory_space<vmem>>, vector<1x128xf32>,
    } else {
    }
    %c1_i32 = arith.constant 1 : i32
    %8 = arith.cmpi eq, %arg0, %c1_i32 : i32
    %c0_i32_4 = arith.constant 0 : i32
    %9 = arith.cmpi eq, %arg1, %c0_i32_4 : i32
    %10 = arith.andi %8, %9 : i1
    %11 = arith.extui %10 : i1 to i32
    %c0_i32_5 = arith.constant 0 : i32
    %12 = arith.cmpi ne, %11, %c0_i32_5 : i32
    scf.if %12 {
      %c0 = arith.constant 0 : index
      %c0_8 = arith.constant 0 : index
      %16 = vector.load %arg7[%c0, %c0_8] : memref<1x128xf32, #tpu.memory_space<vmem>>, vector<1x128xf32>
      %cst = arith.constant 7.812500e-03 : f32
      %17 = vector.broadcast %cst : f32 to vector<1x128xf32>
      %18 = arith.mulf %16, %17 : vector<1x128xf32>
      %c0_9 = arith.constant 0 : index
      %c0_10 = arith.constant 0 : index
      %19 = vector.load %arg8[%c0_9, %c0_10] : memref<1x128xf32, #tpu.memory_space<vmem>>, vector<1x128xf32>
      %cst_11 = arith.constant 7.812500e-03 : f32
      %20 = vector.broadcast %cst_11 : f32 to vector<1x128xf32>
      %21 = arith.mulf %19, %20 : vector<1x128xf32>
      %22 = arith.mulf %18, %18 : vector<1x128xf32>
      %23 = arith.subf %21, %22 : vector<1x128xf32>
      %cst_12 = arith.constant 0.000000e+00 : f32
      %24 = vector.broadcast %cst_12 : f32 to vector<1x128xf32>
      %25 = arith.maximumf %23, %24 : vector<1x128xf32>
      %c0_13 = arith.constant 0 : index
      %c0_14 = arith.constant 0 : index
      %26 = vector.load %arg4[%c0_13, %c0_14] : memref<2x128xf32, #tpu.memory_space<vmem>>, vector<1x128xf32>
      %cst_15 = arith.constant 9.99999974E-6 : f32
      %27 = vector.broadcast %cst_15 : f32 to vector<1x128xf32>
      %28 = arith.addf %25, %27 : vector<1x128xf32>
      %29 = math.rsqrt %28 : vector<1x128xf32>
      %30 = arith.mulf %26, %29 : vector<1x128xf32>
      %c0_16 = arith.constant 0 : index
      %c0_17 = arith.constant 0 : index
      %31 = vector.load %arg9[%c0_16, %c0_17] : memref<2x128xf32, #tpu.memory_space<vmem>>, vector<1x128xf32>
      tpu.vector_store %arg9[%c0_16, %c0_17], %30 {strides = array<i32>} : memref<2x128xf32, #tpu.memory_space<vmem>>, vector<1x128xf32>,
      %c1 = arith.constant 1 : index
      %c0_18 = arith.constant 0 : index
      %32 = vector.load %arg4[%c1, %c0_18] : memref<2x128xf32, #tpu.memory_space<vmem>>, vector<1x128xf32>
      %33 = arith.mulf %18, %30 : vector<1x128xf32>
      %34 = arith.subf %32, %33 : vector<1x128xf32>
      %c1_19 = arith.constant 1 : index
      %c0_20 = arith.constant 0 : index
      %35 = vector.load %arg9[%c1_19, %c0_20] : memref<2x128xf32, #tpu.memory_space<vmem>>, vector<1x128xf32>
      tpu.vector_store %arg9[%c1_19, %c0_20], %34 {strides = array<i32>} : memref<2x128xf32, #tpu.memory_space<vmem>>, vector<1x128xf32>,
    } else {
    }
    %c1_i32_6 = arith.constant 1 : i32
    %13 = arith.cmpi eq, %arg0, %c1_i32_6 : i32
    %14 = arith.extui %13 : i1 to i32
    %c0_i32_7 = arith.constant 0 : i32
    %15 = arith.cmpi ne, %14, %c0_i32_7 : i32
    scf.if %15 {
      %c128_i32 = arith.constant 128 : i32
      %16 = arith.muli %arg1, %c128_i32 : i32
      %17 = tpu.assume_multiple %16, 128 : i32
      %18 = arith.index_cast %17 : i32 to index
      %c0 = arith.constant 0 : index
      %19 = vector.load %arg6[%18, %c0] : memref<128x128xf32, #tpu.memory_space<vmem>>, vector<128x128xf32>
      %c0_8 = arith.constant 0 : index
      %c0_9 = arith.constant 0 : index
      %20 = vector.load %arg9[%c0_8, %c0_9] : memref<2x128xf32, #tpu.memory_space<vmem>>, vector<1x128xf32>
      %21 = vector.broadcast %20 : vector<1x128xf32> to vector<128x128xf32>
      %22 = arith.mulf %19, %21 : vector<128x128xf32>
      %c1 = arith.constant 1 : index
      %c0_10 = arith.constant 0 : index
      %23 = vector.load %arg9[%c1, %c0_10] : memref<2x128xf32, #tpu.memory_space<vmem>>, vector<1x128xf32>
      %24 = vector.broadcast %23 : vector<1x128xf32> to vector<128x128xf32>
      %25 = arith.addf %22, %24 : vector<128x128xf32>
      %cst = arith.constant 0.000000e+00 : f32
      %26 = vector.broadcast %cst : f32 to vector<128x128xf32>
      %27 = arith.cmpf oge, %25, %26 : vector<128x128xf32>
      %cst_11 = arith.constant 2.000000e-01 : f32
      %28 = vector.broadcast %cst_11 : f32 to vector<128x128xf32>
      %29 = arith.mulf %28, %25 : vector<128x128xf32>
      %30 = arith.select %27, %25, %29 : vector<128x128xi1>, vector<128x128xf32>
      %31 = arith.truncf %30 : vector<128x128xf32> to vector<128x128xbf16>
      %c0_12 = arith.constant 0 : index
      %c0_13 = arith.constant 0 : index
      %32 = vector.load %arg5[%c0_12, %c0_13] : memref<128x128xbf16, #tpu.memory_space<vmem>>, vector<128x128xbf16>
      tpu.vector_store %arg5[%c0_12, %c0_13], %31 {strides = array<i32>} : memref<128x128xbf16, #tpu.memory_space<vmem>>, vector<128x128xbf16>,
    } else {
    }
    return
  }
  func.func @transform_0(%arg0: i32, %arg1: i32) -> (i32, i32) {
    %c1_i32 = arith.constant 1 : i32
    %0 = arith.subi %c1_i32, %arg0 : i32
    %1 = arith.muli %arg1, %0 : i32
    %c0_i32 = arith.constant 0 : i32
    %c0_i32_0 = arith.constant 0 : i32
    return %1, %c0_i32 : i32, i32
  }
  func.func @transform_1(%arg0: i32, %arg1: i32) -> (i32, i32) {
    %c0_i32 = arith.constant 0 : i32
    %c0_i32_0 = arith.constant 0 : i32
    %c0_i32_1 = arith.constant 0 : i32
    return %c0_i32, %c0_i32_0 : i32, i32
  }
  func.func @transform_2(%arg0: i32, %arg1: i32) -> (i32, i32) {
    %c0_i32 = arith.constant 0 : i32
    %c0_i32_0 = arith.constant 0 : i32
    %c0_i32_1 = arith.constant 0 : i32
    return %c0_i32, %c0_i32_0 : i32, i32
  }
  func.func @transform_3(%arg0: i32, %arg1: i32) -> (i32, i32) {
    %0 = arith.muli %arg1, %arg0 : i32
    %c0_i32 = arith.constant 0 : i32
    %c0_i32_0 = arith.constant 0 : i32
    return %0, %c0_i32 : i32, i32
  }
}

module attributes {stable_mosaic.version = 11 : i64} {
  func.func @_fused_conv_bn_lrelu_kernel(%arg0: i32, %arg1: i32, %arg2: memref<32x1024xbf16, #tpu.memory_space<vmem>>, %arg3: memref<1024x128xbf16, #tpu.memory_space<vmem>>, %arg4: memref<2x128xf32, #tpu.memory_space<vmem>>, %arg5: memref<32x128xf32, #tpu.memory_space<vmem>>, %arg6: memref<32x128xf32, #tpu.memory_space<vmem>>, %arg7: memref<1x128xf32, #tpu.memory_space<vmem>>, %arg8: memref<1x128xf32, #tpu.memory_space<vmem>>, %arg9: memref<2x128xf32, #tpu.memory_space<vmem>>) attributes {dimension_semantics = [#tpu.dimension_semantics<arbitrary>, #tpu.dimension_semantics<arbitrary>], iteration_bounds = array<i64: 2, 1>, scalar_prefetch = 0 : i64, scratch_operands = 4 : i64, tpu.core_type = #tpu.core_type<tc>, window_params = [{transform_indices = @transform_0, window_bounds = array<i64: 32, 1024>}, {pipeline_mode = #tpu.pipeline_mode<synchronous>, transform_indices = @transform_1, window_bounds = array<i64: 1024, 128>}, {pipeline_mode = #tpu.pipeline_mode<synchronous>, transform_indices = @transform_2, window_bounds = array<i64: 2, 128>}, {transform_indices = @transform_3, window_bounds = array<i64: 32, 128>}]} {
    %c0_i32 = arith.constant 0 : i32
    %0 = arith.cmpi eq, %arg0, %c0_i32 : i32
    %c0_i32_0 = arith.constant 0 : i32
    %1 = arith.cmpi eq, %arg1, %c0_i32_0 : i32
    %2 = arith.andi %0, %1 : i1
    %3 = arith.extui %2 : i1 to i32
    %c0_i32_1 = arith.constant 0 : i32
    %4 = arith.cmpi ne, %3, %c0_i32_1 : i32
    scf.if %4 {
      %cst = arith.constant 0.000000e+00 : f32
      %16 = vector.broadcast %cst : f32 to vector<1x128xf32>
      %c0 = arith.constant 0 : index
      %c0_8 = arith.constant 0 : index
      %17 = vector.load %arg7[%c0, %c0_8] : memref<1x128xf32, #tpu.memory_space<vmem>>, vector<1x128xf32>
      tpu.vector_store %arg7[%c0, %c0_8], %16 {strides = array<i32>} : memref<1x128xf32, #tpu.memory_space<vmem>>, vector<1x128xf32>,
      %cst_9 = arith.constant 0.000000e+00 : f32
      %18 = vector.broadcast %cst_9 : f32 to vector<1x128xf32>
      %c0_10 = arith.constant 0 : index
      %c0_11 = arith.constant 0 : index
      %19 = vector.load %arg8[%c0_10, %c0_11] : memref<1x128xf32, #tpu.memory_space<vmem>>, vector<1x128xf32>
      tpu.vector_store %arg8[%c0_10, %c0_11], %18 {strides = array<i32>} : memref<1x128xf32, #tpu.memory_space<vmem>>, vector<1x128xf32>,
    } else {
    }
    %c0_i32_2 = arith.constant 0 : i32
    %5 = arith.cmpi eq, %arg0, %c0_i32_2 : i32
    %6 = arith.extui %5 : i1 to i32
    %c0_i32_3 = arith.constant 0 : i32
    %7 = arith.cmpi ne, %6, %c0_i32_3 : i32
    scf.if %7 {
      %c0 = arith.constant 0 : index
      %c0_8 = arith.constant 0 : index
      %16 = vector.load %arg2[%c0, %c0_8] : memref<32x1024xbf16, #tpu.memory_space<vmem>>, vector<32x1024xbf16>
      %c0_9 = arith.constant 0 : index
      %c0_10 = arith.constant 0 : index
      %17 = vector.load %arg3[%c0_9, %c0_10] : memref<1024x128xbf16, #tpu.memory_space<vmem>>, vector<1024x128xbf16>
      %cst = arith.constant dense<0.000000e+00> : vector<32x128xf32>
      %18 = tpu.matmul %16, %17, %cst {dimension_numbers = #tpu.dot_dimension_numbers<[1], [0], [0], [1], [0, 0, 1, 1], [], []>} : vector<32x1024xbf16>, vector<1024x128xbf16>, vector<32x128xf32> -> vector<32x128xf32>
      %c32_i32 = arith.constant 32 : i32
      %19 = arith.muli %arg1, %c32_i32 : i32
      %20 = tpu.assume_multiple %19, 32 : i32
      %21 = arith.index_cast %20 : i32 to index
      %c0_11 = arith.constant 0 : index
      %22 = vector.load %arg6[%21, %c0_11] : memref<32x128xf32, #tpu.memory_space<vmem>>, vector<32x128xf32>
      tpu.vector_store %arg6[%21, %c0_11], %18 {strides = array<i32>} : memref<32x128xf32, #tpu.memory_space<vmem>>, vector<32x128xf32>,
      %c0_12 = arith.constant 0 : index
      %c0_13 = arith.constant 0 : index
      %23 = vector.load %arg7[%c0_12, %c0_13] : memref<1x128xf32, #tpu.memory_space<vmem>>, vector<1x128xf32>
      %cst_14 = arith.constant dense<0.000000e+00> : vector<128xf32>
      %24 = vector.multi_reduction <add>, %18, %cst_14 [0] : vector<32x128xf32> to vector<128xf32>
      %25 = vector.shape_cast %24 : vector<128xf32> to vector<1x128xf32>
      %26 = arith.addf %23, %25 : vector<1x128xf32>
      %c0_15 = arith.constant 0 : index
      %c0_16 = arith.constant 0 : index
      %27 = vector.load %arg7[%c0_15, %c0_16] : memref<1x128xf32, #tpu.memory_space<vmem>>, vector<1x128xf32>
      tpu.vector_store %arg7[%c0_15, %c0_16], %26 {strides = array<i32>} : memref<1x128xf32, #tpu.memory_space<vmem>>, vector<1x128xf32>,
      %c0_17 = arith.constant 0 : index
      %c0_18 = arith.constant 0 : index
      %28 = vector.load %arg8[%c0_17, %c0_18] : memref<1x128xf32, #tpu.memory_space<vmem>>, vector<1x128xf32>
      %29 = arith.mulf %18, %18 : vector<32x128xf32>
      %cst_19 = arith.constant dense<0.000000e+00> : vector<128xf32>
      %30 = vector.multi_reduction <add>, %29, %cst_19 [0] : vector<32x128xf32> to vector<128xf32>
      %31 = vector.shape_cast %30 : vector<128xf32> to vector<1x128xf32>
      %32 = arith.addf %28, %31 : vector<1x128xf32>
      %c0_20 = arith.constant 0 : index
      %c0_21 = arith.constant 0 : index
      %33 = vector.load %arg8[%c0_20, %c0_21] : memref<1x128xf32, #tpu.memory_space<vmem>>, vector<1x128xf32>
      tpu.vector_store %arg8[%c0_20, %c0_21], %32 {strides = array<i32>} : memref<1x128xf32, #tpu.memory_space<vmem>>, vector<1x128xf32>,
    } else {
    }
    %c1_i32 = arith.constant 1 : i32
    %8 = arith.cmpi eq, %arg0, %c1_i32 : i32
    %c0_i32_4 = arith.constant 0 : i32
    %9 = arith.cmpi eq, %arg1, %c0_i32_4 : i32
    %10 = arith.andi %8, %9 : i1
    %11 = arith.extui %10 : i1 to i32
    %c0_i32_5 = arith.constant 0 : i32
    %12 = arith.cmpi ne, %11, %c0_i32_5 : i32
    scf.if %12 {
      %c0 = arith.constant 0 : index
      %c0_8 = arith.constant 0 : index
      %16 = vector.load %arg7[%c0, %c0_8] : memref<1x128xf32, #tpu.memory_space<vmem>>, vector<1x128xf32>
      %cst = arith.constant 3.125000e-02 : f32
      %17 = vector.broadcast %cst : f32 to vector<1x128xf32>
      %18 = arith.mulf %16, %17 : vector<1x128xf32>
      %c0_9 = arith.constant 0 : index
      %c0_10 = arith.constant 0 : index
      %19 = vector.load %arg8[%c0_9, %c0_10] : memref<1x128xf32, #tpu.memory_space<vmem>>, vector<1x128xf32>
      %cst_11 = arith.constant 3.125000e-02 : f32
      %20 = vector.broadcast %cst_11 : f32 to vector<1x128xf32>
      %21 = arith.mulf %19, %20 : vector<1x128xf32>
      %22 = arith.mulf %18, %18 : vector<1x128xf32>
      %23 = arith.subf %21, %22 : vector<1x128xf32>
      %cst_12 = arith.constant 0.000000e+00 : f32
      %24 = vector.broadcast %cst_12 : f32 to vector<1x128xf32>
      %25 = arith.maximumf %23, %24 : vector<1x128xf32>
      %c0_13 = arith.constant 0 : index
      %c0_14 = arith.constant 0 : index
      %26 = vector.load %arg4[%c0_13, %c0_14] : memref<2x128xf32, #tpu.memory_space<vmem>>, vector<1x128xf32>
      %cst_15 = arith.constant 9.99999974E-6 : f32
      %27 = vector.broadcast %cst_15 : f32 to vector<1x128xf32>
      %28 = arith.addf %25, %27 : vector<1x128xf32>
      %29 = math.rsqrt %28 : vector<1x128xf32>
      %30 = arith.mulf %26, %29 : vector<1x128xf32>
      %c0_16 = arith.constant 0 : index
      %c0_17 = arith.constant 0 : index
      %31 = vector.load %arg9[%c0_16, %c0_17] : memref<2x128xf32, #tpu.memory_space<vmem>>, vector<1x128xf32>
      tpu.vector_store %arg9[%c0_16, %c0_17], %30 {strides = array<i32>} : memref<2x128xf32, #tpu.memory_space<vmem>>, vector<1x128xf32>,
      %c1 = arith.constant 1 : index
      %c0_18 = arith.constant 0 : index
      %32 = vector.load %arg4[%c1, %c0_18] : memref<2x128xf32, #tpu.memory_space<vmem>>, vector<1x128xf32>
      %33 = arith.mulf %18, %30 : vector<1x128xf32>
      %34 = arith.subf %32, %33 : vector<1x128xf32>
      %c1_19 = arith.constant 1 : index
      %c0_20 = arith.constant 0 : index
      %35 = vector.load %arg9[%c1_19, %c0_20] : memref<2x128xf32, #tpu.memory_space<vmem>>, vector<1x128xf32>
      tpu.vector_store %arg9[%c1_19, %c0_20], %34 {strides = array<i32>} : memref<2x128xf32, #tpu.memory_space<vmem>>, vector<1x128xf32>,
    } else {
    }
    %c1_i32_6 = arith.constant 1 : i32
    %13 = arith.cmpi eq, %arg0, %c1_i32_6 : i32
    %14 = arith.extui %13 : i1 to i32
    %c0_i32_7 = arith.constant 0 : i32
    %15 = arith.cmpi ne, %14, %c0_i32_7 : i32
    scf.if %15 {
      %c32_i32 = arith.constant 32 : i32
      %16 = arith.muli %arg1, %c32_i32 : i32
      %17 = tpu.assume_multiple %16, 32 : i32
      %18 = arith.index_cast %17 : i32 to index
      %c0 = arith.constant 0 : index
      %19 = vector.load %arg6[%18, %c0] : memref<32x128xf32, #tpu.memory_space<vmem>>, vector<32x128xf32>
      %c0_8 = arith.constant 0 : index
      %c0_9 = arith.constant 0 : index
      %20 = vector.load %arg9[%c0_8, %c0_9] : memref<2x128xf32, #tpu.memory_space<vmem>>, vector<1x128xf32>
      %21 = vector.broadcast %20 : vector<1x128xf32> to vector<32x128xf32>
      %22 = arith.mulf %19, %21 : vector<32x128xf32>
      %c1 = arith.constant 1 : index
      %c0_10 = arith.constant 0 : index
      %23 = vector.load %arg9[%c1, %c0_10] : memref<2x128xf32, #tpu.memory_space<vmem>>, vector<1x128xf32>
      %24 = vector.broadcast %23 : vector<1x128xf32> to vector<32x128xf32>
      %25 = arith.addf %22, %24 : vector<32x128xf32>
      %cst = arith.constant 0.000000e+00 : f32
      %26 = vector.broadcast %cst : f32 to vector<32x128xf32>
      %27 = arith.cmpf oge, %25, %26 : vector<32x128xf32>
      %cst_11 = arith.constant 2.000000e-01 : f32
      %28 = vector.broadcast %cst_11 : f32 to vector<32x128xf32>
      %29 = arith.mulf %28, %25 : vector<32x128xf32>
      %30 = arith.select %27, %25, %29 : vector<32x128xi1>, vector<32x128xf32>
      %c0_12 = arith.constant 0 : index
      %c0_13 = arith.constant 0 : index
      %31 = vector.load %arg5[%c0_12, %c0_13] : memref<32x128xf32, #tpu.memory_space<vmem>>, vector<32x128xf32>
      tpu.vector_store %arg5[%c0_12, %c0_13], %30 {strides = array<i32>} : memref<32x128xf32, #tpu.memory_space<vmem>>, vector<32x128xf32>,
    } else {
    }
    return
  }
  func.func @transform_0(%arg0: i32, %arg1: i32) -> (i32, i32) {
    %c1_i32 = arith.constant 1 : i32
    %0 = arith.subi %c1_i32, %arg0 : i32
    %1 = arith.muli %arg1, %0 : i32
    %c0_i32 = arith.constant 0 : i32
    %c0_i32_0 = arith.constant 0 : i32
    return %1, %c0_i32 : i32, i32
  }
  func.func @transform_1(%arg0: i32, %arg1: i32) -> (i32, i32) {
    %c0_i32 = arith.constant 0 : i32
    %c0_i32_0 = arith.constant 0 : i32
    %c0_i32_1 = arith.constant 0 : i32
    return %c0_i32, %c0_i32_0 : i32, i32
  }
  func.func @transform_2(%arg0: i32, %arg1: i32) -> (i32, i32) {
    %c0_i32 = arith.constant 0 : i32
    %c0_i32_0 = arith.constant 0 : i32
    %c0_i32_1 = arith.constant 0 : i32
    return %c0_i32, %c0_i32_0 : i32, i32
  }
  func.func @transform_3(%arg0: i32, %arg1: i32) -> (i32, i32) {
    %0 = arith.muli %arg1, %arg0 : i32
    %c0_i32 = arith.constant 0 : i32
    %c0_i32_0 = arith.constant 0 : i32
    return %0, %c0_i32 : i32, i32
  }
}

</mosaic_0001>

<bundles_post_ra>
// kernel: conv_layers_forward.4
= control target key start
LH: loop header
LB: loop body
LE: loop exit
PB: predicated region body
PF: predicated region fallthrough
CT: control target
= control target key end

     0   :  { %s3679_s12 = smov 0   ;;  %s3681_s13 = smov 0   ;;  %s5036_s0 = inlined_call_operand.vmem [shape: bf16[2048,128], index: 0, kind: input, shape index: {}]   ;;  %s5037_s1 = inlined_call_operand.vmem [shape: bf16[128,128], index: 1, kind: input, shape index: {}]   ;;  %s5038_s2 = inlined_call_operand.vmem [shape: f32[2,128], index: 2, kind: input, shape index: {}]   ;;  %s5039_s3 = inlined_call_operand.vmem [shape: bf16[2048,128], index: 3, kind: output, shape index: {}]  }
   0x1   :  { %s3683_s14 = smov 0   ;;  %s3685_s15 = smov 0  }
   0x2   :  { %s3687_s16 = smov 0  }
   0x3 LB: > { %s22_s17 = sadd.s32 1, %s3648_s14  ;;  %s25_s18 = sadd.s32 1, %s3652_s15  ;;  %s3656_s16 = sphi %s3687_s16, %s13_s16   ;;  %s3652_s15 = sphi %s3685_s15, %s5103_s15   ;;  %s3648_s14 = sphi %s3683_s14, %s5102_s14   ;;  %s3644_s13 = sphi %s3681_s13, %s5101_s13   ;;  %s3640_s12 = sphi %s3679_s12, %s5100_s12  }
   0x4   : > { %p23_p0 = scmp.ge.s32.totalorder %s22_s17, 2  ;;  %p2793_p1 = scmp.ge.s32.totalorder %s3656_s16, 1 }
   0x5   : > { %p160_p2 = scmp.lt.s32.totalorder %s3656_s16, 5 }
   0x6   : > { %s5105_s17 = smov (%p23_p0, %s22_s17), 0  ;;  %s5107_s18 = smov (!%p23_p0, %s25_s18), %s3652_s15 }
   0x7   : > { %p161_p3 = pnand %p2793_p1, %p160_p2  ;;  %p27_p4 = scmp.ge.s32.totalorder %s5107_s18, 2 }
   0x8   : > { %s187_s19 = ssub.s32 (!%p161_p3), 1, %s3644_s13  ;;  %s197_s20 = smul.u32 (!%p161_p3), %s3640_s12, %s3644_s13 }
   0x9   : > { %s5109_s18 = smov (%p27_p4, %s5107_s18), 0  ;;  %164 = sbr.rel (%p161_p3) target bundleno = 885 (0x375), region = 32 }
   0xa   : > { %s188_s21 = smul.u32 (!%p161_p3), %s3640_s12, %s187_s19  ;;  %p205_p5 = scmp.eq.s32.totalorder (!%p161_p3), %s3644_s13, 0 }
   0xb   : > { %s2796_s22 = sshll.u32 (!%p161_p3), %s197_s20, 7  ;;  %p206_p6 = scmp.eq.s32.totalorder (!%p161_p3), %s3640_s12, 0 }
   0xc   : > { %s2794_s23 = sshll.u32 (!%p161_p3), %s188_s21, 7  ;;  %p199_p7 = scmp.lt.s32.totalorder (!%p161_p3), %s2796_s22, 255 }
   0xd   : > { %p190_p8 = scmp.lt.s32.totalorder (!%p161_p3), %s2794_s23, 255  ;;  %p207_p9 = pnand (!%p161_p3), %p206_p6, %p205_p5 }
   0xe   : > { %s5111_s22 = smov (!%p199_p7, %s2796_s22), 255 }
   0xf   : > { %s5113_s23 = smov (!%p190_p8, %s2794_s23), 255  ;;  %s2797_s24 = sshll.u32 %s5111_s22, 2 }
  0x10   : > { %s2795_s25 = sshll.u32 %s5113_s23, 2  ;;  %s3724_s28 = scalar_lea.vmem %s5039_s3, %s2797_s24 }
  0x11   : > { %s3729_s4 = scalar_lea.vmem %s5036_s0, %s2795_s25  ;;  %210 = sbr.rel (%p207_p9) target bundleno = 25 (0x19), region = 36 }
  0x16   : > { %v3658_v0 = vmov 0.0  }
  0x17   : > { %211 = vst [vmem:[#allocation3] sm:$0x1] %v3658_v0 }
  0x18   : > { %212 = vst [vmem:[#allocation4] sm:$0x1] %v3658_v0 }
  0x19 PF: > { %p2798_p10 = scmp.ne.s32.totalorder %s3644_s13, 0 }
  0x1b   : > { %215 = sbr.rel (%p2798_p10) target bundleno = 649 (0x289), region = 40 }
  0x20   : > { %v3163_v1 = vld [vmem:[%s5037_s1 + $0x38] sm:$0xff]  ;;  %v3162_v2 = vld [vmem:[%s5037_s1 + $0x30] sm:$0xff]  ;;  %v3161_v3 = vld [vmem:[%s5037_s1 + $0x28] sm:$0xff]  ;;  %s3087_s29 = sshll.u32 %s3640_s12, 10 }
  0x21   : > { %792 = vmatpush.bf16.msra.mxu0 %v3163_v1  ;;  %3547 = vmatpush.bf16.msra.mxu1 %v3163_v1  ;;  %v3160_v4 = vld [vmem:[%s5037_s1 + $0x20] sm:$0xff]  ;;  %v3159_v5 = vld [vmem:[%s5037_s1 + $0x18] sm:$0xff]  ;;  %v3158_v6 = vld [vmem:[%s5037_s1 + $0x10] sm:$0xff]  ;;  %s3776_s30 = scalar_lea.vmem [#allocation2], %s3087_s29 }
  0x22   : > { %3548 = vmatpush.bf16.msra.mxu2 %v3163_v1  ;;  %3549 = vmatpush.bf16.msra.mxu3 %v3163_v1  ;;  %v3157_v7 = vld [vmem:[%s5037_s1 + $0x8] sm:$0xff]  ;;  %v3156_v8 = vld [vmem:[%s5037_s1] sm:$0xff]  ;;  %v3094_v12 = vld [vmem:[%s3729_s4 + $0x10] sm:$0xff] }
  0x23   : > { %v3092_v9 = vld [vmem:[%s3729_s4] sm:$0xff]  ;;  %v3093_v10 = vld [vmem:[%s3729_s4 + $0x8] sm:$0xff]  ;;  %v3095_v14 = vld [vmem:[%s3729_s4 + $0x18] sm:$0xff] }
  0x24   : > { %v3108_v11 = vld [vmem:[%s3729_s4 + $0x80] sm:$0xff]  ;;  %v3109_v13 = vld [vmem:[%s3729_s4 + $0x88] sm:$0xff]  ;;  %v3110_v15 = vld [vmem:[%s3729_s4 + $0x90] sm:$0xff] }
  0x25   : > { %793 = vmatpush.bf16.msra.mxu0 %v3162_v2  ;;  %3550 = vmatpush.bf16.msra.mxu1 %v3162_v2  ;;  %v3096_v16 = vld [vmem:[%s3729_s4 + $0x20] sm:$0xff]  ;;  %v3111_v17 = vld [vmem:[%s3729_s4 + $0x98] sm:$0xff]  ;;  %v3097_v18 = vld [vmem:[%s3729_s4 + $0x28] sm:$0xff] }
  0x26   : > { %3551 = vmatpush.bf16.msra.mxu2 %v3162_v2  ;;  %3552 = vmatpush.bf16.msra.mxu3 %v3162_v2  ;;  %v3124_v19 = vld [vmem:[%s3729_s4 + $0x100] sm:$0xff]  ;;  %v3098_v21 = vld [vmem:[%s3729_s4 + $0x30] sm:$0xff]  ;;  %v3125_v22 = vld [vmem:[%s3729_s4 + $0x108] sm:$0xff] }
  0x27   : > { %v3112_v20 = vld [vmem:[%s3729_s4 + $0xa0] sm:$0xff]  ;;  %v3113_v23 = vld [vmem:[%s3729_s4 + $0xa8] sm:$0xff]  ;;  %v3099_v24 = vld [vmem:[%s3729_s4 + $0x38] sm:$0xff] }
  0x28   : > { %v3126_v25 = vld [vmem:[%s3729_s4 + $0x110] sm:$0xff]  ;;  %v3100_v27 = vld [vmem:[%s3729_s4 + $0x40] sm:$0xff]  ;;  %v3127_v29 = vld [vmem:[%s3729_s4 + $0x118] sm:$0xff] }
  0x29   : > { %794 = vmatpush.bf16.msra.mxu0 %v3161_v3  ;;  %3553 = vmatpush.bf16.msra.mxu1 %v3161_v3  ;;  %v3114_v26 = vld [vmem:[%s3729_s4 + $0xb0] sm:$0xff]  ;;  %v3115_v34 = vld [vmem:[%s3729_s4 + $0xb8] sm:$0xff]  ;;  %v3101_v36 = vld [vmem:[%s3729_s4 + $0x48] sm:$0xff] }
  0x2a   : > { %3554 = vmatpush.bf16.msra.mxu2 %v3161_v3  ;;  %3555 = vmatpush.bf16.msra.mxu3 %v3161_v3  ;;  %v3128_v41 = vld [vmem:[%s3729_s4 + $0x120] sm:$0xff]  ;;  %v3102_v49 = vld [vmem:[%s3729_s4 + $0x50] sm:$0xff]  ;;  %v3129_v55 = vld [vmem:[%s3729_s4 + $0x128] sm:$0xff] }
  0x2b   : > { %v3140_v42 = vld [vmem:[%s3729_s4 + $0x180] sm:$0xff]  ;;  %v3141_v56 = vld [vmem:[%s3729_s4 + $0x188] sm:$0xff]  ;;  %v3103_v63 = vld [vmem:[%s3729_s4 + $0x58] sm:$0xff] }
  0x2c   : > { %v3116_v47 = vld [vmem:[%s3729_s4 + $0xc0] sm:$0xff]  ;;  %v3117_v61 = vld [vmem:[%s3729_s4 + $0xc8] sm:$0xff] }
  0x2d   : > { %795 = vmatpush.bf16.msra.mxu0 %v3160_v4  ;;  %3556 = vmatpush.bf16.msra.mxu1 %v3160_v4 }
  0x2e   : > { %3557 = vmatpush.bf16.msra.mxu2 %v3160_v4  ;;  %3558 = vmatpush.bf16.msra.mxu3 %v3160_v4 }
  0x31   : > { %796 = vmatpush.bf16.msra.mxu0 %v3159_v5  ;;  %3559 = vmatpush.bf16.msra.mxu1 %v3159_v5 }
  0x32   : > { %3560 = vmatpush.bf16.msra.mxu2 %v3159_v5  ;;  %3561 = vmatpush.bf16.msra.mxu3 %v3159_v5  ;;  %v3130_v5 = vld [vmem:[%s3729_s4 + $0x130] sm:$0xff] }
  0x35   : > { %797 = vmatpush.bf16.msra.mxu0 %v3158_v6  ;;  %3562 = vmatpush.bf16.msra.mxu1 %v3158_v6 }
  0x36   : > { %3563 = vmatpush.bf16.msra.mxu2 %v3158_v6  ;;  %3564 = vmatpush.bf16.msra.mxu3 %v3158_v6  ;;  %v3142_v6 = vld [vmem:[%s3729_s4 + $0x190] sm:$0xff] }
  0x39   : > { %798 = vmatpush.bf16.msra.mxu0 %v3157_v7  ;;  %3565 = vmatpush.bf16.msra.mxu1 %v3157_v7 }
  0x3a   : > { %3566 = vmatpush.bf16.msra.mxu2 %v3157_v7  ;;  %3567 = vmatpush.bf16.msra.mxu3 %v3157_v7 }
  0x3d   : > { %799 = vmatpush.bf16.msra.mxu0 %v3156_v8  ;;  %3568 = vmatpush.bf16.msra.mxu1 %v3156_v8 }
  0x3e   : > { %3569 = vmatpush.bf16.msra.mxu2 %v3156_v8  ;;  %3570 = vmatpush.bf16.msra.mxu3 %v3156_v8 }
  0x40   : > { %800 = vmatmul.bf16.vlgmr.msra.gmra.mxu0 %v3092_v9  ;;  %880 = vmatmul.bf16.vlgmr.msra.gmra.mxu1 %v3108_v11  ;;  %v3118_v11 = vld [vmem:[%s3729_s4 + $0xd0] sm:$0xff] }
  0x41   : > { %960 = vmatmul.bf16.vlgmr.msra.gmra.mxu2 %v3124_v19  ;;  %1040 = vmatmul.bf16.vlgmr.msra.gmra.mxu3 %v3140_v42  ;;  %v3131_v19 = vld [vmem:[%s3729_s4 + $0x138] sm:$0xff]  ;;  %v3106_v42 = vld [vmem:[%s3729_s4 + $0x70] sm:$0xff] }
  0x50   : > { %805 = vmatmul.bf16.gmra.mxu0 %v3093_v10  ;;  %885 = vmatmul.bf16.gmra.mxu1 %v3109_v13  ;;  %v3104_v13 = vld [vmem:[%s3729_s4 + $0x60] sm:$0xff] }
  0x51   : > { %965 = vmatmul.bf16.gmra.mxu2 %v3125_v22  ;;  %1045 = vmatmul.bf16.gmra.mxu3 %v3141_v56 }
  0x60   : > { %810 = vmatmul.bf16.gmra.mxu0 %v3094_v12  ;;  %890 = vmatmul.bf16.gmra.mxu1 %v3110_v15 }
  0x61   : > { %970 = vmatmul.bf16.gmra.mxu2 %v3126_v25  ;;  %1050 = vmatmul.bf16.gmra.mxu3 %v3142_v6  ;;  %v3119_v25 = vld [vmem:[%s3729_s4 + $0xd8] sm:$0xff]  ;;  %v3146_v6 = vld [vmem:[%s3729_s4 + $0x1b0] sm:$0xff] }
  0x70   : > { %815 = vmatmul.bf16.gmra.mxu0 %v3095_v14  ;;  %895 = vmatmul.bf16.gmra.mxu1 %v3111_v17 }
  0x71   : > { %975 = vmatmul.bf16.gmra.mxu2 %v3127_v29 }
  0x80   : > { %820 = vmatmul.bf16.gmra.mxu0 %v3096_v16  ;;  %900 = vmatmul.bf16.gmra.mxu1 %v3112_v20  ;;  %v3143_v20 = vld [vmem:[%s3729_s4 + $0x198] sm:$0xff] }
  0x81   : > { %980 = vmatmul.bf16.gmra.mxu2 %v3128_v41  ;;  %1055 = vmatmul.bf16.gmra.mxu3 %v3143_v20 }
  0x90   : > { %825 = vmatmul.bf16.gmra.mxu0 %v3097_v18  ;;  %905 = vmatmul.bf16.gmra.mxu1 %v3113_v23 }
  0x91   : > { %985 = vmatmul.bf16.gmra.mxu2 %v3129_v55 }
  0xa0   : > { %830 = vmatmul.bf16.gmra.mxu0 %v3098_v21  ;;  %910 = vmatmul.bf16.gmra.mxu1 %v3114_v26 }
  0xa1   : > { %990 = vmatmul.bf16.gmra.mxu2 %v3130_v5  ;;  %v3134_v5 = vld [vmem:[%s3729_s4 + $0x150] sm:$0xff] }
  0xb0   : > { %835 = vmatmul.bf16.gmra.mxu0 %v3099_v24  ;;  %915 = vmatmul.bf16.gmra.mxu1 %v3115_v34  ;;  %v3144_v34 = vld [vmem:[%s3729_s4 + $0x1a0] sm:$0xff] }
  0xb1   : > { %995 = vmatmul.bf16.gmra.mxu2 %v3131_v19  ;;  %1060 = vmatmul.bf16.gmra.mxu3 %v3144_v34 }
  0xbd   : > { %v801_v28 = vpop.f32.mrf.mxu0  ;;  %v3786_v44 = vpop.f32.mrf.mxu1 }
  0xbe   : > { %1123 = vst [vmem:[%s3776_s30] sm:$0xff] %v801_v28  ;;  %v1388_v31 = vmul.f32 %v801_v28, %v801_v28 }
  0xbf   : > { %1155 = vst [vmem:[%s3776_s30 + $0x100] sm:$0xff] %v3786_v44 }
  0xc0   : > { %840 = vmatmul.bf16.gmra.mxu0 %v3100_v27  ;;  %920 = vmatmul.bf16.gmra.mxu1 %v3116_v47  ;;  %v3105_v27 = vld [vmem:[%s3729_s4 + $0x68] sm:$0xff] }
  0xc5   : > { %v803_v30 = vpop.f32.mrf.mxu0  ;;  %v3793_v51 = vpop.f32.mrf.mxu1 }
  0xc6   : > { %1124 = vst [vmem:[%s3776_s30 + $0x8] sm:$0xff] %v803_v30  ;;  %v1389_v32 = vmul.f32 %v803_v30, %v803_v30  ;;  %v1252_v33 = vadd.f32 %v803_v30, %v801_v28 }
  0xc7   : > { %1156 = vst [vmem:[%s3776_s30 + $0x108] sm:$0xff] %v3793_v51 }
  0xc8   : > { %v1516_v35 = vadd.f32 %v1389_v32, %v1388_v31 }
  0xcd   : > { %v806_v37 = vpop.f32.mrf.mxu0  ;;  %v3800_v58 = vpop.f32.mrf.mxu1 }
  0xce   : > { %1125 = vst [vmem:[%s3776_s30 + $0x10] sm:$0xff] %v806_v37  ;;  %v1253_v38 = vadd.f32 %v1252_v33, %v806_v37  ;;  %v1390_v39 = vmul.f32 %v806_v37, %v806_v37  ;;  %v3132_v33 = vld [vmem:[%s3729_s4 + $0x140] sm:$0xff] }
  0xcf   : > { %1157 = vst [vmem:[%s3776_s30 + $0x110] sm:$0xff] %v3800_v58  ;;  %1000 = vmatmul.bf16.gmra.mxu2 %v3132_v33 }
  0xd0   : > { %v1517_v40 = vadd.f32 %v1516_v35, %v1390_v39  ;;  %845 = vmatmul.bf16.gmra.mxu0 %v3101_v36  ;;  %925 = vmatmul.bf16.gmra.mxu1 %v3117_v61  ;;  %v3845_v39 = vpop.f32.mrf.mxu2  ;;  %v3107_v61 = vld [vmem:[%s3729_s4 + $0x78] sm:$0xff] }
  0xd1   : > { %1187 = vst [vmem:[%s3776_s30 + $0x200] sm:$0xff] %v3845_v39 }
  0xd5   : > { %v808_v43 = vpop.f32.mrf.mxu0  ;;  %v3807_v1 = vpop.f32.mrf.mxu1 }
  0xd6   : > { %1126 = vst [vmem:[%s3776_s30 + $0x18] sm:$0xff] %v808_v43  ;;  %v1391_v45 = vmul.f32 %v808_v43, %v808_v43  ;;  %v1254_v46 = vadd.f32 %v1253_v38, %v808_v43 }
  0xd7   : > { %1158 = vst [vmem:[%s3776_s30 + $0x118] sm:$0xff] %v3807_v1 }
  0xd8   : > { %v1518_v48 = vadd.f32 %v1517_v40, %v1391_v45  ;;  %v3120_v40 = vld [vmem:[%s3729_s4 + $0xe0] sm:$0xff] }
  0xdd   : > { %v811_v50 = vpop.f32.mrf.mxu0  ;;  %v3814_v8 = vpop.f32.mrf.mxu1 }
  0xde   : > { %1127 = vst [vmem:[%s3776_s30 + $0x20] sm:$0xff] %v811_v50  ;;  %v1255_v52 = vadd.f32 %v1254_v46, %v811_v50  ;;  %v1392_v53 = vmul.f32 %v811_v50, %v811_v50  ;;  %v3133_v50 = vld [vmem:[%s3729_s4 + $0x148] sm:$0xff] }
  0xdf   : > { %1159 = vst [vmem:[%s3776_s30 + $0x120] sm:$0xff] %v3814_v8  ;;  %1005 = vmatmul.bf16.gmra.mxu2 %v3133_v50 }
  0xe0   : > { %v1519_v54 = vadd.f32 %v1518_v48, %v1392_v53  ;;  %850 = vmatmul.bf16.gmra.mxu0 %v3102_v49  ;;  %930 = vmatmul.bf16.gmra.mxu1 %v3118_v11  ;;  %v3856_v48 = vpop.f32.mrf.mxu2 }
  0xe1   : > { %1188 = vst [vmem:[%s3776_s30 + $0x208] sm:$0xff] %v3856_v48 }
  0xe5   : > { %v813_v57 = vpop.f32.mrf.mxu0  ;;  %v3821_v15 = vpop.f32.mrf.mxu1 }
  0xe6   : > { %1128 = vst [vmem:[%s3776_s30 + $0x28] sm:$0xff] %v813_v57  ;;  %v1393_v59 = vmul.f32 %v813_v57, %v813_v57  ;;  %v1256_v60 = vadd.f32 %v1255_v52, %v813_v57  ;;  %v3145_v52 = vld [vmem:[%s3729_s4 + $0x1a8] sm:$0xff] }
  0xe7   : > { %1160 = vst [vmem:[%s3776_s30 + $0x128] sm:$0xff] %v3821_v15  ;;  %1065 = vmatmul.bf16.gmra.mxu3 %v3145_v52  ;;  %v3933_v52 = vpop.f32.mrf.mxu3 }
  0xe8   : > { %v1520_v62 = vadd.f32 %v1519_v54, %v1393_v59  ;;  %v3867_v57 = vpop.f32.mrf.mxu2  ;;  %v3121_v59 = vld [vmem:[%s3729_s4 + $0xe8] sm:$0xff]  ;;  %5070 = vst [vmem:[#allocation6_spill] sm:$0xff] %v3933_v52 }
  0xe9   : > { %1189 = vst [vmem:[%s3776_s30 + $0x210] sm:$0xff] %v3867_v57 }
  0xea   : > { %1219 = vst [vmem:[%s3776_s30 + $0x300] sm:$0xff] %v3933_v52 }
  0xed   : > { %v816_v0 = vpop.f32.mrf.mxu0  ;;  %v3828_v22 = vpop.f32.mrf.mxu1 }
  0xee   : > { %1129 = vst [vmem:[%s3776_s30 + $0x30] sm:$0xff] %v816_v0  ;;  %v1257_v2 = vadd.f32 %v1256_v60, %v816_v0  ;;  %v1394_v3 = vmul.f32 %v816_v0, %v816_v0 }
  0xef   : > { %1161 = vst [vmem:[%s3776_s30 + $0x130] sm:$0xff] %v3828_v22  ;;  %1010 = vmatmul.bf16.gmra.mxu2 %v3134_v5 }
  0xf0   : > { %v1521_v4 = vadd.f32 %v1520_v62, %v1394_v3  ;;  %855 = vmatmul.bf16.gmra.mxu0 %v3103_v63  ;;  %935 = vmatmul.bf16.gmra.mxu1 %v3119_v25  ;;  %v3878_v3 = vpop.f32.mrf.mxu2 }
  0xf1   : > { %1190 = vst [vmem:[%s3776_s30 + $0x218] sm:$0xff] %v3878_v3 }
  0xf5   : > { %v818_v7 = vpop.f32.mrf.mxu0  ;;  %v3835_v29 = vpop.f32.mrf.mxu1 }
  0xf6   : > { %1130 = vst [vmem:[%s3776_s30 + $0x38] sm:$0xff] %v818_v7  ;;  %v1395_v9 = vmul.f32 %v818_v7, %v818_v7  ;;  %v1258_v10 = vadd.f32 %v1257_v2, %v818_v7 }
  0xf7   : > { %1162 = vst [vmem:[%s3776_s30 + $0x138] sm:$0xff] %v3835_v29  ;;  %1070 = vmatmul.bf16.gmra.mxu3 %v3146_v6 }
  0xf8   : > { %v1522_v12 = vadd.f32 %v1521_v4, %v1395_v9 }
  0xfd   : > { %v821_v14 = vpop.f32.mrf.mxu0  ;;  %v3842_v36 = vpop.f32.mrf.mxu1 }
  0xfe   : > { %1131 = vst [vmem:[%s3776_s30 + $0x40] sm:$0xff] %v821_v14  ;;  %v1259_v16 = vadd.f32 %v1258_v10, %v821_v14  ;;  %v1396_v17 = vmul.f32 %v821_v14, %v821_v14 }
  0xff   : > { %1163 = vst [vmem:[%s3776_s30 + $0x140] sm:$0xff] %v3842_v36 }
 0x100   : > { %v1523_v18 = vadd.f32 %v1522_v12, %v1396_v17  ;;  %860 = vmatmul.bf16.gmra.mxu0 %v3104_v13  ;;  %940 = vmatmul.bf16.gmra.mxu1 %v3120_v40  ;;  %v3889_v12 = vpop.f32.mrf.mxu2  ;;  %v3122_v13 = vld [vmem:[%s3729_s4 + $0xf0] sm:$0xff] }
 0x101   : > { %1191 = vst [vmem:[%s3776_s30 + $0x220] sm:$0xff] %v3889_v12 }
 0x105   : > { %v823_v21 = vpop.f32.mrf.mxu0  ;;  %v3853_v45 = vpop.f32.mrf.mxu1 }
 0x106   : > { %1132 = vst [vmem:[%s3776_s30 + $0x48] sm:$0xff] %v823_v21  ;;  %v1260_v23 = vadd.f32 %v1259_v16, %v823_v21  ;;  %v1397_v24 = vmul.f32 %v823_v21, %v823_v21 }
 0x107   : > { %1164 = vst [vmem:[%s3776_s30 + $0x148] sm:$0xff] %v3853_v45 }
 0x108   : > { %v1524_v26 = vadd.f32 %v1523_v18, %v1397_v24  ;;  %v3899_v20 = vpop.f32.mrf.mxu2  ;;  %v3147_v24 = vld [vmem:[%s3729_s4 + $0x1b8] sm:$0xff] }
 0x109   : > { %1192 = vst [vmem:[%s3776_s30 + $0x228] sm:$0xff] %v3899_v20  ;;  %1075 = vmatmul.bf16.gmra.mxu3 %v3147_v24 }
 0x10d   : > { %v826_v28 = vpop.f32.mrf.mxu0  ;;  %v3864_v54 = vpop.f32.mrf.mxu1 }
 0x10e   : > { %1133 = vst [vmem:[%s3776_s30 + $0x50] sm:$0xff] %v826_v28  ;;  %v1261_v30 = vadd.f32 %v1260_v23, %v826_v28  ;;  %v1398_v31 = vmul.f32 %v826_v28, %v826_v28  ;;  %v3135_v23 = vld [vmem:[%s3729_s4 + $0x158] sm:$0xff] }
 0x10f   : > { %1165 = vst [vmem:[%s3776_s30 + $0x150] sm:$0xff] %v3864_v54  ;;  %1015 = vmatmul.bf16.gmra.mxu2 %v3135_v23 }
 0x110   : > { %v1525_v32 = vadd.f32 %v1524_v26, %v1398_v31  ;;  %865 = vmatmul.bf16.gmra.mxu0 %v3105_v27  ;;  %945 = vmatmul.bf16.gmra.mxu1 %v3121_v59  ;;  %v3123_v31 = vld [vmem:[%s3729_s4 + $0xf8] sm:$0xff] }
 0x115   : > { %v828_v35 = vpop.f32.mrf.mxu0  ;;  %v3875_v63 = vpop.f32.mrf.mxu1 }
 0x116   : > { %1134 = vst [vmem:[%s3776_s30 + $0x58] sm:$0xff] %v828_v35  ;;  %v1262_v37 = vadd.f32 %v1261_v30, %v828_v35  ;;  %v1399_v38 = vmul.f32 %v828_v35, %v828_v35  ;;  %v3910_v30 = vpop.f32.mrf.mxu2 }
 0x117   : > { %1166 = vst [vmem:[%s3776_s30 + $0x158] sm:$0xff] %v3875_v63 }
 0x118   : > { %v1526_v41 = vadd.f32 %v1525_v32, %v1399_v38  ;;  %1193 = vst [vmem:[%s3776_s30 + $0x230] sm:$0xff] %v3910_v30 }
 0x11d   : > { %v831_v43 = vpop.f32.mrf.mxu0  ;;  %v3886_v9 = vpop.f32.mrf.mxu1 }
 0x11e   : > { %1135 = vst [vmem:[%s3776_s30 + $0x60] sm:$0xff] %v831_v43  ;;  %v1263_v46 = vadd.f32 %v1262_v37, %v831_v43  ;;  %v1400_v47 = vmul.f32 %v831_v43, %v831_v43  ;;  %v3920_v38 = vpop.f32.mrf.mxu2 }
 0x11f   : > { %1167 = vst [vmem:[%s3776_s30 + $0x160] sm:$0xff] %v3886_v9 }
 0x120   : > { %v1527_v49 = vadd.f32 %v1526_v41, %v1400_v47  ;;  %870 = vmatmul.bf16.gmra.mxu0 %v3106_v42  ;;  %950 = vmatmul.bf16.gmra.mxu1 %v3122_v13  ;;  %1194 = vst [vmem:[%s3776_s30 + $0x238] sm:$0xff] %v3920_v38  ;;  %v3136_v41 = vld [vmem:[%s3729_s4 + $0x160] sm:$0xff] }
 0x121   : > { %v3148_v42 = vld [vmem:[%s3729_s4 + $0x1c0] sm:$0xff]  ;;  %1020 = vmatmul.bf16.gmra.mxu2 %v3136_v41 }
 0x122   : > { %1080 = vmatmul.bf16.gmra.mxu3 %v3148_v42 }
 0x125   : > { %v833_v53 = vpop.f32.mrf.mxu0  ;;  %v3896_v17 = vpop.f32.mrf.mxu1 }
 0x126   : > { %1136 = vst [vmem:[%s3776_s30 + $0x68] sm:$0xff] %v833_v53  ;;  %v1264_v55 = vadd.f32 %v1263_v46, %v833_v53  ;;  %v1401_v56 = vmul.f32 %v833_v53, %v833_v53  ;;  %v3931_v50 = vpop.f32.mrf.mxu2 }
 0x127   : > { %1168 = vst [vmem:[%s3776_s30 + $0x168] sm:$0xff] %v3896_v17 }
 0x128   : > { %v1528_v60 = vadd.f32 %v1527_v49, %v1401_v56  ;;  %1195 = vst [vmem:[%s3776_s30 + $0x240] sm:$0xff] %v3931_v50 }
 0x12d   : > { %v836_v62 = vpop.f32.mrf.mxu0  ;;  %v3907_v26 = vpop.f32.mrf.mxu1 }
 0x12e   : > { %1137 = vst [vmem:[%s3776_s30 + $0x70] sm:$0xff] %v836_v62  ;;  %v1265_v0 = vadd.f32 %v1264_v55, %v836_v62  ;;  %v1402_v2 = vmul.f32 %v836_v62, %v836_v62  ;;  %v3948_v62 = vpop.f32.mrf.mxu3 }
 0x12f   : > { %1169 = vst [vmem:[%s3776_s30 + $0x170] sm:$0xff] %v3907_v26 }
 0x130   : > { %v1529_v4 = vadd.f32 %v1528_v60, %v1402_v2  ;;  %875 = vmatmul.bf16.gmra.mxu0 %v3107_v61  ;;  %955 = vmatmul.bf16.gmra.mxu1 %v3123_v31  ;;  %v3946_v61 = vpop.f32.mrf.mxu2  ;;  %5071 = vst [vmem:[#allocation7_spill] sm:$0xff] %v3948_v62  ;;  %v3137_v2 = vld [vmem:[%s3729_s4 + $0x168] sm:$0xff] }
 0x131   : > { %1196 = vst [vmem:[%s3776_s30 + $0x248] sm:$0xff] %v3946_v61  ;;  %1025 = vmatmul.bf16.gmra.mxu2 %v3137_v2 }
 0x132   : > { %1220 = vst [vmem:[%s3776_s30 + $0x308] sm:$0xff] %v3948_v62 }
 0x135   : > { %v838_v7 = vpop.f32.mrf.mxu0  ;;  %v3917_v34 = vpop.f32.mrf.mxu1 }
 0x136   : > { %1138 = vst [vmem:[%s3776_s30 + $0x78] sm:$0xff] %v838_v7  ;;  %v1266_v10 = vadd.f32 %v1265_v0, %v838_v7  ;;  %v1403_v11 = vmul.f32 %v838_v7, %v838_v7 }
 0x137   : > { %1170 = vst [vmem:[%s3776_s30 + $0x178] sm:$0xff] %v3917_v34 }
 0x138   : > { %v1530_v14 = vadd.f32 %v1529_v4, %v1403_v11  ;;  %v3149_v4 = vld [vmem:[%s3729_s4 + $0x1c8] sm:$0xff]  ;;  %v3966_v7 = vpop.f32.mrf.mxu2 }
 0x139   : > { %1085 = vmatmul.bf16.gmra.mxu3 %v3149_v4  ;;  %1197 = vst [vmem:[%s3776_s30 + $0x250] sm:$0xff] %v3966_v7 }
 0x13d   : > { %v841_v16 = vpop.f32.mrf.mxu0  ;;  %v3928_v46 = vpop.f32.mrf.mxu1 }
 0x13e   : > { %1139 = vst [vmem:[%s3776_s30 + $0x80] sm:$0xff] %v841_v16  ;;  %v1267_v18 = vadd.f32 %v1266_v10, %v841_v16  ;;  %v1404_v19 = vmul.f32 %v841_v16, %v841_v16  ;;  %v3968_v10 = vpop.f32.mrf.mxu3 }
 0x13f   : > { %1171 = vst [vmem:[%s3776_s30 + $0x180] sm:$0xff] %v3928_v46 }
 0x140   : > { %v1531_v21 = vadd.f32 %v1530_v14, %v1404_v19  ;;  %5072 = vst [vmem:[#allocation8_spill] sm:$0xff] %v3968_v10  ;;  %v3982_v14 = vpop.f32.mrf.mxu2  ;;  %v3150_v19 = vld [vmem:[%s3729_s4 + $0x1d0] sm:$0xff] }
 0x141   : > { %1221 = vst [vmem:[%s3776_s30 + $0x310] sm:$0xff] %v3968_v10 }
 0x142   : > { %1198 = vst [vmem:[%s3776_s30 + $0x258] sm:$0xff] %v3982_v14 }
 0x145   : > { %v843_v25 = vpop.f32.mrf.mxu0  ;;  %v3941_v56 = vpop.f32.mrf.mxu1 }
 0x146   : > { %1140 = vst [vmem:[%s3776_s30 + $0x88] sm:$0xff] %v843_v25  ;;  %v1268_v27 = vadd.f32 %v1267_v18, %v843_v25  ;;  %v1405_v28 = vmul.f32 %v843_v25, %v843_v25  ;;  %v3984_v16 = vpop.f32.mrf.mxu3  ;;  %v3138_v18 = vld [vmem:[%s3729_s4 + $0x170] sm:$0xff] }
 0x147   : > { %1172 = vst [vmem:[%s3776_s30 + $0x188] sm:$0xff] %v3941_v56  ;;  %1030 = vmatmul.bf16.gmra.mxu2 %v3138_v18 }
 0x148   : > { %v1532_v32 = vadd.f32 %v1531_v21, %v1405_v28  ;;  %5073 = vst [vmem:[#allocation9_spill] sm:$0xff] %v3984_v16  ;;  %v4000_v24 = vpop.f32.mrf.mxu2 }
 0x149   : > { %1222 = vst [vmem:[%s3776_s30 + $0x318] sm:$0xff] %v3984_v16  ;;  %1090 = vmatmul.bf16.gmra.mxu3 %v3150_v19 }
 0x14a   : > { %1199 = vst [vmem:[%s3776_s30 + $0x260] sm:$0xff] %v4000_v24 }
 0x14d   : > { %v846_v33 = vpop.f32.mrf.mxu0  ;;  %v3962_v6 = vpop.f32.mrf.mxu1 }
 0x14e   : > { %1141 = vst [vmem:[%s3776_s30 + $0x90] sm:$0xff] %v846_v33  ;;  %v1269_v35 = vadd.f32 %v1268_v27, %v846_v33  ;;  %v1406_v37 = vmul.f32 %v846_v33, %v846_v33  ;;  %v4002_v25 = vpop.f32.mrf.mxu3  ;;  %v3139_v33 = vld [vmem:[%s3729_s4 + $0x178] sm:$0xff] }
 0x14f   : > { %1173 = vst [vmem:[%s3776_s30 + $0x190] sm:$0xff] %v3962_v6 }
 0x150   : > { %v1533_v40 = vadd.f32 %v1532_v32, %v1406_v37  ;;  %5074 = vst [vmem:[#allocation10_spill] sm:$0xff] %v4002_v25  ;;  %v4016_v31 = vpop.f32.mrf.mxu2 }
 0x151   : > { %1223 = vst [vmem:[%s3776_s30 + $0x320] sm:$0xff] %v4002_v25 }
 0x152   : > { %1200 = vst [vmem:[%s3776_s30 + $0x268] sm:$0xff] %v4016_v31 }
 0x155   : > { %v848_v43 = vpop.f32.mrf.mxu0  ;;  %v3978_v13 = vpop.f32.mrf.mxu1 }
 0x156   : > { %1142 = vst [vmem:[%s3776_s30 + $0x98] sm:$0xff] %v848_v43  ;;  %v1270_v47 = vadd.f32 %v1269_v35, %v848_v43  ;;  %v1407_v49 = vmul.f32 %v848_v43, %v848_v43  ;;  %v4018_v32 = vpop.f32.mrf.mxu3  ;;  %v3151_v35 = vld [vmem:[%s3729_s4 + $0x1d8] sm:$0xff] }
 0x157   : > { %1174 = vst [vmem:[%s3776_s30 + $0x198] sm:$0xff] %v3978_v13  ;;  %1035 = vmatmul.bf16.gmra.mxu2 %v3139_v33 }
 0x158   : > { %v1534_v53 = vadd.f32 %v1533_v40, %v1407_v49  ;;  %5075 = vst [vmem:[#allocation11_spill] sm:$0xff] %v4018_v32  ;;  %v4031_v41 = vpop.f32.mrf.mxu2 }
 0x159   : > { %1224 = vst [vmem:[%s3776_s30 + $0x328] sm:$0xff] %v4018_v32  ;;  %1095 = vmatmul.bf16.gmra.mxu3 %v3151_v35 }
 0x15a   : > { %5076 = vst [vmem:[#allocation12_spill] sm:$0xff] %v4031_v41 }
 0x15b   : > { %1201 = vst [vmem:[%s3776_s30 + $0x270] sm:$0xff] %v4031_v41 }
 0x15d   : > { %v851_v55 = vpop.f32.mrf.mxu0  ;;  %v3996_v23 = vpop.f32.mrf.mxu1 }
 0x15e   : > { %1143 = vst [vmem:[%s3776_s30 + $0xa0] sm:$0xff] %v851_v55  ;;  %v3944_v59 = vadd.f32 %v1270_v47, %v851_v55  ;;  %v1408_v60 = vmul.f32 %v851_v55, %v851_v55  ;;  %v4033_v42 = vpop.f32.mrf.mxu3  ;;  %v3152_v55 = vld [vmem:[%s3729_s4 + $0x1e0] sm:$0xff] }
 0x15f   : > { %1175 = vst [vmem:[%s3776_s30 + $0x1a0] sm:$0xff] %v3996_v23 }
 0x160   : > { %v3952_v0 = vadd.f32 %v1534_v53, %v1408_v60  ;;  %5077 = vst [vmem:[#allocation13_spill] sm:$0xff] %v4033_v42  ;;  %v4044_v49 = vpop.f32.mrf.mxu2 }
 0x161   : > { %1225 = vst [vmem:[%s3776_s30 + $0x330] sm:$0xff] %v4033_v42  ;;  %v3153_v42 = vld [vmem:[%s3729_s4 + $0x1e8] sm:$0xff] }
 0x162   : > { %5078 = vst [vmem:[#allocation14_spill] sm:$0xff] %v4044_v49 }
 0x163   : > { %1202 = vst [vmem:[%s3776_s30 + $0x278] sm:$0xff] %v4044_v49 }
 0x165   : > { %v3960_v5 = vpop.f32.mrf.mxu0  ;;  %v4012_v28 = vpop.f32.mrf.mxu1 }
 0x166   : > { %1144 = vst [vmem:[%s3776_s30 + $0xa8] sm:$0xff] %v3960_v5  ;;  %v4046_v53 = vpop.f32.mrf.mxu3 }
 0x167   : > { %1176 = vst [vmem:[%s3776_s30 + $0x1a8] sm:$0xff] %v4012_v28 }
 0x168   : > { %5079 = vst [vmem:[#allocation15_spill] sm:$0xff] %v4046_v53  ;;  %v4058_v4 = vpop.f32.mrf.mxu2 }
 0x169   : > { %1226 = vst [vmem:[%s3776_s30 + $0x338] sm:$0xff] %v4046_v53  ;;  %1100 = vmatmul.bf16.gmra.mxu3 %v3152_v55  ;;  %v1409_v53 = vmul.f32 %v3960_v5, %v3960_v5 }
 0x16a   : > { %5080 = vst [vmem:[#allocation16_spill] sm:$0xff] %v4058_v4 }
 0x16b   : > { %1203 = vst [vmem:[%s3776_s30 + $0x280] sm:$0xff] %v4058_v4  ;;  %v1536_v25 = vadd.f32 %v3952_v0, %v1409_v53 }
 0x16d   : > { %v3976_v11 = vpop.f32.mrf.mxu0  ;;  %v4028_v40 = vpop.f32.mrf.mxu1 }
 0x16e   : > { %1145 = vst [vmem:[%s3776_s30 + $0xb0] sm:$0xff] %v3976_v11  ;;  %v4060_v18 = vpop.f32.mrf.mxu3  ;;  %v1410_v32 = vmul.f32 %v3976_v11, %v3976_v11 }
 0x16f   : > { %1177 = vst [vmem:[%s3776_s30 + $0x1b0] sm:$0xff] %v4028_v40 }
 0x170   : > { %5081 = vst [vmem:[#allocation17_spill] sm:$0xff] %v4060_v18  ;;  %v4071_v35 = vpop.f32.mrf.mxu2 }
 0x171   : > { %1227 = vst [vmem:[%s3776_s30 + $0x340] sm:$0xff] %v4060_v18  ;;  %v1272_v18 = vadd.f32 %v3944_v59, %v3960_v5 }
 0x172   : > { %5082 = vst [vmem:[#allocation18_spill] sm:$0xff] %v4071_v35 }
 0x173   : > { %1204 = vst [vmem:[%s3776_s30 + $0x288] sm:$0xff] %v4071_v35  ;;  %v1273_v16 = vadd.f32 %v1272_v18, %v3976_v11 }
 0x175   : > { %v3994_v21 = vpop.f32.mrf.mxu0  ;;  %v4041_v47 = vpop.f32.mrf.mxu1 }
 0x176   : > { %1146 = vst [vmem:[%s3776_s30 + $0xb8] sm:$0xff] %v3994_v21  ;;  %v4073_v55 = vpop.f32.mrf.mxu3  ;;  %v1411_v10 = vmul.f32 %v3994_v21, %v3994_v21  ;;  %v1274_v35 = vadd.f32 %v1273_v16, %v3994_v21 }
 0x177   : > { %1178 = vst [vmem:[%s3776_s30 + $0x1b8] sm:$0xff] %v4041_v47 }
 0x178   : > { %5083 = vst [vmem:[#allocation19_spill] sm:$0xff] %v4073_v55  ;;  %v4098_v5 = vpop.f32.mrf.mxu2 }
 0x179   : > { %1228 = vst [vmem:[%s3776_s30 + $0x348] sm:$0xff] %v4073_v55  ;;  %1105 = vmatmul.bf16.gmra.mxu3 %v3153_v42  ;;  %v1537_v55 = vadd.f32 %v1536_v25, %v1410_v32 }
 0x17a   : > { %5084 = vst [vmem:[#allocation20_spill] sm:$0xff] %v4098_v5 }
 0x17b   : > { %v1538_v0 = vadd.f32 %v1537_v55, %v1411_v10  ;;  %1205 = vst [vmem:[%s3776_s30 + $0x290] sm:$0xff] %v4098_v5 }
 0x17d   : > { %v4010_v27 = vpop.f32.mrf.mxu0  ;;  %v4055_v2 = vpop.f32.mrf.mxu1 }
 0x17e   : > { %1147 = vst [vmem:[%s3776_s30 + $0xc0] sm:$0xff] %v4010_v27  ;;  %v1412_v59 = vmul.f32 %v4010_v27, %v4010_v27  ;;  %v4100_v42 = vpop.f32.mrf.mxu3  ;;  %v1275_v11 = vadd.f32 %v1274_v35, %v4010_v27 }
 0x17f   : > { %1179 = vst [vmem:[%s3776_s30 + $0x1c0] sm:$0xff] %v4055_v2 }
 0x180   : > { %1229 = vst [vmem:[%s3776_s30 + $0x350] sm:$0xff] %v4100_v42  ;;  %v1539_v16 = vadd.f32 %v1538_v0, %v1412_v59  ;;  %v4112_v5 = vpop.f32.mrf.mxu2 }
 0x181   : > { %1206 = vst [vmem:[%s3776_s30 + $0x298] sm:$0xff] %v4112_v5 }
 0x185   : > { %v863_v37 = vpop.f32.mrf.mxu0  ;;  %v4068_v33 = vpop.f32.mrf.mxu1 }
 0x186   : > { %1148 = vst [vmem:[%s3776_s30 + $0xc8] sm:$0xff] %v863_v37  ;;  %v1413_v53 = vmul.f32 %v863_v37, %v863_v37  ;;  %v1276_v21 = vadd.f32 %v1275_v11, %v863_v37  ;;  %v4114_v41 = vpop.f32.mrf.mxu3 }
 0x187   : > { %1180 = vst [vmem:[%s3776_s30 + $0x1c8] sm:$0xff] %v4068_v33 }
 0x188   : > { %v1540_v32 = vadd.f32 %v1539_v16, %v1413_v53  ;;  %1230 = vst [vmem:[%s3776_s30 + $0x358] sm:$0xff] %v4114_v41 }
 0x18d   : > { %v866_v43 = vpop.f32.mrf.mxu0  ;;  %v4092_v52 = vpop.f32.mrf.mxu1 }
 0x18e   : > { %1149 = vst [vmem:[%s3776_s30 + $0xd0] sm:$0xff] %v866_v43  ;;  %v1414_v25 = vmul.f32 %v866_v43, %v866_v43  ;;  %v1277_v18 = vadd.f32 %v1276_v21, %v866_v43  ;;  %v3154_v43 = vld [vmem:[%s3729_s4 + $0x1f0] sm:$0xff] }
 0x18f   : > { %1181 = vst [vmem:[%s3776_s30 + $0x1d0] sm:$0xff] %v4092_v52  ;;  %1110 = vmatmul.bf16.gmra.mxu3 %v3154_v43  ;;  %v1422_v43 = vmul.f32 %v3800_v58, %v3800_v58 }
 0x190   : > { %v1541_v55 = vadd.f32 %v1540_v32, %v1414_v25 }
 0x195   : > { %v868_v60 = vpop.f32.mrf.mxu0  ;;  %v4109_v10 = vpop.f32.mrf.mxu1 }
 0x196   : > { %1150 = vst [vmem:[%s3776_s30 + $0xd8] sm:$0xff] %v868_v60  ;;  %v1415_v4 = vmul.f32 %v868_v60, %v868_v60  ;;  %v1278_v27 = vadd.f32 %v1277_v18, %v868_v60 }
 0x197   : > { %1182 = vst [vmem:[%s3776_s30 + $0x1d8] sm:$0xff] %v4109_v10 }
 0x198   : > { %v1542_v37 = vadd.f32 %v1541_v55, %v1415_v4  ;;  %v4126_v55 = vpop.f32.mrf.mxu2 }
 0x199   : > { %1207 = vst [vmem:[%s3776_s30 + $0x2a0] sm:$0xff] %v4126_v55 }
 0x19d   : > { %v871_v19 = vpop.f32.mrf.mxu0  ;;  %v4123_v32 = vpop.f32.mrf.mxu1 }
 0x19e   : > { %1151 = vst [vmem:[%s3776_s30 + $0xe0] sm:$0xff] %v871_v19  ;;  %v1416_v35 = vmul.f32 %v871_v19, %v871_v19  ;;  %v1279_v59 = vadd.f32 %v1278_v27, %v871_v19  ;;  %v4128_v27 = vpop.f32.mrf.mxu3 }
 0x19f   : > { %1183 = vst [vmem:[%s3776_s30 + $0x1e0] sm:$0xff] %v4123_v32 }
 0x1a0   : > { %v1543_v11 = vadd.f32 %v1542_v37, %v1416_v35  ;;  %1231 = vst [vmem:[%s3776_s30 + $0x360] sm:$0xff] %v4128_v27  ;;  %v1421_v37 = vmul.f32 %v3793_v51, %v3793_v51 }
 0x1a5   : > { %v873_v62 = vpop.f32.mrf.mxu0 }
 0x1a6   : > { %1152 = vst [vmem:[%s3776_s30 + $0xe8] sm:$0xff] %v873_v62  ;;  %v1417_v0 = vmul.f32 %v873_v62, %v873_v62  ;;  %v1280_v60 = vadd.f32 %v1279_v59, %v873_v62  ;;  %v1420_v62 = vmul.f32 %v3786_v44, %v3786_v44 }
 0x1a8   : > { %v1544_v16 = vadd.f32 %v1543_v11, %v1417_v0 }
 0x1ad   : > { %v876_v49 = vpop.f32.mrf.mxu0 }
 0x1ae   : > { %1153 = vst [vmem:[%s3776_s30 + $0xf0] sm:$0xff] %v876_v49  ;;  %v1418_v53 = vmul.f32 %v876_v49, %v876_v49  ;;  %v1281_v21 = vadd.f32 %v1280_v60, %v876_v49  ;;  %v4145_v60 = vpop.f32.mrf.mxu1 }
 0x1af   : > { %1184 = vst [vmem:[%s3776_s30 + $0x1e8] sm:$0xff] %v4145_v60 }
 0x1b0   : > { %v1545_v4 = vadd.f32 %v1544_v16, %v1418_v53  ;;  %v1423_v53 = vmul.f32 %v3807_v1, %v3807_v1 }
 0x1b5   : > { %v878_v25 = vpop.f32.mrf.mxu0 }
 0x1b6   : > { %1154 = vst [vmem:[%s3776_s30 + $0xf8] sm:$0xff] %v878_v25  ;;  %v1282_v19 = vadd.f32 %v1281_v21, %v878_v25  ;;  %v1419_v18 = vmul.f32 %v878_v25, %v878_v25  ;;  %v4154_v25 = vpop.f32.mrf.mxu3 }
 0x1b7   : > { %1232 = vst [vmem:[%s3776_s30 + $0x368] sm:$0xff] %v4154_v25 }
 0x1b8   : > { %v1283_v35 = vadd.f32 %v1282_v19, %v3786_v44  ;;  %v1546_v49 = vadd.f32 %v1545_v4, %v1419_v18  ;;  %v1425_v18 = vmul.f32 %v3821_v15, %v3821_v15 }
 0x1ba   : > { %v1284_v59 = vadd.f32 %v1283_v35, %v3793_v51  ;;  %v1547_v0 = vadd.f32 %v1546_v49, %v1420_v62  ;;  %v4152_v51 = vpop.f32.mrf.mxu2  ;;  %v1426_v49 = vmul.f32 %v3828_v22, %v3828_v22 }
 0x1bb   : > { %1208 = vst [vmem:[%s3776_s30 + $0x2a8] sm:$0xff] %v4152_v51 }
 0x1bc   : > { %v1285_v11 = vadd.f32 %v1284_v59, %v3800_v58  ;;  %v1548_v44 = vadd.f32 %v1547_v0, %v1421_v37  ;;  %v1424_v58 = vmul.f32 %v3814_v8, %v3814_v8  ;;  %v1427_v0 = vmul.f32 %v3835_v29, %v3835_v29 }
 0x1be   : > { %v1286_v16 = vadd.f32 %v1285_v11, %v3807_v1  ;;  %v1549_v21 = vadd.f32 %v1548_v44, %v1422_v43  ;;  %v3155_v1 = vld [vmem:[%s3729_s4 + $0x1f8] sm:$0xff]  ;;  %v4179_v44 = vpop.f32.mrf.mxu3 }
 0x1bf   : > { %1115 = vmatmul.bf16.gmra.mxu3 %v3155_v1  ;;  %1233 = vst [vmem:[%s3776_s30 + $0x370] sm:$0xff] %v4179_v44 }
 0x1c0   : > { %v1287_v4 = vadd.f32 %v1286_v16, %v3814_v8  ;;  %v1550_v19 = vadd.f32 %v1549_v21, %v1423_v53  ;;  %v4170_v8 = vpop.f32.mrf.mxu1 }
 0x1c1   : > { %1185 = vst [vmem:[%s3776_s30 + $0x1f0] sm:$0xff] %v4170_v8 }
 0x1c2   : > { %v1288_v62 = vadd.f32 %v1287_v4, %v3821_v15  ;;  %v1551_v35 = vadd.f32 %v1550_v19, %v1424_v58  ;;  %v4177_v15 = vpop.f32.mrf.mxu2  ;;  %v1430_v4 = vmul.f32 %v3864_v54, %v3864_v54 }
 0x1c3   : > { %1209 = vst [vmem:[%s3776_s30 + $0x2b0] sm:$0xff] %v4177_v15 }
 0x1c4   : > { %v1289_v37 = vadd.f32 %v1288_v62, %v3828_v22  ;;  %v1552_v59 = vadd.f32 %v1551_v35, %v1425_v18  ;;  %v1428_v22 = vmul.f32 %v3842_v36, %v3842_v36 }
 0x1c6   : > { %v1290_v43 = vadd.f32 %v1289_v37, %v3835_v29  ;;  %v1553_v11 = vadd.f32 %v1552_v59, %v1426_v49  ;;  %v1429_v29 = vmul.f32 %v3853_v45, %v3853_v45 }
 0x1c8   : > { %v1291_v53 = vadd.f32 %v1290_v43, %v3842_v36  ;;  %v1554_v16 = vadd.f32 %v1553_v11, %v1427_v0  ;;  %v4194_v18 = vpop.f32.mrf.mxu1  ;;  %v1431_v36 = vmul.f32 %v3875_v63, %v3875_v63  ;;  %v1434_v11 = vmul.f32 %v3907_v26, %v3907_v26 }
 0x1c9   : > { %1186 = vst [vmem:[%s3776_s30 + $0x1f8] sm:$0xff] %v4194_v18 }
 0x1ca   : > { %v1292_v21 = vadd.f32 %v1291_v53, %v3853_v45  ;;  %v1555_v58 = vadd.f32 %v1554_v16, %v1428_v22  ;;  %v4201_v49 = vpop.f32.mrf.mxu2  ;;  %v4203_v45 = vpop.f32.mrf.mxu3  ;;  %v1435_v16 = vmul.f32 %v3917_v34, %v3917_v34 }
 0x1cb   : > { %1210 = vst [vmem:[%s3776_s30 + $0x2b8] sm:$0xff] %v4201_v49 }
 0x1cc   : > { %v1293_v19 = vadd.f32 %v1292_v21, %v3864_v54  ;;  %v1556_v1 = vadd.f32 %v1555_v58, %v1429_v29  ;;  %v1432_v54 = vmul.f32 %v3886_v9, %v3886_v9  ;;  %1234 = vst [vmem:[%s3776_s30 + $0x378] sm:$0xff] %v4203_v45 }
 0x1ce   : > { %v1294_v62 = vadd.f32 %v1293_v19, %v3875_v63  ;;  %v1557_v35 = vadd.f32 %v1556_v1, %v1430_v4  ;;  %v1433_v63 = vmul.f32 %v3896_v17, %v3896_v17 }
 0x1d0   : > { %v1558_v37 = vadd.f32 %v1557_v35, %v1431_v36  ;;  %v1295_v59 = vadd.f32 %v1294_v62, %v3886_v9  ;;  %v1438_v36 = vmul.f32 %v3962_v6, %v3962_v6 }
 0x1d2   : > { %v1296_v0 = vadd.f32 %v1295_v59, %v3896_v17  ;;  %v1559_v43 = vadd.f32 %v1558_v37, %v1432_v54  ;;  %v4221_v21 = vpop.f32.mrf.mxu2  ;;  %v4223_v58 = vpop.f32.mrf.mxu3  ;;  %v1436_v17 = vmul.f32 %v3928_v46, %v3928_v46  ;;  %v1439_v54 = vmul.f32 %v3978_v13, %v3978_v13 }
 0x1d3   : > { %1211 = vst [vmem:[%s3776_s30 + $0x2c0] sm:$0xff] %v4221_v21 }
 0x1d4   : > { %v1297_v22 = vadd.f32 %v1296_v0, %v3907_v26  ;;  %v1560_v53 = vadd.f32 %v1559_v43, %v1433_v63  ;;  %1235 = vst [vmem:[%s3776_s30 + $0x380] sm:$0xff] %v4223_v58 }
 0x1d6   : > { %v1298_v9 = vadd.f32 %v1297_v22, %v3917_v34  ;;  %v1561_v29 = vadd.f32 %v1560_v53, %v1434_v11  ;;  %v1437_v34 = vmul.f32 %v3941_v56, %v3941_v56  ;;  %v1442_v22 = vmul.f32 %v4028_v40, %v4028_v40 }
 0x1d8   : > { %v1299_v4 = vadd.f32 %v1298_v9, %v3928_v46  ;;  %v1562_v26 = vadd.f32 %v1561_v29, %v1435_v16  ;;  %v1443_v9 = vmul.f32 %v4041_v47, %v4041_v47 }
 0x1da   : > { %v1300_v19 = vadd.f32 %v1299_v4, %v3941_v56  ;;  %v1563_v1 = vadd.f32 %v1562_v26, %v1436_v17  ;;  %v4241_v59 = vpop.f32.mrf.mxu2  ;;  %v4243_v63 = vpop.f32.mrf.mxu3  ;;  %v1440_v56 = vmul.f32 %v3996_v23, %v3996_v23  ;;  %v1444_v26 = vmul.f32 %v4055_v2, %v4055_v2 }
 0x1db   : > { %1212 = vst [vmem:[%s3776_s30 + $0x2c8] sm:$0xff] %v4241_v59 }
 0x1dc   : > { %v1301_v62 = vadd.f32 %v1300_v19, %v3962_v6  ;;  %v1564_v35 = vadd.f32 %v1563_v1, %v1437_v34  ;;  %1236 = vst [vmem:[%s3776_s30 + $0x388] sm:$0xff] %v4243_v63  ;;  %v1445_v19 = vmul.f32 %v4068_v33, %v4068_v33 }
 0x1de   : > { %v1302_v46 = vadd.f32 %v1301_v62, %v3978_v13  ;;  %v1565_v37 = vadd.f32 %v1564_v35, %v1438_v36  ;;  %v1441_v13 = vmul.f32 %v4012_v28, %v4012_v28  ;;  %v1446_v62 = vmul.f32 %v4092_v52, %v4092_v52 }
 0x1e0   : > { %v1303_v0 = vadd.f32 %v1302_v46, %v3996_v23  ;;  %v1566_v6 = vadd.f32 %v1565_v37, %v1439_v54 }
 0x1e2   : > { %v1304_v43 = vadd.f32 %v1303_v0, %v4012_v28  ;;  %v1567_v11 = vadd.f32 %v1566_v6, %v1440_v56  ;;  %v4261_v17 = vpop.f32.mrf.mxu2  ;;  %v4263_v4 = vpop.f32.mrf.mxu3  ;;  %v1448_v0 = vmul.f32 %v4123_v32, %v4123_v32 }
 0x1e3   : > { %1213 = vst [vmem:[%s3776_s30 + $0x2d0] sm:$0xff] %v4261_v17 }
 0x1e4   : > { %v1305_v53 = vadd.f32 %v1304_v43, %v4028_v40  ;;  %v1568_v16 = vadd.f32 %v1567_v11, %v1441_v13  ;;  %1237 = vst [vmem:[%s3776_s30 + $0x390] sm:$0xff] %v4263_v4  ;;  %v1450_v11 = vmul.f32 %v4170_v8, %v4170_v8 }
 0x1e6   : > { %v1306_v23 = vadd.f32 %v1305_v53, %v4041_v47  ;;  %v1569_v29 = vadd.f32 %v1568_v16, %v1442_v22 }
 0x1e8   : > { %v1307_v28 = vadd.f32 %v1306_v23, %v4055_v2  ;;  %v1570_v40 = vadd.f32 %v1569_v29, %v1443_v9  ;;  %v1447_v2 = vmul.f32 %v4109_v10, %v4109_v10 }
 0x1ea   : > { %v1571_v34 = vadd.f32 %v1570_v40, %v1444_v26  ;;  %v1308_v47 = vadd.f32 %v1307_v28, %v4068_v33  ;;  %v4281_v46 = vpop.f32.mrf.mxu2  ;;  %v4283_v37 = vpop.f32.mrf.mxu3  ;;  %v1454_v26 = vmul.f32 %v3867_v57, %v3867_v57 }
 0x1eb   : > { %1214 = vst [vmem:[%s3776_s30 + $0x2d8] sm:$0xff] %v4281_v46 }
 0x1ec   : > { %v1572_v1 = vadd.f32 %v1571_v34, %v1445_v19  ;;  %v1309_v36 = vadd.f32 %v1308_v47, %v4092_v52  ;;  %1238 = vst [vmem:[%s3776_s30 + $0x398] sm:$0xff] %v4283_v37  ;;  %v1455_v47 = vmul.f32 %v3878_v3, %v3878_v3 }
 0x1ee   : > { %v1573_v35 = vadd.f32 %v1572_v1, %v1446_v62  ;;  %v1310_v54 = vadd.f32 %v1309_v36, %v4109_v10  ;;  %v1449_v10 = vmul.f32 %v4145_v60, %v4145_v60 }
 0x1f0   : > { %v1574_v33 = vadd.f32 %v1573_v35, %v1447_v2  ;;  %v1311_v56 = vadd.f32 %v1310_v54, %v4123_v32  ;;  %v1451_v32 = vmul.f32 %v4194_v18, %v4194_v18  ;;  %v1458_v2 = vmul.f32 %v3910_v30, %v3910_v30 }
 0x1f2   : > { %v1575_v52 = vadd.f32 %v1574_v33, %v1448_v0  ;;  %v1312_v6 = vadd.f32 %v1311_v56, %v4145_v60  ;;  %v4301_v16 = vpop.f32.mrf.mxu2  ;;  %v4303_v9 = vpop.f32.mrf.mxu3  ;;  %v1452_v60 = vmul.f32 %v3845_v39, %v3845_v39  ;;  %v1459_v0 = vmul.f32 %v3920_v38, %v3920_v38 }
 0x1f3   : > { %1215 = vst [vmem:[%s3776_s30 + $0x2e0] sm:$0xff] %v4301_v16 }
 0x1f4   : > { %v1576_v13 = vadd.f32 %v1575_v52, %v1449_v10  ;;  %v1313_v43 = vadd.f32 %v1312_v6, %v4170_v8  ;;  %1239 = vst [vmem:[%s3776_s30 + $0x3a0] sm:$0xff] %v4303_v9  ;;  %v1453_v8 = vmul.f32 %v3856_v48, %v3856_v48 }
 0x1f6   : > { %v1577_v22 = vadd.f32 %v1576_v13, %v1450_v11  ;;  %v1314_v53 = vadd.f32 %v1313_v43, %v4194_v18 }
 0x1f8   : > { %v1315_v23 = vadd.f32 %v1314_v53, %v3845_v39  ;;  %v1578_v29 = vadd.f32 %v1577_v22, %v1451_v32  ;;  %v1462_v22 = vmul.f32 %v3966_v7, %v3966_v7 }
 0x1fa   : > { %v1316_v18 = vadd.f32 %v1315_v23, %v3856_v48  ;;  %v1579_v28 = vadd.f32 %v1578_v29, %v1452_v60  ;;  %v4321_v1 = vpop.f32.mrf.mxu2  ;;  %v4323_v36 = vpop.f32.mrf.mxu3  ;;  %v1456_v48 = vmul.f32 %v3889_v12, %v3889_v12  ;;  %v1463_v60 = vmul.f32 %v3982_v14, %v3982_v14 }
 0x1fb   : > { %1216 = vst [vmem:[%s3776_s30 + $0x2e8] sm:$0xff] %v4321_v1 }
 0x1fc   : > { %v1317_v40 = vadd.f32 %v1316_v18, %v3867_v57  ;;  %v1580_v34 = vadd.f32 %v1579_v28, %v1453_v8  ;;  %1240 = vst [vmem:[%s3776_s30 + $0x3a8] sm:$0xff] %v4323_v36  ;;  %v1465_v28 = vmul.f32 %v4016_v31, %v4016_v31 }
 0x1fe   : > { %v1318_v39 = vadd.f32 %v1317_v40, %v3878_v3  ;;  %v1581_v19 = vadd.f32 %v1580_v34, %v1454_v26  ;;  %v1457_v3 = vmul.f32 %v3899_v20, %v3899_v20  ;;  %v5085_v40 = vld [vmem:[#allocation12_spill] sm:$0xff] }
 0x1ff   : > { %v1466_v34 = vmul.f32 %v5085_v40, %v5085_v40 }
 0x200   : > { %v1319_v62 = vadd.f32 %v1318_v39, %v3889_v12  ;;  %v1582_v57 = vadd.f32 %v1581_v19, %v1455_v47  ;;  %v5086_v19 = vld [vmem:[#allocation14_spill] sm:$0xff] }
 0x202   : > { %v1320_v35 = vadd.f32 %v1319_v62, %v3899_v20  ;;  %v1583_v54 = vadd.f32 %v1582_v57, %v1456_v48  ;;  %v4341_v6 = vpop.f32.mrf.mxu2  ;;  %v4343_v10 = vpop.f32.mrf.mxu3  ;;  %v1460_v20 = vmul.f32 %v3931_v50, %v3931_v50  ;;  %v1467_v48 = vmul.f32 %v5086_v19, %v5086_v19 }
 0x203   : > { %1217 = vst [vmem:[%s3776_s30 + $0x2f0] sm:$0xff] %v4341_v6 }
 0x204   : > { %v1321_v33 = vadd.f32 %v1320_v35, %v3910_v30  ;;  %v1584_v56 = vadd.f32 %v1583_v54, %v1457_v3  ;;  %1241 = vst [vmem:[%s3776_s30 + $0x3b0] sm:$0xff] %v4343_v10  ;;  %v5087_v3 = vld [vmem:[#allocation16_spill] sm:$0xff] }
 0x206   : > { %v1322_v12 = vadd.f32 %v1321_v33, %v3920_v38  ;;  %v1585_v52 = vadd.f32 %v1584_v56, %v1458_v2  ;;  %v1461_v38 = vmul.f32 %v3946_v61, %v3946_v61  ;;  %v5088_v2 = vld [vmem:[#allocation18_spill] sm:$0xff] }
 0x207   : > { %v1469_v33 = vmul.f32 %v5088_v2, %v5088_v2 }
 0x208   : > { %v1323_v13 = vadd.f32 %v1322_v12, %v3931_v50  ;;  %v1586_v30 = vadd.f32 %v1585_v52, %v1459_v0  ;;  %v5089_v12 = vld [vmem:[#allocation20_spill] sm:$0xff] }
 0x209   : > { %v1470_v52 = vmul.f32 %v5089_v12, %v5089_v12 }
 0x20a   : > { %v1324_v43 = vadd.f32 %v1323_v13, %v3946_v61  ;;  %v1587_v11 = vadd.f32 %v1586_v30, %v1460_v20  ;;  %v4361_v29 = vpop.f32.mrf.mxu2  ;;  %v4363_v8 = vpop.f32.mrf.mxu3  ;;  %v1464_v61 = vmul.f32 %v4000_v24, %v4000_v24  ;;  %v1471_v30 = vmul.f32 %v4112_v5, %v4112_v5 }
 0x20b   : > { %1218 = vst [vmem:[%s3776_s30 + $0x2f8] sm:$0xff] %v4361_v29 }
 0x20c   : > { %v1325_v53 = vadd.f32 %v1324_v43, %v3966_v7  ;;  %v1588_v32 = vadd.f32 %v1587_v11, %v1461_v38  ;;  %1242 = vst [vmem:[%s3776_s30 + $0x3b8] sm:$0xff] %v4363_v8 }
 0x20e   : > { %v1326_v50 = vadd.f32 %v1325_v53, %v3982_v14  ;;  %v1589_v23 = vadd.f32 %v1588_v32, %v1462_v22  ;;  %v1472_v22 = vmul.f32 %v4126_v55, %v4126_v55 }
 0x210   : > { %v1590_v18 = vadd.f32 %v1589_v23, %v1463_v60  ;;  %v1327_v7 = vadd.f32 %v1326_v50, %v4000_v24  ;;  %v1473_v60 = vmul.f32 %v4152_v51, %v4152_v51 }
 0x212   : > { %v1328_v14 = vadd.f32 %v1327_v7, %v4016_v31  ;;  %v1591_v26 = vadd.f32 %v1590_v18, %v1464_v61  ;;  %v4381_v57 = vpop.f32.mrf.mxu3  ;;  %v1468_v31 = vmul.f32 %v5087_v3, %v5087_v3 }
 0x213   : > { %1243 = vst [vmem:[%s3776_s30 + $0x3c0] sm:$0xff] %v4381_v57 }
 0x214   : > { %v1329_v47 = vadd.f32 %v1328_v14, %v5085_v40  ;;  %v1592_v39 = vadd.f32 %v1591_v26, %v1465_v28  ;;  %v1475_v28 = vmul.f32 %v4201_v49, %v4201_v49  ;;  %v1476_v40 = vmul.f32 %v4221_v21, %v4221_v21 }
 0x216   : > { %v1330_v62 = vadd.f32 %v1329_v47, %v5086_v19  ;;  %v1593_v24 = vadd.f32 %v1592_v39, %v1466_v34  ;;  %v1477_v47 = vmul.f32 %v4241_v59, %v4241_v59  ;;  %v1478_v19 = vmul.f32 %v4261_v17, %v4261_v17 }
 0x218   : > { %v1331_v35 = vadd.f32 %v1330_v62, %v5087_v3  ;;  %v1594_v54 = vadd.f32 %v1593_v24, %v1467_v48  ;;  %v1479_v24 = vmul.f32 %v4281_v46, %v4281_v46 }
 0x21a   : > { %v1332_v56 = vadd.f32 %v1331_v35, %v5088_v2  ;;  %v1595_v0 = vadd.f32 %v1594_v54, %v1468_v31  ;;  %v4397_v11 = vpop.f32.mrf.mxu3  ;;  %v1480_v31 = vmul.f32 %v4301_v16, %v4301_v16  ;;  %v1481_v54 = vmul.f32 %v4321_v1, %v4321_v1 }
 0x21b   : > { %1244 = vst [vmem:[%s3776_s30 + $0x3c8] sm:$0xff] %v4397_v11 }
 0x21c   : > { %v1333_v20 = vadd.f32 %v1332_v56, %v5089_v12  ;;  %v1596_v13 = vadd.f32 %v1595_v0, %v1469_v33  ;;  %v1482_v33 = vmul.f32 %v4341_v6, %v4341_v6  ;;  %v1483_v12 = vmul.f32 %v4361_v29, %v4361_v29 }
 0x21e   : > { %v1334_v38 = vadd.f32 %v1333_v20, %v4112_v5  ;;  %v1597_v43 = vadd.f32 %v1596_v13, %v1470_v52  ;;  %v1474_v5 = vmul.f32 %v4177_v15, %v4177_v15  ;;  %v5090_v52 = vld [vmem:[#allocation6_spill] sm:$0xff] }
 0x220   : > { %v1335_v53 = vadd.f32 %v1334_v38, %v4126_v55  ;;  %v1598_v32 = vadd.f32 %v1597_v43, %v1471_v30  ;;  %v5091_v30 = vld [vmem:[#allocation7_spill] sm:$0xff] }
 0x222   : > { %v1336_v50 = vadd.f32 %v1335_v53, %v4152_v51  ;;  %v1599_v23 = vadd.f32 %v1598_v32, %v1472_v22  ;;  %v4413_v55 = vpop.f32.mrf.mxu3  ;;  %v5092_v22 = vld [vmem:[#allocation8_spill] sm:$0xff] }
 0x223   : > { %1245 = vst [vmem:[%s3776_s30 + $0x3d0] sm:$0xff] %v4413_v55 }
 0x224   : > { %v1337_v61 = vadd.f32 %v1336_v50, %v4177_v15  ;;  %v1600_v18 = vadd.f32 %v1599_v23, %v1473_v60  ;;  %v5093_v60 = vld [vmem:[#allocation9_spill] sm:$0xff] }
 0x225   : > { %v1487_v50 = vmul.f32 %v5093_v60, %v5093_v60 }
 0x226   : > { %v1338_v7 = vadd.f32 %v1337_v61, %v4201_v49  ;;  %v1601_v14 = vadd.f32 %v1600_v18, %v1474_v5  ;;  %v5094_v18 = vld [vmem:[#allocation10_spill] sm:$0xff] }
 0x228   : > { %v1602_v26 = vadd.f32 %v1601_v14, %v1475_v28  ;;  %v1339_v51 = vadd.f32 %v1338_v7, %v4221_v21  ;;  %v1488_v7 = vmul.f32 %v5094_v18, %v5094_v18 }
 0x22a   : > { %v1603_v34 = vadd.f32 %v1602_v26, %v1476_v40  ;;  %v1340_v15 = vadd.f32 %v1339_v51, %v4241_v59  ;;  %v4429_v21 = vpop.f32.mrf.mxu3  ;;  %v5095_v26 = vld [vmem:[#allocation11_spill] sm:$0xff] }
 0x22b   : > { %1246 = vst [vmem:[%s3776_s30 + $0x3d8] sm:$0xff] %v4429_v21  ;;  %v1489_v51 = vmul.f32 %v5095_v26, %v5095_v26 }
 0x22c   : > { %v1604_v39 = vadd.f32 %v1603_v34, %v1477_v47  ;;  %v1341_v49 = vadd.f32 %v1340_v15, %v4261_v17  ;;  %v5096_v15 = vld [vmem:[#allocation13_spill] sm:$0xff] }
 0x22d   : > { %v1490_v47 = vmul.f32 %v5096_v15, %v5096_v15 }
 0x22e   : > { %v1605_v48 = vadd.f32 %v1604_v39, %v1478_v19  ;;  %v1342_v62 = vadd.f32 %v1341_v49, %v4281_v46  ;;  %v5097_v19 = vld [vmem:[#allocation15_spill] sm:$0xff] }
 0x230   : > { %v1606_v3 = vadd.f32 %v1605_v48, %v1479_v24  ;;  %v1343_v59 = vadd.f32 %v1342_v62, %v4301_v16  ;;  %v1491_v48 = vmul.f32 %v5097_v19, %v5097_v19 }
 0x232   : > { %v1607_v35 = vadd.f32 %v1606_v3, %v1480_v31  ;;  %v1344_v17 = vadd.f32 %v1343_v59, %v4321_v1  ;;  %v4445_v16 = vpop.f32.mrf.mxu3  ;;  %v1484_v1 = vmul.f32 %v5090_v52, %v5090_v52  ;;  %v5098_v59 = vld [vmem:[#allocation17_spill] sm:$0xff] }
 0x233   : > { %1247 = vst [vmem:[%s3776_s30 + $0x3e0] sm:$0xff] %v4445_v16  ;;  %v1492_v31 = vmul.f32 %v5098_v59, %v5098_v59 }
 0x234   : > { %v1608_v2 = vadd.f32 %v1607_v35, %v1481_v54  ;;  %v1345_v46 = vadd.f32 %v1344_v17, %v4341_v6  ;;  %v1485_v6 = vmul.f32 %v5091_v30, %v5091_v30  ;;  %v5099_v54 = vld [vmem:[#allocation19_spill] sm:$0xff] }
 0x236   : > { %v1609_v56 = vadd.f32 %v1608_v2, %v1482_v33  ;;  %v1346_v0 = vadd.f32 %v1345_v46, %v4361_v29  ;;  %v1486_v29 = vmul.f32 %v5092_v22, %v5092_v22  ;;  %v1493_v2 = vmul.f32 %v5099_v54, %v5099_v54 }
 0x238   : > { %v1347_v20 = vadd.f32 %v1346_v0, %v5090_v52  ;;  %v1610_v13 = vadd.f32 %v1609_v56, %v1483_v12  ;;  %v1494_v56 = vmul.f32 %v4100_v42, %v4100_v42  ;;  %v1495_v52 = vmul.f32 %v4114_v41, %v4114_v41 }
 0x23a   : > { %v1348_v38 = vadd.f32 %v1347_v20, %v5091_v30  ;;  %v1611_v43 = vadd.f32 %v1610_v13, %v1484_v1  ;;  %v4461_v61 = vpop.f32.mrf.mxu3  ;;  %v1496_v30 = vmul.f32 %v4128_v27, %v4128_v27 }
 0x23b   : > { %1248 = vst [vmem:[%s3776_s30 + $0x3e8] sm:$0xff] %v4461_v61 }
 0x23c   : > { %v1349_v53 = vadd.f32 %v1348_v38, %v5092_v22  ;;  %v1612_v32 = vadd.f32 %v1611_v43, %v1485_v6  ;;  %v1497_v43 = vmul.f32 %v4154_v25, %v4154_v25 }
 0x23e   : > { %v1350_v23 = vadd.f32 %v1349_v53, %v5093_v60  ;;  %v1613_v5 = vadd.f32 %v1612_v32, %v1486_v29  ;;  %v1498_v29 = vmul.f32 %v4179_v44, %v4179_v44  ;;  %v1499_v32 = vmul.f32 %v4203_v45, %v4203_v45 }
 0x240   : > { %v1351_v28 = vadd.f32 %v1350_v23, %v5094_v18  ;;  %v1614_v14 = vadd.f32 %v1613_v5, %v1487_v50 }
 0x242   : > { %v1352_v40 = vadd.f32 %v1351_v28, %v5095_v26  ;;  %v1615_v34 = vadd.f32 %v1614_v14, %v1488_v7  ;;  %v4477_v3 = vpop.f32.mrf.mxu3 }
 0x243   : > { %1249 = vst [vmem:[%s3776_s30 + $0x3f0] sm:$0xff] %v4477_v3 }
 0x244   : > { %v1353_v39 = vadd.f32 %v1352_v40, %v5096_v15  ;;  %v1616_v49 = vadd.f32 %v1615_v34, %v1489_v51 }
 0x246   : > { %v1354_v62 = vadd.f32 %v1353_v39, %v5097_v19  ;;  %v1617_v24 = vadd.f32 %v1616_v49, %v1490_v47  ;;  %v1507_v19 = vmul.f32 %v4363_v8, %v4363_v8 }
 0x248   : > { %v1355_v35 = vadd.f32 %v1354_v62, %v5098_v59  ;;  %v1618_v17 = vadd.f32 %v1617_v24, %v1491_v48  ;;  %v1508_v24 = vmul.f32 %v4381_v57, %v4381_v57 }
 0x24a   : > { %v1356_v46 = vadd.f32 %v1355_v35, %v5099_v54  ;;  %v1619_v33 = vadd.f32 %v1618_v17, %v1492_v31  ;;  %v1118_v13 = vpop.f32.mrf.mxu3  ;;  %v1509_v31 = vmul.f32 %v4397_v11, %v4397_v11  ;;  %v1510_v17 = vmul.f32 %v4413_v55, %v4413_v55 }
 0x24b   : > { %1250 = vst [vmem:[%s3776_s30 + $0x3f8] sm:$0xff] %v1118_v13 }
 0x24c   : > { %v1357_v0 = vadd.f32 %v1356_v46, %v4100_v42  ;;  %v1620_v12 = vadd.f32 %v1619_v33, %v1493_v2  ;;  %v1511_v2 = vmul.f32 %v4429_v21, %v4429_v21  ;;  %v1512_v33 = vmul.f32 %v4445_v16, %v4445_v16 }
 0x24e   : > { %v1358_v1 = vadd.f32 %v1357_v0, %v4114_v41  ;;  %v1621_v20 = vadd.f32 %v1620_v12, %v1494_v56  ;;  %v1513_v0 = vmul.f32 %v4461_v61, %v4461_v61 }
 0x250   : > { %v1622_v6 = vadd.f32 %v1621_v20, %v1495_v52  ;;  %v1359_v38 = vadd.f32 %v1358_v1, %v4128_v27  ;;  %v1500_v27 = vmul.f32 %v4223_v58, %v4223_v58  ;;  %v1514_v52 = vmul.f32 %v4477_v3, %v4477_v3 }
 0x251   : > { %v1515_v20 = vmul.f32 %v1118_v13, %v1118_v13 }
 0x252   : > { %v1360_v42 = vadd.f32 %v1359_v38, %v4154_v25  ;;  %v1623_v22 = vadd.f32 %v1622_v6, %v1496_v30  ;;  %v1501_v25 = vmul.f32 %v4243_v63, %v4243_v63 }
 0x254   : > { %v1361_v41 = vadd.f32 %v1360_v42, %v4179_v44  ;;  %v1624_v53 = vadd.f32 %v1623_v22, %v1497_v43  ;;  %v1502_v44 = vmul.f32 %v4263_v4, %v4263_v4 }
 0x256   : > { %v1362_v60 = vadd.f32 %v1361_v41, %v4203_v45  ;;  %v1625_v50 = vadd.f32 %v1624_v53, %v1498_v29  ;;  %v1503_v45 = vmul.f32 %v4283_v37, %v4283_v37 }
 0x258   : > { %v1363_v23 = vadd.f32 %v1362_v60, %v4223_v58  ;;  %v1626_v5 = vadd.f32 %v1625_v50, %v1499_v32  ;;  %v1504_v58 = vmul.f32 %v4303_v9, %v4303_v9  ;;  %v1387_v50 = vld [vmem:[#allocation4] sm:$0x1] }
 0x25a   : > { %v1364_v18 = vadd.f32 %v1363_v23, %v4243_v63  ;;  %v1627_v7 = vadd.f32 %v1626_v5, %v1500_v27  ;;  %v1505_v63 = vmul.f32 %v4323_v36, %v4323_v36 }
 0x25c   : > { %v1365_v28 = vadd.f32 %v1364_v18, %v4263_v4  ;;  %v1628_v14 = vadd.f32 %v1627_v7, %v1501_v25  ;;  %v1506_v4 = vmul.f32 %v4343_v10, %v4343_v10 }
 0x25e   : > { %v1366_v26 = vadd.f32 %v1365_v28, %v4283_v37  ;;  %v1629_v51 = vadd.f32 %v1628_v14, %v1502_v44 }
 0x260   : > { %v1367_v40 = vadd.f32 %v1366_v26, %v4303_v9  ;;  %v1630_v34 = vadd.f32 %v1629_v51, %v1503_v45 }
 0x262   : > { %v1368_v15 = vadd.f32 %v1367_v40, %v4323_v36  ;;  %v1631_v47 = vadd.f32 %v1630_v34, %v1504_v58 }
 0x264   : > { %v1369_v39 = vadd.f32 %v1368_v15, %v4343_v10  ;;  %v1632_v49 = vadd.f32 %v1631_v47, %v1505_v63 }
 0x266   : > { %v1370_v37 = vadd.f32 %v1369_v39, %v4363_v8  ;;  %v1633_v48 = vadd.f32 %v1632_v49, %v1506_v4 }
 0x268   : > { %v1634_v9 = vadd.f32 %v1633_v48, %v1507_v19  ;;  %v1371_v62 = vadd.f32 %v1370_v37, %v4381_v57 }
 0x26a   : > { %v1635_v36 = vadd.f32 %v1634_v9, %v1508_v24  ;;  %v1372_v59 = vadd.f32 %v1371_v62, %v4397_v11 }
 0x26c   : > { %v1636_v10 = vadd.f32 %v1635_v36, %v1509_v31  ;;  %v1373_v35 = vadd.f32 %v1372_v59, %v4413_v55 }
 0x26e   : > { %v1637_v8 = vadd.f32 %v1636_v10, %v1510_v17  ;;  %v1374_v54 = vadd.f32 %v1373_v35, %v4429_v21 }
 0x270   : > { %v1638_v46 = vadd.f32 %v1637_v8, %v1511_v2  ;;  %v1375_v57 = vadd.f32 %v1374_v54, %v4445_v16 }
 0x272   : > { %v1639_v56 = vadd.f32 %v1638_v46, %v1512_v33  ;;  %v1376_v11 = vadd.f32 %v1375_v57, %v4461_v61  ;;  %v1251_v61 = vld [vmem:[#allocation3] sm:$0x1] }
 0x274   : > { %v1640_v12 = vadd.f32 %v1639_v56, %v1513_v0  ;;  %v1377_v55 = vadd.f32 %v1376_v11, %v4477_v3 }
 0x276   : > { %v1641_v1 = vadd.f32 %v1640_v12, %v1514_v52  ;;  %v1378_v21 = vadd.f32 %v1377_v55, %v1118_v13 }
 0x278   : > { %v1379_v30 = vrot.slane %v1378_v21, 4  ;;  %v1642_v6 = vadd.f32 %v1641_v1, %v1515_v20 }
 0x27a   : > { %v1380_v38 = vadd.f32 %v1379_v30, %v1378_v21  ;;  %v1643_v43 = vrot.slane %v1642_v6, 4 }
 0x27c   : > { %v1381_v16 = vrot.slane %v1380_v38, 2  ;;  %v1644_v42 = vadd.f32 %v1643_v43, %v1642_v6 }
 0x27e   : > { %v1382_v22 = vadd.f32 %v1381_v16, %v1380_v38  ;;  %v1645_v29 = vrot.slane %v1644_v42, 2 }
 0x280   : > { %v1383_v41 = vrot.slane %v1382_v22, 1  ;;  %v1646_v53 = vadd.f32 %v1645_v29, %v1644_v42 }
 0x282   : > { %v1384_v32 = vadd.f32 %v1383_v41, %v1382_v22  ;;  %v1647_v60 = vrot.slane %v1646_v53, 1 }
 0x284   : > { %v1385_v27 = vadd.f32 %v1384_v32, %v1251_v61  ;;  %v1648_v23 = vadd.f32 %v1647_v60, %v1646_v53 }
 0x286   : > { %1386 = vst [vmem:[#allocation3] sm:$0x1] %v1385_v27  ;;  %v1649_v3 = vadd.f32 %v1648_v23, %v1387_v50 }
 0x288   : > { %1650 = vst [vmem:[#allocation4] sm:$0x1] %v1649_v3 }
 0x289 PF: > { %p1651_p11 = scmp.eq.s32.totalorder %s3644_s13, 1 }
 0x28b   : > { %p1652_p12 = pnand %p1651_p11, %p206_p6 }
 0x28d   : > { %1655 = sbr.rel (%p1652_p12) target bundleno = 694 (0x2b6), region = 44 }
 0x292   : > { %v1656_v13 = vld [vmem:[#allocation3] sm:$0x1]  ;;  %v1658_v5 = vld [vmem:[#allocation4] sm:$0x1] }
 0x293   : > { %v1657_v25 = vmul.f32 0.00048828125, %v1656_v13  ;;  %v1659_v18 = vmul.f32 0.00048828125, %v1658_v5  ;;  %v1663_v34 = vld [vmem:[%s5038_s2] sm:$0x1]  ;;  %v1677_v4 = vld [vmem:[%s5038_s2 + $0x1] sm:$0x1] }
 0x295   : > { %v1660_v7 = vmul.f32 %v1657_v25, %v1657_v25 }
 0x297   : > { %v1661_v44 = vsub.f32 %v1659_v18, %v1660_v7 }
 0x299   : > { %v1662_v28 = vmax.f32 %v1661_v44, 0.0 }
 0x29b   : > { %v1664_v14 = vadd.f32 1e-05, %v1662_v28 }
 0x29d   : > { %3612 = vrsqrt.f32 %v1664_v14  ;;  %vm1671_vm0 = vweird.f32 %v1664_v14 }
 0x2a3   : > { %v3613_v45 = vpop.eup %3612 }
 0x2a4   : > { %v1666_v26 = vmul.f32 %v3613_v45, %v1664_v14  ;;  %vm1672_vm1 = vweird.f32 %v3613_v45 }
 0x2a5   : > { %vm1673_vm2 = vmor %vm1671_vm0, %vm1672_vm1 }
 0x2a6   : > { %v1667_v51 = vmul.f32 %v3613_v45, %v1666_v26 }
 0x2a8   : > { %v1668_v58 = vmul.f32 0.5, %v1667_v51 }
 0x2aa   : > { %v1669_v40 = vsub.f32 1.5, %v1668_v58 }
 0x2ac   : > { %v1670_v63 = vmul.f32 %v3613_v45, %v1669_v40 }
 0x2ae   : > { %v1674_v15 = vsel %vm1673_vm2, %v3613_v45, %v1670_v63 }
 0x2af   : > { %v1675_v47 = vmul.f32 %v1674_v15, %v1663_v34 }
 0x2b1   : > { %1676 = vst [vmem:[#allocation5] sm:$0x1] %v1675_v47  ;;  %v1678_v39 = vmul.f32 %v1675_v47, %v1657_v25 }
 0x2b3   : > { %v1679_v49 = vsub.f32 %v1677_v4, %v1678_v39 }
 0x2b5   : > { %1680 = vst [vmem:[#allocation5 + $0x1] sm:$0x1] %v1679_v49 }
 0x2b6 PF: > { %p3088_p13 = scmp.ne.s32.totalorder %s3644_s13, 1 }
 0x2b7   : > { %s3089_s8 = sshll.u32 (!%p3088_p13), %s3640_s12, 10 }
 0x2b8   : > { %1683 = sbr.rel (%p3088_p13) target bundleno = 885 (0x375), region = 48  ;;  %s4566_s9 = scalar_lea.vmem (!%p3088_p13), [#allocation2], %s3089_s8 }
 0x2bd   : > { %v4562_v37 = vld [vmem:[#allocation5] ss:$0 sm:$0xff]  ;;  %v4564_v19 = vld [vmem:[#allocation5 + $0x1] ss:$0 sm:$0xff]  ;;  %v1687_v9 = vld [vmem:[%s4566_s9 + $0x8] sm:$0xff] }
 0x2be   : > { %v1686_v48 = vld [vmem:[%s4566_s9] sm:$0xff]  ;;  %v1688_v62 = vld [vmem:[%s4566_s9 + $0x10] sm:$0xff]  ;;  %v1817_v36 = vmul.f32 %v4562_v37, %v1687_v9  ;;  %v1689_v59 = vld [vmem:[%s4566_s9 + $0x18] sm:$0xff] }
 0x2bf   : > { %v1816_v24 = vmul.f32 %v4562_v37, %v1686_v48  ;;  %v1818_v31 = vmul.f32 %v4562_v37, %v1688_v62  ;;  %v1690_v10 = vld [vmem:[%s4566_s9 + $0x20] sm:$0xff]  ;;  %v1691_v35 = vld [vmem:[%s4566_s9 + $0x28] sm:$0xff]  ;;  %v1819_v17 = vmul.f32 %v4562_v37, %v1689_v59  ;;  %v1692_v2 = vld [vmem:[%s4566_s9 + $0x30] sm:$0xff] }
 0x2c0   : > { %v1820_v8 = vmul.f32 %v4562_v37, %v1690_v10  ;;  %v1821_v54 = vmul.f32 %v4562_v37, %v1691_v35  ;;  %v1693_v46 = vld [vmem:[%s4566_s9 + $0x38] sm:$0xff]  ;;  %v1947_v33 = vadd.f32 %v4564_v19, %v1817_v36  ;;  %v1822_v11 = vmul.f32 %v4562_v37, %v1692_v2  ;;  %v1694_v43 = vld [vmem:[%s4566_s9 + $0x40] sm:$0xff]  ;;  %v1695_v16 = vld [vmem:[%s4566_s9 + $0x48] sm:$0xff] }
 0x2c1   : > { %v1946_v57 = vadd.f32 %v4564_v19, %v1816_v24  ;;  %v1948_v56 = vadd.f32 %v4564_v19, %v1818_v31  ;;  %v1949_v0 = vadd.f32 %v4564_v19, %v1819_v17  ;;  %v1823_v52 = vmul.f32 %v4562_v37, %v1693_v46  ;;  %v1696_v42 = vld [vmem:[%s4566_s9 + $0x50] sm:$0xff]  ;;  %v1697_v13 = vld [vmem:[%s4566_s9 + $0x58] sm:$0xff]  ;;  %v1698_v25 = vld [vmem:[%s4566_s9 + $0x60] sm:$0xff] }
 0x2c2   : > { %v1950_v12 = vadd.f32 %v4564_v19, %v1820_v8  ;;  %v1951_v55 = vadd.f32 %v4564_v19, %v1821_v54  ;;  %vm2075_vm4 = vcmp.ge.f32.partialorder %v1947_v33, 0.0  ;;  %v2203_v21 = vmul.f32 0.2, %v1947_v33  ;;  %v1699_v40 = vld [vmem:[%s4566_s9 + $0x68] sm:$0xff]  ;;  %v1700_v47 = vld [vmem:[%s4566_s9 + $0x70] sm:$0xff]  ;;  %v1701_v36 = vld [vmem:[%s4566_s9 + $0x78] sm:$0xff] }
 0x2c3   : > { %vm2074_vm3 = vcmp.ge.f32.partialorder %v1946_v57, 0.0  ;;  %v2202_v1 = vmul.f32 0.2, %v1946_v57  ;;  %vm2076_vm5 = vcmp.ge.f32.partialorder %v1948_v56, 0.0  ;;  %vm2077_vm6 = vcmp.ge.f32.partialorder %v1949_v0, 0.0  ;;  %v1702_v35 = vld [vmem:[%s4566_s9 + $0x80] sm:$0xff] }
 0x2c4   : > { %v2204_v20 = vmul.f32 0.2, %v1948_v56  ;;  %v2205_v30 = vmul.f32 0.2, %v1949_v0  ;;  %v2331_v38 = vsel %vm2075_vm4, %v1947_v33, %v2203_v21  ;;  %vm2078_vm7 = vcmp.ge.f32.partialorder %v1950_v12, 0.0 }
 0x2c5   : > { %v2330_v6 = vsel %vm2074_vm3, %v1946_v57, %v2202_v1  ;;  %vm2079_vm8 = vcmp.ge.f32.partialorder %v1951_v55, 0.0  ;;  %v2206_v53 = vmul.f32 0.2, %v1950_v12  ;;  %v2207_v32 = vmul.f32 0.2, %v1951_v55 }
 0x2c6   : > { %v3167_v22 = vpack.c.bf16 %v2331_v38, %v2330_v6  ;;  %v2332_v29 = vsel %vm2076_vm5, %v1948_v56, %v2204_v20  ;;  %v2333_v41 = vsel %vm2077_vm6, %v1949_v0, %v2205_v30  ;;  %v1952_v60 = vadd.f32 %v4564_v19, %v1822_v11  ;;  %v1703_v56 = vld [vmem:[%s4566_s9 + $0x88] sm:$0xff]  ;;  %v1704_v11 = vld [vmem:[%s4566_s9 + $0x90] sm:$0xff]  ;;  %v1705_v20 = vld [vmem:[%s4566_s9 + $0x98] sm:$0xff] }
 0x2c7   : > { %v3172_v61 = vpack.c.bf16 %v2333_v41, %v2332_v29  ;;  %v1953_v50 = vadd.f32 %v4564_v19, %v1823_v52  ;;  %v2334_v27 = vsel %vm2078_vm7, %v1950_v12, %v2206_v53  ;;  %v1824_v23 = vmul.f32 %v4562_v37, %v1694_v43 }
 0x2c8   : > { %3168 = vst [vmem:[%s3724_s28] sm:$0xff] %v3167_v22   ;;  %v1825_v3 = vmul.f32 %v4562_v37, %v1695_v16  ;;  %v1826_v5 = vmul.f32 %v4562_v37, %v1696_v42  ;;  %v2335_v18 = vsel %vm2079_vm8, %v1951_v55, %v2207_v32  ;;  %vm2080_vm9 = vcmp.ge.f32.partialorder %v1952_v60, 0.0  ;;  %v1706_v16 = vld [vmem:[%s4566_s9 + $0xa0] sm:$0xff]  ;;  %v1707_v42 = vld [vmem:[%s4566_s9 + $0xa8] sm:$0xff] }
 0x2c9   : > { %3484 = vst [vmem:[%s3724_s28 + $0x8] sm:$0xff] %v3172_v61   ;;  %vm2081_vm10 = vcmp.ge.f32.partialorder %v1953_v50, 0.0  ;;  %v2208_v7 = vmul.f32 0.2, %v1952_v60  ;;  %v3177_v44 = vpack.c.bf16 %v2335_v18, %v2334_v27  ;;  %v2209_v28 = vmul.f32 0.2, %v1953_v50 }
 0x2ca   : > { %v1954_v14 = vadd.f32 %v4564_v19, %v1824_v23  ;;  %v1955_v45 = vadd.f32 %v4564_v19, %v1825_v3  ;;  %v1827_v51 = vmul.f32 %v4562_v37, %v1697_v13  ;;  %v1956_v58 = vadd.f32 %v4564_v19, %v1826_v5  ;;  %v1708_v3 = vld [vmem:[%s4566_s9 + $0xb0] sm:$0xff]  ;;  %v1709_v13 = vld [vmem:[%s4566_s9 + $0xb8] sm:$0xff] }
 0x2cb   : > { %v2336_v26 = vsel %vm2080_vm9, %v1952_v60, %v2208_v7  ;;  %v1828_v34 = vmul.f32 %v4562_v37, %v1698_v25  ;;  %3485 = vst [vmem:[%s3724_s28 + $0x10] sm:$0xff] %v3177_v44   ;;  %v2337_v63 = vsel %vm2081_vm10, %v1953_v50, %v2209_v28  ;;  %v1829_v62 = vmul.f32 %v4562_v37, %v1699_v40 }
 0x2cc   : > { %vm2082_vm11 = vcmp.ge.f32.partialorder %v1954_v14, 0.0  ;;  %vm2083_vm12 = vcmp.ge.f32.partialorder %v1955_v45, 0.0  ;;  %v2210_v15 = vmul.f32 0.2, %v1954_v14  ;;  %v3182_v4 = vpack.c.bf16 %v2337_v63, %v2336_v26 }
 0x2cd   : > { %v2211_v39 = vmul.f32 0.2, %v1955_v45  ;;  %v1957_v49 = vadd.f32 %v4564_v19, %v1827_v51  ;;  %vm2084_vm13 = vcmp.ge.f32.partialorder %v1956_v58, 0.0  ;;  %v2212_v9 = vmul.f32 0.2, %v1956_v58 }
 0x2ce   : > { %v2338_v48 = vsel %vm2082_vm11, %v1954_v14, %v2210_v15  ;;  %v1958_v24 = vadd.f32 %v4564_v19, %v1828_v34  ;;  %3486 = vst [vmem:[%s3724_s28 + $0x18] sm:$0xff] %v3182_v4   ;;  %v1830_v10 = vmul.f32 %v4562_v37, %v1700_v47  ;;  %v1959_v54 = vadd.f32 %v4564_v19, %v1829_v62  ;;  %v1711_v15 = vld [vmem:[%s4566_s9 + $0xc8] sm:$0xff]  ;;  %v1712_v62 = vld [vmem:[%s4566_s9 + $0xd0] sm:$0xff] }
 0x2cf   : > { %v2339_v59 = vsel %vm2083_vm12, %v1955_v45, %v2211_v39  ;;  %vm2085_vm14 = vcmp.ge.f32.partialorder %v1957_v49, 0.0  ;;  %v2213_v31 = vmul.f32 0.2, %v1957_v49  ;;  %v2340_v8 = vsel %vm2084_vm13, %v1956_v58, %v2212_v9  ;;  %v1710_v58 = vld [vmem:[%s4566_s9 + $0xc0] sm:$0xff] }
 0x2d0   : > { %v3187_v17 = vpack.c.bf16 %v2339_v59, %v2338_v48  ;;  %vm2086_vm15 = vcmp.ge.f32.partialorder %v1958_v24, 0.0  ;;  %v2214_v46 = vmul.f32 0.2, %v1958_v24  ;;  %v1831_v57 = vmul.f32 %v4562_v37, %v1701_v36 }
 0x2d1   : > { %v2341_v2 = vsel %vm2085_vm14, %v1957_v49, %v2213_v31  ;;  %v1960_v33 = vadd.f32 %v4564_v19, %v1830_v10  ;;  %vm2087_vm0 = vcmp.ge.f32.partialorder %v1959_v54, 0.0  ;;  %v2215_v12 = vmul.f32 0.2, %v1959_v54  ;;  %v1713_v10 = vld [vmem:[%s4566_s9 + $0xd8] sm:$0xff] }
 0x2d2   : > { %3487 = vst [vmem:[%s3724_s28 + $0x20] sm:$0xff] %v3187_v17   ;;  %v3192_v0 = vpack.c.bf16 %v2341_v2, %v2340_v8  ;;  %v1832_v55 = vmul.f32 %v4562_v37, %v1702_v35  ;;  %v2342_v52 = vsel %vm2086_vm15, %v1958_v24, %v2214_v46  ;;  %v1961_v1 = vadd.f32 %v4564_v19, %v1831_v57  ;;  %v1714_v35 = vld [vmem:[%s4566_s9 + $0xe0] sm:$0xff]  ;;  %v1715_v17 = vld [vmem:[%s4566_s9 + $0xe8] sm:$0xff] }
 0x2d3   : > { %vm2088_vm1 = vcmp.ge.f32.partialorder %v1960_v33, 0.0  ;;  %v2216_v21 = vmul.f32 0.2, %v1960_v33  ;;  %v2343_v30 = vsel %vm2087_vm0, %v1959_v54, %v2215_v12  ;;  %v1833_v6 = vmul.f32 %v4562_v37, %v1703_v56 }
 0x2d4   : > { %3488 = vst [vmem:[%s3724_s28 + $0x28] sm:$0xff] %v3192_v0   ;;  %v1962_v38 = vadd.f32 %v4564_v19, %v1832_v55  ;;  %v1834_v43 = vmul.f32 %v4562_v37, %v1704_v11  ;;  %v3197_v22 = vpack.c.bf16 %v2343_v30, %v2342_v52  ;;  %vm2089_vm2 = vcmp.ge.f32.partialorder %v1961_v1, 0.0  ;;  %v1716_v55 = vld [vmem:[%s4566_s9 + $0xf0] sm:$0xff] }
 0x2d5   : > { %v2217_v29 = vmul.f32 0.2, %v1961_v1  ;;  %v2344_v41 = vsel %vm2088_vm1, %v1960_v33, %v2216_v21  ;;  %v1963_v53 = vadd.f32 %v4564_v19, %v1833_v6  ;;  %v1835_v32 = vmul.f32 %v4562_v37, %v1705_v20 }
 0x2d6   : > { %vm2090_vm3 = vcmp.ge.f32.partialorder %v1962_v38, 0.0  ;;  %v2218_v61 = vmul.f32 0.2, %v1962_v38  ;;  %3489 = vst [vmem:[%s3724_s28 + $0x30] sm:$0xff] %v3197_v22   ;;  %v1964_v50 = vadd.f32 %v4564_v19, %v1834_v43  ;;  %v1836_v27 = vmul.f32 %v4562_v37, %v1706_v16 }
 0x2d7   : > { %v2345_v60 = vsel %vm2089_vm2, %v1961_v1, %v2217_v29  ;;  %v1837_v23 = vmul.f32 %v4562_v37, %v1707_v42  ;;  %vm2091_vm4 = vcmp.ge.f32.partialorder %v1963_v53, 0.0  ;;  %v2219_v25 = vmul.f32 0.2, %v1963_v53  ;;  %v1717_v42 = vld [vmem:[%s4566_s9 + $0xf8] sm:$0xff]  ;;  %v1718_v29 = vld [vmem:[%s4566_s9 + $0x100] sm:$0xff] }
 0x2d8   : > { %v3202_v5 = vpack.c.bf16 %v2345_v60, %v2344_v41  ;;  %v2346_v18 = vsel %vm2090_vm3, %v1962_v38, %v2218_v61  ;;  %v1965_v7 = vadd.f32 %v4564_v19, %v1835_v32  ;;  %vm2092_vm5 = vcmp.ge.f32.partialorder %v1964_v50, 0.0  ;;  %v1719_v61 = vld [vmem:[%s4566_s9 + $0x108] sm:$0xff] }
 0x2d9   : > { %v2220_v44 = vmul.f32 0.2, %v1964_v50  ;;  %v1966_v28 = vadd.f32 %v4564_v19, %v1836_v27  ;;  %v2347_v14 = vsel %vm2091_vm4, %v1963_v53, %v2219_v25  ;;  %v1967_v45 = vadd.f32 %v4564_v19, %v1837_v23 }
 0x2da   : > { %3490 = vst [vmem:[%s3724_s28 + $0x38] sm:$0xff] %v3202_v5   ;;  %v1838_v26 = vmul.f32 %v4562_v37, %v1708_v3  ;;  %v1839_v51 = vmul.f32 %v4562_v37, %v1709_v13  ;;  %v3207_v40 = vpack.c.bf16 %v2347_v14, %v2346_v18  ;;  %vm2093_vm6 = vcmp.ge.f32.partialorder %v1965_v7, 0.0 }
 0x2db   : > { %v2221_v34 = vmul.f32 0.2, %v1965_v7  ;;  %v2348_v63 = vsel %vm2092_vm5, %v1964_v50, %v2220_v44  ;;  %vm2094_vm7 = vcmp.ge.f32.partialorder %v1966_v28, 0.0  ;;  %vm2095_vm8 = vcmp.ge.f32.partialorder %v1967_v45, 0.0 }
 0x2dc   : > { %v2222_v47 = vmul.f32 0.2, %v1966_v28  ;;  %v2223_v4 = vmul.f32 0.2, %v1967_v45  ;;  %3491 = vst [vmem:[%s3724_s28 + $0x40] sm:$0xff] %v3207_v40   ;;  %v1968_v49 = vadd.f32 %v4564_v19, %v1838_v26  ;;  %v1969_v48 = vadd.f32 %v4564_v19, %v1839_v51  ;;  %v1721_v26 = vld [vmem:[%s4566_s9 + $0x118] sm:$0xff] }
 0x2dd   : > { %v2349_v39 = vsel %vm2093_vm6, %v1965_v7, %v2221_v34  ;;  %v1840_v9 = vmul.f32 %v4562_v37, %v1710_v58  ;;  %v1841_v31 = vmul.f32 %v4562_v37, %v1711_v15  ;;  %v1842_v33 = vmul.f32 %v4562_v37, %v1712_v62  ;;  %v1720_v7 = vld [vmem:[%s4566_s9 + $0x110] sm:$0xff] }
 0x2de   : > { %v3212_v24 = vpack.c.bf16 %v2349_v39, %v2348_v63  ;;  %v2350_v36 = vsel %vm2094_vm7, %v1966_v28, %v2222_v47  ;;  %v2351_v59 = vsel %vm2095_vm8, %v1967_v45, %v2223_v4  ;;  %vm2096_vm9 = vcmp.ge.f32.partialorder %v1968_v49, 0.0  ;;  %v1722_v47 = vld [vmem:[%s4566_s9 + $0x120] sm:$0xff] }
 0x2df   : > { %v3217_v8 = vpack.c.bf16 %v2351_v59, %v2350_v36  ;;  %vm2097_vm10 = vcmp.ge.f32.partialorder %v1969_v48, 0.0  ;;  %v2224_v54 = vmul.f32 0.2, %v1968_v49  ;;  %v2225_v2 = vmul.f32 0.2, %v1969_v48 }
 0x2e0   : > { %3492 = vst [vmem:[%s3724_s28 + $0x48] sm:$0xff] %v3212_v24   ;;  %v1970_v46 = vadd.f32 %v4564_v19, %v1840_v9  ;;  %v1971_v57 = vadd.f32 %v4564_v19, %v1841_v31  ;;  %v1843_v11 = vmul.f32 %v4562_v37, %v1713_v10  ;;  %v1844_v0 = vmul.f32 %v4562_v37, %v1714_v35  ;;  %v1724_v35 = vld [vmem:[%s4566_s9 + $0x130] sm:$0xff] }
 0x2e1   : > { %3493 = vst [vmem:[%s3724_s28 + $0x50] sm:$0xff] %v3217_v8   ;;  %v2352_v56 = vsel %vm2096_vm9, %v1968_v49, %v2224_v54  ;;  %v1845_v12 = vmul.f32 %v4562_v37, %v1715_v17  ;;  %v2353_v52 = vsel %vm2097_vm10, %v1969_v48, %v2225_v2  ;;  %v1972_v30 = vadd.f32 %v4564_v19, %v1842_v33  ;;  %v1723_v48 = vld [vmem:[%s4566_s9 + $0x128] sm:$0xff]  ;;  %v1725_v17 = vld [vmem:[%s4566_s9 + $0x138] sm:$0xff] }
 0x2e2   : > { %vm2098_vm11 = vcmp.ge.f32.partialorder %v1970_v46, 0.0  ;;  %vm2099_vm12 = vcmp.ge.f32.partialorder %v1971_v57, 0.0  ;;  %v2226_v1 = vmul.f32 0.2, %v1970_v46  ;;  %v3222_v21 = vpack.c.bf16 %v2353_v52, %v2352_v56  ;;  %v1727_v52 = vld [vmem:[%s4566_s9 + $0x148] sm:$0xff] }
 0x2e3   : > { %v2227_v20 = vmul.f32 0.2, %v1971_v57  ;;  %v1973_v6 = vadd.f32 %v4564_v19, %v1843_v11  ;;  %v1974_v43 = vadd.f32 %v4564_v19, %v1844_v0  ;;  %v1975_v16 = vadd.f32 %v4564_v19, %v1845_v12 }
 0x2e4   : > { %v2354_v38 = vsel %vm2098_vm11, %v1970_v46, %v2226_v1  ;;  %v1846_v22 = vmul.f32 %v4562_v37, %v1716_v55  ;;  %3494 = vst [vmem:[%s3724_s28 + $0x58] sm:$0xff] %v3222_v21   ;;  %vm2100_vm13 = vcmp.ge.f32.partialorder %v1972_v30, 0.0  ;;  %v2228_v53 = vmul.f32 0.2, %v1972_v30  ;;  %v1726_v46 = vld [vmem:[%s4566_s9 + $0x140] sm:$0xff] }
 0x2e5   : > { %v2355_v41 = vsel %vm2099_vm12, %v1971_v57, %v2227_v20  ;;  %vm2101_vm14 = vcmp.ge.f32.partialorder %v1973_v6, 0.0  ;;  %v2229_v60 = vmul.f32 0.2, %v1973_v6  ;;  %vm2102_vm15 = vcmp.ge.f32.partialorder %v1974_v43, 0.0 }
 0x2e6   : > { %v3227_v32 = vpack.c.bf16 %v2355_v41, %v2354_v38  ;;  %vm2103_vm0 = vcmp.ge.f32.partialorder %v1975_v16, 0.0  ;;  %v2356_v50 = vsel %vm2100_vm13, %v1972_v30, %v2228_v53  ;;  %v2230_v27 = vmul.f32 0.2, %v1974_v43  ;;  %v1728_v30 = vld [vmem:[%s4566_s9 + $0x150] sm:$0xff]  ;;  %v1729_v41 = vld [vmem:[%s4566_s9 + $0x158] sm:$0xff] }
 0x2e7   : > { %v2231_v23 = vmul.f32 0.2, %v1975_v16  ;;  %v1847_v3 = vmul.f32 %v4562_v37, %v1717_v42  ;;  %v2357_v13 = vsel %vm2101_vm14, %v1973_v6, %v2229_v60  ;;  %v1976_v5 = vadd.f32 %v4564_v19, %v1846_v22 }
 0x2e8   : > { %3495 = vst [vmem:[%s3724_s28 + $0x60] sm:$0xff] %v3227_v32   ;;  %v1848_v25 = vmul.f32 %v4562_v37, %v1718_v29  ;;  %v1849_v18 = vmul.f32 %v4562_v37, %v1719_v61  ;;  %v3232_v44 = vpack.c.bf16 %v2357_v13, %v2356_v50  ;;  %v2358_v28 = vsel %vm2102_vm15, %v1974_v43, %v2230_v27 }
 0x2e9   : > { %v2359_v14 = vsel %vm2103_vm0, %v1975_v16, %v2231_v23  ;;  %v1977_v45 = vadd.f32 %v4564_v19, %v1847_v3  ;;  %vm2104_vm1 = vcmp.ge.f32.partialorder %v1976_v5, 0.0  ;;  %v2232_v58 = vmul.f32 0.2, %v1976_v5  ;;  %v1730_v23 = vld [vmem:[%s4566_s9 + $0x160] sm:$0xff] }
 0x2ea   : > { %v3237_v51 = vpack.c.bf16 %v2359_v14, %v2358_v28  ;;  %v1978_v40 = vadd.f32 %v4564_v19, %v1848_v25  ;;  %3496 = vst [vmem:[%s3724_s28 + $0x68] sm:$0xff] %v3232_v44   ;;  %v1979_v63 = vadd.f32 %v4564_v19, %v1849_v18  ;;  %v1850_v15 = vmul.f32 %v4562_v37, %v1720_v7  ;;  %v1731_v25 = vld [vmem:[%s4566_s9 + $0x168] sm:$0xff] }
 0x2eb   : > { %vm2105_vm2 = vcmp.ge.f32.partialorder %v1977_v45, 0.0  ;;  %v2233_v34 = vmul.f32 0.2, %v1977_v45  ;;  %v2360_v4 = vsel %vm2104_vm1, %v1976_v5, %v2232_v58  ;;  %v1851_v49 = vmul.f32 %v4562_v37, %v1721_v26  ;;  %v1733_v58 = vld [vmem:[%s4566_s9 + $0x178] sm:$0xff] }
 0x2ec   : > { %3497 = vst [vmem:[%s3724_s28 + $0x70] sm:$0xff] %v3237_v51   ;;  %vm2106_vm3 = vcmp.ge.f32.partialorder %v1978_v40, 0.0  ;;  %v2234_v39 = vmul.f32 0.2, %v1978_v40  ;;  %vm2107_vm4 = vcmp.ge.f32.partialorder %v1979_v63, 0.0  ;;  %v1980_v24 = vadd.f32 %v4564_v19, %v1850_v15  ;;  %v1732_v51 = vld [vmem:[%s4566_s9 + $0x170] sm:$0xff] }
 0x2ed   : > { %v2361_v9 = vsel %vm2105_vm2, %v1977_v45, %v2233_v34  ;;  %v2235_v62 = vmul.f32 0.2, %v1979_v63  ;;  %v1981_v31 = vadd.f32 %v4564_v19, %v1851_v49  ;;  %v1852_v10 = vmul.f32 %v4562_v37, %v1722_v47  ;;  %v1734_v15 = vld [vmem:[%s4566_s9 + $0x180] sm:$0xff] }
 0x2ee   : > { %v3242_v36 = vpack.c.bf16 %v2361_v9, %v2360_v4  ;;  %v2362_v59 = vsel %vm2106_vm3, %v1978_v40, %v2234_v39  ;;  %vm2108_vm5 = vcmp.ge.f32.partialorder %v1980_v24, 0.0  ;;  %v2236_v54 = vmul.f32 0.2, %v1980_v24 }
 0x2ef   : > { %v2363_v8 = vsel %vm2107_vm4, %v1979_v63, %v2235_v62  ;;  %v1853_v2 = vmul.f32 %v4562_v37, %v1723_v48  ;;  %vm2109_vm6 = vcmp.ge.f32.partialorder %v1981_v31, 0.0  ;;  %v2237_v33 = vmul.f32 0.2, %v1981_v31 }
 0x2f0   : > { %3498 = vst [vmem:[%s3724_s28 + $0x78] sm:$0xff] %v3242_v36   ;;  %v3247_v57 = vpack.c.bf16 %v2363_v8, %v2362_v59  ;;  %v1982_v56 = vadd.f32 %v4564_v19, %v1852_v10  ;;  %v2364_v11 = vsel %vm2108_vm5, %v1980_v24, %v2236_v54  ;;  %v1854_v12 = vmul.f32 %v4562_v37, %v1724_v35  ;;  %v1735_v24 = vld [vmem:[%s4566_s9 + $0x188] sm:$0xff]  ;;  %v1736_v10 = vld [vmem:[%s4566_s9 + $0x190] sm:$0xff] }
 0x2f1   : > { %v1983_v0 = vadd.f32 %v4564_v19, %v1853_v2  ;;  %v1855_v55 = vmul.f32 %v4562_v37, %v1725_v17  ;;  %v2365_v1 = vsel %vm2109_vm6, %v1981_v31, %v2237_v33  ;;  %v1856_v20 = vmul.f32 %v4562_v37, %v1726_v46  ;;  %v1737_v33 = vld [vmem:[%s4566_s9 + $0x198] sm:$0xff] }
 0x2f2   : > { %3499 = vst [vmem:[%s3724_s28 + $0x80] sm:$0xff] %v3247_v57   ;;  %vm2110_vm7 = vcmp.ge.f32.partialorder %v1982_v56, 0.0  ;;  %v2238_v21 = vmul.f32 0.2, %v1982_v56  ;;  %v3252_v6 = vpack.c.bf16 %v2365_v1, %v2364_v11  ;;  %v1984_v43 = vadd.f32 %v4564_v19, %v1854_v12  ;;  %v1738_v1 = vld [vmem:[%s4566_s9 + $0x1a0] sm:$0xff] }
 0x2f3   : > { %vm2111_vm8 = vcmp.ge.f32.partialorder %v1983_v0, 0.0  ;;  %v2239_v38 = vmul.f32 0.2, %v1983_v0  ;;  %v1985_v42 = vadd.f32 %v4564_v19, %v1855_v55  ;;  %v1857_v22 = vmul.f32 %v4562_v37, %v1727_v52 }
 0x2f4   : > { %v2366_v16 = vsel %vm2110_vm7, %v1982_v56, %v2238_v21  ;;  %v1986_v29 = vadd.f32 %v4564_v19, %v1856_v20  ;;  %3500 = vst [vmem:[%s3724_s28 + $0x88] sm:$0xff] %v3252_v6   ;;  %vm2112_vm9 = vcmp.ge.f32.partialorder %v1984_v43, 0.0  ;;  %v2240_v61 = vmul.f32 0.2, %v1984_v43  ;;  %v1739_v6 = vld [vmem:[%s4566_s9 + $0x1a8] sm:$0xff] }
 0x2f5   : > { %v2367_v53 = vsel %vm2111_vm8, %v1983_v0, %v2239_v38  ;;  %v1858_v32 = vmul.f32 %v4562_v37, %v1728_v30  ;;  %vm2113_vm10 = vcmp.ge.f32.partialorder %v1985_v42, 0.0  ;;  %v2241_v50 = vmul.f32 0.2, %v1985_v42 }
 0x2f6   : > { %v3257_v60 = vpack.c.bf16 %v2367_v53, %v2366_v16  ;;  %v1987_v27 = vadd.f32 %v4564_v19, %v1857_v22  ;;  %v2368_v3 = vsel %vm2112_vm9, %v1984_v43, %v2240_v61  ;;  %vm2114_vm11 = vcmp.ge.f32.partialorder %v1986_v29, 0.0  ;;  %v1740_v53 = vld [vmem:[%s4566_s9 + $0x1b0] sm:$0xff]  ;;  %v1741_v61 = vld [vmem:[%s4566_s9 + $0x1b8] sm:$0xff] }
 0x2f7   : > { %v2242_v13 = vmul.f32 0.2, %v1986_v29  ;;  %v1859_v5 = vmul.f32 %v4562_v37, %v1729_v41  ;;  %v2369_v18 = vsel %vm2113_vm10, %v1985_v42, %v2241_v50  ;;  %v1988_v44 = vadd.f32 %v4564_v19, %v1858_v32 }
 0x2f8   : > { %3501 = vst [vmem:[%s3724_s28 + $0x90] sm:$0xff] %v3257_v60   ;;  %vm2115_vm12 = vcmp.ge.f32.partialorder %v1987_v27, 0.0  ;;  %v2243_v7 = vmul.f32 0.2, %v1987_v27  ;;  %v3262_v28 = vpack.c.bf16 %v2369_v18, %v2368_v3  ;;  %v1860_v26 = vmul.f32 %v4562_v37, %v1730_v23 }
 0x2f9   : > { %v2370_v14 = vsel %vm2114_vm11, %v1986_v29, %v2242_v13  ;;  %v1989_v45 = vadd.f32 %v4564_v19, %v1859_v5  ;;  %vm2116_vm13 = vcmp.ge.f32.partialorder %v1988_v44, 0.0  ;;  %v2244_v34 = vmul.f32 0.2, %v1988_v44 }
 0x2fa   : > { %v2371_v40 = vsel %vm2115_vm12, %v1987_v27, %v2243_v7  ;;  %v1861_v63 = vmul.f32 %v4562_v37, %v1731_v25  ;;  %3502 = vst [vmem:[%s3724_s28 + $0x98] sm:$0xff] %v3262_v28   ;;  %v1990_v39 = vadd.f32 %v4564_v19, %v1860_v26  ;;  %v1862_v9 = vmul.f32 %v4562_v37, %v1732_v51  ;;  %v1742_v27 = vld [vmem:[%s4566_s9 + $0x1c0] sm:$0xff]  ;;  %v1744_v26 = vld [vmem:[%s4566_s9 + $0x1d0] sm:$0xff] }
 0x2fb   : > { %v3267_v47 = vpack.c.bf16 %v2371_v40, %v2370_v14  ;;  %vm2117_vm14 = vcmp.ge.f32.partialorder %v1989_v45, 0.0  ;;  %v2245_v4 = vmul.f32 0.2, %v1989_v45  ;;  %v2372_v49 = vsel %vm2116_vm13, %v1988_v44, %v2244_v34  ;;  %v1743_v44 = vld [vmem:[%s4566_s9 + $0x1c8] sm:$0xff] }
 0x2fc   : > { %v1991_v48 = vadd.f32 %v4564_v19, %v1861_v63  ;;  %v1863_v62 = vmul.f32 %v4562_v37, %v1733_v58  ;;  %vm2118_vm15 = vcmp.ge.f32.partialorder %v1990_v39, 0.0  ;;  %v2246_v59 = vmul.f32 0.2, %v1990_v39 }
 0x2fd   : > { %3503 = vst [vmem:[%s3724_s28 + $0xa0] sm:$0xff] %v3267_v47   ;;  %v2373_v36 = vsel %vm2117_vm14, %v1989_v45, %v2245_v4  ;;  %v1864_v31 = vmul.f32 %v4562_v37, %v1734_v15  ;;  %v1992_v8 = vadd.f32 %v4564_v19, %v1862_v9  ;;  %v1865_v46 = vmul.f32 %v4562_v37, %v1735_v24  ;;  %v1745_v4 = vld [vmem:[%s4566_s9 + $0x1d8] sm:$0xff] }
 0x2fe   : > { %v3272_v35 = vpack.c.bf16 %v2373_v36, %v2372_v49  ;;  %vm2119_vm0 = vcmp.ge.f32.partialorder %v1991_v48, 0.0  ;;  %v2247_v17 = vmul.f32 0.2, %v1991_v48  ;;  %v2374_v54 = vsel %vm2118_vm15, %v1990_v39, %v2246_v59  ;;  %v1746_v36 = vld [vmem:[%s4566_s9 + $0x1e0] sm:$0xff] }
 0x2ff   : > { %v1993_v2 = vadd.f32 %v4564_v19, %v1863_v62  ;;  %v1994_v57 = vadd.f32 %v4564_v19, %v1864_v31  ;;  %vm2120_vm1 = vcmp.ge.f32.partialorder %v1992_v8, 0.0  ;;  %v2248_v11 = vmul.f32 0.2, %v1992_v8 }
 0x300   : > { %3504 = vst [vmem:[%s3724_s28 + $0xa8] sm:$0xff] %v3272_v35   ;;  %v2375_v56 = vsel %vm2119_vm0, %v1991_v48, %v2247_v17  ;;  %v1866_v0 = vmul.f32 %v4562_v37, %v1736_v10  ;;  %v1995_v52 = vadd.f32 %v4564_v19, %v1865_v46  ;;  %v1867_v30 = vmul.f32 %v4562_v37, %v1737_v33  ;;  %v1747_v35 = vld [vmem:[%s4566_s9 + $0x1e8] sm:$0xff] }
 0x301   : > { %v3277_v12 = vpack.c.bf16 %v2375_v56, %v2374_v54  ;;  %vm2121_vm2 = vcmp.ge.f32.partialorder %v1993_v2, 0.0  ;;  %v2249_v55 = vmul.f32 0.2, %v1993_v2  ;;  %v2376_v21 = vsel %vm2120_vm1, %v1992_v8, %v2248_v11  ;;  %v1748_v56 = vld [vmem:[%s4566_s9 + $0x1f0] sm:$0xff]  ;;  %v1749_v11 = vld [vmem:[%s4566_s9 + $0x1f8] sm:$0xff] }
 0x302   : > { %vm2122_vm3 = vcmp.ge.f32.partialorder %v1994_v57, 0.0  ;;  %v2250_v20 = vmul.f32 0.2, %v1994_v57  ;;  %vm2123_vm4 = vcmp.ge.f32.partialorder %v1995_v52, 0.0  ;;  %v2251_v43 = vmul.f32 0.2, %v1995_v52 }
 0x303   : > { %3505 = vst [vmem:[%s3724_s28 + $0xb0] sm:$0xff] %v3277_v12   ;;  %v2377_v38 = vsel %vm2121_vm2, %v1993_v2, %v2249_v55  ;;  %v1996_v16 = vadd.f32 %v4564_v19, %v1866_v0  ;;  %v1997_v29 = vadd.f32 %v4564_v19, %v1867_v30  ;;  %v1868_v41 = vmul.f32 %v4562_v37, %v1738_v1 }
 0x304   : > { %v3282_v42 = vpack.c.bf16 %v2377_v38, %v2376_v21  ;;  %v2378_v22 = vsel %vm2122_vm3, %v1994_v57, %v2250_v20  ;;  %v2379_v32 = vsel %vm2123_vm4, %v1995_v52, %v2251_v43  ;;  %v1869_v50 = vmul.f32 %v4562_v37, %v1739_v6  ;;  %v1750_v52 = vld [vmem:[%s4566_s9 + $0x200] sm:$0xff] }
 0x305   : > { %vm2124_vm5 = vcmp.ge.f32.partialorder %v1996_v16, 0.0  ;;  %v2252_v60 = vmul.f32 0.2, %v1996_v16  ;;  %v3287_v23 = vpack.c.bf16 %v2379_v32, %v2378_v22  ;;  %vm2125_vm6 = vcmp.ge.f32.partialorder %v1997_v29, 0.0 }
 0x306   : > { %3506 = vst [vmem:[%s3724_s28 + $0xb8] sm:$0xff] %v3282_v42   ;;  %v2253_v3 = vmul.f32 0.2, %v1997_v29  ;;  %v1998_v13 = vadd.f32 %v4564_v19, %v1868_v41  ;;  %v1999_v25 = vadd.f32 %v4564_v19, %v1869_v50  ;;  %v1870_v18 = vmul.f32 %v4562_v37, %v1740_v53  ;;  %v1752_v41 = vld [vmem:[%s4566_s9 + $0x210] sm:$0xff] }
 0x307   : > { %v2380_v5 = vsel %vm2124_vm5, %v1996_v16, %v2252_v60  ;;  %v1871_v7 = vmul.f32 %v4562_v37, %v1741_v61  ;;  %3507 = vst [vmem:[%s3724_s28 + $0xc0] sm:$0xff] %v3287_v23   ;;  %v1872_v45 = vmul.f32 %v4562_v37, %v1742_v27  ;;  %v1873_v15 = vmul.f32 %v4562_v37, %v1743_v44  ;;  %v1751_v16 = vld [vmem:[%s4566_s9 + $0x208] sm:$0xff] }
 0x308   : > { %v2381_v28 = vsel %vm2125_vm6, %v1997_v29, %v2253_v3  ;;  %vm2126_vm7 = vcmp.ge.f32.partialorder %v1998_v13, 0.0  ;;  %v2254_v14 = vmul.f32 0.2, %v1998_v13  ;;  %vm2127_vm8 = vcmp.ge.f32.partialorder %v1999_v25, 0.0  ;;  %v1753_v3 = vld [vmem:[%s4566_s9 + $0x218] sm:$0xff] }
 0x309   : > { %v3292_v51 = vpack.c.bf16 %v2381_v28, %v2380_v5  ;;  %v2255_v58 = vmul.f32 0.2, %v1999_v25  ;;  %v2000_v40 = vadd.f32 %v4564_v19, %v1870_v18  ;;  %v2001_v63 = vadd.f32 %v4564_v19, %v1871_v7  ;;  %v1754_v28 = vld [vmem:[%s4566_s9 + $0x220] sm:$0xff] }
 0x30a   : > { %v2382_v34 = vsel %vm2126_vm7, %v1998_v13, %v2254_v14  ;;  %v2002_v47 = vadd.f32 %v4564_v19, %v1872_v45  ;;  %v1874_v48 = vmul.f32 %v4562_v37, %v1744_v26  ;;  %v2003_v24 = vadd.f32 %v4564_v19, %v1873_v15 }
 0x30b   : > { %3508 = vst [vmem:[%s3724_s28 + $0xc8] sm:$0xff] %v3292_v51   ;;  %v2383_v39 = vsel %vm2127_vm8, %v1999_v25, %v2255_v58  ;;  %vm2128_vm9 = vcmp.ge.f32.partialorder %v2000_v40, 0.0  ;;  %v2256_v49 = vmul.f32 0.2, %v2000_v40  ;;  %vm2129_vm10 = vcmp.ge.f32.partialorder %v2001_v63, 0.0  ;;  %v1755_v51 = vld [vmem:[%s4566_s9 + $0x228] sm:$0xff] }
 0x30c   : > { %v3297_v9 = vpack.c.bf16 %v2383_v39, %v2382_v34  ;;  %v2257_v62 = vmul.f32 0.2, %v2001_v63  ;;  %vm2130_vm11 = vcmp.ge.f32.partialorder %v2002_v47, 0.0  ;;  %v2258_v31 = vmul.f32 0.2, %v2002_v47  ;;  %v1756_v39 = vld [vmem:[%s4566_s9 + $0x230] sm:$0xff] }
 0x30d   : > { %v2384_v59 = vsel %vm2128_vm9, %v2000_v40, %v2256_v49  ;;  %v1875_v10 = vmul.f32 %v4562_v37, %v1745_v4  ;;  %vm2131_vm12 = vcmp.ge.f32.partialorder %v2003_v24, 0.0  ;;  %v2259_v8 = vmul.f32 0.2, %v2003_v24  ;;  %v1757_v49 = vld [vmem:[%s4566_s9 + $0x238] sm:$0xff] }
 0x30e   : > { %3509 = vst [vmem:[%s3724_s28 + $0xd0] sm:$0xff] %v3297_v9   ;;  %v2385_v17 = vsel %vm2129_vm10, %v2001_v63, %v2257_v62  ;;  %v2004_v54 = vadd.f32 %v4564_v19, %v1874_v48  ;;  %v2386_v46 = vsel %vm2130_vm11, %v2002_v47, %v2258_v31  ;;  %v1876_v33 = vmul.f32 %v4562_v37, %v1746_v36 }
 0x30f   : > { %v3302_v2 = vpack.c.bf16 %v2385_v17, %v2384_v59  ;;  %v2005_v57 = vadd.f32 %v4564_v19, %v1875_v10  ;;  %v2387_v0 = vsel %vm2131_vm12, %v2003_v24, %v2259_v8  ;;  %v1877_v55 = vmul.f32 %v4562_v37, %v1747_v35  ;;  %v1758_v24 = vld [vmem:[%s4566_s9 + $0x240] sm:$0xff] }
 0x310   : > { %vm2132_vm13 = vcmp.ge.f32.partialorder %v2004_v54, 0.0  ;;  %v2260_v12 = vmul.f32 0.2, %v2004_v54  ;;  %v3307_v1 = vpack.c.bf16 %v2387_v0, %v2386_v46  ;;  %v2006_v20 = vadd.f32 %v4564_v19, %v1876_v33  ;;  %v1760_v33 = vld [vmem:[%s4566_s9 + $0x250] sm:$0xff] }
 0x311   : > { %3510 = vst [vmem:[%s3724_s28 + $0xd8] sm:$0xff] %v3302_v2   ;;  %vm2133_vm14 = vcmp.ge.f32.partialorder %v2005_v57, 0.0  ;;  %v2261_v21 = vmul.f32 0.2, %v2005_v57  ;;  %v2007_v6 = vadd.f32 %v4564_v19, %v1877_v55  ;;  %v1878_v38 = vmul.f32 %v4562_v37, %v1748_v56 }
 0x312   : > { %v2388_v30 = vsel %vm2132_vm13, %v2004_v54, %v2260_v12  ;;  %v1879_v43 = vmul.f32 %v4562_v37, %v1749_v11  ;;  %3511 = vst [vmem:[%s3724_s28 + $0xe0] sm:$0xff] %v3307_v1   ;;  %vm2134_vm15 = vcmp.ge.f32.partialorder %v2006_v20, 0.0  ;;  %v2262_v22 = vmul.f32 0.2, %v2006_v20  ;;  %v1759_v54 = vld [vmem:[%s4566_s9 + $0x248] sm:$0xff] }
 0x313   : > { %v2389_v42 = vsel %vm2133_vm14, %v2005_v57, %v2261_v21  ;;  %v1880_v29 = vmul.f32 %v4562_v37, %v1750_v52  ;;  %vm2135_vm0 = vcmp.ge.f32.partialorder %v2007_v6, 0.0  ;;  %v2263_v61 = vmul.f32 0.2, %v2007_v6  ;;  %v1761_v21 = vld [vmem:[%s4566_s9 + $0x258] sm:$0xff] }
 0x314   : > { %v3312_v53 = vpack.c.bf16 %v2389_v42, %v2388_v30  ;;  %v2008_v32 = vadd.f32 %v4564_v19, %v1878_v38  ;;  %v2390_v60 = vsel %vm2134_vm15, %v2006_v20, %v2262_v22  ;;  %v2009_v50 = vadd.f32 %v4564_v19, %v1879_v43  ;;  %v1762_v42 = vld [vmem:[%s4566_s9 + $0x260] sm:$0xff] }
 0x315   : > { %v1881_v27 = vmul.f32 %v4562_v37, %v1751_v16  ;;  %v2010_v23 = vadd.f32 %v4564_v19, %v1880_v29  ;;  %v2391_v13 = vsel %vm2135_vm0, %v2007_v6, %v2263_v61  ;;  %v1882_v25 = vmul.f32 %v4562_v37, %v1752_v41  ;;  %v4829_v41 = vld [vmem:[#allocation5] ss:$0 sm:$0xff]  ;;  %v1763_v61 = vld [vmem:[%s4566_s9 + $0x268] sm:$0xff] }
 0x316   : > { %3512 = vst [vmem:[%s3724_s28 + $0xe8] sm:$0xff] %v3312_v53   ;;  %vm2136_vm1 = vcmp.ge.f32.partialorder %v2008_v32, 0.0  ;;  %v2264_v5 = vmul.f32 0.2, %v2008_v32  ;;  %v3317_v18 = vpack.c.bf16 %v2391_v13, %v2390_v60  ;;  %vm2137_vm2 = vcmp.ge.f32.partialorder %v2009_v50, 0.0  ;;  %v1764_v13 = vld [vmem:[%s4566_s9 + $0x270] sm:$0xff] }
 0x317   : > { %v2265_v7 = vmul.f32 0.2, %v2009_v50  ;;  %v2011_v44 = vadd.f32 %v4564_v19, %v1881_v27  ;;  %vm2138_vm3 = vcmp.ge.f32.partialorder %v2010_v23, 0.0  ;;  %v2266_v45 = vmul.f32 0.2, %v2010_v23 }
 0x318   : > { %v2392_v14 = vsel %vm2136_vm1, %v2008_v32, %v2264_v5  ;;  %v1883_v26 = vmul.f32 %v4562_v37, %v1753_v3  ;;  %3513 = vst [vmem:[%s3724_s28 + $0xf0] sm:$0xff] %v3317_v18   ;;  %v2012_v34 = vadd.f32 %v4564_v19, %v1882_v25  ;;  %v1884_v4 = vmul.f32 %v4562_v37, %v1754_v28  ;;  %v4834_v60 = vld [vmem:[#allocation5 + $0x1] ss:$0 sm:$0xff]  ;;  %v1765_v5 = vld [vmem:[%s4566_s9 + $0x278] sm:$0xff] }
 0x319   : > { %v2393_v58 = vsel %vm2137_vm2, %v2009_v50, %v2265_v7  ;;  %vm2139_vm4 = vcmp.ge.f32.partialorder %v2011_v44, 0.0  ;;  %v2267_v40 = vmul.f32 0.2, %v2011_v44  ;;  %v2394_v15 = vsel %vm2138_vm3, %v2010_v23, %v2266_v45 }
 0x31a   : > { %v3322_v63 = vpack.c.bf16 %v2393_v58, %v2392_v14  ;;  %v2013_v47 = vadd.f32 %v4564_v19, %v1883_v26  ;;  %vm2140_vm5 = vcmp.ge.f32.partialorder %v2012_v34, 0.0  ;;  %v2268_v9 = vmul.f32 0.2, %v2012_v34 }
 0x31b   : > { %v2395_v48 = vsel %vm2139_vm4, %v2011_v44, %v2267_v40  ;;  %v1885_v62 = vmul.f32 %v4562_v37, %v1755_v51  ;;  %v2014_v31 = vadd.f32 %v4564_v19, %v1884_v4  ;;  %v1886_v17 = vmul.f32 %v4562_v37, %v1756_v39  ;;  %v1766_v44 = vld [vmem:[%s4566_s9 + $0x280] sm:$0xff]  ;;  %v1768_v4 = vld [vmem:[%s4566_s9 + $0x290] sm:$0xff] }
 0x31c   : > { %3514 = vst [vmem:[%s3724_s28 + $0xf8] sm:$0xff] %v3322_v63   ;;  %v3327_v36 = vpack.c.bf16 %v2395_v48, %v2394_v15  ;;  %vm2141_vm6 = vcmp.ge.f32.partialorder %v2013_v47, 0.0  ;;  %v2269_v59 = vmul.f32 0.2, %v2013_v47  ;;  %v2396_v10 = vsel %vm2140_vm5, %v2012_v34, %v2268_v9  ;;  %v1767_v34 = vld [vmem:[%s4566_s9 + $0x288] sm:$0xff] }
 0x31d   : > { %v2015_v35 = vadd.f32 %v4564_v19, %v1885_v62  ;;  %v1887_v8 = vmul.f32 %v4562_v37, %v1757_v49  ;;  %vm2142_vm7 = vcmp.ge.f32.partialorder %v2014_v31, 0.0  ;;  %v2270_v46 = vmul.f32 0.2, %v2014_v31 }
 0x31e   : > { %3515 = vst [vmem:[%s3724_s28 + $0x100] sm:$0xff] %v3327_v36   ;;  %v2397_v2 = vsel %vm2141_vm6, %v2013_v47, %v2269_v59  ;;  %v1888_v57 = vmul.f32 %v4562_v37, %v1758_v24  ;;  %v2016_v0 = vadd.f32 %v4564_v19, %v1886_v17  ;;  %v1889_v52 = vmul.f32 %v4562_v37, %v1759_v54  ;;  %v1769_v59 = vld [vmem:[%s4566_s9 + $0x298] sm:$0xff] }
 0x31f   : > { %v3332_v56 = vpack.c.bf16 %v2397_v2, %v2396_v10  ;;  %vm2143_vm8 = vcmp.ge.f32.partialorder %v2015_v35, 0.0  ;;  %v2271_v11 = vmul.f32 0.2, %v2015_v35  ;;  %v2398_v12 = vsel %vm2142_vm7, %v2014_v31, %v2270_v46  ;;  %v1770_v2 = vld [vmem:[%s4566_s9 + $0x2a0] sm:$0xff] }
 0x320   : > { %v2017_v55 = vadd.f32 %v4564_v19, %v1887_v8  ;;  %v2018_v1 = vadd.f32 %v4564_v19, %v1888_v57  ;;  %vm2144_vm9 = vcmp.ge.f32.partialorder %v2016_v0, 0.0  ;;  %v2272_v30 = vmul.f32 0.2, %v2016_v0 }
 0x321   : > { %3516 = vst [vmem:[%s3724_s28 + $0x108] sm:$0xff] %v3332_v56   ;;  %v2399_v20 = vsel %vm2143_vm8, %v2015_v35, %v2271_v11  ;;  %v1890_v6 = vmul.f32 %v4562_v37, %v1760_v33  ;;  %v2019_v16 = vadd.f32 %v4564_v19, %v1889_v52  ;;  %v1891_v53 = vmul.f32 %v4829_v41, %v1761_v21  ;;  %v1771_v56 = vld [vmem:[%s4566_s9 + $0x2a8] sm:$0xff] }
 0x322   : > { %v3337_v38 = vpack.c.bf16 %v2399_v20, %v2398_v12  ;;  %vm2145_vm10 = vcmp.ge.f32.partialorder %v2017_v55, 0.0  ;;  %v2273_v43 = vmul.f32 0.2, %v2017_v55  ;;  %v2400_v22 = vsel %vm2144_vm9, %v2016_v0, %v2272_v30  ;;  %v1772_v20 = vld [vmem:[%s4566_s9 + $0x2b0] sm:$0xff]  ;;  %v1773_v30 = vld [vmem:[%s4566_s9 + $0x2b8] sm:$0xff] }
 0x323   : > { %vm2146_vm11 = vcmp.ge.f32.partialorder %v2018_v1, 0.0  ;;  %v2274_v29 = vmul.f32 0.2, %v2018_v1  ;;  %vm2147_vm12 = vcmp.ge.f32.partialorder %v2019_v16, 0.0  ;;  %v2275_v37 = vmul.f32 0.2, %v2019_v16 }
 0x324   : > { %3517 = vst [vmem:[%s3724_s28 + $0x110] sm:$0xff] %v3337_v38   ;;  %v2401_v32 = vsel %vm2145_vm10, %v2017_v55, %v2273_v43  ;;  %v2020_v19 = vadd.f32 %v4834_v60, %v1890_v6  ;;  %v2021_v23 = vadd.f32 %v4834_v60, %v1891_v53  ;;  %v1892_v3 = vmul.f32 %v4829_v41, %v1762_v42 }
 0x325   : > { %v3342_v50 = vpack.c.bf16 %v2401_v32, %v2400_v22  ;;  %v2402_v27 = vsel %vm2146_vm11, %v2018_v1, %v2274_v29  ;;  %v2403_v25 = vsel %vm2147_vm12, %v2019_v16, %v2275_v37  ;;  %v1893_v7 = vmul.f32 %v4829_v41, %v1763_v61  ;;  %v1774_v16 = vld [vmem:[%s4566_s9 + $0x2c0] sm:$0xff] }
 0x326   : > { %vm2148_vm13 = vcmp.ge.f32.partialorder %v2020_v19, 0.0  ;;  %v2276_v18 = vmul.f32 0.2, %v2020_v19  ;;  %v3347_v28 = vpack.c.bf16 %v2403_v25, %v2402_v27  ;;  %vm2149_vm14 = vcmp.ge.f32.partialorder %v2021_v23, 0.0 }
 0x327   : > { %3518 = vst [vmem:[%s3724_s28 + $0x118] sm:$0xff] %v3342_v50   ;;  %v2277_v14 = vmul.f32 0.2, %v2021_v23  ;;  %v2022_v45 = vadd.f32 %v4834_v60, %v1892_v3  ;;  %v2023_v51 = vadd.f32 %v4834_v60, %v1893_v7  ;;  %v1894_v58 = vmul.f32 %v4829_v41, %v1764_v13  ;;  %v1776_v3 = vld [vmem:[%s4566_s9 + $0x2d0] sm:$0xff] }
 0x328   : > { %v2404_v26 = vsel %vm2148_vm13, %v2020_v19, %v2276_v18  ;;  %v1895_v40 = vmul.f32 %v4829_v41, %v1765_v5  ;;  %3519 = vst [vmem:[%s3724_s28 + $0x120] sm:$0xff] %v3347_v28   ;;  %v1896_v47 = vmul.f32 %v4829_v41, %v1766_v44  ;;  %v1897_v24 = vmul.f32 %v4829_v41, %v1767_v34  ;;  %v1775_v19 = vld [vmem:[%s4566_s9 + $0x2c8] sm:$0xff] }
 0x329   : > { %v2405_v63 = vsel %vm2149_vm14, %v2021_v23, %v2277_v14  ;;  %vm2150_vm15 = vcmp.ge.f32.partialorder %v2022_v45, 0.0  ;;  %v2278_v15 = vmul.f32 0.2, %v2022_v45  ;;  %vm2151_vm0 = vcmp.ge.f32.partialorder %v2023_v51, 0.0  ;;  %v1777_v14 = vld [vmem:[%s4566_s9 + $0x2d8] sm:$0xff] }
 0x32a   : > { %v3352_v39 = vpack.c.bf16 %v2405_v63, %v2404_v26  ;;  %v2279_v49 = vmul.f32 0.2, %v2023_v51  ;;  %v2024_v48 = vadd.f32 %v4834_v60, %v1894_v58  ;;  %v2025_v62 = vadd.f32 %v4834_v60, %v1895_v40  ;;  %v1778_v63 = vld [vmem:[%s4566_s9 + $0x2e0] sm:$0xff] }
 0x32b   : > { %v2406_v9 = vsel %vm2150_vm15, %v2022_v45, %v2278_v15  ;;  %v2026_v36 = vadd.f32 %v4834_v60, %v1896_v47  ;;  %v1898_v35 = vmul.f32 %v4829_v41, %v1768_v4  ;;  %v2027_v54 = vadd.f32 %v4834_v60, %v1897_v24 }
 0x32c   : > { %3520 = vst [vmem:[%s3724_s28 + $0x128] sm:$0xff] %v3352_v39   ;;  %v2407_v31 = vsel %vm2151_vm0, %v2023_v51, %v2279_v49  ;;  %vm2152_vm1 = vcmp.ge.f32.partialorder %v2024_v48, 0.0  ;;  %v2280_v10 = vmul.f32 0.2, %v2024_v48  ;;  %vm2153_vm2 = vcmp.ge.f32.partialorder %v2025_v62, 0.0  ;;  %v1779_v39 = vld [vmem:[%s4566_s9 + $0x2e8] sm:$0xff] }
 0x32d   : > { %v3357_v17 = vpack.c.bf16 %v2407_v31, %v2406_v9  ;;  %v2281_v8 = vmul.f32 0.2, %v2025_v62  ;;  %vm2154_vm3 = vcmp.ge.f32.partialorder %v2026_v36, 0.0  ;;  %v2282_v57 = vmul.f32 0.2, %v2026_v36  ;;  %v1780_v31 = vld [vmem:[%s4566_s9 + $0x2f0] sm:$0xff] }
 0x32e   : > { %v2408_v46 = vsel %vm2152_vm1, %v2024_v48, %v2280_v10  ;;  %v1899_v33 = vmul.f32 %v4829_v41, %v1769_v59  ;;  %vm2155_vm4 = vcmp.ge.f32.partialorder %v2027_v54, 0.0  ;;  %v2283_v0 = vmul.f32 0.2, %v2027_v54  ;;  %v1781_v10 = vld [vmem:[%s4566_s9 + $0x2f8] sm:$0xff] }
 0x32f   : > { %3521 = vst [vmem:[%s3724_s28 + $0x130] sm:$0xff] %v3357_v17   ;;  %v2409_v11 = vsel %vm2153_vm2, %v2025_v62, %v2281_v8  ;;  %v2028_v12 = vadd.f32 %v4834_v60, %v1898_v35  ;;  %v2410_v52 = vsel %vm2154_vm3, %v2026_v36, %v2282_v57  ;;  %v1900_v21 = vmul.f32 %v4829_v41, %v1770_v2 }
 0x330   : > { %v3362_v55 = vpack.c.bf16 %v2409_v11, %v2408_v46  ;;  %v2029_v1 = vadd.f32 %v4834_v60, %v1899_v33  ;;  %v2411_v6 = vsel %vm2155_vm4, %v2027_v54, %v2283_v0  ;;  %v1901_v43 = vmul.f32 %v4829_v41, %v1771_v56  ;;  %v1782_v54 = vld [vmem:[%s4566_s9 + $0x300] sm:$0xff] }
 0x331   : > { %vm2156_vm5 = vcmp.ge.f32.partialorder %v2028_v12, 0.0  ;;  %v2284_v38 = vmul.f32 0.2, %v2028_v12  ;;  %v3367_v42 = vpack.c.bf16 %v2411_v6, %v2410_v52  ;;  %v2030_v29 = vadd.f32 %v4834_v60, %v1900_v21  ;;  %v1784_v21 = vld [vmem:[%s4566_s9 + $0x310] sm:$0xff] }
 0x332   : > { %3522 = vst [vmem:[%s3724_s28 + $0x138] sm:$0xff] %v3362_v55   ;;  %vm2157_vm6 = vcmp.ge.f32.partialorder %v2029_v1, 0.0  ;;  %v2285_v22 = vmul.f32 0.2, %v2029_v1  ;;  %v2031_v61 = vadd.f32 %v4834_v60, %v1901_v43  ;;  %v1902_v32 = vmul.f32 %v4829_v41, %v1772_v20 }
 0x333   : > { %v2412_v53 = vsel %vm2156_vm5, %v2028_v12, %v2284_v38  ;;  %v1903_v37 = vmul.f32 %v4829_v41, %v1773_v30  ;;  %3523 = vst [vmem:[%s3724_s28 + $0x140] sm:$0xff] %v3367_v42   ;;  %vm2158_vm7 = vcmp.ge.f32.partialorder %v2030_v29, 0.0  ;;  %v2286_v27 = vmul.f32 0.2, %v2030_v29  ;;  %v1783_v12 = vld [vmem:[%s4566_s9 + $0x308] sm:$0xff] }
 0x334   : > { %v2413_v50 = vsel %vm2157_vm6, %v2029_v1, %v2285_v22  ;;  %v1904_v23 = vmul.f32 %v4829_v41, %v1774_v16  ;;  %vm2159_vm8 = vcmp.ge.f32.partialorder %v2031_v61, 0.0  ;;  %v2287_v5 = vmul.f32 0.2, %v2031_v61  ;;  %v1785_v22 = vld [vmem:[%s4566_s9 + $0x318] sm:$0xff] }
 0x335   : > { %v3372_v13 = vpack.c.bf16 %v2413_v50, %v2412_v53  ;;  %v2032_v25 = vadd.f32 %v4834_v60, %v1902_v32  ;;  %v2414_v18 = vsel %vm2158_vm7, %v2030_v29, %v2286_v27  ;;  %v2033_v7 = vadd.f32 %v4834_v60, %v1903_v37  ;;  %v1786_v50 = vld [vmem:[%s4566_s9 + $0x320] sm:$0xff] }
 0x336   : > { %v1905_v44 = vmul.f32 %v4829_v41, %v1775_v19  ;;  %v2034_v28 = vadd.f32 %v4834_v60, %v1904_v23  ;;  %v2415_v45 = vsel %vm2159_vm8, %v2031_v61, %v2287_v5  ;;  %v1906_v51 = vmul.f32 %v4829_v41, %v1776_v3 }
 0x337   : > { %3524 = vst [vmem:[%s3724_s28 + $0x148] sm:$0xff] %v3372_v13   ;;  %vm2160_vm9 = vcmp.ge.f32.partialorder %v2032_v25, 0.0  ;;  %v2288_v26 = vmul.f32 0.2, %v2032_v25  ;;  %v3377_v58 = vpack.c.bf16 %v2415_v45, %v2414_v18  ;;  %vm2161_vm10 = vcmp.ge.f32.partialorder %v2033_v7, 0.0  ;;  %v1787_v13 = vld [vmem:[%s4566_s9 + $0x328] sm:$0xff] }
 0x338   : > { %v2289_v40 = vmul.f32 0.2, %v2033_v7  ;;  %v2035_v34 = vadd.f32 %v4834_v60, %v1905_v44  ;;  %vm2162_vm11 = vcmp.ge.f32.partialorder %v2034_v28, 0.0  ;;  %v2290_v47 = vmul.f32 0.2, %v2034_v28  ;;  %v1788_v45 = vld [vmem:[%s4566_s9 + $0x330] sm:$0xff] }
 0x339   : > { %v2416_v15 = vsel %vm2160_vm9, %v2032_v25, %v2288_v26  ;;  %v1907_v4 = vmul.f32 %v4829_v41, %v1777_v14  ;;  %3525 = vst [vmem:[%s3724_s28 + $0x150] sm:$0xff] %v3377_v58   ;;  %v2036_v9 = vadd.f32 %v4834_v60, %v1906_v51  ;;  %v1908_v59 = vmul.f32 %v4829_v41, %v1778_v63  ;;  %v1789_v26 = vld [vmem:[%s4566_s9 + $0x338] sm:$0xff] }
 0x33a   : > { %v2417_v49 = vsel %vm2161_vm10, %v2033_v7, %v2289_v40  ;;  %vm2163_vm12 = vcmp.ge.f32.partialorder %v2035_v34, 0.0  ;;  %v2291_v48 = vmul.f32 0.2, %v2035_v34  ;;  %v2418_v24 = vsel %vm2162_vm11, %v2034_v28, %v2290_v47 }
 0x33b   : > { %v3382_v62 = vpack.c.bf16 %v2417_v49, %v2416_v15  ;;  %v2037_v36 = vadd.f32 %v4834_v60, %v1907_v4  ;;  %vm2164_vm13 = vcmp.ge.f32.partialorder %v2036_v9, 0.0  ;;  %v2292_v17 = vmul.f32 0.2, %v2036_v9 }
 0x33c   : > { %v2419_v35 = vsel %vm2163_vm12, %v2035_v34, %v2291_v48  ;;  %v1909_v8 = vmul.f32 %v4829_v41, %v1779_v39  ;;  %v2038_v57 = vadd.f32 %v4834_v60, %v1908_v59  ;;  %v1910_v11 = vmul.f32 %v4829_v41, %v1780_v31  ;;  %v1790_v34 = vld [vmem:[%s4566_s9 + $0x340] sm:$0xff]  ;;  %v1792_v59 = vld [vmem:[%s4566_s9 + $0x350] sm:$0xff] }
 0x33d   : > { %3526 = vst [vmem:[%s3724_s28 + $0x158] sm:$0xff] %v3382_v62   ;;  %v3387_v2 = vpack.c.bf16 %v2419_v35, %v2418_v24  ;;  %vm2165_vm14 = vcmp.ge.f32.partialorder %v2037_v36, 0.0  ;;  %v2293_v46 = vmul.f32 0.2, %v2037_v36  ;;  %v2420_v33 = vsel %vm2164_vm13, %v2036_v9, %v2292_v17  ;;  %v1791_v9 = vld [vmem:[%s4566_s9 + $0x348] sm:$0xff] }
 0x33e   : > { %v2039_v56 = vadd.f32 %v4834_v60, %v1909_v8  ;;  %v1911_v0 = vmul.f32 %v4829_v41, %v1781_v10  ;;  %vm2166_vm15 = vcmp.ge.f32.partialorder %v2038_v57, 0.0  ;;  %v2294_v52 = vmul.f32 0.2, %v2038_v57 }
 0x33f   : > { %3527 = vst [vmem:[%s3724_s28 + $0x160] sm:$0xff] %v3387_v2   ;;  %v2421_v55 = vsel %vm2165_vm14, %v2037_v36, %v2293_v46  ;;  %v1912_v1 = vmul.f32 %v4829_v41, %v1782_v54  ;;  %v2040_v6 = vadd.f32 %v4834_v60, %v1910_v11  ;;  %v1913_v16 = vmul.f32 %v4829_v41, %v1783_v12  ;;  %v1793_v46 = vld [vmem:[%s4566_s9 + $0x358] sm:$0xff] }
 0x340   : > { %v3392_v20 = vpack.c.bf16 %v2421_v55, %v2420_v33  ;;  %vm2167_vm0 = vcmp.ge.f32.partialorder %v2039_v56, 0.0  ;;  %v2295_v30 = vmul.f32 0.2, %v2039_v56  ;;  %v2422_v38 = vsel %vm2166_vm15, %v2038_v57, %v2294_v52  ;;  %v1794_v55 = vld [vmem:[%s4566_s9 + $0x360] sm:$0xff] }
 0x341   : > { %v2041_v43 = vadd.f32 %v4834_v60, %v1911_v0  ;;  %v2042_v42 = vadd.f32 %v4834_v60, %v1912_v1  ;;  %vm2168_vm1 = vcmp.ge.f32.partialorder %v2040_v6, 0.0  ;;  %v2296_v53 = vmul.f32 0.2, %v2040_v6 }
 0x342   : > { %3528 = vst [vmem:[%s3724_s28 + $0x168] sm:$0xff] %v3392_v20   ;;  %v2423_v29 = vsel %vm2167_vm0, %v2039_v56, %v2295_v30  ;;  %v1914_v61 = vmul.f32 %v4829_v41, %v1784_v21  ;;  %v2043_v19 = vadd.f32 %v4834_v60, %v1913_v16  ;;  %v1915_v3 = vmul.f32 %v4829_v41, %v1785_v22  ;;  %v1795_v20 = vld [vmem:[%s4566_s9 + $0x368] sm:$0xff] }
 0x343   : > { %v3397_v32 = vpack.c.bf16 %v2423_v29, %v2422_v38  ;;  %vm2169_vm2 = vcmp.ge.f32.partialorder %v2041_v43, 0.0  ;;  %v2297_v37 = vmul.f32 0.2, %v2041_v43  ;;  %v2424_v27 = vsel %vm2168_vm1, %v2040_v6, %v2296_v53  ;;  %v1796_v29 = vld [vmem:[%s4566_s9 + $0x370] sm:$0xff]  ;;  %v1797_v53 = vld [vmem:[%s4566_s9 + $0x378] sm:$0xff] }
 0x344   : > { %vm2170_vm3 = vcmp.ge.f32.partialorder %v2042_v42, 0.0  ;;  %v2298_v23 = vmul.f32 0.2, %v2042_v42  ;;  %vm2171_vm4 = vcmp.ge.f32.partialorder %v2043_v19, 0.0  ;;  %v2299_v25 = vmul.f32 0.2, %v2043_v19 }
 0x345   : > { %3529 = vst [vmem:[%s3724_s28 + $0x170] sm:$0xff] %v3397_v32   ;;  %v2425_v5 = vsel %vm2169_vm2, %v2041_v43, %v2297_v37  ;;  %v2044_v18 = vadd.f32 %v4834_v60, %v1914_v61  ;;  %v2045_v28 = vadd.f32 %v4834_v60, %v1915_v3  ;;  %v1916_v14 = vmul.f32 %v4829_v41, %v1786_v50 }
 0x346   : > { %v3402_v7 = vpack.c.bf16 %v2425_v5, %v2424_v27  ;;  %v2426_v44 = vsel %vm2170_vm3, %v2042_v42, %v2298_v23  ;;  %v2427_v51 = vsel %vm2171_vm4, %v2043_v19, %v2299_v25  ;;  %v1917_v40 = vmul.f32 %v4829_v41, %v1787_v13  ;;  %v1798_v19 = vld [vmem:[%s4566_s9 + $0x380] sm:$0xff] }
 0x347   : > { %vm2172_vm5 = vcmp.ge.f32.partialorder %v2044_v18, 0.0  ;;  %v2300_v58 = vmul.f32 0.2, %v2044_v18  ;;  %v3407_v63 = vpack.c.bf16 %v2427_v51, %v2426_v44  ;;  %vm2173_vm6 = vcmp.ge.f32.partialorder %v2045_v28, 0.0 }
 0x348   : > { %3530 = vst [vmem:[%s3724_s28 + $0x178] sm:$0xff] %v3402_v7   ;;  %v2301_v15 = vmul.f32 0.2, %v2045_v28  ;;  %v2046_v47 = vadd.f32 %v4834_v60, %v1916_v14  ;;  %v2047_v39 = vadd.f32 %v4834_v60, %v1917_v40  ;;  %v1918_v49 = vmul.f32 %v4829_v41, %v1788_v45  ;;  %v1800_v14 = vld [vmem:[%s4566_s9 + $0x390] sm:$0xff] }
 0x349   : > { %v2428_v4 = vsel %vm2172_vm5, %v2044_v18, %v2300_v58  ;;  %v1919_v48 = vmul.f32 %v4829_v41, %v1789_v26  ;;  %3531 = vst [vmem:[%s3724_s28 + $0x180] sm:$0xff] %v3407_v63   ;;  %v1920_v36 = vmul.f32 %v4829_v41, %v1790_v34  ;;  %v1921_v54 = vmul.f32 %v4829_v41, %v1791_v9  ;;  %v1799_v18 = vld [vmem:[%s4566_s9 + $0x388] sm:$0xff] }
 0x34a   : > { %v2429_v62 = vsel %vm2173_vm6, %v2045_v28, %v2301_v15  ;;  %vm2174_vm7 = vcmp.ge.f32.partialorder %v2046_v47, 0.0  ;;  %v2302_v24 = vmul.f32 0.2, %v2046_v47  ;;  %vm2175_vm8 = vcmp.ge.f32.partialorder %v2047_v39, 0.0  ;;  %v1801_v15 = vld [vmem:[%s4566_s9 + $0x398] sm:$0xff] }
 0x34b   : > { %v3412_v31 = vpack.c.bf16 %v2429_v62, %v2428_v4  ;;  %v2303_v10 = vmul.f32 0.2, %v2047_v39  ;;  %v2048_v35 = vadd.f32 %v4834_v60, %v1918_v49  ;;  %v2049_v8 = vadd.f32 %v4834_v60, %v1919_v48  ;;  %v1802_v62 = vld [vmem:[%s4566_s9 + $0x3a0] sm:$0xff] }
 0x34c   : > { %v2430_v17 = vsel %vm2174_vm7, %v2046_v47, %v2302_v24  ;;  %v2050_v2 = vadd.f32 %v4834_v60, %v1920_v36  ;;  %v1922_v56 = vmul.f32 %v4829_v41, %v1792_v59  ;;  %v2051_v12 = vadd.f32 %v4834_v60, %v1921_v54 }
 0x34d   : > { %3532 = vst [vmem:[%s3724_s28 + $0x188] sm:$0xff] %v3412_v31   ;;  %v2431_v57 = vsel %vm2175_vm8, %v2047_v39, %v2303_v10  ;;  %vm2176_vm9 = vcmp.ge.f32.partialorder %v2048_v35, 0.0  ;;  %v2304_v33 = vmul.f32 0.2, %v2048_v35  ;;  %vm2177_vm10 = vcmp.ge.f32.partialorder %v2049_v8, 0.0  ;;  %v1803_v31 = vld [vmem:[%s4566_s9 + $0x3a8] sm:$0xff] }
 0x34e   : > { %v3417_v11 = vpack.c.bf16 %v2431_v57, %v2430_v17  ;;  %v2305_v0 = vmul.f32 0.2, %v2049_v8  ;;  %vm2178_vm11 = vcmp.ge.f32.partialorder %v2050_v2, 0.0  ;;  %v2306_v1 = vmul.f32 0.2, %v2050_v2  ;;  %v1804_v57 = vld [vmem:[%s4566_s9 + $0x3b0] sm:$0xff] }
 0x34f   : > { %v2432_v52 = vsel %vm2176_vm9, %v2048_v35, %v2304_v33  ;;  %v1923_v21 = vmul.f32 %v4829_v41, %v1793_v46  ;;  %vm2179_vm12 = vcmp.ge.f32.partialorder %v2051_v12, 0.0  ;;  %v2307_v6 = vmul.f32 0.2, %v2051_v12  ;;  %v1805_v33 = vld [vmem:[%s4566_s9 + $0x3b8] sm:$0xff] }
 0x350   : > { %3533 = vst [vmem:[%s3724_s28 + $0x190] sm:$0xff] %v3417_v11   ;;  %v2433_v30 = vsel %vm2177_vm10, %v2049_v8, %v2305_v0  ;;  %v2052_v38 = vadd.f32 %v4834_v60, %v1922_v56  ;;  %v2434_v16 = vsel %vm2178_vm11, %v2050_v2, %v2306_v1  ;;  %v1924_v22 = vmul.f32 %v4829_v41, %v1794_v55 }
 0x351   : > { %v3422_v43 = vpack.c.bf16 %v2433_v30, %v2432_v52  ;;  %v2053_v42 = vadd.f32 %v4834_v60, %v1923_v21  ;;  %v2435_v61 = vsel %vm2179_vm12, %v2051_v12, %v2307_v6  ;;  %v1925_v37 = vmul.f32 %v4829_v41, %v1795_v20  ;;  %v1806_v12 = vld [vmem:[%s4566_s9 + $0x3c0] sm:$0xff] }
 0x352   : > { %vm2180_vm13 = vcmp.ge.f32.partialorder %v2052_v38, 0.0  ;;  %v2308_v32 = vmul.f32 0.2, %v2052_v38  ;;  %v3427_v50 = vpack.c.bf16 %v2435_v61, %v2434_v16  ;;  %v2054_v23 = vadd.f32 %v4834_v60, %v1924_v22  ;;  %v1808_v22 = vld [vmem:[%s4566_s9 + $0x3d0] sm:$0xff] }
 0x353   : > { %3534 = vst [vmem:[%s3724_s28 + $0x198] sm:$0xff] %v3422_v43   ;;  %vm2181_vm14 = vcmp.ge.f32.partialorder %v2053_v42, 0.0  ;;  %v2309_v27 = vmul.f32 0.2, %v2053_v42  ;;  %v2055_v13 = vadd.f32 %v4834_v60, %v1925_v37  ;;  %v1926_v5 = vmul.f32 %v4829_v41, %v1796_v29 }
 0x354   : > { %v2436_v3 = vsel %vm2180_vm13, %v2052_v38, %v2308_v32  ;;  %v1927_v25 = vmul.f32 %v4829_v41, %v1797_v53  ;;  %3535 = vst [vmem:[%s3724_s28 + $0x1a0] sm:$0xff] %v3427_v50   ;;  %vm2182_vm15 = vcmp.ge.f32.partialorder %v2054_v23, 0.0  ;;  %v2310_v44 = vmul.f32 0.2, %v2054_v23  ;;  %v1807_v38 = vld [vmem:[%s4566_s9 + $0x3c8] sm:$0xff] }
 0x355   : > { %v2437_v7 = vsel %vm2181_vm14, %v2053_v42, %v2309_v27  ;;  %v1928_v28 = vmul.f32 %v4829_v41, %v1798_v19  ;;  %vm2183_vm0 = vcmp.ge.f32.partialorder %v2055_v13, 0.0  ;;  %v2311_v26 = vmul.f32 0.2, %v2055_v13  ;;  %v1809_v27 = vld [vmem:[%s4566_s9 + $0x3d8] sm:$0xff] }
 0x356   : > { %v3432_v45 = vpack.c.bf16 %v2437_v7, %v2436_v3  ;;  %v2056_v51 = vadd.f32 %v4834_v60, %v1926_v5  ;;  %v2438_v58 = vsel %vm2182_vm15, %v2054_v23, %v2310_v44  ;;  %v2057_v40 = vadd.f32 %v4834_v60, %v1927_v25  ;;  %v1810_v7 = vld [vmem:[%s4566_s9 + $0x3e0] sm:$0xff] }
 0x357   : > { %v1929_v34 = vmul.f32 %v4829_v41, %v1799_v18  ;;  %v2058_v63 = vadd.f32 %v4834_v60, %v1928_v28  ;;  %v2439_v47 = vsel %vm2183_vm0, %v2055_v13, %v2311_v26  ;;  %v1930_v39 = vmul.f32 %v4829_v41, %v1800_v14 }
 0x358   : > { %3536 = vst [vmem:[%s3724_s28 + $0x1a8] sm:$0xff] %v3432_v45   ;;  %vm2184_vm1 = vcmp.ge.f32.partialorder %v2056_v51, 0.0  ;;  %v2312_v4 = vmul.f32 0.2, %v2056_v51  ;;  %v3437_v49 = vpack.c.bf16 %v2439_v47, %v2438_v58  ;;  %vm2185_vm2 = vcmp.ge.f32.partialorder %v2057_v40, 0.0  ;;  %v1811_v45 = vld [vmem:[%s4566_s9 + $0x3e8] sm:$0xff] }
 0x359   : > { %v2313_v48 = vmul.f32 0.2, %v2057_v40  ;;  %v2059_v9 = vadd.f32 %v4834_v60, %v1929_v34  ;;  %vm2186_vm3 = vcmp.ge.f32.partialorder %v2058_v63, 0.0  ;;  %v2314_v36 = vmul.f32 0.2, %v2058_v63  ;;  %v1812_v47 = vld [vmem:[%s4566_s9 + $0x3f0] sm:$0xff] }
 0x35a   : > { %v2440_v24 = vsel %vm2184_vm1, %v2056_v51, %v2312_v4  ;;  %v1931_v59 = vmul.f32 %v4829_v41, %v1801_v15  ;;  %3537 = vst [vmem:[%s3724_s28 + $0x1b0] sm:$0xff] %v3437_v49   ;;  %v2060_v17 = vadd.f32 %v4834_v60, %v1930_v39  ;;  %v1932_v46 = vmul.f32 %v4829_v41, %v1802_v62  ;;  %v1813_v4 = vld [vmem:[%s4566_s9 + $0x3f8] sm:$0xff] }
 0x35b   : > { %v2441_v10 = vsel %vm2185_vm2, %v2057_v40, %v2313_v48  ;;  %vm2187_vm4 = vcmp.ge.f32.partialorder %v2059_v9, 0.0  ;;  %v2315_v35 = vmul.f32 0.2, %v2059_v9  ;;  %v2442_v54 = vsel %vm2186_vm3, %v2058_v63, %v2314_v36 }
 0x35c   : > { %v3442_v8 = vpack.c.bf16 %v2441_v10, %v2440_v24  ;;  %v2061_v2 = vadd.f32 %v4834_v60, %v1931_v59  ;;  %vm2188_vm5 = vcmp.ge.f32.partialorder %v2060_v17, 0.0  ;;  %v2316_v11 = vmul.f32 0.2, %v2060_v17 }
 0x35d   : > { %v2443_v56 = vsel %vm2187_vm4, %v2059_v9, %v2315_v35  ;;  %v1933_v0 = vmul.f32 %v4829_v41, %v1803_v31  ;;  %v2062_v1 = vadd.f32 %v4834_v60, %v1932_v46  ;;  %v1934_v30 = vmul.f32 %v4829_v41, %v1804_v57 }
 0x35e   : > { %3538 = vst [vmem:[%s3724_s28 + $0x1b8] sm:$0xff] %v3442_v8   ;;  %v3447_v55 = vpack.c.bf16 %v2443_v56, %v2442_v54  ;;  %vm2189_vm6 = vcmp.ge.f32.partialorder %v2061_v2, 0.0  ;;  %v2317_v52 = vmul.f32 0.2, %v2061_v2  ;;  %v2444_v21 = vsel %vm2188_vm5, %v2060_v17, %v2316_v11 }
 0x35f   : > { %v2063_v20 = vadd.f32 %v4834_v60, %v1933_v0  ;;  %v1935_v6 = vmul.f32 %v4829_v41, %v1805_v33  ;;  %vm2190_vm7 = vcmp.ge.f32.partialorder %v2062_v1, 0.0  ;;  %v2318_v16 = vmul.f32 0.2, %v2062_v1 }
 0x360   : > { %3539 = vst [vmem:[%s3724_s28 + $0x1c0] sm:$0xff] %v3447_v55   ;;  %v2445_v43 = vsel %vm2189_vm6, %v2061_v2, %v2317_v52  ;;  %v1936_v42 = vmul.f32 %v4829_v41, %v1806_v12  ;;  %v2064_v61 = vadd.f32 %v4834_v60, %v1934_v30  ;;  %v1937_v19 = vmul.f32 %v4829_v41, %v1807_v38 }
 0x361   : > { %v3452_v29 = vpack.c.bf16 %v2445_v43, %v2444_v21  ;;  %vm2191_vm8 = vcmp.ge.f32.partialorder %v2063_v20, 0.0  ;;  %v2319_v53 = vmul.f32 0.2, %v2063_v20  ;;  %v2446_v32 = vsel %vm2190_vm7, %v2062_v1, %v2318_v16 }
 0x362   : > { %v2065_v37 = vadd.f32 %v4834_v60, %v1935_v6  ;;  %v2066_v50 = vadd.f32 %v4834_v60, %v1936_v42  ;;  %vm2192_vm9 = vcmp.ge.f32.partialorder %v2064_v61, 0.0  ;;  %v2320_v3 = vmul.f32 0.2, %v2064_v61 }
 0x363   : > { %3540 = vst [vmem:[%s3724_s28 + $0x1c8] sm:$0xff] %v3452_v29   ;;  %v2447_v23 = vsel %vm2191_vm8, %v2063_v20, %v2319_v53  ;;  %v1938_v13 = vmul.f32 %v4829_v41, %v1808_v22  ;;  %v2067_v18 = vadd.f32 %v4834_v60, %v1937_v19  ;;  %v1939_v14 = vmul.f32 %v4829_v41, %v1809_v27 }
 0x364   : > { %v3457_v5 = vpack.c.bf16 %v2447_v23, %v2446_v32  ;;  %vm2193_vm10 = vcmp.ge.f32.partialorder %v2065_v37, 0.0  ;;  %v2321_v25 = vmul.f32 0.2, %v2065_v37  ;;  %v2448_v44 = vsel %vm2192_vm9, %v2064_v61, %v2320_v3 }
 0x365   : > { %vm2194_vm11 = vcmp.ge.f32.partialorder %v2066_v50, 0.0  ;;  %v2322_v28 = vmul.f32 0.2, %v2066_v50  ;;  %vm2195_vm12 = vcmp.ge.f32.partialorder %v2067_v18, 0.0  ;;  %v2323_v51 = vmul.f32 0.2, %v2067_v18 }
 0x366   : > { %3541 = vst [vmem:[%s3724_s28 + $0x1d0] sm:$0xff] %v3457_v5   ;;  %v2449_v26 = vsel %vm2193_vm10, %v2065_v37, %v2321_v25  ;;  %v2068_v58 = vadd.f32 %v4834_v60, %v1938_v13  ;;  %v2069_v63 = vadd.f32 %v4834_v60, %v1939_v14  ;;  %v1940_v15 = vmul.f32 %v4829_v41, %v1810_v7 }
 0x367   : > { %v3462_v40 = vpack.c.bf16 %v2449_v26, %v2448_v44  ;;  %v2450_v34 = vsel %vm2194_vm11, %v2066_v50, %v2322_v28  ;;  %v2451_v39 = vsel %vm2195_vm12, %v2067_v18, %v2323_v51  ;;  %v1941_v48 = vmul.f32 %v4829_v41, %v1811_v45 }
 0x368   : > { %vm2196_vm13 = vcmp.ge.f32.partialorder %v2068_v58, 0.0  ;;  %v2324_v49 = vmul.f32 0.2, %v2068_v58  ;;  %v3467_v9 = vpack.c.bf16 %v2451_v39, %v2450_v34  ;;  %vm2197_vm14 = vcmp.ge.f32.partialorder %v2069_v63, 0.0 }
 0x369   : > { %3542 = vst [vmem:[%s3724_s28 + $0x1d8] sm:$0xff] %v3462_v40   ;;  %v2325_v62 = vmul.f32 0.2, %v2069_v63  ;;  %v2070_v24 = vadd.f32 %v4834_v60, %v1940_v15  ;;  %v2071_v59 = vadd.f32 %v4834_v60, %v1941_v48  ;;  %v1942_v31 = vmul.f32 %v4829_v41, %v1812_v47 }
 0x36a   : > { %v2452_v36 = vsel %vm2196_vm13, %v2068_v58, %v2324_v49  ;;  %v1943_v10 = vmul.f32 %v4829_v41, %v1813_v4  ;;  %3543 = vst [vmem:[%s3724_s28 + $0x1e0] sm:$0xff] %v3467_v9  }
 0x36b   : > { %v2453_v35 = vsel %vm2197_vm14, %v2069_v63, %v2325_v62  ;;  %vm2198_vm15 = vcmp.ge.f32.partialorder %v2070_v24, 0.0  ;;  %v2326_v17 = vmul.f32 0.2, %v2070_v24  ;;  %vm2199_vm0 = vcmp.ge.f32.partialorder %v2071_v59, 0.0 }
 0x36c   : > { %v3472_v8 = vpack.c.bf16 %v2453_v35, %v2452_v36  ;;  %v2327_v54 = vmul.f32 0.2, %v2071_v59  ;;  %v2072_v2 = vadd.f32 %v4834_v60, %v1942_v31  ;;  %v2073_v57 = vadd.f32 %v4834_v60, %v1943_v10 }
 0x36d   : > { %v2454_v46 = vsel %vm2198_vm15, %v2070_v24, %v2326_v17 }
 0x36e   : > { %3544 = vst [vmem:[%s3724_s28 + $0x1e8] sm:$0xff] %v3472_v8   ;;  %v2455_v33 = vsel %vm2199_vm0, %v2071_v59, %v2327_v54  ;;  %vm2200_vm1 = vcmp.ge.f32.partialorder %v2072_v2, 0.0  ;;  %v2328_v56 = vmul.f32 0.2, %v2072_v2  ;;  %vm2201_vm2 = vcmp.ge.f32.partialorder %v2073_v57, 0.0 }
 0x36f   : > { %v3477_v11 = vpack.c.bf16 %v2455_v33, %v2454_v46  ;;  %v2329_v41 = vmul.f32 0.2, %v2073_v57 }
 0x370   : > { %v2456_v0 = vsel %vm2200_vm1, %v2072_v2, %v2328_v56 }
 0x371   : > { %3545 = vst [vmem:[%s3724_s28 + $0x1f0] sm:$0xff] %v3477_v11   ;;  %v2457_v12 = vsel %vm2201_vm2, %v2073_v57, %v2329_v41 }
 0x372   : > { %v3482_v55 = vpack.c.bf16 %v2457_v12, %v2456_v0 }
 0x374   : > { %3546 = vst [vmem:[%s3724_s28 + $0x1f8] sm:$0xff] %v3482_v55  }
 0x375 PF: > { %s13_s16 = sadd.s32 1, %s3656_s16   ;;  %s5100_s12 = smov %s3648_s14 }
 0x376   : > { %p10_p0 = scmp.ge.s32.totalorder %s13_s16, 6   ;;  %s5101_s13 = smov %s3652_s15 }
 0x377   : > { %s5102_s14 = smov %s5105_s17  ;;  %s5103_s15 = smov %s5109_s18 }
 0x378   :  { %12 = sbr.rel (!%p10_p0) target bundleno = 3 (0x3), region = 80 }

// kernel: conv_layers_forward.5
= control target key start
LH: loop header
LB: loop body
LE: loop exit
PB: predicated region body
PF: predicated region fallthrough
CT: control target
= control target key end

     0   :  { %s2663_s12 = smov 0   ;;  %s2665_s13 = smov 0   ;;  %s3567_s0 = inlined_call_operand.vmem [shape: bf16[512,256], index: 0, kind: input, shape index: {}]   ;;  %s3568_s1 = inlined_call_operand.vmem [shape: bf16[256,128], index: 1, kind: input, shape index: {}]   ;;  %s3569_s2 = inlined_call_operand.vmem [shape: f32[2,128], index: 2, kind: input, shape index: {}]   ;;  %s3570_s3 = inlined_call_operand.vmem [shape: bf16[512,128], index: 3, kind: output, shape index: {}]  }
   0x1   :  { %s2667_s14 = smov 0  }
   0x2 LB: > { %s25_s15 = sadd.s32 1, %s2636_s13  ;;  %p1971_p0 = scmp.ge.s32.totalorder %s2640_s14, 1  ;;  %s2640_s14 = sphi %s2667_s14, %s13_s14   ;;  %s2636_s13 = sphi %s2665_s13, %s3572_s13   ;;  %s2632_s12 = sphi %s2663_s12, %s3571_s12  }
   0x3   : > { %p27_p1 = scmp.ge.s32.totalorder %s25_s15, 2  ;;  %p161_p2 = scmp.lt.s32.totalorder %s2640_s14, 3 }
   0x5   : > { %s3574_s15 = smov (%p27_p1, %s25_s15), 0  ;;  %p162_p3 = pnand %p1971_p0, %p161_p2 }
   0x6   : > { %p208_p4 = scmp.eq.s32.totalorder (!%p162_p3), %s2632_s12, 0 }
   0x7   : > { %165 = sbr.rel (%p162_p3) target bundleno = 659 (0x293), region = 32 }
   0xc   : > { %213 = sbr.rel (!%p208_p4) target bundleno = 17 (0x11), region = 36  ;;  %v2642_v0 = vmov (%p208_p4), 0.0  }
   0xd   : > { %214 = vst [vmem:[#allocation3] sm:$0x1] (%p208_p4), %v2642_v0 }
   0xe   : > { %215 = vst [vmem:[#allocation4] sm:$0x1] (%p208_p4), %v2642_v0 }
  0x11 PF: > { %p1973_p5 = scmp.ne.s32.totalorder %s2632_s12, 0 }
  0x13   : > { %218 = sbr.rel (%p1973_p5) target bundleno = 516 (0x204), region = 40 }
  0x18   : > { %v2372_v1 = vld [vmem:[%s3568_s1 + $0x38] sm:$0xff]  ;;  %v2371_v3 = vld [vmem:[%s3568_s1 + $0x30] sm:$0xff]  ;;  %v2370_v5 = vld [vmem:[%s3568_s1 + $0x28] sm:$0xff] }
  0x19   : > { %v2380_v2 = vld [vmem:[%s3568_s1 + $0x78] sm:$0xff]  ;;  %731 = vmatpush.bf16.msra.mxu0 %v2372_v1  ;;  %v2379_v4 = vld [vmem:[%s3568_s1 + $0x70] sm:$0xff]  ;;  %2573 = vmatpush.bf16.msra.mxu2 %v2372_v1  ;;  %v2378_v6 = vld [vmem:[%s3568_s1 + $0x68] sm:$0xff] }
  0x1a   : > { %900 = vmatpush.bf16.msra.mxu1 %v2380_v2  ;;  %2581 = vmatpush.bf16.msra.mxu3 %v2380_v2  ;;  %v2369_v7 = vld [vmem:[%s3568_s1 + $0x20] sm:$0xff]  ;;  %v2368_v9 = vld [vmem:[%s3568_s1 + $0x18] sm:$0xff]  ;;  %v2367_v11 = vld [vmem:[%s3568_s1 + $0x10] sm:$0xff] }
  0x1b   : > { %v2377_v8 = vld [vmem:[%s3568_s1 + $0x60] sm:$0xff]  ;;  %v2376_v10 = vld [vmem:[%s3568_s1 + $0x58] sm:$0xff]  ;;  %v2375_v12 = vld [vmem:[%s3568_s1 + $0x50] sm:$0xff] }
  0x1c   : > { %v2366_v13 = vld [vmem:[%s3568_s1 + $0x8] sm:$0xff]  ;;  %v2365_v15 = vld [vmem:[%s3568_s1] sm:$0xff]  ;;  %v1984_v23 = vld [vmem:[%s3567_s0 + $0x10] sm:$0xf] }
  0x1d   : > { %732 = vmatpush.bf16.msra.mxu0 %v2371_v3  ;;  %2574 = vmatpush.bf16.msra.mxu2 %v2371_v3  ;;  %v2374_v14 = vld [vmem:[%s3568_s1 + $0x48] sm:$0xff]  ;;  %v2373_v16 = vld [vmem:[%s3568_s1 + $0x40] sm:$0xff]  ;;  %v2304_v24 = vld [vmem:[%s3567_s0 + $0x14] sm:$0xf0] }
  0x1e   : > { %901 = vmatpush.bf16.msra.mxu1 %v2379_v4  ;;  %2582 = vmatpush.bf16.msra.mxu3 %v2379_v4  ;;  %v1976_v17 = vld [vmem:[%s3567_s0] sm:$0xf]  ;;  %v2302_v18 = vld [vmem:[%s3567_s0 + $0x4] sm:$0xf0]  ;;  %v2301_v19 = vld [vmem:[%s3567_s0 + $0x4] sm:$0xf]  ;;  %v1985_v27 = vor.u32 %v2304_v24, %v1984_v23 }
  0x1f   : > { %v1978_v20 = vld [vmem:[%s3567_s0 + $0x8] sm:$0xf0]  ;;  %v1977_v21 = vor.u32 %v2302_v18, %v1976_v17  ;;  %v2303_v25 = vld [vmem:[%s3567_s0 + $0x14] sm:$0xf]  ;;  %v1986_v26 = vld [vmem:[%s3567_s0 + $0x18] sm:$0xf0] }
  0x20   : > { %v1981_v22 = vor.u32 %v2301_v19, %v1978_v20  ;;  %v1989_v28 = vor.u32 %v2303_v25, %v1986_v26  ;;  %v2104_v29 = vld [vmem:[%s3567_s0 + $0x100] sm:$0xf]  ;;  %v2334_v30 = vld [vmem:[%s3567_s0 + $0x104] sm:$0xf0]  ;;  %v2333_v31 = vld [vmem:[%s3567_s0 + $0x104] sm:$0xf] }
  0x21   : > { %733 = vmatpush.bf16.msra.mxu0 %v2370_v5  ;;  %2575 = vmatpush.bf16.msra.mxu2 %v2370_v5  ;;  %v2105_v32 = vor.u32 %v2334_v30, %v2104_v29  ;;  %v2106_v33 = vld [vmem:[%s3567_s0 + $0x108] sm:$0xf0]  ;;  %v1992_v35 = vld [vmem:[%s3567_s0 + $0x20] sm:$0xf]  ;;  %v2306_v36 = vld [vmem:[%s3567_s0 + $0x24] sm:$0xf0] }
  0x22   : > { %902 = vmatpush.bf16.msra.mxu1 %v2378_v6  ;;  %2583 = vmatpush.bf16.msra.mxu3 %v2378_v6  ;;  %v2109_v34 = vor.u32 %v2333_v31, %v2106_v33  ;;  %v2305_v37 = vld [vmem:[%s3567_s0 + $0x24] sm:$0xf]  ;;  %v1994_v38 = vld [vmem:[%s3567_s0 + $0x28] sm:$0xf0]  ;;  %v1993_v39 = vor.u32 %v2306_v36, %v1992_v35  ;;  %v2112_v41 = vld [vmem:[%s3567_s0 + $0x110] sm:$0xf] }
  0x23   : > { %v1997_v40 = vor.u32 %v2305_v37, %v1994_v38  ;;  %v2336_v42 = vld [vmem:[%s3567_s0 + $0x114] sm:$0xf0]  ;;  %v2335_v43 = vld [vmem:[%s3567_s0 + $0x114] sm:$0xf]  ;;  %v2114_v45 = vld [vmem:[%s3567_s0 + $0x118] sm:$0xf0] }
  0x24   : > { %v2113_v44 = vor.u32 %v2336_v42, %v2112_v41  ;;  %v2117_v46 = vor.u32 %v2335_v43, %v2114_v45  ;;  %v2000_v47 = vld [vmem:[%s3567_s0 + $0x30] sm:$0xf]  ;;  %v2308_v48 = vld [vmem:[%s3567_s0 + $0x34] sm:$0xf0]  ;;  %v2307_v49 = vld [vmem:[%s3567_s0 + $0x34] sm:$0xf] }
  0x25   : > { %734 = vmatpush.bf16.msra.mxu0 %v2369_v7  ;;  %2576 = vmatpush.bf16.msra.mxu2 %v2369_v7  ;;  %v2002_v50 = vld [vmem:[%s3567_s0 + $0x38] sm:$0xf0]  ;;  %v2001_v51 = vor.u32 %v2308_v48, %v2000_v47  ;;  %v2120_v53 = vld [vmem:[%s3567_s0 + $0x120] sm:$0xf]  ;;  %v2338_v54 = vld [vmem:[%s3567_s0 + $0x124] sm:$0xf0] }
  0x26   : > { %903 = vmatpush.bf16.msra.mxu1 %v2377_v8  ;;  %2584 = vmatpush.bf16.msra.mxu3 %v2377_v8  ;;  %v2005_v52 = vor.u32 %v2307_v49, %v2002_v50  ;;  %v2337_v55 = vld [vmem:[%s3567_s0 + $0x124] sm:$0xf]  ;;  %v2121_v56 = vor.u32 %v2338_v54, %v2120_v53  ;;  %v2122_v57 = vld [vmem:[%s3567_s0 + $0x128] sm:$0xf0]  ;;  %v2008_v59 = vld [vmem:[%s3567_s0 + $0x40] sm:$0xf] }
  0x27   : > { %v2125_v58 = vor.u32 %v2337_v55, %v2122_v57  ;;  %v2310_v60 = vld [vmem:[%s3567_s0 + $0x44] sm:$0xf0]  ;;  %v2309_v61 = vld [vmem:[%s3567_s0 + $0x44] sm:$0xf]  ;;  %v2010_v62 = vld [vmem:[%s3567_s0 + $0x48] sm:$0xf0] }
  0x28   : > { %v2009_v63 = vor.u32 %v2310_v60, %v2008_v59  ;;  %v2013_v0 = vor.u32 %v2309_v61, %v2010_v62  ;;  %v2128_v1 = vld [vmem:[%s3567_s0 + $0x130] sm:$0xf]  ;;  %v2340_v2 = vld [vmem:[%s3567_s0 + $0x134] sm:$0xf0]  ;;  %v2339_v3 = vld [vmem:[%s3567_s0 + $0x134] sm:$0xf] }
  0x29   : > { %735 = vmatpush.bf16.msra.mxu0 %v2368_v9  ;;  %2577 = vmatpush.bf16.msra.mxu2 %v2368_v9  ;;  %v2129_v4 = vor.u32 %v2340_v2, %v2128_v1  ;;  %v2130_v5 = vld [vmem:[%s3567_s0 + $0x138] sm:$0xf0]  ;;  %v2016_v7 = vld [vmem:[%s3567_s0 + $0x50] sm:$0xf]  ;;  %v2312_v8 = vld [vmem:[%s3567_s0 + $0x54] sm:$0xf0] }
  0x2a   : > { %904 = vmatpush.bf16.msra.mxu1 %v2376_v10  ;;  %2585 = vmatpush.bf16.msra.mxu3 %v2376_v10  ;;  %v2133_v6 = vor.u32 %v2339_v3, %v2130_v5  ;;  %v2311_v9 = vld [vmem:[%s3567_s0 + $0x54] sm:$0xf]  ;;  %v2018_v10 = vld [vmem:[%s3567_s0 + $0x58] sm:$0xf0]  ;;  %v2138_v17 = vld [vmem:[%s3567_s0 + $0x148] sm:$0xf0] }
  0x2b   : > { %v2024_v19 = vld [vmem:[%s3567_s0 + $0x60] sm:$0xf]  ;;  %v2314_v20 = vld [vmem:[%s3567_s0 + $0x64] sm:$0xf0]  ;;  %v2144_v25 = vld [vmem:[%s3567_s0 + $0x150] sm:$0xf] }
  0x2c   : > { %v2025_v23 = vor.u32 %v2314_v20, %v2024_v19  ;;  %v2344_v26 = vld [vmem:[%s3567_s0 + $0x154] sm:$0xf0]  ;;  %v2146_v29 = vld [vmem:[%s3567_s0 + $0x158] sm:$0xf0]  ;;  %v2032_v31 = vld [vmem:[%s3567_s0 + $0x70] sm:$0xf] }
  0x2d   : > { %736 = vmatpush.bf16.msra.mxu0 %v2367_v11  ;;  %2578 = vmatpush.bf16.msra.mxu2 %v2367_v11  ;;  %v2017_v11 = vor.u32 %v2312_v8, %v2016_v7  ;;  %v2315_v33 = vld [vmem:[%s3567_s0 + $0x74] sm:$0xf]  ;;  %v2152_v37 = vld [vmem:[%s3567_s0 + $0x160] sm:$0xf]  ;;  %v2346_v38 = vld [vmem:[%s3567_s0 + $0x164] sm:$0xf0] }
  0x2e   : > { %905 = vmatpush.bf16.msra.mxu1 %v2375_v12  ;;  %2586 = vmatpush.bf16.msra.mxu3 %v2375_v12  ;;  %v2021_v12 = vor.u32 %v2311_v9, %v2018_v10  ;;  %v2154_v41 = vld [vmem:[%s3567_s0 + $0x168] sm:$0xf0]  ;;  %v2040_v43 = vld [vmem:[%s3567_s0 + $0x80] sm:$0xf]  ;;  %v2317_v45 = vld [vmem:[%s3567_s0 + $0x84] sm:$0xf] }
  0x2f   : > { %v2348_v53 = vld [vmem:[%s3567_s0 + $0x174] sm:$0xf0]  ;;  %v2347_v54 = vld [vmem:[%s3567_s0 + $0x174] sm:$0xf]  ;;  %v2050_v3 = vld [vmem:[%s3567_s0 + $0x98] sm:$0xf0] }
  0x30   : > { %v2320_v1 = vld [vmem:[%s3567_s0 + $0x94] sm:$0xf0]  ;;  %v2319_v2 = vld [vmem:[%s3567_s0 + $0x94] sm:$0xf]  ;;  %v2168_v10 = vld [vmem:[%s3567_s0 + $0x180] sm:$0xf] }
  0x31   : > { %737 = vmatpush.bf16.msra.mxu0 %v2366_v13  ;;  %2579 = vmatpush.bf16.msra.mxu2 %v2366_v13  ;;  %v2136_v13 = vld [vmem:[%s3567_s0 + $0x140] sm:$0xf] }
  0x32   : > { %906 = vmatpush.bf16.msra.mxu1 %v2374_v14  ;;  %2587 = vmatpush.bf16.msra.mxu3 %v2374_v14  ;;  %v2342_v14 = vld [vmem:[%s3567_s0 + $0x144] sm:$0xf0] }
  0x35   : > { %738 = vmatpush.bf16.msra.mxu0 %v2365_v15  ;;  %2580 = vmatpush.bf16.msra.mxu2 %v2365_v15  ;;  %v2341_v15 = vld [vmem:[%s3567_s0 + $0x144] sm:$0xf] }
  0x36   : > { %907 = vmatpush.bf16.msra.mxu1 %v2373_v16  ;;  %2588 = vmatpush.bf16.msra.mxu3 %v2373_v16  ;;  %v2137_v16 = vor.u32 %v2342_v14, %v2136_v13  ;;  %v2141_v18 = vor.u32 %v2341_v15, %v2138_v17 }
  0x38   : > { %739 = vmatmul.bf16.vlgmr.msra.gmra.mxu0 %v1977_v21  ;;  %819 = vmatmul.bf16.vlgmr.msra.gmra.mxu2 %v2105_v32  ;;  %v2313_v21 = vld [vmem:[%s3567_s0 + $0x64] sm:$0xf]  ;;  %v2316_v32 = vld [vmem:[%s3567_s0 + $0x74] sm:$0xf0] }
  0x39   : > { %908 = vmatmul.bf16.vlgmr.msra.gmra.mxu1 %v1981_v22  ;;  %988 = vmatmul.bf16.vlgmr.msra.gmra.mxu3 %v2109_v34  ;;  %v2026_v22 = vld [vmem:[%s3567_s0 + $0x68] sm:$0xf0]  ;;  %v2034_v34 = vld [vmem:[%s3567_s0 + $0x78] sm:$0xf0]  ;;  %v2033_v35 = vor.u32 %v2316_v32, %v2032_v31 }
  0x3a   : > { %v2029_v24 = vor.u32 %v2313_v21, %v2026_v22  ;;  %v2037_v36 = vor.u32 %v2315_v33, %v2034_v34 }
  0x48   : > { %744 = vmatmul.bf16.gmra.mxu0 %v1985_v27  ;;  %824 = vmatmul.bf16.gmra.mxu2 %v2113_v44  ;;  %v2343_v27 = vld [vmem:[%s3567_s0 + $0x154] sm:$0xf]  ;;  %v2318_v44 = vld [vmem:[%s3567_s0 + $0x84] sm:$0xf0] }
  0x49   : > { %913 = vmatmul.bf16.gmra.mxu1 %v1989_v28  ;;  %993 = vmatmul.bf16.gmra.mxu3 %v2117_v46  ;;  %v2145_v28 = vor.u32 %v2344_v26, %v2144_v25  ;;  %v2149_v30 = vor.u32 %v2343_v27, %v2146_v29  ;;  %v2042_v46 = vld [vmem:[%s3567_s0 + $0x88] sm:$0xf0]  ;;  %v2041_v47 = vor.u32 %v2318_v44, %v2040_v43  ;;  %v2056_v26 = vld [vmem:[%s3567_s0 + $0xa0] sm:$0xf]  ;;  %v2322_v27 = vld [vmem:[%s3567_s0 + $0xa4] sm:$0xf0] }
  0x4a   : > { %v2045_v48 = vor.u32 %v2317_v45, %v2042_v46  ;;  %v2058_v29 = vld [vmem:[%s3567_s0 + $0xa8] sm:$0xf0]  ;;  %v2057_v32 = vor.u32 %v2322_v27, %v2056_v26  ;;  %v2178_v46 = vld [vmem:[%s3567_s0 + $0x198] sm:$0xf0] }
  0x58   : > { %749 = vmatmul.bf16.gmra.mxu0 %v1993_v39  ;;  %829 = vmatmul.bf16.gmra.mxu2 %v2121_v56  ;;  %v2345_v39 = vld [vmem:[%s3567_s0 + $0x164] sm:$0xf]  ;;  %v2162_v56 = vld [vmem:[%s3567_s0 + $0x178] sm:$0xf0] }
  0x59   : > { %918 = vmatmul.bf16.gmra.mxu1 %v1997_v40  ;;  %998 = vmatmul.bf16.gmra.mxu3 %v2125_v58  ;;  %v2153_v40 = vor.u32 %v2346_v38, %v2152_v37  ;;  %v2157_v42 = vor.u32 %v2345_v39, %v2154_v41  ;;  %v2165_v57 = vor.u32 %v2347_v54, %v2162_v56  ;;  %v2352_v41 = vld [vmem:[%s3567_s0 + $0x194] sm:$0xf0]  ;;  %v2064_v56 = vld [vmem:[%s3567_s0 + $0xb0] sm:$0xf] }
  0x68   : > { %754 = vmatmul.bf16.gmra.mxu0 %v2001_v51  ;;  %834 = vmatmul.bf16.gmra.mxu2 %v2129_v4 }
  0x69   : > { %923 = vmatmul.bf16.gmra.mxu1 %v2005_v52  ;;  %1003 = vmatmul.bf16.gmra.mxu3 %v2133_v6  ;;  %v2160_v52 = vld [vmem:[%s3567_s0 + $0x170] sm:$0xf]  ;;  %v2053_v6 = vor.u32 %v2319_v2, %v2050_v3 }
  0x6a   : > { %v2161_v55 = vor.u32 %v2348_v53, %v2160_v52 }
  0x78   : > { %759 = vmatmul.bf16.gmra.mxu0 %v2009_v63  ;;  %839 = vmatmul.bf16.gmra.mxu2 %v2137_v16  ;;  %v2170_v16 = vld [vmem:[%s3567_s0 + $0x188] sm:$0xf0] }
  0x79   : > { %928 = vmatmul.bf16.gmra.mxu1 %v2013_v0  ;;  %1008 = vmatmul.bf16.gmra.mxu3 %v2141_v18  ;;  %v2048_v0 = vld [vmem:[%s3567_s0 + $0x90] sm:$0xf] }
  0x7a   : > { %v2049_v5 = vor.u32 %v2320_v1, %v2048_v0 }
  0x88   : > { %764 = vmatmul.bf16.gmra.mxu0 %v2017_v11  ;;  %844 = vmatmul.bf16.gmra.mxu2 %v2145_v28  ;;  %v2350_v11 = vld [vmem:[%s3567_s0 + $0x184] sm:$0xf0]  ;;  %v2321_v28 = vld [vmem:[%s3567_s0 + $0xa4] sm:$0xf] }
  0x89   : > { %933 = vmatmul.bf16.gmra.mxu1 %v2021_v12  ;;  %1013 = vmatmul.bf16.gmra.mxu3 %v2149_v30  ;;  %v2349_v12 = vld [vmem:[%s3567_s0 + $0x184] sm:$0xf]  ;;  %v2169_v15 = vor.u32 %v2350_v11, %v2168_v10  ;;  %v2061_v33 = vor.u32 %v2321_v28, %v2058_v29 }
  0x8a   : > { %v2173_v17 = vor.u32 %v2349_v12, %v2170_v16  ;;  %v2186_v12 = vld [vmem:[%s3567_s0 + $0x1a8] sm:$0xf0] }
  0x98   : > { %769 = vmatmul.bf16.gmra.mxu0 %v2025_v23  ;;  %849 = vmatmul.bf16.gmra.mxu2 %v2153_v40  ;;  %v2176_v40 = vld [vmem:[%s3567_s0 + $0x190] sm:$0xf] }
  0x99   : > { %938 = vmatmul.bf16.gmra.mxu1 %v2029_v24  ;;  %1018 = vmatmul.bf16.gmra.mxu3 %v2157_v42  ;;  %v2351_v42 = vld [vmem:[%s3567_s0 + $0x194] sm:$0xf]  ;;  %v2177_v45 = vor.u32 %v2352_v41, %v2176_v40 }
  0x9a   : > { %v2355_v40 = vld [vmem:[%s3567_s0 + $0x1b4] sm:$0xf] }
  0xa8   : > { %774 = vmatmul.bf16.gmra.mxu0 %v2033_v35  ;;  %854 = vmatmul.bf16.gmra.mxu2 %v2161_v55 }
  0xa9   : > { %943 = vmatmul.bf16.gmra.mxu1 %v2037_v36  ;;  %1023 = vmatmul.bf16.gmra.mxu3 %v2165_v57  ;;  %v2324_v57 = vld [vmem:[%s3567_s0 + $0xb4] sm:$0xf0] }
  0xb5   : > { %v740_v49 = vpop.f32.mrf.mxu0 }
  0xb6   : > { %v909_v50 = vpop.f32.mrf.mxu1 }
  0xb7   : > { %v910_v51 = vadd.f32 %v909_v50, %v740_v49 }
  0xb8   : > { %779 = vmatmul.bf16.gmra.mxu0 %v2041_v47  ;;  %859 = vmatmul.bf16.gmra.mxu2 %v2169_v15  ;;  %v2181_v47 = vor.u32 %v2351_v42, %v2178_v46 }
  0xb9   : > { %1071 = vst [vmem:[#allocation2 + $0xb0] sm:$0xff] %v910_v51  ;;  %948 = vmatmul.bf16.gmra.mxu1 %v2045_v48  ;;  %v1208_v61 = vmul.f32 %v910_v51, %v910_v51  ;;  %1028 = vmatmul.bf16.gmra.mxu3 %v2173_v17 }
  0xbb   : > { %v820_v22 = vpop.f32.mrf.mxu2 }
  0xbc   : > { %v989_v23 = vpop.f32.mrf.mxu3 }
  0xbd   : > { %v742_v58 = vpop.f32.mrf.mxu0  ;;  %v2973_v31 = vadd.f32 %v989_v23, %v820_v22  ;;  %v2072_v22 = vld [vmem:[%s3567_s0 + $0xc0] sm:$0xf]  ;;  %v2326_v23 = vld [vmem:[%s3567_s0 + $0xc4] sm:$0xf0] }
  0xbe   : > { %v911_v59 = vpop.f32.mrf.mxu1  ;;  %v2073_v28 = vor.u32 %v2326_v23, %v2072_v22  ;;  %v2088_v22 = vld [vmem:[%s3567_s0 + $0xe0] sm:$0xf]  ;;  %v2330_v23 = vld [vmem:[%s3567_s0 + $0xe4] sm:$0xf0] }
  0xbf   : > { %v912_v60 = vadd.f32 %v911_v59, %v742_v58  ;;  %1103 = vst [vmem:[#allocation2 + $0x148] sm:$0xff] %v2973_v31  ;;  %v2323_v58 = vld [vmem:[%s3567_s0 + $0xb4] sm:$0xf]  ;;  %v2066_v59 = vld [vmem:[%s3567_s0 + $0xb8] sm:$0xf0] }
  0xc1   : > { %1072 = vst [vmem:[#allocation2 + $0x1b0] sm:$0xff] %v912_v60  ;;  %v1136_v62 = vadd.f32 %v912_v60, %v910_v51  ;;  %v1209_v63 = vmul.f32 %v912_v60, %v912_v60 }
  0xc3   : > { %v1272_v4 = vadd.f32 %v1209_v63, %v1208_v61  ;;  %v822_v37 = vpop.f32.mrf.mxu2  ;;  %v2069_v63 = vor.u32 %v2323_v58, %v2066_v59 }
  0xc4   : > { %v991_v38 = vpop.f32.mrf.mxu3 }
  0xc5   : > { %v745_v7 = vpop.f32.mrf.mxu0  ;;  %v2976_v39 = vadd.f32 %v991_v38, %v822_v37  ;;  %v2192_v37 = vld [vmem:[%s3567_s0 + $0x1b0] sm:$0xf]  ;;  %v2356_v38 = vld [vmem:[%s3567_s0 + $0x1b4] sm:$0xf0] }
  0xc6   : > { %v914_v8 = vpop.f32.mrf.mxu1 }
  0xc7   : > { %v915_v9 = vadd.f32 %v914_v8, %v745_v7  ;;  %1104 = vst [vmem:[#allocation2 + $0x1d0] sm:$0xff] %v2976_v39  ;;  %v2354_v7 = vld [vmem:[%s3567_s0 + $0x1a4] sm:$0xf0]  ;;  %v2353_v8 = vld [vmem:[%s3567_s0 + $0x1a4] sm:$0xf] }
  0xc8   : > { %784 = vmatmul.bf16.gmra.mxu0 %v2049_v5  ;;  %864 = vmatmul.bf16.gmra.mxu2 %v2177_v45 }
  0xc9   : > { %1073 = vst [vmem:[#allocation2 + $0xd8] sm:$0xff] %v915_v9  ;;  %v1137_v13 = vadd.f32 %v1136_v62, %v915_v9  ;;  %v1210_v14 = vmul.f32 %v915_v9, %v915_v9  ;;  %953 = vmatmul.bf16.gmra.mxu1 %v2053_v6  ;;  %1033 = vmatmul.bf16.gmra.mxu3 %v2181_v47  ;;  %v2184_v6 = vld [vmem:[%s3567_s0 + $0x1a0] sm:$0xf] }
  0xca   : > { %v2065_v62 = vor.u32 %v2324_v57, %v2064_v56  ;;  %v2185_v11 = vor.u32 %v2354_v7, %v2184_v6  ;;  %v2327_v56 = vld [vmem:[%s3567_s0 + $0xd4] sm:$0xf]  ;;  %v2082_v57 = vld [vmem:[%s3567_s0 + $0xd8] sm:$0xf0]  ;;  %v2200_v6 = vld [vmem:[%s3567_s0 + $0x1c0] sm:$0xf] }
  0xcb   : > { %v1273_v18 = vadd.f32 %v1272_v4, %v1210_v14  ;;  %v825_v52 = vpop.f32.mrf.mxu2  ;;  %v2358_v7 = vld [vmem:[%s3567_s0 + $0x1c4] sm:$0xf0] }
  0xcc   : > { %v994_v53 = vpop.f32.mrf.mxu3 }
  0xcd   : > { %v747_v19 = vpop.f32.mrf.mxu0  ;;  %v3003_v61 = vadd.f32 %v994_v53, %v825_v52 }
  0xce   : > { %v916_v20 = vpop.f32.mrf.mxu1 }
  0xcf   : > { %v917_v21 = vadd.f32 %v916_v20, %v747_v19  ;;  %1105 = vst [vmem:[#allocation2 + $0x100] sm:$0xff] %v3003_v61 }
  0xd1   : > { %1074 = vst [vmem:[#allocation2 + $0x18] sm:$0xff] %v917_v21  ;;  %v1138_v24 = vadd.f32 %v1137_v13, %v917_v21  ;;  %v1211_v25 = vmul.f32 %v917_v21, %v917_v21  ;;  %v2189_v13 = vor.u32 %v2353_v8, %v2186_v12  ;;  %v2357_v8 = vld [vmem:[%s3567_s0 + $0x1c4] sm:$0xf]  ;;  %v2202_v12 = vld [vmem:[%s3567_s0 + $0x1c8] sm:$0xf0] }
  0xd3   : > { %v1274_v30 = vadd.f32 %v1273_v18, %v1211_v25  ;;  %v827_v3 = vpop.f32.mrf.mxu2  ;;  %v2074_v25 = vld [vmem:[%s3567_s0 + $0xc8] sm:$0xf0] }
  0xd4   : > { %v996_v4 = vpop.f32.mrf.mxu3 }
  0xd5   : > { %v750_v34 = vpop.f32.mrf.mxu0  ;;  %v3006_v5 = vadd.f32 %v996_v4, %v827_v3 }
  0xd6   : > { %v919_v35 = vpop.f32.mrf.mxu1 }
  0xd7   : > { %v920_v36 = vadd.f32 %v919_v35, %v750_v34  ;;  %1106 = vst [vmem:[#allocation2 + $0xc8] sm:$0xff] %v3006_v5 }
  0xd8   : > { %789 = vmatmul.bf16.gmra.mxu0 %v2057_v32  ;;  %869 = vmatmul.bf16.gmra.mxu2 %v2185_v11  ;;  %v2201_v11 = vor.u32 %v2358_v7, %v2200_v6 }
  0xd9   : > { %1075 = vst [vmem:[#allocation2 + $0x50] sm:$0xff] %v920_v36  ;;  %v1139_v43 = vadd.f32 %v1138_v24, %v920_v36  ;;  %v1212_v44 = vmul.f32 %v920_v36, %v920_v36  ;;  %958 = vmatmul.bf16.gmra.mxu1 %v2061_v33  ;;  %1038 = vmatmul.bf16.gmra.mxu3 %v2189_v13  ;;  %v2325_v24 = vld [vmem:[%s3567_s0 + $0xc4] sm:$0xf] }
  0xda   : > { %v2077_v29 = vor.u32 %v2325_v24, %v2074_v25  ;;  %v2205_v13 = vor.u32 %v2357_v8, %v2202_v12  ;;  %v2329_v24 = vld [vmem:[%s3567_s0 + $0xe4] sm:$0xf]  ;;  %v2090_v25 = vld [vmem:[%s3567_s0 + $0xe8] sm:$0xf0] }
  0xdb   : > { %v1275_v48 = vadd.f32 %v1274_v30, %v1212_v44  ;;  %v830_v18 = vpop.f32.mrf.mxu2  ;;  %v2194_v44 = vld [vmem:[%s3567_s0 + $0x1b8] sm:$0xf0]  ;;  %v2361_v12 = vld [vmem:[%s3567_s0 + $0x1e4] sm:$0xf] }
  0xdc   : > { %v999_v19 = vpop.f32.mrf.mxu3  ;;  %v2197_v45 = vor.u32 %v2355_v40, %v2194_v44  ;;  %v2208_v40 = vld [vmem:[%s3567_s0 + $0x1d0] sm:$0xf] }
  0xdd   : > { %v752_v49 = vpop.f32.mrf.mxu0  ;;  %v3033_v27 = vadd.f32 %v999_v19, %v830_v18 }
  0xde   : > { %v921_v50 = vpop.f32.mrf.mxu1 }
  0xdf   : > { %v922_v51 = vadd.f32 %v921_v50, %v752_v49  ;;  %1107 = vst [vmem:[#allocation2 + $0x40] sm:$0xff] %v3033_v27 }
  0xe1   : > { %1076 = vst [vmem:[#allocation2 + $0x168] sm:$0xff] %v922_v51  ;;  %v1140_v54 = vadd.f32 %v1139_v43, %v922_v51  ;;  %v1213_v55 = vmul.f32 %v922_v51, %v922_v51  ;;  %v2193_v43 = vor.u32 %v2356_v38, %v2192_v37 }
  0xe3   : > { %v1276_v60 = vadd.f32 %v1275_v48, %v1213_v55  ;;  %v832_v34 = vpop.f32.mrf.mxu2  ;;  %v2328_v55 = vld [vmem:[%s3567_s0 + $0xd4] sm:$0xf0] }
  0xe4   : > { %v1001_v35 = vpop.f32.mrf.mxu3 }
  0xe5   : > { %v755_v0 = vpop.f32.mrf.mxu0  ;;  %v3036_v36 = vadd.f32 %v1001_v35, %v832_v34 }
  0xe6   : > { %v924_v1 = vpop.f32.mrf.mxu1 }
  0xe7   : > { %v925_v2 = vadd.f32 %v924_v1, %v755_v0  ;;  %1108 = vst [vmem:[#allocation2 + $0x1f8] sm:$0xff] %v3036_v36 }
  0xe8   : > { %794 = vmatmul.bf16.gmra.mxu0 %v2065_v62  ;;  %874 = vmatmul.bf16.gmra.mxu2 %v2193_v43  ;;  %v2085_v62 = vor.u32 %v2327_v56, %v2082_v57  ;;  %v2096_v56 = vld [vmem:[%s3567_s0 + $0xf0] sm:$0xf]  ;;  %v2332_v57 = vld [vmem:[%s3567_s0 + $0xf4] sm:$0xf0] }
  0xe9   : > { %1077 = vst [vmem:[#allocation2 + $0x130] sm:$0xff] %v925_v2  ;;  %v1141_v9 = vadd.f32 %v1140_v54, %v925_v2  ;;  %v1214_v10 = vmul.f32 %v925_v2, %v925_v2  ;;  %963 = vmatmul.bf16.gmra.mxu1 %v2069_v63  ;;  %1043 = vmatmul.bf16.gmra.mxu3 %v2197_v45  ;;  %v2080_v54 = vld [vmem:[%s3567_s0 + $0xd0] sm:$0xf] }
  0xeb   : > { %v1277_v14 = vadd.f32 %v1276_v60, %v1214_v10  ;;  %v835_v50 = vpop.f32.mrf.mxu2  ;;  %v2081_v60 = vor.u32 %v2328_v55, %v2080_v54 }
  0xec   : > { %v1004_v51 = vpop.f32.mrf.mxu3 }
  0xed   : > { %v757_v15 = vpop.f32.mrf.mxu0  ;;  %v3063_v59 = vadd.f32 %v1004_v51, %v835_v50 }
  0xee   : > { %v926_v16 = vpop.f32.mrf.mxu1 }
  0xef   : > { %v927_v17 = vadd.f32 %v926_v16, %v757_v15  ;;  %1109 = vst [vmem:[#allocation2 + $0x20] sm:$0xff] %v3063_v59 }
  0xf1   : > { %1078 = vst [vmem:[#allocation2 + $0x48] sm:$0xff] %v927_v17  ;;  %v1142_v20 = vadd.f32 %v1141_v9, %v927_v17  ;;  %v1215_v21 = vmul.f32 %v927_v17, %v927_v17 }
  0xf3   : > { %v1278_v26 = vadd.f32 %v1277_v14, %v1215_v21  ;;  %v837_v2 = vpop.f32.mrf.mxu2 }
  0xf4   : > { %v1006_v3 = vpop.f32.mrf.mxu3 }
  0xf5   : > { %v760_v30 = vpop.f32.mrf.mxu0  ;;  %v3066_v4 = vadd.f32 %v1006_v3, %v837_v2 }
  0xf6   : > { %v929_v32 = vpop.f32.mrf.mxu1 }
  0xf7   : > { %v930_v33 = vadd.f32 %v929_v32, %v760_v30  ;;  %1110 = vst [vmem:[#allocation2 + $0x128] sm:$0xff] %v3066_v4  ;;  %v2093_v30 = vor.u32 %v2329_v24, %v2090_v25 }
  0xf8   : > { %799 = vmatmul.bf16.gmra.mxu0 %v2073_v28  ;;  %879 = vmatmul.bf16.gmra.mxu2 %v2201_v11  ;;  %v2362_v11 = vld [vmem:[%s3567_s0 + $0x1e4] sm:$0xf0] }
  0xf9   : > { %1079 = vst [vmem:[#allocation2 + $0x180] sm:$0xff] %v930_v33  ;;  %v1143_v41 = vadd.f32 %v1142_v20, %v930_v33  ;;  %v1216_v42 = vmul.f32 %v930_v33, %v930_v33  ;;  %968 = vmatmul.bf16.gmra.mxu1 %v2077_v29  ;;  %1048 = vmatmul.bf16.gmra.mxu3 %v2205_v13 }
  0xfa   : > { %v2089_v29 = vor.u32 %v2330_v23, %v2088_v22 }
  0xfb   : > { %v1279_v46 = vadd.f32 %v1278_v26, %v1216_v42  ;;  %v840_v18 = vpop.f32.mrf.mxu2  ;;  %v2359_v42 = vld [vmem:[%s3567_s0 + $0x1d4] sm:$0xf] }
  0xfc   : > { %v1009_v19 = vpop.f32.mrf.mxu3 }
  0xfd   : > { %v762_v47 = vpop.f32.mrf.mxu0  ;;  %v3093_v28 = vadd.f32 %v1009_v19, %v840_v18 }
  0xfe   : > { %v931_v48 = vpop.f32.mrf.mxu1 }
  0xff   : > { %v932_v49 = vadd.f32 %v931_v48, %v762_v47  ;;  %1111 = vst [vmem:[#allocation2 + $0x1a0] sm:$0xff] %v3093_v28 }
 0x101   : > { %1080 = vst [vmem:[#allocation2 + $0x110] sm:$0xff] %v932_v49  ;;  %v1144_v52 = vadd.f32 %v1143_v41, %v932_v49  ;;  %v1217_v53 = vmul.f32 %v932_v49, %v932_v49  ;;  %v2360_v41 = vld [vmem:[%s3567_s0 + $0x1d4] sm:$0xf0] }
 0x102   : > { %v2209_v45 = vor.u32 %v2360_v41, %v2208_v40  ;;  %v2224_v40 = vld [vmem:[%s3567_s0 + $0x1f0] sm:$0xf]  ;;  %v2364_v41 = vld [vmem:[%s3567_s0 + $0x1f4] sm:$0xf0] }
 0x103   : > { %v1280_v58 = vadd.f32 %v1279_v46, %v1217_v53  ;;  %v842_v35 = vpop.f32.mrf.mxu2  ;;  %v2210_v46 = vld [vmem:[%s3567_s0 + $0x1d8] sm:$0xf0] }
 0x104   : > { %v1011_v37 = vpop.f32.mrf.mxu3  ;;  %v2213_v47 = vor.u32 %v2359_v42, %v2210_v46  ;;  %v2363_v42 = vld [vmem:[%s3567_s0 + $0x1f4] sm:$0xf]  ;;  %v2226_v46 = vld [vmem:[%s3567_s0 + $0x1f8] sm:$0xf0] }
 0x105   : > { %v765_v63 = vpop.f32.mrf.mxu0  ;;  %v3096_v38 = vadd.f32 %v1011_v37, %v842_v35 }
 0x106   : > { %v934_v0 = vpop.f32.mrf.mxu1 }
 0x107   : > { %v935_v1 = vadd.f32 %v934_v0, %v765_v63  ;;  %1112 = vst [vmem:[#allocation2 + $0x1f0] sm:$0xff] %v3096_v38  ;;  %v2097_v0 = vor.u32 %v2332_v57, %v2096_v56 }
 0x108   : > { %804 = vmatmul.bf16.gmra.mxu0 %v2081_v60  ;;  %884 = vmatmul.bf16.gmra.mxu2 %v2209_v45  ;;  %v2098_v60 = vld [vmem:[%s3567_s0 + $0xf8] sm:$0xf0]  ;;  %v2225_v45 = vor.u32 %v2364_v41, %v2224_v40 }
 0x109   : > { %1081 = vst [vmem:[#allocation2 + $0x118] sm:$0xff] %v935_v1  ;;  %v1145_v9 = vadd.f32 %v1144_v52, %v935_v1  ;;  %v1218_v10 = vmul.f32 %v935_v1, %v935_v1  ;;  %973 = vmatmul.bf16.gmra.mxu1 %v2085_v62  ;;  %1053 = vmatmul.bf16.gmra.mxu3 %v2213_v47 }
 0x10a   : > { %v2229_v47 = vor.u32 %v2363_v42, %v2226_v46 }
 0x10b   : > { %v1281_v14 = vadd.f32 %v1280_v58, %v1218_v10  ;;  %v845_v52 = vpop.f32.mrf.mxu2  ;;  %v2331_v58 = vld [vmem:[%s3567_s0 + $0xf4] sm:$0xf]  ;;  %v2216_v10 = vld [vmem:[%s3567_s0 + $0x1e0] sm:$0xf] }
 0x10c   : > { %v1014_v53 = vpop.f32.mrf.mxu3  ;;  %v2101_v1 = vor.u32 %v2331_v58, %v2098_v60 }
 0x10d   : > { %v767_v15 = vpop.f32.mrf.mxu0  ;;  %v3123_v63 = vadd.f32 %v1014_v53, %v845_v52 }
 0x10e   : > { %v936_v16 = vpop.f32.mrf.mxu1 }
 0x10f   : > { %v937_v17 = vadd.f32 %v936_v16, %v767_v15  ;;  %1113 = vst [vmem:[#allocation2 + $0xe8] sm:$0xff] %v3123_v63  ;;  %v2217_v15 = vor.u32 %v2362_v11, %v2216_v10  ;;  %v2218_v16 = vld [vmem:[%s3567_s0 + $0x1e8] sm:$0xf0] }
 0x111   : > { %1082 = vst [vmem:[#allocation2 + $0x98] sm:$0xff] %v937_v17  ;;  %v1146_v20 = vadd.f32 %v1145_v9, %v937_v17  ;;  %v1219_v21 = vmul.f32 %v937_v17, %v937_v17  ;;  %v2221_v17 = vor.u32 %v2361_v12, %v2218_v16 }
 0x113   : > { %v1282_v26 = vadd.f32 %v1281_v14, %v1219_v21  ;;  %v847_v7 = vpop.f32.mrf.mxu2 }
 0x114   : > { %v1016_v8 = vpop.f32.mrf.mxu3 }
 0x115   : > { %v770_v32 = vpop.f32.mrf.mxu0  ;;  %v3126_v9 = vadd.f32 %v1016_v8, %v847_v7 }
 0x116   : > { %v939_v33 = vpop.f32.mrf.mxu1 }
 0x117   : > { %v940_v34 = vadd.f32 %v939_v33, %v770_v32  ;;  %1114 = vst [vmem:[#allocation2 + $0x78] sm:$0xff] %v3126_v9 }
 0x118   : > { %809 = vmatmul.bf16.gmra.mxu0 %v2089_v29  ;;  %889 = vmatmul.bf16.gmra.mxu2 %v2217_v15 }
 0x119   : > { %1083 = vst [vmem:[#allocation2 + $0x120] sm:$0xff] %v940_v34  ;;  %v1147_v43 = vadd.f32 %v1146_v20, %v940_v34  ;;  %v1220_v44 = vmul.f32 %v940_v34, %v940_v34  ;;  %978 = vmatmul.bf16.gmra.mxu1 %v2093_v30  ;;  %1058 = vmatmul.bf16.gmra.mxu3 %v2221_v17 }
 0x11b   : > { %v1283_v48 = vadd.f32 %v1282_v26, %v1220_v44  ;;  %v850_v22 = vpop.f32.mrf.mxu2 }
 0x11c   : > { %v1019_v23 = vpop.f32.mrf.mxu3 }
 0x11d   : > { %v772_v49 = vpop.f32.mrf.mxu0  ;;  %v3141_v29 = vadd.f32 %v1019_v23, %v850_v22 }
 0x11e   : > { %v941_v50 = vpop.f32.mrf.mxu1 }
 0x11f   : > { %v942_v51 = vadd.f32 %v941_v50, %v772_v49  ;;  %1115 = vst [vmem:[#allocation2 + $0x70] sm:$0xff] %v3141_v29 }
 0x121   : > { %1084 = vst [vmem:[#allocation2 + $0x150] sm:$0xff] %v942_v51  ;;  %v1148_v54 = vadd.f32 %v1147_v43, %v942_v51  ;;  %v1221_v55 = vmul.f32 %v942_v51, %v942_v51 }
 0x123   : > { %v1284_v62 = vadd.f32 %v1283_v48, %v1221_v55  ;;  %v852_v34 = vpop.f32.mrf.mxu2 }
 0x124   : > { %v1021_v35 = vpop.f32.mrf.mxu3 }
 0x125   : > { %v775_v2 = vpop.f32.mrf.mxu0  ;;  %v3144_v37 = vadd.f32 %v1021_v35, %v852_v34 }
 0x126   : > { %v944_v3 = vpop.f32.mrf.mxu1 }
 0x127   : > { %v945_v6 = vadd.f32 %v944_v3, %v775_v2  ;;  %1116 = vst [vmem:[#allocation2 + $0x90] sm:$0xff] %v3144_v37 }
 0x128   : > { %814 = vmatmul.bf16.gmra.mxu0 %v2097_v0  ;;  %894 = vmatmul.bf16.gmra.mxu2 %v2225_v45 }
 0x129   : > { %1085 = vst [vmem:[#allocation2 + $0x108] sm:$0xff] %v945_v6  ;;  %v1149_v13 = vadd.f32 %v1148_v54, %v945_v6  ;;  %v1222_v14 = vmul.f32 %v945_v6, %v945_v6  ;;  %983 = vmatmul.bf16.gmra.mxu1 %v2101_v1  ;;  %1063 = vmatmul.bf16.gmra.mxu3 %v2229_v47 }
 0x12b   : > { %v1285_v18 = vadd.f32 %v1284_v62, %v1222_v14  ;;  %v855_v52 = vpop.f32.mrf.mxu2 }
 0x12c   : > { %v1024_v53 = vpop.f32.mrf.mxu3 }
 0x12d   : > { %v777_v19 = vpop.f32.mrf.mxu0  ;;  %v3159_v57 = vadd.f32 %v1024_v53, %v855_v52 }
 0x12e   : > { %v946_v20 = vpop.f32.mrf.mxu1 }
 0x12f   : > { %v947_v21 = vadd.f32 %v946_v20, %v777_v19  ;;  %1117 = vst [vmem:[#allocation2 + $0x1d8] sm:$0xff] %v3159_v57 }
 0x131   : > { %1086 = vst [vmem:[#allocation2 + $0x60] sm:$0xff] %v947_v21  ;;  %v1150_v24 = vadd.f32 %v1149_v13, %v947_v21  ;;  %v1223_v25 = vmul.f32 %v947_v21, %v947_v21 }
 0x133   : > { %v1286_v26 = vadd.f32 %v1285_v18, %v1223_v25  ;;  %v857_v0 = vpop.f32.mrf.mxu2 }
 0x134   : > { %v1026_v1 = vpop.f32.mrf.mxu3 }
 0x135   : > { %v780_v30 = vpop.f32.mrf.mxu0  ;;  %v3162_v2 = vadd.f32 %v1026_v1, %v857_v0 }
 0x136   : > { %v949_v32 = vpop.f32.mrf.mxu1 }
 0x137   : > { %v950_v33 = vadd.f32 %v949_v32, %v780_v30  ;;  %1118 = vst [vmem:[#allocation2 + $0xd0] sm:$0xff] %v3162_v2 }
 0x139   : > { %1087 = vst [vmem:[#allocation2 + $0xe0] sm:$0xff] %v950_v33  ;;  %v1151_v43 = vadd.f32 %v1150_v24, %v950_v33  ;;  %v1224_v44 = vmul.f32 %v950_v33, %v950_v33 }
 0x13b   : > { %v1287_v48 = vadd.f32 %v1286_v26, %v1224_v44  ;;  %v860_v12 = vpop.f32.mrf.mxu2 }
 0x13c   : > { %v1029_v13 = vpop.f32.mrf.mxu3 }
 0x13d   : > { %v782_v49 = vpop.f32.mrf.mxu0  ;;  %v3165_v17 = vadd.f32 %v1029_v13, %v860_v12 }
 0x13e   : > { %v951_v50 = vpop.f32.mrf.mxu1 }
 0x13f   : > { %v952_v51 = vadd.f32 %v951_v50, %v782_v49  ;;  %1119 = vst [vmem:[#allocation2 + $0xb8] sm:$0xff] %v3165_v17 }
 0x141   : > { %1088 = vst [vmem:[#allocation2 + $0x188] sm:$0xff] %v952_v51  ;;  %v1152_v54 = vadd.f32 %v1151_v43, %v952_v51  ;;  %v1225_v55 = vmul.f32 %v952_v51, %v952_v51 }
 0x143   : > { %v1288_v56 = vadd.f32 %v1287_v48, %v1225_v55  ;;  %v862_v21 = vpop.f32.mrf.mxu2 }
 0x144   : > { %v1031_v22 = vpop.f32.mrf.mxu3 }
 0x145   : > { %v785_v58 = vpop.f32.mrf.mxu0  ;;  %v3168_v23 = vadd.f32 %v1031_v22, %v862_v21 }
 0x146   : > { %v954_v60 = vpop.f32.mrf.mxu1 }
 0x147   : > { %v955_v62 = vadd.f32 %v954_v60, %v785_v58  ;;  %1120 = vst [vmem:[#allocation2 + $0x88] sm:$0xff] %v3168_v23 }
 0x149   : > { %1089 = vst [vmem:[#allocation2 + $0x138] sm:$0xff] %v955_v62  ;;  %v1153_v3 = vadd.f32 %v1152_v54, %v955_v62  ;;  %v1226_v6 = vmul.f32 %v955_v62, %v955_v62 }
 0x14b   : > { %v1289_v7 = vadd.f32 %v1288_v56, %v1226_v6  ;;  %v865_v34 = vpop.f32.mrf.mxu2 }
 0x14c   : > { %v1034_v35 = vpop.f32.mrf.mxu3 }
 0x14d   : > { %v787_v8 = vpop.f32.mrf.mxu0  ;;  %v3178_v40 = vadd.f32 %v1034_v35, %v865_v34 }
 0x14e   : > { %v956_v10 = vpop.f32.mrf.mxu1 }
 0x14f   : > { %v957_v11 = vadd.f32 %v956_v10, %v787_v8  ;;  %1121 = vst [vmem:[#allocation2 + $0xa8] sm:$0xff] %v3178_v40 }
 0x151   : > { %1090 = vst [vmem:[#allocation2 + $0x140] sm:$0xff] %v957_v11  ;;  %v1154_v14 = vadd.f32 %v1153_v3, %v957_v11  ;;  %v1227_v15 = vmul.f32 %v957_v11, %v957_v11 }
 0x153   : > { %v1290_v16 = vadd.f32 %v1289_v7, %v1227_v15  ;;  %v867_v44 = vpop.f32.mrf.mxu2 }
 0x154   : > { %v1036_v45 = vpop.f32.mrf.mxu3 }
 0x155   : > { %v790_v18 = vpop.f32.mrf.mxu0  ;;  %v3181_v46 = vadd.f32 %v1036_v45, %v867_v44 }
 0x156   : > { %v959_v19 = vpop.f32.mrf.mxu1 }
 0x157   : > { %v960_v20 = vadd.f32 %v959_v19, %v790_v18  ;;  %1122 = vst [vmem:[#allocation2 + $0x1c8] sm:$0xff] %v3181_v46 }
 0x159   : > { %1091 = vst [vmem:[#allocation2 + $0x80] sm:$0xff] %v960_v20  ;;  %v3170_v24 = vadd.f32 %v1154_v14, %v960_v20  ;;  %v1228_v25 = vmul.f32 %v960_v20, %v960_v20 }
 0x15b   : > { %v3173_v26 = vadd.f32 %v1290_v16, %v1228_v25  ;;  %v870_v50 = vpop.f32.mrf.mxu2 }
 0x15c   : > { %v1039_v51 = vpop.f32.mrf.mxu3 }
 0x15d   : > { %v792_v30 = vpop.f32.mrf.mxu0  ;;  %v3184_v52 = vadd.f32 %v1039_v51, %v870_v50 }
 0x15e   : > { %v961_v32 = vpop.f32.mrf.mxu1 }
 0x15f   : > { %v3175_v33 = vadd.f32 %v961_v32, %v792_v30  ;;  %1123 = vst [vmem:[#allocation2 + $0x170] sm:$0xff] %v3184_v52 }
 0x161   : > { %1092 = vst [vmem:[#allocation2 + $0x1a8] sm:$0xff] %v3175_v33  ;;  %v1156_v44 = vadd.f32 %v3170_v24, %v3175_v33 }
 0x163   : > { %v872_v56 = vpop.f32.mrf.mxu2 }
 0x164   : > { %v1041_v58 = vpop.f32.mrf.mxu3 }
 0x165   : > { %v795_v41 = vpop.f32.mrf.mxu0  ;;  %v3187_v60 = vadd.f32 %v1041_v58, %v872_v56 }
 0x166   : > { %v964_v42 = vpop.f32.mrf.mxu1 }
 0x167   : > { %v965_v43 = vadd.f32 %v964_v42, %v795_v41  ;;  %1124 = vst [vmem:[#allocation2 + $0x178] sm:$0xff] %v3187_v60  ;;  %v1229_v41 = vmul.f32 %v3175_v33, %v3175_v33 }
 0x169   : > { %1093 = vst [vmem:[#allocation2 + $0x1b8] sm:$0xff] %v965_v43  ;;  %v1230_v42 = vmul.f32 %v965_v43, %v965_v43  ;;  %v1292_v45 = vadd.f32 %v3173_v26, %v1229_v41  ;;  %v1157_v51 = vadd.f32 %v1156_v44, %v965_v43 }
 0x16b   : > { %v875_v3 = vpop.f32.mrf.mxu2  ;;  %v1293_v58 = vadd.f32 %v1292_v45, %v1230_v42 }
 0x16c   : > { %v1044_v6 = vpop.f32.mrf.mxu3 }
 0x16d   : > { %v797_v47 = vpop.f32.mrf.mxu0  ;;  %v3190_v7 = vadd.f32 %v1044_v6, %v875_v3 }
 0x16e   : > { %v966_v48 = vpop.f32.mrf.mxu1 }
 0x16f   : > { %v967_v49 = vadd.f32 %v966_v48, %v797_v47  ;;  %1125 = vst [vmem:[#allocation2 + $0x68] sm:$0xff] %v3190_v7 }
 0x171   : > { %1094 = vst [vmem:[#allocation2 + $0x28] sm:$0xff] %v967_v49  ;;  %v1231_v47 = vmul.f32 %v967_v49, %v967_v49 }
 0x173   : > { %v877_v12 = vpop.f32.mrf.mxu2  ;;  %v1294_v3 = vadd.f32 %v1293_v58, %v1231_v47 }
 0x174   : > { %v1046_v13 = vpop.f32.mrf.mxu3 }
 0x175   : > { %v800_v53 = vpop.f32.mrf.mxu0  ;;  %v3193_v14 = vadd.f32 %v1046_v13, %v877_v12 }
 0x176   : > { %v969_v54 = vpop.f32.mrf.mxu1 }
 0x177   : > { %v970_v55 = vadd.f32 %v969_v54, %v800_v53  ;;  %1126 = vst [vmem:[#allocation2 + $0x190] sm:$0xff] %v3193_v14 }
 0x179   : > { %1095 = vst [vmem:[#allocation2 + $0x1e8] sm:$0xff] %v970_v55 }
 0x17b   : > { %v880_v19 = vpop.f32.mrf.mxu2 }
 0x17c   : > { %v1049_v20 = vpop.f32.mrf.mxu3 }
 0x17d   : > { %v802_v62 = vpop.f32.mrf.mxu0  ;;  %v3196_v30 = vadd.f32 %v1049_v20, %v880_v19 }
 0x17e   : > { %v971_v0 = vpop.f32.mrf.mxu1 }
 0x17f   : > { %v972_v1 = vadd.f32 %v971_v0, %v802_v62  ;;  %1127 = vst [vmem:[#allocation2 + $0x198] sm:$0xff] %v3196_v30  ;;  %v1232_v62 = vmul.f32 %v970_v55, %v970_v55  ;;  %v1158_v0 = vadd.f32 %v1157_v51, %v967_v49 }
 0x181   : > { %1096 = vst [vmem:[#allocation2 + $0xf8] sm:$0xff] %v972_v1  ;;  %v1233_v6 = vmul.f32 %v972_v1, %v972_v1 }
 0x183   : > { %v882_v32 = vpop.f32.mrf.mxu2 }
 0x184   : > { %v1051_v34 = vpop.f32.mrf.mxu3 }
 0x185   : > { %v805_v8 = vpop.f32.mrf.mxu0  ;;  %v3198_v35 = vadd.f32 %v1051_v34, %v882_v32 }
 0x186   : > { %v974_v10 = vpop.f32.mrf.mxu1 }
 0x187   : > { %v975_v11 = vadd.f32 %v974_v10, %v805_v8  ;;  %1128 = vst [vmem:[#allocation2 + $0x38] sm:$0xff] %v3198_v35  ;;  %v1159_v8 = vadd.f32 %v1158_v0, %v970_v55  ;;  %v1295_v10 = vadd.f32 %v1294_v3, %v1232_v62 }
 0x189   : > { %1097 = vst [vmem:[#allocation2 + $0x160] sm:$0xff] %v975_v11  ;;  %v1160_v12 = vadd.f32 %v1159_v8, %v972_v1  ;;  %v1234_v13 = vmul.f32 %v975_v11, %v975_v11  ;;  %v1296_v24 = vadd.f32 %v1295_v10, %v1233_v6  ;;  %v1242_v10 = vmul.f32 %v3003_v61, %v3003_v61 }
 0x18b   : > { %v885_v54 = vpop.f32.mrf.mxu2  ;;  %v1297_v49 = vadd.f32 %v1296_v24, %v1234_v13 }
 0x18c   : > { %v1054_v56 = vpop.f32.mrf.mxu3 }
 0x18d   : > { %v807_v15 = vpop.f32.mrf.mxu0  ;;  %v3207_v43 = vadd.f32 %v1054_v56, %v885_v54 }
 0x18e   : > { %v976_v16 = vpop.f32.mrf.mxu1 }
 0x18f   : > { %v977_v18 = vadd.f32 %v976_v16, %v807_v15  ;;  %v1161_v15 = vadd.f32 %v1160_v12, %v975_v11  ;;  %1129 = vst [vmem:[#allocation2 + $0xc0] sm:$0xff] %v3207_v43 }
 0x191   : > { %1098 = vst [vmem:[#allocation2 + $0x30] sm:$0xff] %v977_v18  ;;  %v1235_v16 = vmul.f32 %v977_v18, %v977_v18  ;;  %v1162_v32 = vadd.f32 %v1161_v15, %v977_v18 }
 0x193   : > { %v887_v20 = vpop.f32.mrf.mxu2  ;;  %v1298_v55 = vadd.f32 %v1297_v49, %v1235_v16 }
 0x195   : > { %v810_v21 = vpop.f32.mrf.mxu0 }
 0x196   : > { %v979_v22 = vpop.f32.mrf.mxu1 }
 0x197   : > { %v980_v25 = vadd.f32 %v979_v22, %v810_v21  ;;  %v1056_v21 = vpop.f32.mrf.mxu3 }
 0x198   : > { %v3209_v22 = vadd.f32 %v1056_v21, %v887_v20  ;;  %v1245_v21 = vmul.f32 %v3036_v36, %v3036_v36 }
 0x199   : > { %1099 = vst [vmem:[#allocation2 + $0x1e0] sm:$0xff] %v980_v25  ;;  %v1236_v34 = vmul.f32 %v980_v25, %v980_v25  ;;  %v1163_v1 = vadd.f32 %v1162_v32, %v980_v25  ;;  %v1240_v25 = vmul.f32 %v2973_v31, %v2973_v31 }
 0x19a   : > { %1130 = vst [vmem:[#allocation2 + $0x1c0] sm:$0xff] %v3209_v22 }
 0x19b   : > { %v1299_v11 = vadd.f32 %v1298_v55, %v1236_v34  ;;  %v890_v54 = vpop.f32.mrf.mxu2 }
 0x19d   : > { %v812_v48 = vpop.f32.mrf.mxu0 }
 0x19e   : > { %v981_v50 = vpop.f32.mrf.mxu1 }
 0x19f   : > { %v982_v53 = vadd.f32 %v981_v50, %v812_v48  ;;  %v1059_v56 = vpop.f32.mrf.mxu3 }
 0x1a0   : > { %v3222_v24 = vadd.f32 %v1059_v56, %v890_v54 }
 0x1a1   : > { %1100 = vst [vmem:[#allocation2] sm:$0xff] %v982_v53  ;;  %v1237_v41 = vmul.f32 %v982_v53, %v982_v53  ;;  %v1164_v42 = vadd.f32 %v1163_v1, %v982_v53  ;;  %v1241_v53 = vmul.f32 %v2976_v39, %v2976_v39 }
 0x1a2   : > { %1131 = vst [vmem:[#allocation2 + $0x158] sm:$0xff] %v3222_v24 }
 0x1a3   : > { %v1300_v48 = vadd.f32 %v1299_v11, %v1237_v41  ;;  %v1247_v11 = vmul.f32 %v3066_v4, %v3066_v4 }
 0x1a5   : > { %v815_v33 = vpop.f32.mrf.mxu0 }
 0x1a6   : > { %v984_v26 = vpop.f32.mrf.mxu1 }
 0x1a7   : > { %v985_v19 = vadd.f32 %v984_v26, %v815_v33  ;;  %v892_v33 = vpop.f32.mrf.mxu2  ;;  %v1061_v26 = vpop.f32.mrf.mxu3 }
 0x1a8   : > { %v3224_v15 = vadd.f32 %v1061_v26, %v892_v33 }
 0x1a9   : > { %1101 = vst [vmem:[#allocation2 + $0xf0] sm:$0xff] %v985_v19  ;;  %v1238_v44 = vmul.f32 %v985_v19, %v985_v19  ;;  %v1165_v50 = vadd.f32 %v1164_v42, %v985_v19 }
 0x1aa   : > { %1132 = vst [vmem:[#allocation2 + $0x10] sm:$0xff] %v3224_v15 }
 0x1ab   : > { %v1301_v18 = vadd.f32 %v1300_v48, %v1238_v44  ;;  %v1248_v44 = vmul.f32 %v3093_v28, %v3093_v28 }
 0x1ad   : > { %v817_v45 = vpop.f32.mrf.mxu0 }
 0x1ae   : > { %v986_v47 = vpop.f32.mrf.mxu1 }
 0x1af   : > { %v987_v51 = vadd.f32 %v986_v47, %v817_v45  ;;  %v895_v1 = vpop.f32.mrf.mxu2  ;;  %v1064_v41 = vpop.f32.mrf.mxu3  ;;  %v1249_v47 = vmul.f32 %v3096_v38, %v3096_v38 }
 0x1b1   : > { %1102 = vst [vmem:[#allocation2 + $0x8] sm:$0xff] %v987_v51  ;;  %v1166_v58 = vadd.f32 %v1165_v50, %v987_v51  ;;  %v1239_v62 = vmul.f32 %v987_v51, %v987_v51  ;;  %v1250_v50 = vmul.f32 %v3123_v63, %v3123_v63 }
 0x1b3   : > { %v1167_v0 = vadd.f32 %v1166_v58, %v2973_v31  ;;  %v1302_v3 = vadd.f32 %v1301_v18, %v1239_v62  ;;  %v1243_v31 = vmul.f32 %v3006_v5, %v3006_v5 }
 0x1b5   : > { %v1168_v6 = vadd.f32 %v1167_v0, %v2976_v39  ;;  %v1303_v8 = vadd.f32 %v1302_v3, %v1240_v25  ;;  %v1244_v39 = vmul.f32 %v3033_v27, %v3033_v27  ;;  %v1253_v3 = vmul.f32 %v3144_v37, %v3144_v37 }
 0x1b7   : > { %v1169_v12 = vadd.f32 %v1168_v6, %v3003_v61  ;;  %v1304_v13 = vadd.f32 %v1303_v8, %v1241_v53  ;;  %v897_v56 = vpop.f32.mrf.mxu2  ;;  %v1066_v18 = vpop.f32.mrf.mxu3 }
 0x1b8   : > { %v3254_v58 = vadd.f32 %v1066_v18, %v897_v56  ;;  %v1269_v56 = vmul.f32 %v3224_v15, %v3224_v15 }
 0x1b9   : > { %v1170_v16 = vadd.f32 %v1169_v12, %v3006_v5  ;;  %v1305_v19 = vadd.f32 %v1304_v13, %v1242_v10  ;;  %v1246_v5 = vmul.f32 %v3063_v59, %v3063_v59  ;;  %v1255_v12 = vmul.f32 %v3162_v2, %v3162_v2 }
 0x1ba   : > { %1134 = vst [vmem:[#allocation2 + $0xa0] sm:$0xff] %v3254_v58 }
 0x1bb   : > { %v1171_v61 = vadd.f32 %v1170_v16, %v3033_v27  ;;  %v1306_v20 = vadd.f32 %v1305_v19, %v1243_v31 }
 0x1bd   : > { %v1172_v49 = vadd.f32 %v1171_v61, %v3036_v36  ;;  %v1307_v32 = vadd.f32 %v1306_v20, %v1244_v39 }
 0x1bf   : > { %v1173_v34 = vadd.f32 %v1172_v49, %v3063_v59  ;;  %v1308_v55 = vadd.f32 %v1307_v32, %v1245_v21 }
 0x1c1   : > { %v1174_v27 = vadd.f32 %v1173_v34, %v3066_v4  ;;  %v1309_v42 = vadd.f32 %v1308_v55, %v1246_v5  ;;  %v3252_v4 = vadd.f32 %v1064_v41, %v895_v1 }
 0x1c3   : > { %v1175_v36 = vadd.f32 %v1174_v27, %v3093_v28  ;;  %v1310_v45 = vadd.f32 %v1309_v42, %v1247_v11  ;;  %v1251_v28 = vmul.f32 %v3126_v9, %v3126_v9  ;;  %1133 = vst [vmem:[#allocation2 + $0x58] sm:$0xff] %v3252_v4  ;;  %v1264_v27 = vmul.f32 %v3196_v30, %v3196_v30 }
 0x1c5   : > { %v1176_v59 = vadd.f32 %v1175_v36, %v3096_v38  ;;  %v1311_v48 = vadd.f32 %v1310_v45, %v1248_v44  ;;  %v1252_v38 = vmul.f32 %v3141_v29, %v3141_v29  ;;  %v1265_v36 = vmul.f32 %v3198_v35, %v3198_v35 }
 0x1c7   : > { %v1177_v51 = vadd.f32 %v1176_v59, %v3123_v63  ;;  %v1312_v54 = vadd.f32 %v1311_v48, %v1249_v47  ;;  %v1266_v47 = vmul.f32 %v3207_v43, %v3207_v43  ;;  %v1267_v48 = vmul.f32 %v3209_v22, %v3209_v22 }
 0x1c9   : > { %v1178_v62 = vadd.f32 %v1177_v51, %v3126_v9  ;;  %v1313_v25 = vadd.f32 %v1312_v54, %v1250_v50  ;;  %v1254_v9 = vmul.f32 %v3159_v57, %v3159_v57  ;;  %v1268_v51 = vmul.f32 %v3222_v24, %v3222_v24 }
 0x1cb   : > { %v1314_v63 = vadd.f32 %v1313_v25, %v1251_v28  ;;  %v1179_v0 = vadd.f32 %v1178_v62, %v3141_v29  ;;  %v1256_v29 = vmul.f32 %v3165_v17, %v3165_v17  ;;  %v1270_v28 = vmul.f32 %v3252_v4, %v3252_v4 }
 0x1cc   : > { %v1271_v25 = vmul.f32 %v3254_v58, %v3254_v58 }
 0x1cd   : > { %v1180_v53 = vadd.f32 %v1179_v0, %v3144_v37  ;;  %v1315_v6 = vadd.f32 %v1314_v63, %v1252_v38  ;;  %v1257_v37 = vmul.f32 %v3168_v23, %v3168_v23 }
 0x1cf   : > { %v1181_v8 = vadd.f32 %v1180_v53, %v3159_v57  ;;  %v1316_v10 = vadd.f32 %v1315_v6, %v1253_v3  ;;  %v1258_v57 = vmul.f32 %v3178_v40, %v3178_v40 }
 0x1d1   : > { %v1182_v13 = vadd.f32 %v1181_v8, %v3162_v2  ;;  %v1317_v33 = vadd.f32 %v1316_v10, %v1254_v9  ;;  %v1259_v2 = vmul.f32 %v3181_v46, %v3181_v46  ;;  %v1135_v10 = vld [vmem:[#allocation3] sm:$0x1] }
 0x1d3   : > { %v1183_v26 = vadd.f32 %v1182_v13, %v3165_v17  ;;  %v1318_v31 = vadd.f32 %v1317_v33, %v1255_v12  ;;  %v1260_v17 = vmul.f32 %v3184_v52, %v3184_v52 }
 0x1d5   : > { %v1184_v16 = vadd.f32 %v1183_v26, %v3168_v23  ;;  %v1319_v19 = vadd.f32 %v1318_v31, %v1256_v29  ;;  %v1261_v23 = vmul.f32 %v3187_v60, %v3187_v60 }
 0x1d7   : > { %v1185_v39 = vadd.f32 %v1184_v16, %v3178_v40  ;;  %v1320_v61 = vadd.f32 %v1319_v19, %v1257_v37  ;;  %v1262_v40 = vmul.f32 %v3190_v7, %v3190_v7 }
 0x1d9   : > { %v1186_v20 = vadd.f32 %v1185_v39, %v3181_v46  ;;  %v1321_v21 = vadd.f32 %v1320_v61, %v1258_v57  ;;  %v1263_v46 = vmul.f32 %v3193_v14, %v3193_v14 }
 0x1db   : > { %v1187_v49 = vadd.f32 %v1186_v20, %v3184_v52  ;;  %v1322_v32 = vadd.f32 %v1321_v21, %v1259_v2 }
 0x1dd   : > { %v1188_v5 = vadd.f32 %v1187_v49, %v3187_v60  ;;  %v1323_v34 = vadd.f32 %v1322_v32, %v1260_v17 }
 0x1df   : > { %v1189_v55 = vadd.f32 %v1188_v5, %v3190_v7  ;;  %v1324_v1 = vadd.f32 %v1323_v34, %v1261_v23 }
 0x1e1   : > { %v1190_v41 = vadd.f32 %v1189_v55, %v3193_v14  ;;  %v1325_v11 = vadd.f32 %v1324_v1, %v1262_v40 }
 0x1e3   : > { %v1191_v52 = vadd.f32 %v1190_v41, %v3196_v30  ;;  %v1326_v42 = vadd.f32 %v1325_v11, %v1263_v46 }
 0x1e5   : > { %v1327_v60 = vadd.f32 %v1326_v42, %v1264_v27  ;;  %v1192_v44 = vadd.f32 %v1191_v52, %v3198_v35 }
 0x1e7   : > { %v1328_v7 = vadd.f32 %v1327_v60, %v1265_v36  ;;  %v1193_v45 = vadd.f32 %v1192_v44, %v3207_v43 }
 0x1e9   : > { %v1329_v14 = vadd.f32 %v1328_v7, %v1266_v47  ;;  %v1194_v59 = vadd.f32 %v1193_v45, %v3209_v22 }
 0x1eb   : > { %v1330_v30 = vadd.f32 %v1329_v14, %v1267_v48  ;;  %v1195_v50 = vadd.f32 %v1194_v59, %v3222_v24 }
 0x1ed   : > { %v1331_v54 = vadd.f32 %v1330_v30, %v1268_v51  ;;  %v1196_v35 = vadd.f32 %v1195_v50, %v3224_v15 }
 0x1ef   : > { %v1332_v18 = vadd.f32 %v1331_v54, %v1269_v56  ;;  %v1197_v43 = vadd.f32 %v1196_v35, %v3252_v4  ;;  %v1207_v4 = vld [vmem:[#allocation4] sm:$0x1] }
 0x1f1   : > { %v1333_v62 = vadd.f32 %v1332_v18, %v1270_v28  ;;  %v1198_v22 = vadd.f32 %v1197_v43, %v3254_v58 }
 0x1f3   : > { %v1199_v38 = vrot.slane %v1198_v22, 4  ;;  %v1334_v24 = vadd.f32 %v1333_v62, %v1271_v25 }
 0x1f5   : > { %v1200_v63 = vadd.f32 %v1199_v38, %v1198_v22  ;;  %v1335_v0 = vrot.slane %v1334_v24, 4 }
 0x1f7   : > { %v1201_v3 = vrot.slane %v1200_v63, 2  ;;  %v1336_v53 = vadd.f32 %v1335_v0, %v1334_v24 }
 0x1f9   : > { %v1202_v6 = vadd.f32 %v1201_v3, %v1200_v63  ;;  %v1337_v15 = vrot.slane %v1336_v53, 2 }
 0x1fb   : > { %v1203_v9 = vrot.slane %v1202_v6, 1  ;;  %v1338_v8 = vadd.f32 %v1337_v15, %v1336_v53 }
 0x1fd   : > { %v1204_v12 = vadd.f32 %v1203_v9, %v1202_v6  ;;  %v1339_v13 = vrot.slane %v1338_v8, 1 }
 0x1ff   : > { %v1205_v33 = vadd.f32 %v1204_v12, %v1135_v10  ;;  %v1340_v29 = vadd.f32 %v1339_v13, %v1338_v8 }
 0x201   : > { %1206 = vst [vmem:[#allocation3] sm:$0x1] %v1205_v33  ;;  %v1341_v26 = vadd.f32 %v1340_v29, %v1207_v4 }
 0x203   : > { %1342 = vst [vmem:[#allocation4] sm:$0x1] %v1341_v26 }
 0x204 PF: > { %p1343_p6 = scmp.eq.s32.totalorder %s2632_s12, 1 }
 0x205   : > { %v1355_v32 = vld [vmem:[%s3569_s2] sm:$0x1] (%p1343_p6)  ;;  %v1369_v40 = vld [vmem:[%s3569_s2 + $0x1] sm:$0x1] (%p1343_p6) }
 0x206   : > { %1347 = sbr.rel (!%p1343_p6) target bundleno = 556 (0x22c), region = 44 }
 0x208   : > { %v1348_v58 = vld [vmem:[#allocation3] sm:$0x1] (%p1343_p6) }
 0x209   : > { %v1349_v37 = vmul.f32 (%p1343_p6), 0.001953125, %v1348_v58 }
 0x20a   : > { %v1350_v31 = vld [vmem:[#allocation4] sm:$0x1] (%p1343_p6) }
 0x20b   : > { %v1351_v16 = vmul.f32 0.001953125, %v1350_v31  ;;  %v1352_v19 = vmul.f32 %v1349_v37, %v1349_v37 }
 0x20d   : > { %v1353_v57 = vsub.f32 %v1351_v16, %v1352_v19 }
 0x20f   : > { %v1354_v39 = vmax.f32 %v1353_v57, 0.0 }
 0x211   : > { %v1356_v61 = vadd.f32 1e-05, %v1354_v39 }
 0x213   : > { %2614 = vrsqrt.f32 %v1356_v61  ;;  %vm1363_vm0 = vweird.f32 %v1356_v61 }
 0x219   : > { %v2615_v2 = vpop.eup %2614 }
 0x21a   : > { %v1358_v20 = vmul.f32 %v2615_v2, %v1356_v61  ;;  %vm1364_vm1 = vweird.f32 %v2615_v2 }
 0x21b   : > { %vm1365_vm2 = vmor %vm1363_vm0, %vm1364_vm1 }
 0x21c   : > { %v1359_v21 = vmul.f32 %v2615_v2, %v1358_v20 }
 0x21e   : > { %v1360_v17 = vmul.f32 0.5, %v1359_v21 }
 0x220   : > { %v1361_v49 = vsub.f32 1.5, %v1360_v17 }
 0x222   : > { %v1362_v23 = vmul.f32 %v2615_v2, %v1361_v49 }
 0x224   : > { %v1366_v5 = vsel %vm1365_vm2, %v2615_v2, %v1362_v23 }
 0x225   : > { %v1367_v34 = vmul.f32 %v1366_v5, %v1355_v32 }
 0x227   : > { %1368 = vst [vmem:[#allocation5] sm:$0x1] %v1367_v34  ;;  %v1370_v55 = vmul.f32 %v1367_v34, %v1349_v37 }
 0x229   : > { %v1371_v1 = vsub.f32 %v1369_v40, %v1370_v55 }
 0x22b   : > { %1372 = vst [vmem:[#allocation5 + $0x1] sm:$0x1] %v1371_v1 }
 0x22c PF: > { %p2295_p7 = scmp.ne.s32.totalorder %s2632_s12, 1 }
 0x22e   : > { %1375 = sbr.rel (%p2295_p7) target bundleno = 659 (0x293), region = 48 }
 0x233   : > { %v1378_v46 = vld [vmem:[#allocation2 + $0xb0] sm:$0xff]  ;;  %v3329_v11 = vld [vmem:[#allocation5] ss:$0 sm:$0xff]  ;;  %v3331_v52 = vld [vmem:[#allocation5 + $0x1] ss:$0 sm:$0xff] }
 0x234   : > { %v1379_v41 = vld [vmem:[#allocation2 + $0x1b0] sm:$0xff]  ;;  %v1380_v27 = vld [vmem:[#allocation2 + $0xd8] sm:$0xff]  ;;  %v1444_v44 = vmul.f32 %v3329_v11, %v1378_v46  ;;  %v1383_v47 = vld [vmem:[#allocation2 + $0x168] sm:$0xff] }
 0x235   : > { %v1381_v42 = vld [vmem:[#allocation2 + $0x18] sm:$0xff]  ;;  %v1382_v60 = vld [vmem:[#allocation2 + $0x50] sm:$0xff]  ;;  %v1445_v36 = vmul.f32 %v3329_v11, %v1379_v41  ;;  %v1446_v7 = vmul.f32 %v3329_v11, %v1380_v27  ;;  %v1385_v59 = vld [vmem:[#allocation2 + $0x48] sm:$0xff]  ;;  %v1449_v30 = vmul.f32 %v3329_v11, %v1383_v47 }
 0x236   : > { %v1447_v45 = vmul.f32 %v3329_v11, %v1381_v42  ;;  %v1384_v14 = vld [vmem:[#allocation2 + $0x130] sm:$0xff]  ;;  %v1448_v48 = vmul.f32 %v3329_v11, %v1382_v60  ;;  %v1451_v51 = vmul.f32 %v3329_v11, %v1385_v59  ;;  %v1510_v54 = vadd.f32 %v3331_v52, %v1444_v44  ;;  %v1386_v53 = vld [vmem:[#allocation2 + $0x180] sm:$0xff]  ;;  %v1388_v12 = vld [vmem:[#allocation2 + $0x118] sm:$0xff] }
 0x237   : > { %v1450_v50 = vmul.f32 %v3329_v11, %v1384_v14  ;;  %v1511_v35 = vadd.f32 %v3331_v52, %v1445_v36  ;;  %v1512_v56 = vadd.f32 %v3331_v52, %v1446_v7  ;;  %v1515_v28 = vadd.f32 %v3331_v52, %v1449_v30  ;;  %v1387_v10 = vld [vmem:[#allocation2 + $0x110] sm:$0xff]  ;;  %v1389_v13 = vld [vmem:[#allocation2 + $0x98] sm:$0xff]  ;;  %v1390_v39 = vld [vmem:[#allocation2 + $0x120] sm:$0xff] }
 0x238   : > { %v1513_v18 = vadd.f32 %v3331_v52, %v1447_v45  ;;  %v1514_v43 = vadd.f32 %v3331_v52, %v1448_v48  ;;  %v1517_v22 = vadd.f32 %v3331_v52, %v1451_v51  ;;  %vm1574_vm3 = vcmp.ge.f32.partialorder %v1510_v54, 0.0  ;;  %v1391_v61 = vld [vmem:[#allocation2 + $0x150] sm:$0xff]  ;;  %v1392_v1 = vld [vmem:[#allocation2 + $0x108] sm:$0xff]  ;;  %v1393_v46 = vld [vmem:[#allocation2 + $0x60] sm:$0xff] }
 0x239   : > { %v1516_v62 = vadd.f32 %v3331_v52, %v1450_v50  ;;  %vm1575_vm4 = vcmp.ge.f32.partialorder %v1511_v35, 0.0  ;;  %v1638_v25 = vmul.f32 0.2, %v1510_v54  ;;  %v1639_v38 = vmul.f32 0.2, %v1511_v35  ;;  %v1394_v14 = vld [vmem:[#allocation2 + $0xe0] sm:$0xff] }
 0x23a   : > { %vm1576_vm5 = vcmp.ge.f32.partialorder %v1512_v56, 0.0  ;;  %vm1577_vm6 = vcmp.ge.f32.partialorder %v1513_v18, 0.0  ;;  %v1640_v24 = vmul.f32 0.2, %v1512_v56  ;;  %v1641_v63 = vmul.f32 0.2, %v1513_v18 }
 0x23b   : > { %v1702_v0 = vsel %vm1574_vm3, %v1510_v54, %v1638_v25  ;;  %v1703_v3 = vsel %vm1575_vm4, %v1511_v35, %v1639_v38  ;;  %vm1578_vm7 = vcmp.ge.f32.partialorder %v1514_v43, 0.0  ;;  %vm1579_vm8 = vcmp.ge.f32.partialorder %v1515_v28, 0.0  ;;  %v1395_v59 = vld [vmem:[#allocation2 + $0x188] sm:$0xff]  ;;  %v1396_v51 = vld [vmem:[#allocation2 + $0x138] sm:$0xff]  ;;  %v1397_v54 = vld [vmem:[#allocation2 + $0x140] sm:$0xff] }
 0x23c   : > { %v2385_v6 = vpack.c.bf16 %v1703_v3, %v1702_v0  ;;  %v1704_v15 = vsel %vm1576_vm5, %v1512_v56, %v1640_v24  ;;  %v1705_v9 = vsel %vm1577_vm6, %v1513_v18, %v1641_v63  ;;  %v1642_v8 = vmul.f32 0.2, %v1514_v43  ;;  %v1398_v0 = vld [vmem:[#allocation2 + $0x80] sm:$0xff]  ;;  %v1399_v3 = vld [vmem:[#allocation2 + $0x1a8] sm:$0xff] }
 0x23d   : > { %v2390_v4 = vpack.c.bf16 %v1705_v9, %v1704_v15  ;;  %v1643_v33 = vmul.f32 0.2, %v1515_v28  ;;  %vm1580_vm9 = vcmp.ge.f32.partialorder %v1516_v62, 0.0  ;;  %vm1581_vm10 = vcmp.ge.f32.partialorder %v1517_v22, 0.0 }
 0x23e   : > { %2386 = vst [vmem:[%s3570_s3] sm:$0xff] %v2385_v6   ;;  %v1706_v29 = vsel %vm1578_vm7, %v1514_v43, %v1642_v8  ;;  %v1644_v26 = vmul.f32 0.2, %v1516_v62  ;;  %v1645_v58 = vmul.f32 0.2, %v1517_v22  ;;  %v1452_v31 = vmul.f32 %v3329_v11, %v1386_v53 }
 0x23f   : > { %2542 = vst [vmem:[%s3570_s3 + $0x8] sm:$0xff] %v2390_v4   ;;  %v1707_v37 = vsel %vm1579_vm8, %v1515_v28, %v1643_v33  ;;  %v1453_v16 = vmul.f32 %v3329_v11, %v1387_v10  ;;  %v1454_v19 = vmul.f32 %v3329_v11, %v1388_v12  ;;  %v1455_v57 = vmul.f32 %v3329_v11, %v1389_v13 }
 0x240   : > { %v2395_v2 = vpack.c.bf16 %v1707_v37, %v1706_v29  ;;  %v1708_v20 = vsel %vm1580_vm9, %v1516_v62, %v1644_v26  ;;  %v1709_v21 = vsel %vm1581_vm10, %v1517_v22, %v1645_v58  ;;  %v1518_v17 = vadd.f32 %v3331_v52, %v1452_v31  ;;  %v1400_v58 = vld [vmem:[#allocation2 + $0x1b8] sm:$0xff]  ;;  %v1401_v31 = vld [vmem:[#allocation2 + $0x28] sm:$0xff] }
 0x241   : > { %v2400_v49 = vpack.c.bf16 %v1709_v21, %v1708_v20  ;;  %v1519_v32 = vadd.f32 %v3331_v52, %v1453_v16  ;;  %v1520_v23 = vadd.f32 %v3331_v52, %v1454_v19  ;;  %v1521_v5 = vadd.f32 %v3331_v52, %v1455_v57 }
 0x242   : > { %2543 = vst [vmem:[%s3570_s3 + $0x10] sm:$0xff] %v2395_v2   ;;  %vm1582_vm11 = vcmp.ge.f32.partialorder %v1518_v17, 0.0  ;;  %v1646_v34 = vmul.f32 0.2, %v1518_v17  ;;  %v1456_v40 = vmul.f32 %v3329_v11, %v1390_v39  ;;  %v1457_v55 = vmul.f32 %v3329_v11, %v1391_v61 }
 0x243   : > { %2544 = vst [vmem:[%s3570_s3 + $0x18] sm:$0xff] %v2400_v49   ;;  %vm1583_vm12 = vcmp.ge.f32.partialorder %v1519_v32, 0.0  ;;  %v1647_v41 = vmul.f32 0.2, %v1519_v32  ;;  %vm1584_vm13 = vcmp.ge.f32.partialorder %v1520_v23, 0.0  ;;  %vm1585_vm14 = vcmp.ge.f32.partialorder %v1521_v5, 0.0 }
 0x244   : > { %v1710_v27 = vsel %vm1582_vm11, %v1518_v17, %v1646_v34  ;;  %v1648_v42 = vmul.f32 0.2, %v1520_v23  ;;  %v1649_v60 = vmul.f32 0.2, %v1521_v5  ;;  %v1522_v44 = vadd.f32 %v3331_v52, %v1456_v40  ;;  %v1402_v49 = vld [vmem:[#allocation2 + $0x1e8] sm:$0xff]  ;;  %v1404_v40 = vld [vmem:[#allocation2 + $0x160] sm:$0xff] }
 0x245   : > { %v1711_v36 = vsel %vm1583_vm12, %v1519_v32, %v1647_v41  ;;  %v1523_v7 = vadd.f32 %v3331_v52, %v1457_v55  ;;  %v1458_v45 = vmul.f32 %v3329_v11, %v1392_v1  ;;  %v1459_v47 = vmul.f32 %v3329_v11, %v1393_v46  ;;  %v1403_v32 = vld [vmem:[#allocation2 + $0xf8] sm:$0xff]  ;;  %v1405_v55 = vld [vmem:[#allocation2 + $0x30] sm:$0xff] }
 0x246   : > { %v2405_v48 = vpack.c.bf16 %v1711_v36, %v1710_v27  ;;  %v1712_v30 = vsel %vm1584_vm13, %v1520_v23, %v1648_v42  ;;  %v1713_v50 = vsel %vm1585_vm14, %v1521_v5, %v1649_v60  ;;  %vm1586_vm15 = vcmp.ge.f32.partialorder %v1522_v44, 0.0 }
 0x247   : > { %v2410_v35 = vpack.c.bf16 %v1713_v50, %v1712_v30  ;;  %vm1587_vm0 = vcmp.ge.f32.partialorder %v1523_v7, 0.0  ;;  %v1650_v56 = vmul.f32 0.2, %v1522_v44  ;;  %v1651_v18 = vmul.f32 0.2, %v1523_v7 }
 0x248   : > { %2545 = vst [vmem:[%s3570_s3 + $0x20] sm:$0xff] %v2405_v48   ;;  %v1524_v43 = vadd.f32 %v3331_v52, %v1458_v45  ;;  %v1525_v28 = vadd.f32 %v3331_v52, %v1459_v47  ;;  %v1460_v62 = vmul.f32 %v3329_v11, %v1394_v14  ;;  %v1461_v22 = vmul.f32 %v3329_v11, %v1395_v59  ;;  %v1406_v14 = vld [vmem:[#allocation2 + $0x1e0] sm:$0xff] }
 0x249   : > { %2546 = vst [vmem:[%s3570_s3 + $0x28] sm:$0xff] %v2410_v35   ;;  %v1714_v25 = vsel %vm1586_vm15, %v1522_v44, %v1650_v56  ;;  %v1715_v38 = vsel %vm1587_vm0, %v1523_v7, %v1651_v18  ;;  %v1462_v24 = vmul.f32 %v3329_v11, %v1396_v51  ;;  %v1463_v63 = vmul.f32 %v3329_v11, %v1397_v54  ;;  %v1407_v59 = vld [vmem:[#allocation2] sm:$0xff] }
 0x24a   : > { %v2415_v53 = vpack.c.bf16 %v1715_v38, %v1714_v25  ;;  %vm1588_vm1 = vcmp.ge.f32.partialorder %v1524_v43, 0.0  ;;  %vm1589_vm2 = vcmp.ge.f32.partialorder %v1525_v28, 0.0  ;;  %v1652_v6 = vmul.f32 0.2, %v1524_v43  ;;  %v1408_v25 = vld [vmem:[#allocation2 + $0xf0] sm:$0xff]  ;;  %v1409_v38 = vld [vmem:[#allocation2 + $0x8] sm:$0xff] }
 0x24b   : > { %v1653_v15 = vmul.f32 0.2, %v1525_v28  ;;  %v1526_v9 = vadd.f32 %v3331_v52, %v1460_v62  ;;  %v1527_v8 = vadd.f32 %v3331_v52, %v1461_v22  ;;  %v1528_v10 = vadd.f32 %v3331_v52, %v1462_v24 }
 0x24c   : > { %2547 = vst [vmem:[%s3570_s3 + $0x30] sm:$0xff] %v2415_v53   ;;  %v1716_v12 = vsel %vm1588_vm1, %v1524_v43, %v1652_v6  ;;  %v1529_v13 = vadd.f32 %v3331_v52, %v1463_v63  ;;  %v1464_v4 = vmul.f32 %v3329_v11, %v1398_v0  ;;  %v1465_v33 = vmul.f32 %v3329_v11, %v1399_v3 }
 0x24d   : > { %v1717_v29 = vsel %vm1589_vm2, %v1525_v28, %v1653_v15  ;;  %vm1590_vm3 = vcmp.ge.f32.partialorder %v1526_v9, 0.0  ;;  %vm1591_vm4 = vcmp.ge.f32.partialorder %v1527_v8, 0.0  ;;  %v1654_v26 = vmul.f32 0.2, %v1526_v9 }
 0x24e   : > { %v2420_v37 = vpack.c.bf16 %v1717_v29, %v1716_v12  ;;  %v1655_v16 = vmul.f32 0.2, %v1527_v8  ;;  %vm1592_vm5 = vcmp.ge.f32.partialorder %v1528_v10, 0.0  ;;  %vm1593_vm6 = vcmp.ge.f32.partialorder %v1529_v13, 0.0  ;;  %v1410_v12 = vld [vmem:[#allocation2 + $0x148] sm:$0xff] }
 0x24f   : > { %v1718_v19 = vsel %vm1590_vm3, %v1526_v9, %v1654_v26  ;;  %v1656_v57 = vmul.f32 0.2, %v1528_v10  ;;  %v1657_v39 = vmul.f32 0.2, %v1529_v13  ;;  %v1530_v61 = vadd.f32 %v3331_v52, %v1464_v4  ;;  %v1412_v26 = vld [vmem:[#allocation2 + $0x100] sm:$0xff] }
 0x250   : > { %2548 = vst [vmem:[%s3570_s3 + $0x38] sm:$0xff] %v2420_v37   ;;  %v1719_v2 = vsel %vm1591_vm4, %v1527_v8, %v1655_v16  ;;  %v1531_v20 = vadd.f32 %v3331_v52, %v1465_v33  ;;  %v1466_v21 = vmul.f32 %v3329_v11, %v1400_v58  ;;  %v1467_v17 = vmul.f32 %v3329_v11, %v1401_v31  ;;  %v1413_v58 = vld [vmem:[#allocation2 + $0xc8] sm:$0xff] }
 0x251   : > { %v2425_v23 = vpack.c.bf16 %v1719_v2, %v1718_v19  ;;  %v1720_v5 = vsel %vm1592_vm5, %v1528_v10, %v1656_v57  ;;  %v1721_v34 = vsel %vm1593_vm6, %v1529_v13, %v1657_v39  ;;  %vm1594_vm7 = vcmp.ge.f32.partialorder %v1530_v61, 0.0  ;;  %v1411_v13 = vld [vmem:[#allocation2 + $0x1d0] sm:$0xff] }
 0x252   : > { %v2430_v1 = vpack.c.bf16 %v1721_v34, %v1720_v5  ;;  %vm1595_vm8 = vcmp.ge.f32.partialorder %v1531_v20, 0.0  ;;  %v1658_v46 = vmul.f32 0.2, %v1530_v61  ;;  %v1659_v41 = vmul.f32 0.2, %v1531_v20 }
 0x253   : > { %2549 = vst [vmem:[%s3570_s3 + $0x40] sm:$0xff] %v2425_v23   ;;  %v1532_v27 = vadd.f32 %v3331_v52, %v1466_v21  ;;  %v1533_v42 = vadd.f32 %v3331_v52, %v1467_v17  ;;  %v1468_v60 = vmul.f32 %v3329_v11, %v1402_v49  ;;  %v1469_v44 = vmul.f32 %v3329_v11, %v1403_v32  ;;  %v1414_v49 = vld [vmem:[#allocation2 + $0x40] sm:$0xff]  ;;  %v1415_v32 = vld [vmem:[#allocation2 + $0x1f8] sm:$0xff] }
 0x254   : > { %2550 = vst [vmem:[%s3570_s3 + $0x48] sm:$0xff] %v2430_v1   ;;  %v1722_v36 = vsel %vm1594_vm7, %v1530_v61, %v1658_v46  ;;  %v1723_v7 = vsel %vm1595_vm8, %v1531_v20, %v1659_v41  ;;  %v1470_v45 = vmul.f32 %v3329_v11, %v1404_v40  ;;  %v1471_v47 = vmul.f32 %v3329_v11, %v1405_v55 }
 0x255   : > { %v2435_v48 = vpack.c.bf16 %v1723_v7, %v1722_v36  ;;  %vm1596_vm9 = vcmp.ge.f32.partialorder %v1532_v27, 0.0  ;;  %vm1597_vm10 = vcmp.ge.f32.partialorder %v1533_v42, 0.0  ;;  %v1660_v30 = vmul.f32 0.2, %v1532_v27  ;;  %v1416_v36 = vld [vmem:[#allocation2 + $0x20] sm:$0xff]  ;;  %v1417_v7 = vld [vmem:[#allocation2 + $0x128] sm:$0xff] }
 0x256   : > { %v1661_v50 = vmul.f32 0.2, %v1533_v42  ;;  %v1534_v51 = vadd.f32 %v3331_v52, %v1468_v60  ;;  %v1535_v54 = vadd.f32 %v3331_v52, %v1469_v44  ;;  %v1536_v35 = vadd.f32 %v3331_v52, %v1470_v45 }
 0x257   : > { %2551 = vst [vmem:[%s3570_s3 + $0x50] sm:$0xff] %v2435_v48   ;;  %v1724_v56 = vsel %vm1596_vm9, %v1532_v27, %v1660_v30  ;;  %v1537_v18 = vadd.f32 %v3331_v52, %v1471_v47  ;;  %v1472_v43 = vmul.f32 %v3329_v11, %v1406_v14  ;;  %v1473_v28 = vmul.f32 %v3329_v11, %v1407_v59 }
 0x258   : > { %v1725_v62 = vsel %vm1597_vm10, %v1533_v42, %v1661_v50  ;;  %vm1598_vm11 = vcmp.ge.f32.partialorder %v1534_v51, 0.0  ;;  %vm1599_vm12 = vcmp.ge.f32.partialorder %v1535_v54, 0.0  ;;  %v1662_v22 = vmul.f32 0.2, %v1534_v51 }
 0x259   : > { %v2440_v24 = vpack.c.bf16 %v1725_v62, %v1724_v56  ;;  %v1663_v63 = vmul.f32 0.2, %v1535_v54  ;;  %vm1600_vm13 = vcmp.ge.f32.partialorder %v1536_v35, 0.0  ;;  %vm1601_vm14 = vcmp.ge.f32.partialorder %v1537_v18, 0.0  ;;  %v1418_v56 = vld [vmem:[#allocation2 + $0x1a0] sm:$0xff] }
 0x25a   : > { %v1726_v0 = vsel %vm1598_vm11, %v1534_v51, %v1662_v22  ;;  %v1664_v3 = vmul.f32 0.2, %v1536_v35  ;;  %v1665_v53 = vmul.f32 0.2, %v1537_v18  ;;  %v1538_v6 = vadd.f32 %v3331_v52, %v1472_v43  ;;  %v1420_v22 = vld [vmem:[#allocation2 + $0xe8] sm:$0xff] }
 0x25b   : > { %2552 = vst [vmem:[%s3570_s3 + $0x58] sm:$0xff] %v2440_v24   ;;  %v1727_v15 = vsel %vm1599_vm12, %v1535_v54, %v1663_v63  ;;  %v1539_v9 = vadd.f32 %v3331_v52, %v1473_v28  ;;  %v1474_v8 = vmul.f32 %v3329_v11, %v1408_v25  ;;  %v1475_v10 = vmul.f32 %v3329_v11, %v1409_v38  ;;  %v1421_v25 = vld [vmem:[#allocation2 + $0x78] sm:$0xff] }
 0x25c   : > { %v2445_v4 = vpack.c.bf16 %v1727_v15, %v1726_v0  ;;  %v1728_v33 = vsel %vm1600_vm13, %v1536_v35, %v1664_v3  ;;  %v1729_v29 = vsel %vm1601_vm14, %v1537_v18, %v1665_v53  ;;  %vm1602_vm15 = vcmp.ge.f32.partialorder %v1538_v6, 0.0  ;;  %v1419_v18 = vld [vmem:[#allocation2 + $0x1f0] sm:$0xff] }
 0x25d   : > { %v2450_v31 = vpack.c.bf16 %v1729_v29, %v1728_v33  ;;  %vm1603_vm0 = vcmp.ge.f32.partialorder %v1539_v9, 0.0  ;;  %v1666_v37 = vmul.f32 0.2, %v1538_v6  ;;  %v1667_v16 = vmul.f32 0.2, %v1539_v9 }
 0x25e   : > { %2553 = vst [vmem:[%s3570_s3 + $0x60] sm:$0xff] %v2445_v4   ;;  %v1540_v19 = vadd.f32 %v3331_v52, %v1474_v8  ;;  %v1541_v57 = vadd.f32 %v3331_v52, %v1475_v10  ;;  %v1476_v39 = vmul.f32 %v3329_v11, %v1410_v12  ;;  %v1477_v61 = vmul.f32 %v3329_v11, %v1411_v13  ;;  %v1422_v12 = vld [vmem:[#allocation2 + $0x70] sm:$0xff] }
 0x25f   : > { %2554 = vst [vmem:[%s3570_s3 + $0x68] sm:$0xff] %v2450_v31   ;;  %v1730_v2 = vsel %vm1602_vm15, %v1538_v6, %v1666_v37  ;;  %v1731_v20 = vsel %vm1603_vm0, %v1539_v9, %v1667_v16  ;;  %v1478_v21 = vmul.f32 %v3329_v11, %v1412_v26  ;;  %v1479_v17 = vmul.f32 %v3329_v11, %v1413_v58  ;;  %v1423_v13 = vld [vmem:[#allocation2 + $0x90] sm:$0xff] }
 0x260   : > { %v2455_v23 = vpack.c.bf16 %v1731_v20, %v1730_v2  ;;  %vm1604_vm1 = vcmp.ge.f32.partialorder %v1540_v19, 0.0  ;;  %vm1605_vm2 = vcmp.ge.f32.partialorder %v1541_v57, 0.0  ;;  %v1668_v5 = vmul.f32 0.2, %v1540_v19  ;;  %v1424_v2 = vld [vmem:[#allocation2 + $0x1d8] sm:$0xff]  ;;  %v1425_v20 = vld [vmem:[#allocation2 + $0xd0] sm:$0xff] }
 0x261   : > { %v1669_v34 = vmul.f32 0.2, %v1541_v57  ;;  %v1542_v40 = vadd.f32 %v3331_v52, %v1476_v39  ;;  %v1543_v55 = vadd.f32 %v3331_v52, %v1477_v61  ;;  %v1544_v1 = vadd.f32 %v3331_v52, %v1478_v21 }
 0x262   : > { %2555 = vst [vmem:[%s3570_s3 + $0x70] sm:$0xff] %v2455_v23   ;;  %v1732_v46 = vsel %vm1604_vm1, %v1540_v19, %v1668_v5  ;;  %v1545_v41 = vadd.f32 %v3331_v52, %v1479_v17  ;;  %v1480_v27 = vmul.f32 %v3329_v11, %v1414_v49  ;;  %v1481_v42 = vmul.f32 %v3329_v11, %v1415_v32 }
 0x263   : > { %v1733_v60 = vsel %vm1605_vm2, %v1541_v57, %v1669_v34  ;;  %vm1606_vm3 = vcmp.ge.f32.partialorder %v1542_v40, 0.0  ;;  %vm1607_vm4 = vcmp.ge.f32.partialorder %v1543_v55, 0.0  ;;  %v1670_v44 = vmul.f32 0.2, %v1542_v40 }
 0x264   : > { %v2460_v45 = vpack.c.bf16 %v1733_v60, %v1732_v46  ;;  %v1671_v47 = vmul.f32 0.2, %v1543_v55  ;;  %vm1608_vm5 = vcmp.ge.f32.partialorder %v1544_v1, 0.0  ;;  %vm1609_vm6 = vcmp.ge.f32.partialorder %v1545_v41, 0.0  ;;  %v1426_v46 = vld [vmem:[#allocation2 + $0xb8] sm:$0xff] }
 0x265   : > { %v1734_v14 = vsel %vm1606_vm3, %v1542_v40, %v1670_v44  ;;  %v1672_v59 = vmul.f32 0.2, %v1544_v1  ;;  %v1673_v48 = vmul.f32 0.2, %v1545_v41  ;;  %v1546_v30 = vadd.f32 %v3331_v52, %v1480_v27  ;;  %v1428_v44 = vld [vmem:[#allocation2 + $0xa8] sm:$0xff] }
 0x266   : > { %2556 = vst [vmem:[%s3570_s3 + $0x78] sm:$0xff] %v2460_v45   ;;  %v1735_v50 = vsel %vm1607_vm4, %v1543_v55, %v1671_v47  ;;  %v1547_v51 = vadd.f32 %v3331_v52, %v1481_v42  ;;  %v1482_v54 = vmul.f32 %v3329_v11, %v1416_v36  ;;  %v1483_v35 = vmul.f32 %v3329_v11, %v1417_v7  ;;  %v1429_v36 = vld [vmem:[#allocation2 + $0x1c8] sm:$0xff] }
 0x267   : > { %v2465_v43 = vpack.c.bf16 %v1735_v50, %v1734_v14  ;;  %v1736_v28 = vsel %vm1608_vm5, %v1544_v1, %v1672_v59  ;;  %v1737_v62 = vsel %vm1609_vm6, %v1545_v41, %v1673_v48  ;;  %vm1610_vm7 = vcmp.ge.f32.partialorder %v1546_v30, 0.0  ;;  %v1427_v41 = vld [vmem:[#allocation2 + $0x88] sm:$0xff] }
 0x268   : > { %v2470_v38 = vpack.c.bf16 %v1737_v62, %v1736_v28  ;;  %vm1611_vm8 = vcmp.ge.f32.partialorder %v1547_v51, 0.0  ;;  %v1674_v24 = vmul.f32 0.2, %v1546_v30  ;;  %v1675_v63 = vmul.f32 0.2, %v1547_v51 }
 0x269   : > { %2557 = vst [vmem:[%s3570_s3 + $0x80] sm:$0xff] %v2465_v43   ;;  %v1548_v0 = vadd.f32 %v3331_v52, %v1482_v54  ;;  %v1549_v3 = vadd.f32 %v3331_v52, %v1483_v35  ;;  %v1484_v53 = vmul.f32 %v3329_v11, %v1418_v56  ;;  %v1485_v6 = vmul.f32 %v3329_v11, %v1419_v18  ;;  %v1430_v56 = vld [vmem:[#allocation2 + $0x170] sm:$0xff]  ;;  %v1431_v18 = vld [vmem:[#allocation2 + $0x178] sm:$0xff] }
 0x26a   : > { %2558 = vst [vmem:[%s3570_s3 + $0x88] sm:$0xff] %v2470_v38   ;;  %v1738_v15 = vsel %vm1610_vm7, %v1546_v30, %v1674_v24  ;;  %v1739_v9 = vsel %vm1611_vm8, %v1547_v51, %v1675_v63  ;;  %v1486_v8 = vmul.f32 %v3329_v11, %v1420_v22  ;;  %v1487_v10 = vmul.f32 %v3329_v11, %v1421_v25 }
 0x26b   : > { %v2475_v4 = vpack.c.bf16 %v1739_v9, %v1738_v15  ;;  %vm1612_vm9 = vcmp.ge.f32.partialorder %v1548_v0, 0.0  ;;  %vm1613_vm10 = vcmp.ge.f32.partialorder %v1549_v3, 0.0  ;;  %v1676_v33 = vmul.f32 0.2, %v1548_v0  ;;  %v1432_v15 = vld [vmem:[#allocation2 + $0x68] sm:$0xff]  ;;  %v1433_v9 = vld [vmem:[#allocation2 + $0x190] sm:$0xff] }
 0x26c   : > { %v1677_v29 = vmul.f32 0.2, %v1549_v3  ;;  %v1550_v26 = vadd.f32 %v3331_v52, %v1484_v53  ;;  %v1551_v58 = vadd.f32 %v3331_v52, %v1485_v6  ;;  %v1552_v31 = vadd.f32 %v3331_v52, %v1486_v8 }
 0x26d   : > { %2559 = vst [vmem:[%s3570_s3 + $0x90] sm:$0xff] %v2475_v4   ;;  %v1740_v37 = vsel %vm1612_vm9, %v1548_v0, %v1676_v33  ;;  %v1553_v16 = vadd.f32 %v3331_v52, %v1487_v10  ;;  %v1488_v19 = vmul.f32 %v3329_v11, %v1422_v12  ;;  %v1489_v57 = vmul.f32 %v3329_v11, %v1423_v13 }
 0x26e   : > { %v1741_v39 = vsel %vm1613_vm10, %v1549_v3, %v1677_v29  ;;  %vm1614_vm11 = vcmp.ge.f32.partialorder %v1550_v26, 0.0  ;;  %vm1615_vm12 = vcmp.ge.f32.partialorder %v1551_v58, 0.0  ;;  %v1678_v61 = vmul.f32 0.2, %v1550_v26 }
 0x26f   : > { %v2480_v21 = vpack.c.bf16 %v1741_v39, %v1740_v37  ;;  %v1679_v17 = vmul.f32 0.2, %v1551_v58  ;;  %vm1616_vm13 = vcmp.ge.f32.partialorder %v1552_v31, 0.0  ;;  %vm1617_vm14 = vcmp.ge.f32.partialorder %v1553_v16, 0.0  ;;  %v1434_v37 = vld [vmem:[#allocation2 + $0x198] sm:$0xff] }
 0x270   : > { %v1742_v49 = vsel %vm1614_vm11, %v1550_v26, %v1678_v61  ;;  %v1680_v32 = vmul.f32 0.2, %v1552_v31  ;;  %v1681_v23 = vmul.f32 0.2, %v1553_v16  ;;  %v1554_v5 = vadd.f32 %v3331_v52, %v1488_v19  ;;  %v1436_v61 = vld [vmem:[#allocation2 + $0xc0] sm:$0xff] }
 0x271   : > { %2560 = vst [vmem:[%s3570_s3 + $0x98] sm:$0xff] %v2480_v21   ;;  %v1743_v34 = vsel %vm1615_vm12, %v1551_v58, %v1679_v17  ;;  %v1555_v40 = vadd.f32 %v3331_v52, %v1489_v57  ;;  %v1490_v55 = vmul.f32 %v3329_v11, %v1424_v2  ;;  %v1491_v1 = vmul.f32 %v3329_v11, %v1425_v20  ;;  %v1437_v2 = vld [vmem:[#allocation2 + $0x1c0] sm:$0xff] }
 0x272   : > { %v2485_v27 = vpack.c.bf16 %v1743_v34, %v1742_v49  ;;  %v1744_v42 = vsel %vm1616_vm13, %v1552_v31, %v1680_v32  ;;  %v1745_v60 = vsel %vm1617_vm14, %v1553_v16, %v1681_v23  ;;  %vm1618_vm15 = vcmp.ge.f32.partialorder %v1554_v5, 0.0  ;;  %v1435_v16 = vld [vmem:[#allocation2 + $0x38] sm:$0xff] }
 0x273   : > { %v2490_v7 = vpack.c.bf16 %v1745_v60, %v1744_v42  ;;  %vm1619_vm0 = vcmp.ge.f32.partialorder %v1555_v40, 0.0  ;;  %v1682_v45 = vmul.f32 0.2, %v1554_v5  ;;  %v1683_v47 = vmul.f32 0.2, %v1555_v40 }
 0x274   : > { %2561 = vst [vmem:[%s3570_s3 + $0xa0] sm:$0xff] %v2485_v27   ;;  %v1556_v14 = vadd.f32 %v3331_v52, %v1490_v55  ;;  %v1557_v59 = vadd.f32 %v3331_v52, %v1491_v1  ;;  %v1492_v48 = vmul.f32 %v3329_v11, %v1426_v46  ;;  %v1493_v30 = vmul.f32 %v3329_v11, %v1427_v41  ;;  %v1438_v46 = vld [vmem:[#allocation2 + $0x158] sm:$0xff]  ;;  %v1439_v41 = vld [vmem:[#allocation2 + $0x10] sm:$0xff] }
 0x275   : > { %2562 = vst [vmem:[%s3570_s3 + $0xa8] sm:$0xff] %v2490_v7   ;;  %v1746_v50 = vsel %vm1618_vm15, %v1554_v5, %v1682_v45  ;;  %v1747_v51 = vsel %vm1619_vm0, %v1555_v40, %v1683_v47  ;;  %v1494_v54 = vmul.f32 %v3329_v11, %v1428_v44  ;;  %v1495_v35 = vmul.f32 %v3329_v11, %v1429_v36 }
 0x276   : > { %v2495_v43 = vpack.c.bf16 %v1747_v51, %v1746_v50  ;;  %vm1620_vm1 = vcmp.ge.f32.partialorder %v1556_v14, 0.0  ;;  %vm1621_vm2 = vcmp.ge.f32.partialorder %v1557_v59, 0.0  ;;  %v1684_v28 = vmul.f32 0.2, %v1556_v14  ;;  %v1440_v50 = vld [vmem:[#allocation2 + $0x58] sm:$0xff]  ;;  %v1441_v51 = vld [vmem:[#allocation2 + $0xa0] sm:$0xff] }
 0x277   : > { %v1685_v62 = vmul.f32 0.2, %v1557_v59  ;;  %v1558_v22 = vadd.f32 %v3331_v52, %v1492_v48  ;;  %v1559_v25 = vadd.f32 %v3331_v52, %v1493_v30  ;;  %v1560_v38 = vadd.f32 %v3331_v52, %v1494_v54 }
 0x278   : > { %2563 = vst [vmem:[%s3570_s3 + $0xb0] sm:$0xff] %v2495_v43   ;;  %v1748_v24 = vsel %vm1620_vm1, %v1556_v14, %v1684_v28  ;;  %v1561_v63 = vadd.f32 %v3331_v52, %v1495_v35  ;;  %v1496_v0 = vmul.f32 %v3329_v11, %v1430_v56  ;;  %v1497_v3 = vmul.f32 %v3329_v11, %v1431_v18 }
 0x279   : > { %v1749_v53 = vsel %vm1621_vm2, %v1557_v59, %v1685_v62  ;;  %vm1622_vm3 = vcmp.ge.f32.partialorder %v1558_v22, 0.0  ;;  %vm1623_vm4 = vcmp.ge.f32.partialorder %v1559_v25, 0.0  ;;  %v1686_v6 = vmul.f32 0.2, %v1558_v22 }
 0x27a   : > { %v2500_v8 = vpack.c.bf16 %v1749_v53, %v1748_v24  ;;  %v1687_v10 = vmul.f32 0.2, %v1559_v25  ;;  %vm1624_vm5 = vcmp.ge.f32.partialorder %v1560_v38, 0.0  ;;  %vm1625_vm6 = vcmp.ge.f32.partialorder %v1561_v63, 0.0 }
 0x27b   : > { %v1750_v12 = vsel %vm1622_vm3, %v1558_v22, %v1686_v6  ;;  %v1688_v13 = vmul.f32 0.2, %v1560_v38  ;;  %v1689_v4 = vmul.f32 0.2, %v1561_v63  ;;  %v1562_v33 = vadd.f32 %v3331_v52, %v1496_v0 }
 0x27c   : > { %2564 = vst [vmem:[%s3570_s3 + $0xb8] sm:$0xff] %v2500_v8   ;;  %v1751_v29 = vsel %vm1623_vm4, %v1559_v25, %v1687_v10  ;;  %v1563_v26 = vadd.f32 %v3331_v52, %v1497_v3  ;;  %v1498_v58 = vmul.f32 %v3329_v11, %v1432_v15  ;;  %v1499_v31 = vmul.f32 %v3329_v11, %v1433_v9 }
 0x27d   : > { %v2505_v19 = vpack.c.bf16 %v1751_v29, %v1750_v12  ;;  %v1752_v57 = vsel %vm1624_vm5, %v1560_v38, %v1688_v13  ;;  %v1753_v39 = vsel %vm1625_vm6, %v1561_v63, %v1689_v4  ;;  %vm1626_vm7 = vcmp.ge.f32.partialorder %v1562_v33, 0.0 }
 0x27e   : > { %v2510_v20 = vpack.c.bf16 %v1753_v39, %v1752_v57  ;;  %vm1627_vm8 = vcmp.ge.f32.partialorder %v1563_v26, 0.0  ;;  %v1690_v21 = vmul.f32 0.2, %v1562_v33  ;;  %v1691_v17 = vmul.f32 0.2, %v1563_v26 }
 0x27f   : > { %2565 = vst [vmem:[%s3570_s3 + $0xc0] sm:$0xff] %v2505_v19   ;;  %v1564_v49 = vadd.f32 %v3331_v52, %v1498_v58  ;;  %v1565_v32 = vadd.f32 %v3331_v52, %v1499_v31  ;;  %v1500_v23 = vmul.f32 %v3329_v11, %v1434_v37  ;;  %v1501_v5 = vmul.f32 %v3329_v11, %v1435_v16 }
 0x280   : > { %2566 = vst [vmem:[%s3570_s3 + $0xc8] sm:$0xff] %v2510_v20   ;;  %v1754_v34 = vsel %vm1626_vm7, %v1562_v33, %v1690_v21  ;;  %v1755_v40 = vsel %vm1627_vm8, %v1563_v26, %v1691_v17  ;;  %v1502_v55 = vmul.f32 %v3329_v11, %v1436_v61  ;;  %v1503_v1 = vmul.f32 %v3329_v11, %v1437_v2 }
 0x281   : > { %v2515_v27 = vpack.c.bf16 %v1755_v40, %v1754_v34  ;;  %vm1628_vm9 = vcmp.ge.f32.partialorder %v1564_v49, 0.0  ;;  %vm1629_vm10 = vcmp.ge.f32.partialorder %v1565_v32, 0.0  ;;  %v1692_v42 = vmul.f32 0.2, %v1564_v49 }
 0x282   : > { %v1693_v60 = vmul.f32 0.2, %v1565_v32  ;;  %v1566_v44 = vadd.f32 %v3331_v52, %v1500_v23  ;;  %v1567_v36 = vadd.f32 %v3331_v52, %v1501_v5  ;;  %v1568_v7 = vadd.f32 %v3331_v52, %v1502_v55 }
 0x283   : > { %2567 = vst [vmem:[%s3570_s3 + $0xd0] sm:$0xff] %v2515_v27   ;;  %v1756_v45 = vsel %vm1628_vm9, %v1564_v49, %v1692_v42  ;;  %v1569_v47 = vadd.f32 %v3331_v52, %v1503_v1  ;;  %v1504_v14 = vmul.f32 %v3329_v11, %v1438_v46  ;;  %v1505_v59 = vmul.f32 %v3329_v11, %v1439_v41 }
 0x284   : > { %v1757_v48 = vsel %vm1629_vm10, %v1565_v32, %v1693_v60  ;;  %vm1630_vm11 = vcmp.ge.f32.partialorder %v1566_v44, 0.0  ;;  %vm1631_vm12 = vcmp.ge.f32.partialorder %v1567_v36, 0.0  ;;  %v1694_v30 = vmul.f32 0.2, %v1566_v44 }
 0x285   : > { %v2520_v54 = vpack.c.bf16 %v1757_v48, %v1756_v45  ;;  %v1695_v35 = vmul.f32 0.2, %v1567_v36  ;;  %vm1632_vm13 = vcmp.ge.f32.partialorder %v1568_v7, 0.0  ;;  %vm1633_vm14 = vcmp.ge.f32.partialorder %v1569_v47, 0.0 }
 0x286   : > { %v1758_v56 = vsel %vm1630_vm11, %v1566_v44, %v1694_v30  ;;  %v1696_v18 = vmul.f32 0.2, %v1568_v7  ;;  %v1697_v43 = vmul.f32 0.2, %v1569_v47  ;;  %v1570_v28 = vadd.f32 %v3331_v52, %v1504_v14 }
 0x287   : > { %2568 = vst [vmem:[%s3570_s3 + $0xd8] sm:$0xff] %v2520_v54   ;;  %v1759_v62 = vsel %vm1631_vm12, %v1567_v36, %v1695_v35  ;;  %v1571_v22 = vadd.f32 %v3331_v52, %v1505_v59  ;;  %v1506_v25 = vmul.f32 %v3329_v11, %v1440_v50  ;;  %v1507_v38 = vmul.f32 %v3329_v11, %v1441_v51 }
 0x288   : > { %v2525_v24 = vpack.c.bf16 %v1759_v62, %v1758_v56  ;;  %v1760_v63 = vsel %vm1632_vm13, %v1568_v7, %v1696_v18  ;;  %v1761_v0 = vsel %vm1633_vm14, %v1569_v47, %v1697_v43  ;;  %vm1634_vm15 = vcmp.ge.f32.partialorder %v1570_v28, 0.0 }
 0x289   : > { %v2530_v3 = vpack.c.bf16 %v1761_v0, %v1760_v63  ;;  %vm1635_vm0 = vcmp.ge.f32.partialorder %v1571_v22, 0.0  ;;  %v1698_v53 = vmul.f32 0.2, %v1570_v28  ;;  %v1699_v6 = vmul.f32 0.2, %v1571_v22 }
 0x28a   : > { %2569 = vst [vmem:[%s3570_s3 + $0xe0] sm:$0xff] %v2525_v24   ;;  %v1572_v15 = vadd.f32 %v3331_v52, %v1506_v25  ;;  %v1573_v9 = vadd.f32 %v3331_v52, %v1507_v38 }
 0x28b   : > { %2570 = vst [vmem:[%s3570_s3 + $0xe8] sm:$0xff] %v2530_v3   ;;  %v1762_v11 = vsel %vm1634_vm15, %v1570_v28, %v1698_v53  ;;  %v1763_v8 = vsel %vm1635_vm0, %v1571_v22, %v1699_v6 }
 0x28c   : > { %v2535_v10 = vpack.c.bf16 %v1763_v8, %v1762_v11  ;;  %vm1636_vm1 = vcmp.ge.f32.partialorder %v1572_v15, 0.0  ;;  %vm1637_vm2 = vcmp.ge.f32.partialorder %v1573_v9, 0.0  ;;  %v1700_v12 = vmul.f32 0.2, %v1572_v15 }
 0x28d   : > { %v1701_v13 = vmul.f32 0.2, %v1573_v9 }
 0x28e   : > { %2571 = vst [vmem:[%s3570_s3 + $0xf0] sm:$0xff] %v2535_v10   ;;  %v1764_v4 = vsel %vm1636_vm1, %v1572_v15, %v1700_v12 }
 0x28f   : > { %v1765_v33 = vsel %vm1637_vm2, %v1573_v9, %v1701_v13 }
 0x290   : > { %v2540_v29 = vpack.c.bf16 %v1765_v33, %v1764_v4 }
 0x292   : > { %2572 = vst [vmem:[%s3570_s3 + $0xf8] sm:$0xff] %v2540_v29  }
 0x293 PF: > { %s13_s14 = sadd.s32 1, %s2640_s14   ;;  %s3571_s12 = smov %s2636_s13 }
 0x294   : > { %p10_p8 = scmp.ge.s32.totalorder %s13_s14, 4   ;;  %s3572_s13 = smov %s3574_s15 }
 0x296   :  { %12 = sbr.rel (!%p10_p8) target bundleno = 2 (0x2), region = 80 }

// kernel: conv_layers_forward.6
= control target key start
LH: loop header
LB: loop body
LE: loop exit
PB: predicated region body
PF: predicated region fallthrough
CT: control target
= control target key end

     0   :  { %s1641_s12 = smov 0   ;;  %s1643_s13 = smov 0   ;;  %s2035_s0 = inlined_call_operand.vmem [shape: bf16[128,512], index: 0, kind: input, shape index: {}]   ;;  %s2036_s1 = inlined_call_operand.vmem [shape: bf16[512,128], index: 1, kind: input, shape index: {}]   ;;  %s2037_s2 = inlined_call_operand.vmem [shape: f32[2,128], index: 2, kind: input, shape index: {}]   ;;  %s2038_s3 = inlined_call_operand.vmem [shape: bf16[128,128], index: 3, kind: output, shape index: {}]  }
   0x1   :  { %s1645_s14 = smov 0  }
   0x2 LB: > { %s25_s15 = sadd.s32 1, %s1614_s13  ;;  %p1189_p0 = scmp.ge.s32.totalorder %s1618_s14, 1  ;;  %s1618_s14 = sphi %s1645_s14, %s13_s14   ;;  %s1614_s13 = sphi %s1643_s13, %s2040_s13   ;;  %s1610_s12 = sphi %s1641_s12, %s2039_s12  }
   0x3   : > { %p27_p1 = scmp.ge.s32.totalorder %s25_s15, 2  ;;  %p161_p2 = scmp.lt.s32.totalorder %s1618_s14, 3 }
   0x5   : > { %s2042_s15 = smov (%p27_p1, %s25_s15), 0  ;;  %p162_p3 = pnand %p1189_p0, %p161_p2 }
   0x6   : > { %p208_p4 = scmp.eq.s32.totalorder (!%p162_p3), %s1610_s12, 0 }
   0x7   : > { %165 = sbr.rel (%p162_p3) target bundleno = 410 (0x19a), region = 32 }
   0xc   : > { %213 = sbr.rel (!%p208_p4) target bundleno = 17 (0x11), region = 36  ;;  %v1620_v0 = vmov (%p208_p4), 0.0  }
   0xd   : > { %214 = vst [vmem:[#allocation3] sm:$0x1] (%p208_p4), %v1620_v0 }
   0xe   : > { %215 = vst [vmem:[#allocation4] sm:$0x1] (%p208_p4), %v1620_v0 }
  0x11 PF: > { %p1191_p5 = scmp.ne.s32.totalorder %s1610_s12, 0 }
  0x13   : > { %218 = sbr.rel (%p1191_p5) target bundleno = 333 (0x14d), region = 40 }
  0x18   : > { %v1494_v1 = vld [vmem:[%s2036_s1 + $0x38] sm:$0xff]  ;;  %v1493_v5 = vld [vmem:[%s2036_s1 + $0x30] sm:$0xff]  ;;  %v1492_v9 = vld [vmem:[%s2036_s1 + $0x28] sm:$0xff] }
  0x19   : > { %v1502_v2 = vld [vmem:[%s2036_s1 + $0x78] sm:$0xff]  ;;  %667 = vmatpush.bf16.msra.mxu0 %v1494_v1  ;;  %v1501_v6 = vld [vmem:[%s2036_s1 + $0x70] sm:$0xff]  ;;  %v1500_v10 = vld [vmem:[%s2036_s1 + $0x68] sm:$0xff] }
  0x1a   : > { %v1510_v3 = vld [vmem:[%s2036_s1 + $0xb8] sm:$0xff]  ;;  %716 = vmatpush.bf16.msra.mxu1 %v1502_v2  ;;  %v1509_v7 = vld [vmem:[%s2036_s1 + $0xb0] sm:$0xff]  ;;  %v1508_v11 = vld [vmem:[%s2036_s1 + $0xa8] sm:$0xff] }
  0x1b   : > { %v1518_v4 = vld [vmem:[%s2036_s1 + $0xf8] sm:$0xff]  ;;  %765 = vmatpush.bf16.msra.mxu2 %v1510_v3  ;;  %v1517_v8 = vld [vmem:[%s2036_s1 + $0xf0] sm:$0xff]  ;;  %v1516_v12 = vld [vmem:[%s2036_s1 + $0xe8] sm:$0xff] }
  0x1c   : > { %814 = vmatpush.bf16.msra.mxu3 %v1518_v4  ;;  %v1491_v13 = vld [vmem:[%s2036_s1 + $0x20] sm:$0xff]  ;;  %v1490_v17 = vld [vmem:[%s2036_s1 + $0x18] sm:$0xff]  ;;  %v1489_v21 = vld [vmem:[%s2036_s1 + $0x10] sm:$0xff] }
  0x1d   : > { %668 = vmatpush.bf16.msra.mxu0 %v1493_v5  ;;  %v1499_v14 = vld [vmem:[%s2036_s1 + $0x60] sm:$0xff]  ;;  %v1498_v18 = vld [vmem:[%s2036_s1 + $0x58] sm:$0xff]  ;;  %v1497_v22 = vld [vmem:[%s2036_s1 + $0x50] sm:$0xff] }
  0x1e   : > { %717 = vmatpush.bf16.msra.mxu1 %v1501_v6  ;;  %v1507_v15 = vld [vmem:[%s2036_s1 + $0xa0] sm:$0xff]  ;;  %v1506_v19 = vld [vmem:[%s2036_s1 + $0x98] sm:$0xff]  ;;  %v1505_v23 = vld [vmem:[%s2036_s1 + $0x90] sm:$0xff] }
  0x1f   : > { %766 = vmatpush.bf16.msra.mxu2 %v1509_v7  ;;  %v1515_v16 = vld [vmem:[%s2036_s1 + $0xe0] sm:$0xff]  ;;  %v1514_v20 = vld [vmem:[%s2036_s1 + $0xd8] sm:$0xff]  ;;  %v1513_v24 = vld [vmem:[%s2036_s1 + $0xd0] sm:$0xff] }
  0x20   : > { %815 = vmatpush.bf16.msra.mxu3 %v1517_v8  ;;  %v1488_v25 = vld [vmem:[%s2036_s1 + $0x8] sm:$0xff]  ;;  %v1487_v29 = vld [vmem:[%s2036_s1] sm:$0xff]  ;;  %v1457_v34 = vld [vmem:[%s2035_s0 + $0xc] sm:$0xf0] }
  0x21   : > { %669 = vmatpush.bf16.msra.mxu0 %v1492_v9  ;;  %v1496_v26 = vld [vmem:[%s2036_s1 + $0x48] sm:$0xff]  ;;  %v1495_v30 = vld [vmem:[%s2036_s1 + $0x40] sm:$0xff]  ;;  %v1196_v36 = vld [vmem:[%s2035_s0 + $0x10] sm:$0xf0] }
  0x22   : > { %718 = vmatpush.bf16.msra.mxu1 %v1500_v10  ;;  %v1504_v27 = vld [vmem:[%s2036_s1 + $0x88] sm:$0xff]  ;;  %v1503_v31 = vld [vmem:[%s2036_s1 + $0x80] sm:$0xff]  ;;  %v1458_v38 = vld [vmem:[%s2035_s0 + $0x14] sm:$0xf0] }
  0x23   : > { %767 = vmatpush.bf16.msra.mxu2 %v1508_v11  ;;  %v1512_v28 = vld [vmem:[%s2036_s1 + $0xc8] sm:$0xff]  ;;  %v1511_v32 = vld [vmem:[%s2036_s1 + $0xc0] sm:$0xff]  ;;  %v1204_v40 = vld [vmem:[%s2035_s0 + $0x18] sm:$0xf0] }
  0x24   : > { %816 = vmatpush.bf16.msra.mxu3 %v1516_v12  ;;  %v1194_v33 = vld [vmem:[%s2035_s0] sm:$0xf]  ;;  %v1455_v35 = vld [vmem:[%s2035_s0 + $0x4] sm:$0xf]  ;;  %v1202_v37 = vld [vmem:[%s2035_s0 + $0x8] sm:$0xf] }
  0x25   : > { %670 = vmatpush.bf16.msra.mxu0 %v1491_v13  ;;  %v1456_v39 = vld [vmem:[%s2035_s0 + $0xc] sm:$0xf]  ;;  %v1195_v41 = vor.u32 %v1457_v34, %v1194_v33  ;;  %v1199_v42 = vor.u32 %v1455_v35, %v1196_v36  ;;  %v1203_v43 = vor.u32 %v1458_v38, %v1202_v37  ;;  %v1210_v45 = vld [vmem:[%s2035_s0 + $0x20] sm:$0xf]  ;;  %v1461_v46 = vld [vmem:[%s2035_s0 + $0x2c] sm:$0xf0] }
  0x26   : > { %719 = vmatpush.bf16.msra.mxu1 %v1499_v14  ;;  %v1207_v44 = vor.u32 %v1456_v39, %v1204_v40  ;;  %v1459_v47 = vld [vmem:[%s2035_s0 + $0x24] sm:$0xf]  ;;  %v1212_v48 = vld [vmem:[%s2035_s0 + $0x30] sm:$0xf0]  ;;  %v1218_v49 = vld [vmem:[%s2035_s0 + $0x28] sm:$0xf]  ;;  %v1211_v53 = vor.u32 %v1461_v46, %v1210_v45 }
  0x27   : > { %768 = vmatpush.bf16.msra.mxu2 %v1507_v15  ;;  %v1462_v50 = vld [vmem:[%s2035_s0 + $0x34] sm:$0xf0]  ;;  %v1460_v51 = vld [vmem:[%s2035_s0 + $0x2c] sm:$0xf]  ;;  %v1220_v52 = vld [vmem:[%s2035_s0 + $0x38] sm:$0xf0]  ;;  %v1215_v54 = vor.u32 %v1459_v47, %v1212_v48 }
  0x28   : > { %817 = vmatpush.bf16.msra.mxu3 %v1515_v16  ;;  %v1219_v55 = vor.u32 %v1462_v50, %v1218_v49  ;;  %v1223_v56 = vor.u32 %v1460_v51, %v1220_v52  ;;  %v1226_v57 = vld [vmem:[%s2035_s0 + $0x40] sm:$0xf]  ;;  %v1465_v58 = vld [vmem:[%s2035_s0 + $0x4c] sm:$0xf0]  ;;  %v1463_v59 = vld [vmem:[%s2035_s0 + $0x44] sm:$0xf] }
  0x29   : > { %671 = vmatpush.bf16.msra.mxu0 %v1490_v17  ;;  %v1228_v60 = vld [vmem:[%s2035_s0 + $0x50] sm:$0xf0]  ;;  %v1234_v61 = vld [vmem:[%s2035_s0 + $0x48] sm:$0xf]  ;;  %v1466_v62 = vld [vmem:[%s2035_s0 + $0x54] sm:$0xf0]  ;;  %v1227_v1 = vor.u32 %v1465_v58, %v1226_v57 }
  0x2a   : > { %720 = vmatpush.bf16.msra.mxu1 %v1498_v18  ;;  %v1464_v63 = vld [vmem:[%s2035_s0 + $0x4c] sm:$0xf]  ;;  %v1236_v0 = vld [vmem:[%s2035_s0 + $0x58] sm:$0xf0]  ;;  %v1231_v2 = vor.u32 %v1463_v59, %v1228_v60  ;;  %v1235_v3 = vor.u32 %v1466_v62, %v1234_v61  ;;  %v1242_v5 = vld [vmem:[%s2035_s0 + $0x60] sm:$0xf] }
  0x2b   : > { %769 = vmatpush.bf16.msra.mxu2 %v1506_v19  ;;  %v1239_v4 = vor.u32 %v1464_v63, %v1236_v0  ;;  %v1469_v6 = vld [vmem:[%s2035_s0 + $0x6c] sm:$0xf0]  ;;  %v1467_v7 = vld [vmem:[%s2035_s0 + $0x64] sm:$0xf]  ;;  %v1244_v8 = vld [vmem:[%s2035_s0 + $0x70] sm:$0xf0] }
  0x2c   : > { %818 = vmatpush.bf16.msra.mxu3 %v1514_v20  ;;  %v1250_v9 = vld [vmem:[%s2035_s0 + $0x68] sm:$0xf]  ;;  %v1470_v10 = vld [vmem:[%s2035_s0 + $0x74] sm:$0xf0]  ;;  %v1468_v11 = vld [vmem:[%s2035_s0 + $0x6c] sm:$0xf]  ;;  %v1243_v13 = vor.u32 %v1469_v6, %v1242_v5  ;;  %v1247_v14 = vor.u32 %v1467_v7, %v1244_v8 }
  0x2d   : > { %672 = vmatpush.bf16.msra.mxu0 %v1489_v21  ;;  %v1252_v12 = vld [vmem:[%s2035_s0 + $0x78] sm:$0xf0]  ;;  %v1251_v15 = vor.u32 %v1470_v10, %v1250_v9  ;;  %v1258_v17 = vld [vmem:[%s2035_s0 + $0x80] sm:$0xf]  ;;  %v1473_v18 = vld [vmem:[%s2035_s0 + $0x8c] sm:$0xf0] }
  0x2e   : > { %721 = vmatpush.bf16.msra.mxu1 %v1497_v22  ;;  %v1255_v16 = vor.u32 %v1468_v11, %v1252_v12  ;;  %v1471_v19 = vld [vmem:[%s2035_s0 + $0x84] sm:$0xf]  ;;  %v1260_v20 = vld [vmem:[%s2035_s0 + $0x90] sm:$0xf0]  ;;  %v1266_v21 = vld [vmem:[%s2035_s0 + $0x88] sm:$0xf] }
  0x2f   : > { %770 = vmatpush.bf16.msra.mxu2 %v1505_v23  ;;  %v1474_v22 = vld [vmem:[%s2035_s0 + $0x94] sm:$0xf0]  ;;  %v1472_v23 = vld [vmem:[%s2035_s0 + $0x8c] sm:$0xf]  ;;  %v1282_v33 = vld [vmem:[%s2035_s0 + $0xa8] sm:$0xf] }
  0x30   : > { %819 = vmatpush.bf16.msra.mxu3 %v1513_v24  ;;  %v1268_v24 = vld [vmem:[%s2035_s0 + $0x98] sm:$0xf0]  ;;  %v1478_v34 = vld [vmem:[%s2035_s0 + $0xb4] sm:$0xf0]  ;;  %v1476_v35 = vld [vmem:[%s2035_s0 + $0xac] sm:$0xf] }
  0x31   : > { %673 = vmatpush.bf16.msra.mxu0 %v1488_v25  ;;  %v1259_v25 = vor.u32 %v1473_v18, %v1258_v17  ;;  %v1284_v36 = vld [vmem:[%s2035_s0 + $0xb8] sm:$0xf0]  ;;  %v1283_v39 = vor.u32 %v1478_v34, %v1282_v33  ;;  %v1298_v45 = vld [vmem:[%s2035_s0 + $0xc8] sm:$0xf]  ;;  %v1482_v46 = vld [vmem:[%s2035_s0 + $0xd4] sm:$0xf0] }
  0x32   : > { %722 = vmatpush.bf16.msra.mxu1 %v1496_v26  ;;  %v1263_v26 = vor.u32 %v1471_v19, %v1260_v20  ;;  %v1287_v40 = vor.u32 %v1476_v35, %v1284_v36  ;;  %v1480_v47 = vld [vmem:[%s2035_s0 + $0xcc] sm:$0xf]  ;;  %v1300_v48 = vld [vmem:[%s2035_s0 + $0xd8] sm:$0xf0]  ;;  %v1299_v51 = vor.u32 %v1482_v46, %v1298_v45  ;;  %v1314_v57 = vld [vmem:[%s2035_s0 + $0xe8] sm:$0xf] }
  0x33   : > { %771 = vmatpush.bf16.msra.mxu2 %v1504_v27  ;;  %v1267_v27 = vor.u32 %v1474_v22, %v1266_v21  ;;  %v1303_v52 = vor.u32 %v1480_v47, %v1300_v48  ;;  %v1486_v58 = vld [vmem:[%s2035_s0 + $0xf4] sm:$0xf0]  ;;  %v1484_v59 = vld [vmem:[%s2035_s0 + $0xec] sm:$0xf]  ;;  %v1316_v60 = vld [vmem:[%s2035_s0 + $0xf8] sm:$0xf0] }
  0x34   : > { %820 = vmatpush.bf16.msra.mxu3 %v1512_v28  ;;  %v1271_v28 = vor.u32 %v1472_v23, %v1268_v24  ;;  %v1315_v63 = vor.u32 %v1486_v58, %v1314_v57  ;;  %v1319_v0 = vor.u32 %v1484_v59, %v1316_v60 }
  0x35   : > { %674 = vmatpush.bf16.msra.mxu0 %v1487_v29  ;;  %v1274_v29 = vld [vmem:[%s2035_s0 + $0xa0] sm:$0xf] }
  0x36   : > { %723 = vmatpush.bf16.msra.mxu1 %v1495_v30  ;;  %v1477_v30 = vld [vmem:[%s2035_s0 + $0xac] sm:$0xf0] }
  0x37   : > { %772 = vmatpush.bf16.msra.mxu2 %v1503_v31  ;;  %v1475_v31 = vld [vmem:[%s2035_s0 + $0xa4] sm:$0xf]  ;;  %v1275_v37 = vor.u32 %v1477_v30, %v1274_v29 }
  0x38   : > { %821 = vmatpush.bf16.msra.mxu3 %v1511_v32  ;;  %675 = vmatmul.bf16.vlgmr.msra.gmra.mxu0 %v1195_v41  ;;  %v1276_v32 = vld [vmem:[%s2035_s0 + $0xb0] sm:$0xf0]  ;;  %v1290_v41 = vld [vmem:[%s2035_s0 + $0xc0] sm:$0xf] }
  0x39   : > { %724 = vmatmul.bf16.vlgmr.msra.gmra.mxu1 %v1199_v42  ;;  %v1279_v38 = vor.u32 %v1475_v31, %v1276_v32  ;;  %v1481_v42 = vld [vmem:[%s2035_s0 + $0xcc] sm:$0xf0] }
  0x3a   : > { %773 = vmatmul.bf16.vlgmr.msra.gmra.mxu2 %v1203_v43  ;;  %v1479_v43 = vld [vmem:[%s2035_s0 + $0xc4] sm:$0xf]  ;;  %v1291_v49 = vor.u32 %v1481_v42, %v1290_v41 }
  0x3b   : > { %822 = vmatmul.bf16.vlgmr.msra.gmra.mxu3 %v1207_v44  ;;  %v1292_v44 = vld [vmem:[%s2035_s0 + $0xd0] sm:$0xf0] }
  0x3c   : > { %v1295_v50 = vor.u32 %v1479_v43, %v1292_v44 }
  0x48   : > { %680 = vmatmul.bf16.gmra.mxu0 %v1211_v53  ;;  %v1306_v53 = vld [vmem:[%s2035_s0 + $0xe0] sm:$0xf] }
  0x49   : > { %729 = vmatmul.bf16.gmra.mxu1 %v1215_v54  ;;  %v1485_v54 = vld [vmem:[%s2035_s0 + $0xec] sm:$0xf0] }
  0x4a   : > { %778 = vmatmul.bf16.gmra.mxu2 %v1219_v55  ;;  %v1483_v55 = vld [vmem:[%s2035_s0 + $0xe4] sm:$0xf]  ;;  %v1307_v61 = vor.u32 %v1485_v54, %v1306_v53 }
  0x4b   : > { %827 = vmatmul.bf16.gmra.mxu3 %v1223_v56  ;;  %v1308_v56 = vld [vmem:[%s2035_s0 + $0xf0] sm:$0xf0] }
  0x4c   : > { %v1311_v62 = vor.u32 %v1483_v55, %v1308_v56 }
  0x58   : > { %685 = vmatmul.bf16.gmra.mxu0 %v1227_v1 }
  0x59   : > { %734 = vmatmul.bf16.gmra.mxu1 %v1231_v2 }
  0x5a   : > { %783 = vmatmul.bf16.gmra.mxu2 %v1235_v3 }
  0x5b   : > { %832 = vmatmul.bf16.gmra.mxu3 %v1239_v4 }
  0x68   : > { %690 = vmatmul.bf16.gmra.mxu0 %v1243_v13 }
  0x69   : > { %739 = vmatmul.bf16.gmra.mxu1 %v1247_v14 }
  0x6a   : > { %788 = vmatmul.bf16.gmra.mxu2 %v1251_v15 }
  0x6b   : > { %837 = vmatmul.bf16.gmra.mxu3 %v1255_v16 }
  0x78   : > { %695 = vmatmul.bf16.gmra.mxu0 %v1259_v25 }
  0x79   : > { %744 = vmatmul.bf16.gmra.mxu1 %v1263_v26 }
  0x7a   : > { %793 = vmatmul.bf16.gmra.mxu2 %v1267_v27 }
  0x7b   : > { %842 = vmatmul.bf16.gmra.mxu3 %v1271_v28 }
  0x88   : > { %700 = vmatmul.bf16.gmra.mxu0 %v1275_v37 }
  0x89   : > { %749 = vmatmul.bf16.gmra.mxu1 %v1279_v38 }
  0x8a   : > { %798 = vmatmul.bf16.gmra.mxu2 %v1283_v39 }
  0x8b   : > { %847 = vmatmul.bf16.gmra.mxu3 %v1287_v40 }
  0x98   : > { %705 = vmatmul.bf16.gmra.mxu0 %v1291_v49 }
  0x99   : > { %754 = vmatmul.bf16.gmra.mxu1 %v1295_v50 }
  0x9a   : > { %803 = vmatmul.bf16.gmra.mxu2 %v1299_v51 }
  0x9b   : > { %852 = vmatmul.bf16.gmra.mxu3 %v1303_v52 }
  0xa8   : > { %710 = vmatmul.bf16.gmra.mxu0 %v1307_v61 }
  0xa9   : > { %759 = vmatmul.bf16.gmra.mxu1 %v1311_v62 }
  0xaa   : > { %808 = vmatmul.bf16.gmra.mxu2 %v1315_v63 }
  0xab   : > { %857 = vmatmul.bf16.gmra.mxu3 %v1319_v0 }
  0xb5   : > { %v676_v1 = vpop.f32.mrf.mxu0 }
  0xb6   : > { %v725_v2 = vpop.f32.mrf.mxu1 }
  0xb7   : > { %v726_v3 = vadd.f32 %v725_v2, %v676_v1 }
  0xbd   : > { %v774_v4 = vpop.f32.mrf.mxu2  ;;  %v678_v7 = vpop.f32.mrf.mxu0 }
  0xbe   : > { %v823_v5 = vpop.f32.mrf.mxu3  ;;  %v775_v6 = vadd.f32 %v774_v4, %v726_v3  ;;  %v727_v8 = vpop.f32.mrf.mxu1 }
  0xbf   : > { %v728_v10 = vadd.f32 %v727_v8, %v678_v7 }
  0xc0   : > { %v824_v9 = vadd.f32 %v823_v5, %v775_v6 }
  0xc2   : > { %865 = vst [vmem:[#allocation2 + $0x30] sm:$0xff] %v824_v9  ;;  %v906_v17 = vmul.f32 %v824_v9, %v824_v9 }
  0xc5   : > { %v776_v11 = vpop.f32.mrf.mxu2  ;;  %v681_v14 = vpop.f32.mrf.mxu0 }
  0xc6   : > { %v825_v12 = vpop.f32.mrf.mxu3  ;;  %v777_v13 = vadd.f32 %v776_v11, %v728_v10  ;;  %v730_v15 = vpop.f32.mrf.mxu1 }
  0xc7   : > { %v731_v20 = vadd.f32 %v730_v15, %v681_v14 }
  0xc8   : > { %v826_v16 = vadd.f32 %v825_v12, %v777_v13 }
  0xca   : > { %866 = vst [vmem:[#allocation2] sm:$0xff] %v826_v16  ;;  %v882_v18 = vadd.f32 %v826_v16, %v824_v9  ;;  %v907_v19 = vmul.f32 %v826_v16, %v826_v16 }
  0xcc   : > { %v922_v21 = vadd.f32 %v907_v19, %v906_v17 }
  0xcd   : > { %v779_v22 = vpop.f32.mrf.mxu2  ;;  %v683_v25 = vpop.f32.mrf.mxu0 }
  0xce   : > { %v828_v23 = vpop.f32.mrf.mxu3  ;;  %v780_v24 = vadd.f32 %v779_v22, %v731_v20  ;;  %v732_v26 = vpop.f32.mrf.mxu1 }
  0xcf   : > { %v733_v31 = vadd.f32 %v732_v26, %v683_v25 }
  0xd0   : > { %v829_v27 = vadd.f32 %v828_v23, %v780_v24 }
  0xd2   : > { %867 = vst [vmem:[#allocation2 + $0x58] sm:$0xff] %v829_v27  ;;  %v883_v28 = vadd.f32 %v882_v18, %v829_v27  ;;  %v908_v29 = vmul.f32 %v829_v27, %v829_v27 }
  0xd4   : > { %v923_v30 = vadd.f32 %v922_v21, %v908_v29 }
  0xd5   : > { %v781_v32 = vpop.f32.mrf.mxu2  ;;  %v686_v35 = vpop.f32.mrf.mxu0 }
  0xd6   : > { %v830_v33 = vpop.f32.mrf.mxu3  ;;  %v782_v34 = vadd.f32 %v781_v32, %v733_v31  ;;  %v735_v36 = vpop.f32.mrf.mxu1 }
  0xd7   : > { %v736_v40 = vadd.f32 %v735_v36, %v686_v35 }
  0xd8   : > { %v831_v37 = vadd.f32 %v830_v33, %v782_v34 }
  0xda   : > { %868 = vst [vmem:[#allocation2 + $0x18] sm:$0xff] %v831_v37  ;;  %v884_v38 = vadd.f32 %v883_v28, %v831_v37  ;;  %v909_v39 = vmul.f32 %v831_v37, %v831_v37 }
  0xdc   : > { %v924_v41 = vadd.f32 %v923_v30, %v909_v39 }
  0xdd   : > { %v784_v42 = vpop.f32.mrf.mxu2  ;;  %v688_v45 = vpop.f32.mrf.mxu0 }
  0xde   : > { %v833_v43 = vpop.f32.mrf.mxu3  ;;  %v785_v44 = vadd.f32 %v784_v42, %v736_v40  ;;  %v737_v46 = vpop.f32.mrf.mxu1 }
  0xdf   : > { %v738_v51 = vadd.f32 %v737_v46, %v688_v45 }
  0xe0   : > { %v834_v47 = vadd.f32 %v833_v43, %v785_v44 }
  0xe2   : > { %869 = vst [vmem:[#allocation2 + $0x50] sm:$0xff] %v834_v47  ;;  %v1951_v48 = vadd.f32 %v884_v38, %v834_v47  ;;  %v910_v49 = vmul.f32 %v834_v47, %v834_v47 }
  0xe4   : > { %v1953_v50 = vadd.f32 %v924_v41, %v910_v49 }
  0xe5   : > { %v786_v52 = vpop.f32.mrf.mxu2  ;;  %v691_v55 = vpop.f32.mrf.mxu0 }
  0xe6   : > { %v835_v53 = vpop.f32.mrf.mxu3  ;;  %v787_v54 = vadd.f32 %v786_v52, %v738_v51  ;;  %v740_v56 = vpop.f32.mrf.mxu1 }
  0xe7   : > { %v741_v58 = vadd.f32 %v740_v56, %v691_v55 }
  0xe8   : > { %v836_v57 = vadd.f32 %v835_v53, %v787_v54 }
  0xea   : > { %870 = vst [vmem:[#allocation2 + $0x68] sm:$0xff] %v836_v57  ;;  %v911_v43 = vmul.f32 %v836_v57, %v836_v57  ;;  %v886_v47 = vadd.f32 %v1951_v48, %v836_v57 }
  0xec   : > { %v926_v54 = vadd.f32 %v1953_v50, %v911_v43  ;;  %v905_v43 = vld [vmem:[#allocation4] sm:$0x1] }
  0xed   : > { %v789_v59 = vpop.f32.mrf.mxu2  ;;  %v693_v62 = vpop.f32.mrf.mxu0 }
  0xee   : > { %v838_v60 = vpop.f32.mrf.mxu3  ;;  %v790_v61 = vadd.f32 %v789_v59, %v741_v58  ;;  %v742_v63 = vpop.f32.mrf.mxu1 }
  0xef   : > { %v743_v1 = vadd.f32 %v742_v63, %v693_v62 }
  0xf0   : > { %v839_v0 = vadd.f32 %v838_v60, %v790_v61 }
  0xf2   : > { %871 = vst [vmem:[#allocation2 + $0x8] sm:$0xff] %v839_v0  ;;  %v912_v49 = vmul.f32 %v839_v0, %v839_v0  ;;  %v887_v55 = vadd.f32 %v886_v47, %v839_v0 }
  0xf4   : > { %v927_v59 = vadd.f32 %v926_v54, %v912_v49 }
  0xf5   : > { %v791_v2 = vpop.f32.mrf.mxu2  ;;  %v696_v5 = vpop.f32.mrf.mxu0 }
  0xf6   : > { %v840_v3 = vpop.f32.mrf.mxu3  ;;  %v792_v4 = vadd.f32 %v791_v2, %v743_v1  ;;  %v745_v6 = vpop.f32.mrf.mxu1 }
  0xf7   : > { %v746_v8 = vadd.f32 %v745_v6, %v696_v5 }
  0xf8   : > { %v841_v7 = vadd.f32 %v840_v3, %v792_v4 }
  0xfa   : > { %872 = vst [vmem:[#allocation2 + $0x48] sm:$0xff] %v841_v7  ;;  %v913_v56 = vmul.f32 %v841_v7, %v841_v7  ;;  %v888_v60 = vadd.f32 %v887_v55, %v841_v7 }
  0xfc   : > { %v928_v63 = vadd.f32 %v927_v59, %v913_v56 }
  0xfd   : > { %v794_v9 = vpop.f32.mrf.mxu2  ;;  %v698_v12 = vpop.f32.mrf.mxu0 }
  0xfe   : > { %v843_v10 = vpop.f32.mrf.mxu3  ;;  %v795_v11 = vadd.f32 %v794_v9, %v746_v8  ;;  %v747_v13 = vpop.f32.mrf.mxu1 }
  0xff   : > { %v748_v15 = vadd.f32 %v747_v13, %v698_v12 }
 0x100   : > { %v844_v14 = vadd.f32 %v843_v10, %v795_v11 }
 0x102   : > { %873 = vst [vmem:[#allocation2 + $0x40] sm:$0xff] %v844_v14  ;;  %v914_v61 = vmul.f32 %v844_v14, %v844_v14  ;;  %v889_v1 = vadd.f32 %v888_v60, %v844_v14 }
 0x104   : > { %v929_v48 = vadd.f32 %v928_v63, %v914_v61 }
 0x105   : > { %v796_v16 = vpop.f32.mrf.mxu2  ;;  %v701_v19 = vpop.f32.mrf.mxu0 }
 0x106   : > { %v845_v17 = vpop.f32.mrf.mxu3  ;;  %v797_v18 = vadd.f32 %v796_v16, %v748_v15  ;;  %v750_v20 = vpop.f32.mrf.mxu1 }
 0x107   : > { %v751_v22 = vadd.f32 %v750_v20, %v701_v19 }
 0x108   : > { %v846_v21 = vadd.f32 %v845_v17, %v797_v18 }
 0x10a   : > { %874 = vst [vmem:[#allocation2 + $0x20] sm:$0xff] %v846_v21  ;;  %v915_v2 = vmul.f32 %v846_v21, %v846_v21  ;;  %v890_v57 = vadd.f32 %v889_v1, %v846_v21 }
 0x10c   : > { %v930_v8 = vadd.f32 %v929_v48, %v915_v2 }
 0x10d   : > { %v799_v23 = vpop.f32.mrf.mxu2  ;;  %v703_v26 = vpop.f32.mrf.mxu0 }
 0x10e   : > { %v848_v24 = vpop.f32.mrf.mxu3  ;;  %v800_v25 = vadd.f32 %v799_v23, %v751_v22  ;;  %v752_v27 = vpop.f32.mrf.mxu1 }
 0x10f   : > { %v753_v29 = vadd.f32 %v752_v27, %v703_v26 }
 0x110   : > { %v849_v28 = vadd.f32 %v848_v24, %v800_v25 }
 0x112   : > { %875 = vst [vmem:[#allocation2 + $0x10] sm:$0xff] %v849_v28  ;;  %v916_v5 = vmul.f32 %v849_v28, %v849_v28  ;;  %v891_v9 = vadd.f32 %v890_v57, %v849_v28 }
 0x114   : > { %v931_v12 = vadd.f32 %v930_v8, %v916_v5 }
 0x115   : > { %v801_v30 = vpop.f32.mrf.mxu2  ;;  %v706_v33 = vpop.f32.mrf.mxu0 }
 0x116   : > { %v850_v31 = vpop.f32.mrf.mxu3  ;;  %v802_v32 = vadd.f32 %v801_v30, %v753_v29  ;;  %v755_v34 = vpop.f32.mrf.mxu1 }
 0x117   : > { %v756_v36 = vadd.f32 %v755_v34, %v706_v33 }
 0x118   : > { %v851_v35 = vadd.f32 %v850_v31, %v802_v32 }
 0x11a   : > { %876 = vst [vmem:[#allocation2 + $0x38] sm:$0xff] %v851_v35  ;;  %v917_v50 = vmul.f32 %v851_v35, %v851_v35  ;;  %v892_v7 = vadd.f32 %v891_v9, %v851_v35 }
 0x11c   : > { %v932_v15 = vadd.f32 %v931_v12, %v917_v50 }
 0x11d   : > { %v804_v37 = vpop.f32.mrf.mxu2  ;;  %v708_v40 = vpop.f32.mrf.mxu0 }
 0x11e   : > { %v853_v38 = vpop.f32.mrf.mxu3  ;;  %v805_v39 = vadd.f32 %v804_v37, %v756_v36  ;;  %v757_v41 = vpop.f32.mrf.mxu1 }
 0x11f   : > { %v758_v44 = vadd.f32 %v757_v41, %v708_v40  ;;  %v881_v40 = vld [vmem:[#allocation3] sm:$0x1] }
 0x120   : > { %v854_v42 = vadd.f32 %v853_v38, %v805_v39 }
 0x122   : > { %877 = vst [vmem:[#allocation2 + $0x60] sm:$0xff] %v854_v42  ;;  %v918_v13 = vmul.f32 %v854_v42, %v854_v42  ;;  %v893_v16 = vadd.f32 %v892_v7, %v854_v42 }
 0x124   : > { %v933_v19 = vadd.f32 %v932_v15, %v918_v13 }
 0x125   : > { %v806_v45 = vpop.f32.mrf.mxu2  ;;  %v711_v52 = vpop.f32.mrf.mxu0 }
 0x126   : > { %v855_v46 = vpop.f32.mrf.mxu3  ;;  %v807_v51 = vadd.f32 %v806_v45, %v758_v44  ;;  %v760_v53 = vpop.f32.mrf.mxu1 }
 0x127   : > { %v761_v62 = vadd.f32 %v760_v53, %v711_v52 }
 0x128   : > { %v856_v58 = vadd.f32 %v855_v46, %v807_v51 }
 0x12a   : > { %878 = vst [vmem:[#allocation2 + $0x70] sm:$0xff] %v856_v58  ;;  %v919_v14 = vmul.f32 %v856_v58, %v856_v58  ;;  %v894_v20 = vadd.f32 %v893_v16, %v856_v58 }
 0x12c   : > { %v934_v24 = vadd.f32 %v933_v19, %v919_v14 }
 0x12d   : > { %v809_v3 = vpop.f32.mrf.mxu2  ;;  %v713_v10 = vpop.f32.mrf.mxu0 }
 0x12e   : > { %v858_v4 = vpop.f32.mrf.mxu3  ;;  %v810_v6 = vadd.f32 %v809_v3, %v761_v62  ;;  %v762_v11 = vpop.f32.mrf.mxu1 }
 0x12f   : > { %v763_v17 = vadd.f32 %v762_v11, %v713_v10 }
 0x130   : > { %v859_v0 = vadd.f32 %v858_v4, %v810_v6 }
 0x132   : > { %879 = vst [vmem:[#allocation2 + $0x78] sm:$0xff] %v859_v0  ;;  %v920_v21 = vmul.f32 %v859_v0, %v859_v0  ;;  %v895_v25 = vadd.f32 %v894_v20, %v859_v0 }
 0x134   : > { %v935_v27 = vadd.f32 %v934_v24, %v920_v21 }
 0x135   : > { %v811_v18 = vpop.f32.mrf.mxu2 }
 0x136   : > { %v812_v22 = vadd.f32 %v811_v18, %v763_v17  ;;  %v860_v23 = vpop.f32.mrf.mxu3 }
 0x138   : > { %v861_v26 = vadd.f32 %v860_v23, %v812_v22 }
 0x13a   : > { %880 = vst [vmem:[#allocation2 + $0x28] sm:$0xff] %v861_v26  ;;  %v896_v28 = vadd.f32 %v895_v25, %v861_v26  ;;  %v921_v29 = vmul.f32 %v861_v26, %v861_v26 }
 0x13c   : > { %v897_v30 = vrot.slane %v896_v28, 4  ;;  %v936_v31 = vadd.f32 %v935_v27, %v921_v29 }
 0x13e   : > { %v898_v32 = vadd.f32 %v897_v30, %v896_v28  ;;  %v937_v33 = vrot.slane %v936_v31, 4 }
 0x140   : > { %v899_v34 = vrot.slane %v898_v32, 2  ;;  %v938_v35 = vadd.f32 %v937_v33, %v936_v31 }
 0x142   : > { %v900_v36 = vadd.f32 %v899_v34, %v898_v32  ;;  %v939_v37 = vrot.slane %v938_v35, 2 }
 0x144   : > { %v901_v38 = vrot.slane %v900_v36, 1  ;;  %v940_v39 = vadd.f32 %v939_v37, %v938_v35 }
 0x146   : > { %v902_v41 = vadd.f32 %v901_v38, %v900_v36  ;;  %v941_v42 = vrot.slane %v940_v39, 1 }
 0x148   : > { %v903_v44 = vadd.f32 %v902_v41, %v881_v40  ;;  %v942_v45 = vadd.f32 %v941_v42, %v940_v39 }
 0x14a   : > { %904 = vst [vmem:[#allocation3] sm:$0x1] %v903_v44  ;;  %v943_v46 = vadd.f32 %v942_v45, %v905_v43 }
 0x14c   : > { %944 = vst [vmem:[#allocation4] sm:$0x1] %v943_v46 }
 0x14d PF: > { %p945_p6 = scmp.eq.s32.totalorder %s1610_s12, 1 }
 0x14e   : > { %v957_v63 = vld [vmem:[%s2037_s2] sm:$0x1] (%p945_p6)  ;;  %v971_v4 = vld [vmem:[%s2037_s2 + $0x1] sm:$0x1] (%p945_p6) }
 0x14f   : > { %949 = sbr.rel (!%p945_p6) target bundleno = 373 (0x175), region = 44 }
 0x151   : > { %v950_v47 = vld [vmem:[#allocation3] sm:$0x1] (%p945_p6) }
 0x152   : > { %v951_v51 = vmul.f32 (%p945_p6), 0.0078125, %v950_v47 }
 0x153   : > { %v952_v49 = vld [vmem:[#allocation4] sm:$0x1] (%p945_p6) }
 0x154   : > { %v953_v52 = vmul.f32 0.0078125, %v952_v49  ;;  %v954_v53 = vmul.f32 %v951_v51, %v951_v51 }
 0x156   : > { %v955_v54 = vsub.f32 %v953_v52, %v954_v53 }
 0x158   : > { %v956_v55 = vmax.f32 %v955_v54, 0.0 }
 0x15a   : > { %v958_v56 = vadd.f32 1e-05, %v956_v55 }
 0x15c   : > { %1592 = vrsqrt.f32 %v958_v56  ;;  %vm965_vm0 = vweird.f32 %v958_v56 }
 0x162   : > { %v1593_v58 = vpop.eup %1592 }
 0x163   : > { %v960_v59 = vmul.f32 %v1593_v58, %v958_v56  ;;  %vm966_vm1 = vweird.f32 %v1593_v58 }
 0x164   : > { %vm967_vm2 = vmor %vm965_vm0, %vm966_vm1 }
 0x165   : > { %v961_v60 = vmul.f32 %v1593_v58, %v960_v59 }
 0x167   : > { %v962_v61 = vmul.f32 0.5, %v961_v60 }
 0x169   : > { %v963_v62 = vsub.f32 1.5, %v962_v61 }
 0x16b   : > { %v964_v1 = vmul.f32 %v1593_v58, %v963_v62 }
 0x16d   : > { %v968_v2 = vsel %vm967_vm2, %v1593_v58, %v964_v1 }
 0x16e   : > { %v969_v3 = vmul.f32 %v968_v2, %v957_v63 }
 0x170   : > { %970 = vst [vmem:[#allocation5] sm:$0x1] %v969_v3  ;;  %v972_v48 = vmul.f32 %v969_v3, %v951_v51 }
 0x172   : > { %v973_v57 = vsub.f32 %v971_v4, %v972_v48 }
 0x174   : > { %974 = vst [vmem:[#allocation5 + $0x1] sm:$0x1] %v973_v57 }
 0x175 PF: > { %p1449_p7 = scmp.ne.s32.totalorder %s1610_s12, 1 }
 0x177   : > { %977 = sbr.rel (%p1449_p7) target bundleno = 410 (0x19a), region = 48 }
 0x17c   : > { %v980_v5 = vld [vmem:[#allocation2 + $0x30] sm:$0xff]  ;;  %v981_v6 = vld [vmem:[#allocation2] sm:$0xff]  ;;  %v982_v50 = vld [vmem:[#allocation2 + $0x58] sm:$0xff] }
 0x17d   : > { %v1965_v8 = vld [vmem:[#allocation5] ss:$0 sm:$0xff]  ;;  %v1967_v9 = vld [vmem:[#allocation5 + $0x1] ss:$0 sm:$0xff]  ;;  %v983_v0 = vld [vmem:[#allocation2 + $0x18] sm:$0xff] }
 0x17e   : > { %v984_v10 = vld [vmem:[#allocation2 + $0x50] sm:$0xff]  ;;  %v998_v11 = vmul.f32 %v1965_v8, %v980_v5  ;;  %v999_v12 = vmul.f32 %v1965_v8, %v981_v6  ;;  %v1000_v7 = vmul.f32 %v1965_v8, %v982_v50  ;;  %v1001_v13 = vmul.f32 %v1965_v8, %v983_v0  ;;  %v985_v15 = vld [vmem:[#allocation2 + $0x68] sm:$0xff]  ;;  %v988_v35 = vld [vmem:[#allocation2 + $0x40] sm:$0xff] }
 0x17f   : > { %v986_v16 = vld [vmem:[#allocation2 + $0x8] sm:$0xff]  ;;  %v1002_v17 = vmul.f32 %v1965_v8, %v984_v10  ;;  %v1003_v18 = vmul.f32 %v1965_v8, %v985_v15  ;;  %v989_v40 = vld [vmem:[#allocation2 + $0x20] sm:$0xff]  ;;  %v990_v41 = vld [vmem:[#allocation2 + $0x10] sm:$0xff]  ;;  %v1006_v49 = vmul.f32 %v1965_v8, %v988_v35 }
 0x180   : > { %v987_v14 = vld [vmem:[#allocation2 + $0x48] sm:$0xff]  ;;  %v1004_v19 = vmul.f32 %v1965_v8, %v986_v16  ;;  %v1016_v21 = vadd.f32 %v1967_v9, %v998_v11  ;;  %v1017_v22 = vadd.f32 %v1967_v9, %v999_v12  ;;  %v1018_v23 = vadd.f32 %v1967_v9, %v1000_v7  ;;  %v991_v42 = vld [vmem:[#allocation2 + $0x38] sm:$0xff]  ;;  %v992_v55 = vld [vmem:[#allocation2 + $0x60] sm:$0xff] }
 0x181   : > { %v1005_v20 = vmul.f32 %v1965_v8, %v987_v14  ;;  %v1019_v24 = vadd.f32 %v1967_v9, %v1001_v13  ;;  %v1020_v25 = vadd.f32 %v1967_v9, %v1002_v17  ;;  %v1021_v26 = vadd.f32 %v1967_v9, %v1003_v18  ;;  %v993_v56 = vld [vmem:[#allocation2 + $0x70] sm:$0xff]  ;;  %v994_v57 = vld [vmem:[#allocation2 + $0x78] sm:$0xff]  ;;  %v995_v5 = vld [vmem:[#allocation2 + $0x28] sm:$0xff] }
 0x182   : > { %v1022_v27 = vadd.f32 %v1967_v9, %v1004_v19  ;;  %vm1032_vm3 = vcmp.ge.f32.partialorder %v1016_v21, 0.0  ;;  %vm1033_vm4 = vcmp.ge.f32.partialorder %v1017_v22, 0.0  ;;  %v1048_v29 = vmul.f32 0.2, %v1016_v21 }
 0x183   : > { %v1023_v28 = vadd.f32 %v1967_v9, %v1005_v20  ;;  %v1049_v30 = vmul.f32 0.2, %v1017_v22  ;;  %vm1034_vm5 = vcmp.ge.f32.partialorder %v1018_v23, 0.0  ;;  %vm1035_vm6 = vcmp.ge.f32.partialorder %v1019_v24, 0.0 }
 0x184   : > { %v1050_v31 = vmul.f32 0.2, %v1018_v23  ;;  %v1051_v32 = vmul.f32 0.2, %v1019_v24  ;;  %v1064_v33 = vsel %vm1032_vm3, %v1016_v21, %v1048_v29  ;;  %vm1036_vm7 = vcmp.ge.f32.partialorder %v1020_v25, 0.0 }
 0x185   : > { %v1065_v34 = vsel %vm1033_vm4, %v1017_v22, %v1049_v30  ;;  %vm1037_vm8 = vcmp.ge.f32.partialorder %v1021_v26, 0.0  ;;  %v1052_v39 = vmul.f32 0.2, %v1020_v25  ;;  %v1053_v44 = vmul.f32 0.2, %v1021_v26 }
 0x186   : > { %v1523_v36 = vpack.c.bf16 %v1065_v34, %v1064_v33  ;;  %v1066_v37 = vsel %vm1034_vm5, %v1018_v23, %v1050_v31  ;;  %v1067_v38 = vsel %vm1035_vm6, %v1019_v24, %v1051_v32  ;;  %vm1038_vm9 = vcmp.ge.f32.partialorder %v1022_v27, 0.0 }
 0x187   : > { %v1528_v43 = vpack.c.bf16 %v1067_v38, %v1066_v37  ;;  %vm1039_vm10 = vcmp.ge.f32.partialorder %v1023_v28, 0.0  ;;  %v1068_v45 = vsel %vm1036_vm7, %v1020_v25, %v1052_v39  ;;  %v1054_v46 = vmul.f32 0.2, %v1022_v27 }
 0x188   : > { %1524 = vst [vmem:[%s2038_s3] sm:$0xff] %v1523_v36   ;;  %v1055_v47 = vmul.f32 0.2, %v1023_v28  ;;  %v1069_v51 = vsel %vm1037_vm8, %v1021_v26, %v1053_v44  ;;  %v1007_v52 = vmul.f32 %v1965_v8, %v989_v40  ;;  %v1008_v53 = vmul.f32 %v1965_v8, %v990_v41 }
 0x189   : > { %1560 = vst [vmem:[%s2038_s3 + $0x8] sm:$0xff] %v1528_v43   ;;  %v1009_v54 = vmul.f32 %v1965_v8, %v991_v42  ;;  %v1533_v58 = vpack.c.bf16 %v1069_v51, %v1068_v45  ;;  %v1070_v59 = vsel %vm1038_vm9, %v1022_v27, %v1054_v46  ;;  %v1024_v61 = vadd.f32 %v1967_v9, %v1006_v49 }
 0x18a   : > { %v1071_v60 = vsel %vm1039_vm10, %v1023_v28, %v1055_v47  ;;  %v1025_v63 = vadd.f32 %v1967_v9, %v1007_v52  ;;  %v1026_v1 = vadd.f32 %v1967_v9, %v1008_v53  ;;  %v1010_v4 = vmul.f32 %v1965_v8, %v992_v55 }
 0x18b   : > { %v1538_v62 = vpack.c.bf16 %v1071_v60, %v1070_v59  ;;  %v1027_v2 = vadd.f32 %v1967_v9, %v1009_v54  ;;  %1561 = vst [vmem:[%s2038_s3 + $0x10] sm:$0xff] %v1533_v58   ;;  %vm1040_vm11 = vcmp.ge.f32.partialorder %v1024_v61, 0.0  ;;  %v1056_v3 = vmul.f32 0.2, %v1024_v61 }
 0x18c   : > { %v1011_v48 = vmul.f32 %v1965_v8, %v993_v56  ;;  %vm1041_vm12 = vcmp.ge.f32.partialorder %v1025_v63, 0.0  ;;  %v1057_v6 = vmul.f32 0.2, %v1025_v63  ;;  %vm1042_vm13 = vcmp.ge.f32.partialorder %v1026_v1, 0.0 }
 0x18d   : > { %1562 = vst [vmem:[%s2038_s3 + $0x18] sm:$0xff] %v1538_v62   ;;  %vm1043_vm14 = vcmp.ge.f32.partialorder %v1027_v2, 0.0  ;;  %v1072_v50 = vsel %vm1040_vm11, %v1024_v61, %v1056_v3  ;;  %v1058_v0 = vmul.f32 0.2, %v1026_v1  ;;  %v1059_v10 = vmul.f32 0.2, %v1027_v2 }
 0x18e   : > { %v1028_v11 = vadd.f32 %v1967_v9, %v1010_v4  ;;  %v1073_v12 = vsel %vm1041_vm12, %v1025_v63, %v1057_v6  ;;  %v1029_v7 = vadd.f32 %v1967_v9, %v1011_v48  ;;  %v1012_v13 = vmul.f32 %v1965_v8, %v994_v57 }
 0x18f   : > { %v1013_v15 = vmul.f32 %v1965_v8, %v995_v5  ;;  %v1543_v16 = vpack.c.bf16 %v1073_v12, %v1072_v50  ;;  %v1074_v14 = vsel %vm1042_vm13, %v1026_v1, %v1058_v0  ;;  %v1075_v17 = vsel %vm1043_vm14, %v1027_v2, %v1059_v10 }
 0x190   : > { %vm1044_vm15 = vcmp.ge.f32.partialorder %v1028_v11, 0.0  ;;  %v1548_v18 = vpack.c.bf16 %v1075_v17, %v1074_v14  ;;  %vm1045_vm0 = vcmp.ge.f32.partialorder %v1029_v7, 0.0  ;;  %v1060_v19 = vmul.f32 0.2, %v1028_v11 }
 0x191   : > { %v1061_v20 = vmul.f32 0.2, %v1029_v7  ;;  %1563 = vst [vmem:[%s2038_s3 + $0x20] sm:$0xff] %v1543_v16   ;;  %v1030_v21 = vadd.f32 %v1967_v9, %v1012_v13  ;;  %v1031_v22 = vadd.f32 %v1967_v9, %v1013_v15 }
 0x192   : > { %1564 = vst [vmem:[%s2038_s3 + $0x28] sm:$0xff] %v1548_v18   ;;  %v1076_v8 = vsel %vm1044_vm15, %v1028_v11, %v1060_v19 }
 0x193   : > { %v1077_v23 = vsel %vm1045_vm0, %v1029_v7, %v1061_v20  ;;  %vm1046_vm1 = vcmp.ge.f32.partialorder %v1030_v21, 0.0  ;;  %vm1047_vm2 = vcmp.ge.f32.partialorder %v1031_v22, 0.0  ;;  %v1062_v25 = vmul.f32 0.2, %v1030_v21 }
 0x194   : > { %v1553_v24 = vpack.c.bf16 %v1077_v23, %v1076_v8  ;;  %v1063_v26 = vmul.f32 0.2, %v1031_v22 }
 0x195   : > { %v1078_v27 = vsel %vm1046_vm1, %v1030_v21, %v1062_v25 }
 0x196   : > { %1565 = vst [vmem:[%s2038_s3 + $0x30] sm:$0xff] %v1553_v24   ;;  %v1079_v28 = vsel %vm1047_vm2, %v1031_v22, %v1063_v26 }
 0x197   : > { %v1558_v29 = vpack.c.bf16 %v1079_v28, %v1078_v27 }
 0x199   : > { %1566 = vst [vmem:[%s2038_s3 + $0x38] sm:$0xff] %v1558_v29  }
 0x19a PF: > { %s13_s14 = sadd.s32 1, %s1618_s14   ;;  %s2039_s12 = smov %s1614_s13 }
 0x19b   : > { %p10_p8 = scmp.ge.s32.totalorder %s13_s14, 4   ;;  %s2040_s13 = smov %s2042_s15 }
 0x19d   :  { %12 = sbr.rel (!%p10_p8) target bundleno = 2 (0x2), region = 80 }

// kernel: conv_layers_forward.7
= control target key start
LH: loop header
LB: loop body
LE: loop exit
PB: predicated region body
PF: predicated region fallthrough
CT: control target
= control target key end

     0   :  { %8 = vsyncpa [#allocation7], 0  ;;  %s2043_s0 = inlined_call_operand.vmem [shape: bf16[32,1024], index: 0, kind: input, shape index: {}]   ;;  %s2044_s1 = inlined_call_operand.vmem [shape: bf16[1024,128], index: 1, kind: input, shape index: {}]   ;;  %s2045_s2 = inlined_call_operand.vmem [shape: f32[2,128], index: 2, kind: input, shape index: {}]   ;;  %s2046_s3 = inlined_call_operand.hbm [shape: f32[32,128], index: 3, kind: output, shape index: {}]  }
   0x1   :  { %10 = vsyncpa [#allocation7 + $0x1], 0  ;;  %s1706_s12 = smov 0   ;;  %s1708_s13 = smov 0  }
   0x2   :  { %s1710_s14 = smov 0  }
   0x3 LB: > { %s1167_s15 = sadd.s32 4294967295, %s1680_s14   ;;  %s1168_s16 = sadd.s32 4294967294, %s1680_s14   ;;  %s1680_s14 = sphi %s1710_s14, %s16_s14   ;;  %s1676_s13 = sphi %s1708_s13, %s2048_s13   ;;  %s1672_s12 = sphi %s1706_s12, %s2047_s12  }
   0x4   : > { %s28_s17 = sadd.s32 1, %s1676_s13  ;;  %p1172_p0 = scmp.ge.s32.totalorder %s1680_s14, 1 }
   0x5   : > { %p30_p1 = scmp.ge.s32.totalorder %s28_s17, 2  ;;  %p164_p2 = scmp.lt.s32.totalorder %s1680_s14, 3 }
   0x7   : > { %s2050_s17 = smov (%p30_p1, %s28_s17), 0  ;;  %p165_p3 = pnand %p1172_p0, %p164_p2 }
   0x8   : > { %p204_p4 = scmp.eq.s32.totalorder (!%p165_p3), %s1672_s12, 0 }
   0x9   : > { %168 = sbr.rel (%p165_p3) target bundleno = 334 (0x14e), region = 32 }
   0xe   : > { %209 = sbr.rel (!%p204_p4) target bundleno = 19 (0x13), region = 36  ;;  %v1682_v0 = vmov (%p204_p4), 0.0  }
   0xf   : > { %210 = vst [vmem:[#allocation3] sm:$0x1] (%p204_p4), %v1682_v0 }
  0x10   : > { %211 = vst [vmem:[#allocation4] sm:$0x1] (%p204_p4), %v1682_v0 }
  0x13 PF: > { %p1174_p5 = scmp.ne.s32.totalorder %s1672_s12, 0 }
  0x15   : > { %214 = sbr.rel (%p1174_p5) target bundleno = 271 (0x10f), region = 40 }
  0x1a   : > { %v1525_v1 = vld [vmem:[%s2044_s1 + $0x38] sm:$0xff]  ;;  %v1524_v5 = vld [vmem:[%s2044_s1 + $0x30] sm:$0xff]  ;;  %v1523_v9 = vld [vmem:[%s2044_s1 + $0x28] sm:$0xff] }
  0x1b   : > { %v1533_v2 = vld [vmem:[%s2044_s1 + $0x78] sm:$0xff]  ;;  %823 = vmatpush.bf16.msra.mxu0 %v1525_v1  ;;  %v1532_v6 = vld [vmem:[%s2044_s1 + $0x70] sm:$0xff]  ;;  %v1531_v10 = vld [vmem:[%s2044_s1 + $0x68] sm:$0xff] }
  0x1c   : > { %v1541_v3 = vld [vmem:[%s2044_s1 + $0xb8] sm:$0xff]  ;;  %842 = vmatpush.bf16.msra.mxu1 %v1533_v2  ;;  %v1540_v7 = vld [vmem:[%s2044_s1 + $0xb0] sm:$0xff]  ;;  %v1539_v11 = vld [vmem:[%s2044_s1 + $0xa8] sm:$0xff] }
  0x1d   : > { %v1549_v4 = vld [vmem:[%s2044_s1 + $0xf8] sm:$0xff]  ;;  %861 = vmatpush.bf16.msra.mxu2 %v1541_v3  ;;  %v1548_v8 = vld [vmem:[%s2044_s1 + $0xf0] sm:$0xff]  ;;  %v1547_v12 = vld [vmem:[%s2044_s1 + $0xe8] sm:$0xff] }
  0x1e   : > { %880 = vmatpush.bf16.msra.mxu3 %v1549_v4  ;;  %v1522_v13 = vld [vmem:[%s2044_s1 + $0x20] sm:$0xff]  ;;  %v1521_v17 = vld [vmem:[%s2044_s1 + $0x18] sm:$0xff]  ;;  %v1520_v21 = vld [vmem:[%s2044_s1 + $0x10] sm:$0xff] }
  0x1f   : > { %824 = vmatpush.bf16.msra.mxu0 %v1524_v5  ;;  %v1530_v14 = vld [vmem:[%s2044_s1 + $0x60] sm:$0xff]  ;;  %v1529_v18 = vld [vmem:[%s2044_s1 + $0x58] sm:$0xff]  ;;  %v1528_v22 = vld [vmem:[%s2044_s1 + $0x50] sm:$0xff] }
  0x20   : > { %843 = vmatpush.bf16.msra.mxu1 %v1532_v6  ;;  %v1538_v15 = vld [vmem:[%s2044_s1 + $0xa0] sm:$0xff]  ;;  %v1537_v19 = vld [vmem:[%s2044_s1 + $0x98] sm:$0xff]  ;;  %v1536_v23 = vld [vmem:[%s2044_s1 + $0x90] sm:$0xff] }
  0x21   : > { %862 = vmatpush.bf16.msra.mxu2 %v1540_v7  ;;  %v1546_v16 = vld [vmem:[%s2044_s1 + $0xe0] sm:$0xff]  ;;  %v1545_v20 = vld [vmem:[%s2044_s1 + $0xd8] sm:$0xff]  ;;  %v1544_v24 = vld [vmem:[%s2044_s1 + $0xd0] sm:$0xff] }
  0x22   : > { %881 = vmatpush.bf16.msra.mxu3 %v1548_v8  ;;  %v1519_v25 = vld [vmem:[%s2044_s1 + $0x8] sm:$0xff]  ;;  %v1518_v29 = vld [vmem:[%s2044_s1] sm:$0xff]  ;;  %v1573_v41 = vld [vmem:[%s2044_s1 + $0x1b8] sm:$0xff] }
  0x23   : > { %825 = vmatpush.bf16.msra.mxu0 %v1523_v9  ;;  %v1527_v26 = vld [vmem:[%s2044_s1 + $0x48] sm:$0xff]  ;;  %v1526_v30 = vld [vmem:[%s2044_s1 + $0x40] sm:$0xff]  ;;  %v1557_v42 = vld [vmem:[%s2044_s1 + $0x138] sm:$0xff] }
  0x24   : > { %844 = vmatpush.bf16.msra.mxu1 %v1531_v10  ;;  %v1535_v27 = vld [vmem:[%s2044_s1 + $0x88] sm:$0xff]  ;;  %v1534_v31 = vld [vmem:[%s2044_s1 + $0x80] sm:$0xff]  ;;  %v1565_v47 = vld [vmem:[%s2044_s1 + $0x178] sm:$0xff] }
  0x25   : > { %863 = vmatpush.bf16.msra.mxu2 %v1539_v11  ;;  %v1543_v28 = vld [vmem:[%s2044_s1 + $0xc8] sm:$0xff]  ;;  %v1542_v32 = vld [vmem:[%s2044_s1 + $0xc0] sm:$0xff]  ;;  %v1581_v48 = vld [vmem:[%s2044_s1 + $0x1f8] sm:$0xff] }
  0x26   : > { %882 = vmatpush.bf16.msra.mxu3 %v1547_v12  ;;  %v1177_v33 = vld [vmem:[%s2043_s0] sm:$0xf]  ;;  %v1502_v35 = vld [vmem:[%s2043_s0 + $0x4] sm:$0xf]  ;;  %v1185_v37 = vld [vmem:[%s2043_s0 + $0x8] sm:$0xf] }
  0x27   : > { %826 = vmatpush.bf16.msra.mxu0 %v1522_v13  ;;  %v1506_v34 = vld [vmem:[%s2043_s0 + $0x1c] sm:$0xf0]  ;;  %v1179_v36 = vld [vmem:[%s2043_s0 + $0x20] sm:$0xf0]  ;;  %v1507_v38 = vld [vmem:[%s2043_s0 + $0x24] sm:$0xf0] }
  0x28   : > { %845 = vmatpush.bf16.msra.mxu1 %v1530_v14  ;;  %v1503_v39 = vld [vmem:[%s2043_s0 + $0xc] sm:$0xf]  ;;  %v1178_v43 = vor.u32 %v1506_v34, %v1177_v33  ;;  %v1182_v44 = vor.u32 %v1502_v35, %v1179_v36  ;;  %v1186_v45 = vor.u32 %v1507_v38, %v1185_v37  ;;  %v1572_v49 = vld [vmem:[%s2044_s1 + $0x1b0] sm:$0xff]  ;;  %v1570_v57 = vld [vmem:[%s2044_s1 + $0x1a0] sm:$0xff] }
  0x29   : > { %864 = vmatpush.bf16.msra.mxu2 %v1538_v15  ;;  %v1187_v40 = vld [vmem:[%s2043_s0 + $0x28] sm:$0xf0]  ;;  %v1556_v50 = vld [vmem:[%s2044_s1 + $0x130] sm:$0xff]  ;;  %v1554_v58 = vld [vmem:[%s2044_s1 + $0x120] sm:$0xff] }
  0x2a   : > { %883 = vmatpush.bf16.msra.mxu3 %v1546_v16  ;;  %v1190_v46 = vor.u32 %v1503_v39, %v1187_v40  ;;  %v1564_v51 = vld [vmem:[%s2044_s1 + $0x170] sm:$0xff]  ;;  %v1571_v53 = vld [vmem:[%s2044_s1 + $0x1a8] sm:$0xff]  ;;  %v1562_v59 = vld [vmem:[%s2044_s1 + $0x160] sm:$0xff] }
  0x2b   : > { %827 = vmatpush.bf16.msra.mxu0 %v1521_v17  ;;  %v1580_v52 = vld [vmem:[%s2044_s1 + $0x1f0] sm:$0xff]  ;;  %v1555_v54 = vld [vmem:[%s2044_s1 + $0x128] sm:$0xff]  ;;  %v1578_v60 = vld [vmem:[%s2044_s1 + $0x1e0] sm:$0xff] }
  0x2c   : > { %846 = vmatpush.bf16.msra.mxu1 %v1529_v18  ;;  %v1563_v55 = vld [vmem:[%s2044_s1 + $0x168] sm:$0xff]  ;;  %v1209_v61 = vld [vmem:[%s2043_s0 + $0x40] sm:$0xf]  ;;  %v1510_v63 = vld [vmem:[%s2043_s0 + $0x44] sm:$0xf] }
  0x2d   : > { %865 = vmatpush.bf16.msra.mxu2 %v1537_v19  ;;  %v1579_v56 = vld [vmem:[%s2044_s1 + $0x1e8] sm:$0xff]  ;;  %v1514_v62 = vld [vmem:[%s2043_s0 + $0x5c] sm:$0xf0]  ;;  %v1211_v0 = vld [vmem:[%s2043_s0 + $0x60] sm:$0xf0] }
  0x2e   : > { %884 = vmatpush.bf16.msra.mxu3 %v1545_v20  ;;  %v1217_v1 = vld [vmem:[%s2043_s0 + $0x48] sm:$0xf]  ;;  %v1511_v3 = vld [vmem:[%s2043_s0 + $0x4c] sm:$0xf]  ;;  %v1569_v5 = vld [vmem:[%s2044_s1 + $0x198] sm:$0xff]  ;;  %v1210_v7 = vor.u32 %v1514_v62, %v1209_v61  ;;  %v1214_v8 = vor.u32 %v1510_v63, %v1211_v0 }
  0x2f   : > { %828 = vmatpush.bf16.msra.mxu0 %v1520_v21  ;;  %v1515_v2 = vld [vmem:[%s2043_s0 + $0x64] sm:$0xf0]  ;;  %v1219_v4 = vld [vmem:[%s2043_s0 + $0x68] sm:$0xf0]  ;;  %v1553_v6 = vld [vmem:[%s2044_s1 + $0x118] sm:$0xff] }
  0x30   : > { %847 = vmatpush.bf16.msra.mxu1 %v1528_v22  ;;  %v1218_v9 = vor.u32 %v1515_v2, %v1217_v1  ;;  %v1222_v10 = vor.u32 %v1511_v3, %v1219_v4  ;;  %v1561_v11 = vld [vmem:[%s2044_s1 + $0x158] sm:$0xff]  ;;  %v1568_v13 = vld [vmem:[%s2044_s1 + $0x190] sm:$0xff]  ;;  %v1567_v17 = vld [vmem:[%s2044_s1 + $0x188] sm:$0xff] }
  0x31   : > { %866 = vmatpush.bf16.msra.mxu2 %v1536_v23  ;;  %v1577_v12 = vld [vmem:[%s2044_s1 + $0x1d8] sm:$0xff]  ;;  %v1552_v14 = vld [vmem:[%s2044_s1 + $0x110] sm:$0xff]  ;;  %v1551_v18 = vld [vmem:[%s2044_s1 + $0x108] sm:$0xff] }
  0x32   : > { %885 = vmatpush.bf16.msra.mxu3 %v1544_v24  ;;  %v1560_v15 = vld [vmem:[%s2044_s1 + $0x150] sm:$0xff]  ;;  %v1559_v19 = vld [vmem:[%s2044_s1 + $0x148] sm:$0xff]  ;;  %v1566_v21 = vld [vmem:[%s2044_s1 + $0x180] sm:$0xff] }
  0x33   : > { %829 = vmatpush.bf16.msra.mxu0 %v1519_v25  ;;  %v1576_v16 = vld [vmem:[%s2044_s1 + $0x1d0] sm:$0xff]  ;;  %v1575_v20 = vld [vmem:[%s2044_s1 + $0x1c8] sm:$0xff]  ;;  %v1550_v22 = vld [vmem:[%s2044_s1 + $0x100] sm:$0xff] }
  0x34   : > { %848 = vmatpush.bf16.msra.mxu1 %v1527_v26  ;;  %v1558_v23 = vld [vmem:[%s2044_s1 + $0x140] sm:$0xff]  ;;  %v1193_v25 = vld [vmem:[%s2043_s0 + $0x10] sm:$0xf]  ;;  %v1512_v39 = vld [vmem:[%s2043_s0 + $0x54] sm:$0xf] }
  0x35   : > { %867 = vmatpush.bf16.msra.mxu2 %v1535_v27  ;;  %v1574_v24 = vld [vmem:[%s2044_s1 + $0x1c0] sm:$0xff]  ;;  %v1508_v26 = vld [vmem:[%s2043_s0 + $0x2c] sm:$0xf0]  ;;  %v1504_v27 = vld [vmem:[%s2043_s0 + $0x14] sm:$0xf] }
  0x36   : > { %886 = vmatpush.bf16.msra.mxu3 %v1543_v28  ;;  %v1195_v28 = vld [vmem:[%s2043_s0 + $0x30] sm:$0xf0]  ;;  %v1194_v33 = vor.u32 %v1508_v26, %v1193_v25  ;;  %v1225_v37 = vld [vmem:[%s2043_s0 + $0x50] sm:$0xf] }
  0x37   : > { %830 = vmatpush.bf16.msra.mxu0 %v1518_v29  ;;  %v1201_v29 = vld [vmem:[%s2043_s0 + $0x18] sm:$0xf]  ;;  %v1198_v34 = vor.u32 %v1504_v27, %v1195_v28  ;;  %v1516_v38 = vld [vmem:[%s2043_s0 + $0x6c] sm:$0xf0]  ;;  %v1227_v40 = vld [vmem:[%s2043_s0 + $0x70] sm:$0xf0] }
  0x38   : > { %849 = vmatpush.bf16.msra.mxu1 %v1526_v30  ;;  %v1509_v30 = vld [vmem:[%s2043_s0 + $0x34] sm:$0xf0] }
  0x39   : > { %868 = vmatpush.bf16.msra.mxu2 %v1534_v31  ;;  %v1505_v31 = vld [vmem:[%s2043_s0 + $0x1c] sm:$0xf]  ;;  %v1202_v35 = vor.u32 %v1509_v30, %v1201_v29 }
  0x3a   : > { %887 = vmatpush.bf16.msra.mxu3 %v1542_v32  ;;  %831 = vmatmul.bf16.vlgmr.msra.gmra.mxu0 %v1178_v43  ;;  %v1203_v32 = vld [vmem:[%s2043_s0 + $0x38] sm:$0xf0] }
  0x3b   : > { %899 = vmatpush.bf16.msrb.mxu0 %v1557_v42  ;;  %850 = vmatmul.bf16.vlgmr.msra.gmra.mxu1 %v1182_v44  ;;  %v1206_v36 = vor.u32 %v1505_v31, %v1203_v32  ;;  %v1517_v42 = vld [vmem:[%s2043_s0 + $0x74] sm:$0xf0]  ;;  %v1513_v43 = vld [vmem:[%s2043_s0 + $0x5c] sm:$0xf] }
  0x3c   : > { %869 = vmatmul.bf16.vlgmr.msra.gmra.mxu2 %v1186_v45  ;;  %918 = vmatpush.bf16.msrb.mxu1 %v1565_v47  ;;  %v1235_v44 = vld [vmem:[%s2043_s0 + $0x78] sm:$0xf0]  ;;  %v1226_v45 = vor.u32 %v1516_v38, %v1225_v37 }
  0x3d   : > { %937 = vmatpush.bf16.msrb.mxu2 %v1573_v41  ;;  %888 = vmatmul.bf16.vlgmr.msra.gmra.mxu3 %v1190_v46  ;;  %v1233_v41 = vld [vmem:[%s2043_s0 + $0x58] sm:$0xf]  ;;  %v1230_v46 = vor.u32 %v1512_v39, %v1227_v40 }
  0x3e   : > { %956 = vmatpush.bf16.msrb.mxu3 %v1581_v48  ;;  %v1234_v47 = vor.u32 %v1517_v42, %v1233_v41  ;;  %v1238_v48 = vor.u32 %v1513_v43, %v1235_v44 }
  0x3f   : > { %900 = vmatpush.bf16.msrb.mxu0 %v1556_v50 }
  0x40   : > { %919 = vmatpush.bf16.msrb.mxu1 %v1564_v51 }
  0x41   : > { %938 = vmatpush.bf16.msrb.mxu2 %v1572_v49 }
  0x42   : > { %957 = vmatpush.bf16.msrb.mxu3 %v1580_v52 }
  0x43   : > { %901 = vmatpush.bf16.msrb.mxu0 %v1555_v54 }
  0x44   : > { %920 = vmatpush.bf16.msrb.mxu1 %v1563_v55 }
  0x45   : > { %939 = vmatpush.bf16.msrb.mxu2 %v1571_v53 }
  0x46   : > { %958 = vmatpush.bf16.msrb.mxu3 %v1579_v56 }
  0x47   : > { %902 = vmatpush.bf16.msrb.mxu0 %v1554_v58 }
  0x48   : > { %921 = vmatpush.bf16.msrb.mxu1 %v1562_v59 }
  0x49   : > { %940 = vmatpush.bf16.msrb.mxu2 %v1570_v57 }
  0x4a   : > { %959 = vmatpush.bf16.msrb.mxu3 %v1578_v60  ;;  %836 = vmatmul.bf16.gmra.mxu0 %v1210_v7 }
  0x4b   : > { %903 = vmatpush.bf16.msrb.mxu0 %v1553_v6  ;;  %855 = vmatmul.bf16.gmra.mxu1 %v1214_v8 }
  0x4c   : > { %874 = vmatmul.bf16.gmra.mxu2 %v1218_v9  ;;  %922 = vmatpush.bf16.msrb.mxu1 %v1561_v11 }
  0x4d   : > { %941 = vmatpush.bf16.msrb.mxu2 %v1569_v5  ;;  %893 = vmatmul.bf16.gmra.mxu3 %v1222_v10 }
  0x4e   : > { %960 = vmatpush.bf16.msrb.mxu3 %v1577_v12 }
  0x4f   : > { %904 = vmatpush.bf16.msrb.mxu0 %v1552_v14 }
  0x50   : > { %923 = vmatpush.bf16.msrb.mxu1 %v1560_v15 }
  0x51   : > { %942 = vmatpush.bf16.msrb.mxu2 %v1568_v13 }
  0x52   : > { %961 = vmatpush.bf16.msrb.mxu3 %v1576_v16 }
  0x53   : > { %905 = vmatpush.bf16.msrb.mxu0 %v1551_v18 }
  0x54   : > { %924 = vmatpush.bf16.msrb.mxu1 %v1559_v19 }
  0x55   : > { %943 = vmatpush.bf16.msrb.mxu2 %v1567_v17 }
  0x56   : > { %962 = vmatpush.bf16.msrb.mxu3 %v1575_v20 }
  0x57   : > { %906 = vmatpush.bf16.msrb.mxu0 %v1550_v22 }
  0x58   : > { %925 = vmatpush.bf16.msrb.mxu1 %v1558_v23 }
  0x59   : > { %944 = vmatpush.bf16.msrb.mxu2 %v1566_v21 }
  0x5a   : > { %963 = vmatpush.bf16.msrb.mxu3 %v1574_v24  ;;  %907 = vmatmul.bf16.vlgmr.msrb.gmra.mxu0 %v1194_v33 }
  0x5b   : > { %926 = vmatmul.bf16.vlgmr.msrb.gmra.mxu1 %v1198_v34 }
  0x5c   : > { %945 = vmatmul.bf16.vlgmr.msrb.gmra.mxu2 %v1202_v35 }
  0x5d   : > { %964 = vmatmul.bf16.vlgmr.msrb.gmra.mxu3 %v1206_v36 }
  0x6a   : > { %912 = vmatmul.bf16.gmra.mxu0 %v1226_v45 }
  0x6b   : > { %931 = vmatmul.bf16.gmra.mxu1 %v1230_v46 }
  0x6c   : > { %950 = vmatmul.bf16.gmra.mxu2 %v1234_v47 }
  0x6d   : > { %969 = vmatmul.bf16.gmra.mxu3 %v1238_v48 }
  0xb7   : > { %v832_v49 = vpop.f32.mrf.mxu0 }
  0xb8   : > { %v851_v50 = vpop.f32.mrf.mxu1 }
  0xb9   : > { %v852_v63 = vadd.f32 %v851_v50, %v832_v49 }
  0xbf   : > { %v870_v51 = vpop.f32.mrf.mxu2  ;;  %v834_v53 = vpop.f32.mrf.mxu0 }
  0xc0   : > { %v889_v52 = vpop.f32.mrf.mxu3  ;;  %v853_v54 = vpop.f32.mrf.mxu1  ;;  %v871_v0 = vadd.f32 %v870_v51, %v852_v63 }
  0xc1   : > { %v854_v6 = vadd.f32 %v853_v54, %v834_v53 }
  0xc2   : > { %v890_v3 = vadd.f32 %v889_v52, %v871_v0  ;;  %v981_v0 = vld [vmem:[#allocation3] sm:$0x1] }
  0xc7   : > { %v872_v55 = vpop.f32.mrf.mxu2  ;;  %v837_v57 = vpop.f32.mrf.mxu0 }
  0xc8   : > { %v891_v56 = vpop.f32.mrf.mxu3  ;;  %v856_v58 = vpop.f32.mrf.mxu1  ;;  %v873_v8 = vadd.f32 %v872_v55, %v854_v6 }
  0xc9   : > { %v857_v16 = vadd.f32 %v856_v58, %v837_v57 }
  0xca   : > { %v892_v11 = vadd.f32 %v891_v56, %v873_v8 }
  0xcf   : > { %v875_v59 = vpop.f32.mrf.mxu2  ;;  %v839_v61 = vpop.f32.mrf.mxu0 }
  0xd0   : > { %v894_v60 = vpop.f32.mrf.mxu3  ;;  %v858_v62 = vpop.f32.mrf.mxu1  ;;  %v876_v19 = vadd.f32 %v875_v59, %v857_v16 }
  0xd1   : > { %v859_v26 = vadd.f32 %v858_v62, %v839_v61 }
  0xd2   : > { %v895_v22 = vadd.f32 %v894_v60, %v876_v19 }
  0xd7   : > { %v877_v1 = vpop.f32.mrf.mxu2  ;;  %v908_v4 = vpop.f32.mrf.mxu0 }
  0xd8   : > { %v896_v2 = vpop.f32.mrf.mxu3  ;;  %v927_v5 = vpop.f32.mrf.mxu1  ;;  %v909_v7 = vadd.f32 %v908_v4, %v890_v3  ;;  %v878_v30 = vadd.f32 %v877_v1, %v859_v26  ;;  %v993_v3 = vld [vmem:[#allocation4] sm:$0x1] }
  0xda   : > { %v928_v9 = vadd.f32 %v927_v5, %v909_v7  ;;  %v897_v33 = vadd.f32 %v896_v2, %v878_v30 }
  0xdf   : > { %v946_v10 = vpop.f32.mrf.mxu2  ;;  %v910_v14 = vpop.f32.mrf.mxu0 }
  0xe0   : > { %v947_v12 = vadd.f32 %v946_v10, %v928_v9  ;;  %v965_v13 = vpop.f32.mrf.mxu3  ;;  %v929_v15 = vpop.f32.mrf.mxu1  ;;  %v911_v18 = vadd.f32 %v910_v14, %v892_v11 }
  0xe2   : > { %v966_v17 = vadd.f32 %v965_v13, %v947_v12  ;;  %v930_v20 = vadd.f32 %v929_v15, %v911_v18 }
  0xe4   : > { %977 = vst [vmem:[#allocation2 + $0x10] sm:$0xff] %v966_v17  ;;  %v994_v43 = vmul.f32 %v966_v17, %v966_v17 }
  0xe7   : > { %v948_v21 = vpop.f32.mrf.mxu2  ;;  %v913_v25 = vpop.f32.mrf.mxu0 }
  0xe8   : > { %v949_v23 = vadd.f32 %v948_v21, %v930_v20  ;;  %v967_v24 = vpop.f32.mrf.mxu3  ;;  %v914_v28 = vadd.f32 %v913_v25, %v895_v22  ;;  %v932_v29 = vpop.f32.mrf.mxu1 }
  0xea   : > { %v968_v27 = vadd.f32 %v967_v24, %v949_v23  ;;  %v933_v31 = vadd.f32 %v932_v29, %v914_v28 }
  0xec   : > { %978 = vst [vmem:[#allocation2] sm:$0xff] %v968_v27  ;;  %v995_v40 = vmul.f32 %v968_v27, %v968_v27  ;;  %v982_v44 = vadd.f32 %v968_v27, %v966_v17 }
  0xee   : > { %v998_v48 = vadd.f32 %v995_v40, %v994_v43 }
  0xef   : > { %v951_v32 = vpop.f32.mrf.mxu2  ;;  %v915_v36 = vpop.f32.mrf.mxu0 }
  0xf0   : > { %v952_v34 = vadd.f32 %v951_v32, %v933_v31  ;;  %v970_v35 = vpop.f32.mrf.mxu3  ;;  %v916_v38 = vadd.f32 %v915_v36, %v897_v33  ;;  %v934_v39 = vpop.f32.mrf.mxu1 }
  0xf2   : > { %v971_v37 = vadd.f32 %v970_v35, %v952_v34  ;;  %v935_v41 = vadd.f32 %v934_v39, %v916_v38 }
  0xf4   : > { %979 = vst [vmem:[#allocation2 + $0x18] sm:$0xff] %v971_v37  ;;  %v996_v45 = vmul.f32 %v971_v37, %v971_v37  ;;  %v983_v49 = vadd.f32 %v982_v44, %v971_v37 }
  0xf6   : > { %v999_v51 = vadd.f32 %v998_v48, %v996_v45 }
  0xf7   : > { %v953_v42 = vpop.f32.mrf.mxu2 }
  0xf8   : > { %v954_v46 = vadd.f32 %v953_v42, %v935_v41  ;;  %v972_v47 = vpop.f32.mrf.mxu3 }
  0xfa   : > { %v973_v50 = vadd.f32 %v972_v47, %v954_v46 }
  0xfc   : > { %980 = vst [vmem:[#allocation2 + $0x8] sm:$0xff] %v973_v50  ;;  %v984_v52 = vadd.f32 %v983_v49, %v973_v50  ;;  %v997_v53 = vmul.f32 %v973_v50, %v973_v50 }
  0xfe   : > { %v985_v54 = vrot.slane %v984_v52, 4  ;;  %v1000_v55 = vadd.f32 %v999_v51, %v997_v53 }
 0x100   : > { %v986_v56 = vadd.f32 %v985_v54, %v984_v52  ;;  %v1001_v57 = vrot.slane %v1000_v55, 4 }
 0x102   : > { %v987_v58 = vrot.slane %v986_v56, 2  ;;  %v1002_v59 = vadd.f32 %v1001_v57, %v1000_v55 }
 0x104   : > { %v988_v60 = vadd.f32 %v987_v58, %v986_v56  ;;  %v1003_v61 = vrot.slane %v1002_v59, 2 }
 0x106   : > { %v989_v62 = vrot.slane %v988_v60, 1  ;;  %v1004_v63 = vadd.f32 %v1003_v61, %v1002_v59 }
 0x108   : > { %v990_v1 = vadd.f32 %v989_v62, %v988_v60  ;;  %v1005_v2 = vrot.slane %v1004_v63, 1 }
 0x10a   : > { %v991_v4 = vadd.f32 %v990_v1, %v981_v0  ;;  %v1006_v5 = vadd.f32 %v1005_v2, %v1004_v63 }
 0x10c   : > { %992 = vst [vmem:[#allocation3] sm:$0x1] %v991_v4  ;;  %v1007_v6 = vadd.f32 %v1006_v5, %v993_v3 }
 0x10e   : > { %1008 = vst [vmem:[#allocation4] sm:$0x1] %v1007_v6 }
 0x10f PF: > { %p1009_p6 = scmp.eq.s32.totalorder %s1672_s12, 1 }
 0x110   : > { %v1021_v20 = vld [vmem:[%s2045_s2] sm:$0x1] (%p1009_p6)  ;;  %v1035_v24 = vld [vmem:[%s2045_s2 + $0x1] sm:$0x1] (%p1009_p6) }
 0x111   : > { %1013 = sbr.rel (!%p1009_p6) target bundleno = 311 (0x137), region = 44 }
 0x113   : > { %v1014_v7 = vld [vmem:[#allocation3] sm:$0x1] (%p1009_p6) }
 0x114   : > { %v1015_v9 = vmul.f32 (%p1009_p6), 0.03125, %v1014_v7 }
 0x115   : > { %v1016_v8 = vld [vmem:[#allocation4] sm:$0x1] (%p1009_p6) }
 0x116   : > { %v1017_v10 = vmul.f32 0.03125, %v1016_v8  ;;  %v1018_v11 = vmul.f32 %v1015_v9, %v1015_v9 }
 0x118   : > { %v1019_v12 = vsub.f32 %v1017_v10, %v1018_v11 }
 0x11a   : > { %v1020_v13 = vmax.f32 %v1019_v12, 0.0 }
 0x11c   : > { %v1022_v14 = vadd.f32 1e-05, %v1020_v13 }
 0x11e   : > { %1622 = vrsqrt.f32 %v1022_v14  ;;  %vm1029_vm0 = vweird.f32 %v1022_v14 }
 0x124   : > { %v1623_v15 = vpop.eup %1622 }
 0x125   : > { %v1024_v16 = vmul.f32 %v1623_v15, %v1022_v14  ;;  %vm1030_vm1 = vweird.f32 %v1623_v15 }
 0x126   : > { %vm1031_vm2 = vmor %vm1029_vm0, %vm1030_vm1 }
 0x127   : > { %v1025_v17 = vmul.f32 %v1623_v15, %v1024_v16 }
 0x129   : > { %v1026_v18 = vmul.f32 0.5, %v1025_v17 }
 0x12b   : > { %v1027_v19 = vsub.f32 1.5, %v1026_v18 }
 0x12d   : > { %v1028_v21 = vmul.f32 %v1623_v15, %v1027_v19 }
 0x12f   : > { %v1032_v22 = vsel %vm1031_vm2, %v1623_v15, %v1028_v21 }
 0x130   : > { %v1033_v23 = vmul.f32 %v1032_v22, %v1021_v20 }
 0x132   : > { %1034 = vst [vmem:[#allocation5] sm:$0x1] %v1033_v23  ;;  %v1036_v25 = vmul.f32 %v1033_v23, %v1015_v9 }
 0x134   : > { %v1037_v26 = vsub.f32 %v1035_v24, %v1036_v25 }
 0x136   : > { %1038 = vst [vmem:[#allocation5 + $0x1] sm:$0x1] %v1037_v26 }
 0x137 PF: > { %p1496_p7 = scmp.ne.s32.totalorder %s1672_s12, 1 }
 0x139   : > { %1041 = sbr.rel (%p1496_p7) target bundleno = 330 (0x14a), region = 48 }
 0x13e   : > { %v1044_v27 = vld [vmem:[#allocation2 + $0x10] sm:$0xff]  ;;  %v1624_v28 = vld [vmem:[#allocation5] ss:$0 sm:$0xff]  ;;  %v1625_v29 = vld [vmem:[#allocation5 + $0x1] ss:$0 sm:$0xff] }
 0x13f   : > { %v1045_v30 = vld [vmem:[#allocation2] sm:$0xff]  ;;  %v1050_v31 = vmul.f32 %v1624_v28, %v1044_v27  ;;  %v1046_v33 = vld [vmem:[#allocation2 + $0x18] sm:$0xff]  ;;  %v1047_v34 = vld [vmem:[#allocation2 + $0x8] sm:$0xff] }
 0x140   : > { %v1051_v32 = vmul.f32 %v1624_v28, %v1045_v30  ;;  %v1052_v35 = vmul.f32 %v1624_v28, %v1046_v33  ;;  %v1053_v36 = vmul.f32 %v1624_v28, %v1047_v34 }
 0x141   : > { %v1056_v37 = vadd.f32 %v1625_v29, %v1050_v31 }
 0x142   : > { %v1057_v38 = vadd.f32 %v1625_v29, %v1051_v32  ;;  %v1058_v39 = vadd.f32 %v1625_v29, %v1052_v35  ;;  %v1059_v40 = vadd.f32 %v1625_v29, %v1053_v36 }
 0x143   : > { %vm1060_vm3 = vcmp.ge.f32.partialorder %v1056_v37, 0.0  ;;  %v1064_v41 = vmul.f32 0.2, %v1056_v37 }
 0x144   : > { %vm1061_vm4 = vcmp.ge.f32.partialorder %v1057_v38, 0.0  ;;  %v1065_v42 = vmul.f32 0.2, %v1057_v38  ;;  %vm1062_vm5 = vcmp.ge.f32.partialorder %v1058_v39, 0.0  ;;  %v1066_v43 = vmul.f32 0.2, %v1058_v39 }
 0x145   : > { %vm1063_vm6 = vcmp.ge.f32.partialorder %v1059_v40, 0.0  ;;  %v1067_v44 = vmul.f32 0.2, %v1059_v40  ;;  %v1068_v45 = vsel %vm1060_vm3, %v1056_v37, %v1064_v41 }
 0x146   : > { %v1069_v46 = vsel %vm1061_vm4, %v1057_v38, %v1065_v42  ;;  %1072 = vst [vmem:[#allocation6] sm:$0xff] %v1068_v45  ;;  %v1070_v47 = vsel %vm1062_vm5, %v1058_v39, %v1066_v43 }
 0x147   : > { %v1071_v48 = vsel %vm1063_vm6, %v1059_v40, %v1067_v44  ;;  %1073 = vst [vmem:[#allocation6 + $0x8] sm:$0xff] %v1069_v46 }
 0x148   : > { %1074 = vst [vmem:[#allocation6 + $0x10] sm:$0xff] %v1070_v47 }
 0x149   : > { %1075 = vst [vmem:[#allocation6 + $0x18] sm:$0xff] %v1071_v48 }
 0x14a PF: > { %p1591_p8 = scmp.eq.s32.totalorder %s1167_s15, 1  ;;  %s1092_s26 = sshll.u32 %s2046_s3, 4  ;;  %s1093_s26 = int_to_ptr.hbm [resolvable:$true] %s1092_s26 }
 0x14b   : > { %s1683_s27 = smov [#allocation6]   ;;  %s1684_s29 = smov 128  }
 0x14c   : > { %s1090_s28 = sshll.u32 %s1683_s27, 4  ;;  %s1685_s30 = smov 8   ;;  %s1091_s28 = int_to_ptr.vmem [resolvable:$true] %s1090_s28 }
 0x14d   : > { %1584 = dma.vmem_to_hbm [thread:$0]  (%p1591_p8), %s1091_s28, 512, %s1093_s26, [#allocation7], %s1684_s29, %s1684_s29, %s1685_s30  }
 0x14e PF: > { %p1592_p9 = scmp.ge.s32.totalorder %s1680_s14, 2  ;;  %p1593_p10 = scmp.eq.s32.totalorder %s1168_s16, 1 }
 0x150   : > { %p1588_p11 = pnand %p1593_p10, %p1592_p9 }
 0x152   : > { %p1589_p12 = pneg %p1588_p11 }
 0x154   : > { %1667 = dma.done.wait (%p1589_p12), [#allocation7], 512  }
 0x155   : > { %1669 = vsyncadd (%p1589_p12), [#allocation7], 4294966784  ;;  %s16_s14 = sadd.s32 1, %s1680_s14   ;;  %s2047_s12 = smov %s1676_s13 }
 0x156   : > { %p13_p13 = scmp.ge.s32.totalorder %s16_s14, 4   ;;  %s2048_s13 = smov %s2050_s17 }
 0x158   :  { %15 = sbr.rel (!%p13_p13) target bundleno = 3 (0x3), region = 85 }
 0x15d   :  { %1114 = vsyncpa [#allocation7], 1 }
 0x15e   :  { %1116 = vsyncpa [#allocation7 + $0x1], 1 }

</bundles_post_ra>
